<compile_context>
chip_gen: v5e
topology: v5e:2x2
jax: 0.10.0
libtpu: 0.0.40
codegen_flags: <defaults>
</compile_context>

<pallas_src>
import jax
import jax.numpy as jnp
from jax.experimental import pallas as pl
from jax.experimental.pallas import tpu as pltpu  # noqa: F401  (kept per harness convention)


# ----------------------------- Pallas kernels ------------------------------ #

def _conv_matmul_kernel(w_ref, p_ref, b_ref, o_ref):
    # w_ref: (C_out, K) bf16, p_ref: (K, M) bf16, b_ref: (C_out, 1) f32
    acc = jnp.dot(w_ref[...], p_ref[...], preferred_element_type=jnp.float32)
    acc = acc + b_ref[...]                       # lane-broadcast bias
    o_ref[...] = jnp.maximum(acc, 0.0).astype(o_ref.dtype)


def conv_matmul(wm, patches, bias):
    """relu(wm @ patches + bias); wm:(C_out,K) bf16, patches:(K,M) bf16 -> (C_out,M) bf16.

    Single grid-less invocation: all operands live fully in VMEM (<< limits on
    v5e/v6e/v7x), output is lane-dense along M = B*OH*OW.
    """
    c_out, k = wm.shape
    k2, m = patches.shape
    assert k == k2
    return pl.pallas_call(
        _conv_matmul_kernel,
        out_shape=jax.ShapeDtypeStruct((c_out, m), jnp.bfloat16),
    )(wm, patches, bias)


def _fc_fused_kernel(x_ref, w1_ref, b1_ref, w2_ref, b2_ref, o_ref):
    # x:(B,K1) bf16, w1:(K1,H) bf16, b1:(1,H) f32, w2:(H,A) bf16, b2:(1,A) f32
    h = jnp.dot(x_ref[...], w1_ref[...], preferred_element_type=jnp.float32)
    h = jnp.maximum(h + b1_ref[...], 0.0)                       # (B, H) f32, stays in VMEM
    out = jnp.dot(h.astype(jnp.bfloat16), w2_ref[...],
                  preferred_element_type=jnp.float32) + b2_ref[...]
    o_ref[...] = out


def fc_fused(x, w1t, b1, w2t, b2):
    """relu(x @ w1t + b1) @ w2t + b2, fused in one kernel. Returns (B, A) f32."""
    B = x.shape[0]
    A = w2t.shape[1]
    return pl.pallas_call(
        _fc_fused_kernel,
        out_shape=jax.ShapeDtypeStruct((B, A), jnp.float32),
    )(x, w1t, b1, w2t, b2)


# ------------------------------- JAX glue ---------------------------------- #

def _im2col_cnhw(x, k, s):
    """x: (C, B, H, W) -> patches (C*k*k, B*OH*OW); K ordering (c, kh, kw)."""
    C, B, H, W = x.shape
    OH = (H - k) // s + 1
    OW = (W - k) // s + 1
    cols = []
    for kh in range(k):
        for kw in range(k):
            cols.append(x[:, :, kh:kh + s * (OH - 1) + 1:s,
                          kw:kw + s * (OW - 1) + 1:s])          # (C, B, OH, OW)
    p = jnp.stack(cols, axis=1)                                 # (C, k*k, B, OH, OW)
    return p.reshape(C * k * k, B * OH * OW), OH, OW


def conv_relu(x_cnhw, wm, bias, *, k, stride):
    """One Conv2d+ReLU layer. x_cnhw:(C_in,B,H,W) bf16 -> (C_out,B,OH,OW) bf16."""
    _, B, _, _ = x_cnhw.shape
    patches, OH, OW = _im2col_cnhw(x_cnhw, k, stride)
    y = conv_matmul(wm, patches, bias)                          # (C_out, B*OH*OW)
    return y.reshape(-1, B, OH, OW)                             # free reshape (CNHW)


def prepare_params(params):
    """One-time host-side reshape/cast of the PyTorch-style parameters."""
    def wmat(w):                                   # (C_out,C_in,k,k) -> (C_out, C_in*k*k)
        return w.reshape(w.shape[0], -1).astype(jnp.bfloat16)

    def col_bias(b):                               # (C_out,) -> (C_out, 1) f32
        return b.reshape(-1, 1).astype(jnp.float32)

    return {
        "w1": wmat(params["w1"]), "b1": col_bias(params["b1"]),
        "w2": wmat(params["w2"]), "b2": col_bias(params["b2"]),
        "w3": wmat(params["w3"]), "b3": col_bias(params["b3"]),
        "wf1": params["wf1"].T.astype(jnp.bfloat16),            # (3872, 512)
        "bf1": params["bf1"].reshape(1, -1).astype(jnp.float32),
        "wf2": params["wf2"].T.astype(jnp.bfloat16),            # (512, A)
        "bf2": params["bf2"].reshape(1, -1).astype(jnp.float32),
    }


@jax.jit
def qnetwork_cnn_forward(x_nchw, p):
    """Exact forward of QNetworkCNN: 3x(conv+relu) -> flatten -> fc+relu -> fc."""
    B = x_nchw.shape[0]
    x = jnp.transpose(x_nchw, (1, 0, 2, 3)).astype(jnp.bfloat16)   # NCHW -> CNHW
    x = conv_relu(x, p["w1"], p["b1"], k=8, stride=3)
    x = conv_relu(x, p["w2"], p["b2"], k=4, stride=2)
    x = conv_relu(x, p["w3"], p["b3"], k=2, stride=1)
    # CNHW -> NCHW flatten, matching torch's x.view(B, -1) ordering (C,H,W).
    x_flat = jnp.transpose(x, (1, 0, 2, 3)).reshape(B, -1)          # (B, 3872) bf16
    return fc_fused(x_flat, p["wf1"], p["bf1"], p["wf2"], p["bf2"])


def _reference_forward(x, params):
    """Pure-JAX f32 reference (lax conv) for a correctness cross-check."""
    dn = ("NCHW", "OIHW", "NCHW")

    def conv(x, w, b, s):
        y = jax.lax.conv_general_dilated(x, w, (s, s), "VALID",
                                         dimension_numbers=dn)
        return jax.nn.relu(y + b.reshape(1, -1, 1, 1))

    x = conv(x, params["w1"], params["b1"], 3)
    x = conv(x, params["w2"], params["b2"], 2)
    x = conv(x, params["w3"], params["b3"], 1)
    x = x.reshape(x.shape[0], -1)
    x = jax.nn.relu(x @ params["wf1"].T + params["bf1"])
    return x @ params["wf2"].T + params["bf2"]


# --------------------------------- main ------------------------------------ #

if __name__ == "__main__":
    action_dim = 4
    key = jax.random.PRNGKey(0)
    keys = jax.random.split(key, 11)

    def u(k, shape, fan_in):   # PyTorch-style uniform(-1/sqrt(fan_in), +1/sqrt(fan_in))
        bound = 1.0 / (fan_in ** 0.5)
        return jax.random.uniform(k, shape, jnp.float32, -bound, bound)

    params = {
        "w1": u(keys[0], (8, 1, 8, 8), 1 * 8 * 8),
        "b1": u(keys[1], (8,), 1 * 8 * 8),
        "w2": u(keys[2], (16, 8, 4, 4), 8 * 4 * 4),
        "b2": u(keys[3], (16,), 8 * 4 * 4),
        "w3": u(keys[4], (32, 16, 2, 2), 16 * 2 * 2),
        "b3": u(keys[5], (32,), 16 * 2 * 2),
        "wf1": u(keys[6], (512, 3872), 3872),     # fc_input_size = 32*11*11
        "bf1": u(keys[7], (512,), 3872),
        "wf2": u(keys[8], (action_dim, 512), 512),
        "bf2": u(keys[9], (action_dim,), 512),
    }

    # Spatial shape is fixed by the module (fc_input_size computed from 84x84);
    # only the batch is small.
    x = jax.random.normal(keys[10], (2, 1, 84, 84), jnp.float32)

    prepared = prepare_params(params)
    out = jax.block_until_ready(qnetwork_cnn_forward(x, prepared))
    assert out.shape == (2, action_dim)

    ref = jax.block_until_ready(_reference_forward(x, params))
    # bf16 MXU operands vs. f32 reference -> loosened tolerance (still catches
    # any ordering/semantics bug, which would produce O(0.1+) errors).
    assert jnp.allclose(out, ref, rtol=3e-2, atol=3e-2), \
        float(jnp.max(jnp.abs(out - ref)))

    print("KERNEL_OK")
</pallas_src>

<mosaic_0001>
module attributes {stable_mosaic.version = 11 : i64} {
  func.func @_conv_matmul_kernel(%arg0: memref<8x64xbf16, #tpu.memory_space<vmem>>, %arg1: memref<64x1352xbf16, #tpu.memory_space<vmem>>, %arg2: memref<8x1xf32, #tpu.memory_space<vmem>>, %arg3: memref<8x1352xbf16, #tpu.memory_space<vmem>>) attributes {dimension_semantics = [], scalar_prefetch = 0 : i64, scratch_operands = 0 : i64, tpu.core_type = #tpu.core_type<tc>} {
    %c0 = arith.constant 0 : index
    %c0_0 = arith.constant 0 : index
    %0 = vector.load %arg0[%c0, %c0_0] : memref<8x64xbf16, #tpu.memory_space<vmem>>, vector<8x64xbf16>
    %c0_1 = arith.constant 0 : index
    %c0_2 = arith.constant 0 : index
    %1 = vector.load %arg1[%c0_1, %c0_2] : memref<64x1352xbf16, #tpu.memory_space<vmem>>, vector<64x1352xbf16>
    %cst = arith.constant dense<0.000000e+00> : vector<8x1352xf32>
    %2 = tpu.matmul %0, %1, %cst {dimension_numbers = #tpu.dot_dimension_numbers<[1], [0], [0], [1], [0, 0, 1, 1], [], []>} : vector<8x64xbf16>, vector<64x1352xbf16>, vector<8x1352xf32> -> vector<8x1352xf32>
    %c0_3 = arith.constant 0 : index
    %c0_4 = arith.constant 0 : index
    %3 = vector.load %arg2[%c0_3, %c0_4] : memref<8x1xf32, #tpu.memory_space<vmem>>, vector<8x1xf32>
    %4 = vector.broadcast %3 : vector<8x1xf32> to vector<8x1352xf32>
    %5 = arith.addf %2, %4 : vector<8x1352xf32>
    %cst_5 = arith.constant 0.000000e+00 : f32
    %6 = vector.broadcast %cst_5 : f32 to vector<8x1352xf32>
    %7 = arith.maximumf %5, %6 : vector<8x1352xf32>
    %8 = arith.truncf %7 : vector<8x1352xf32> to vector<8x1352xbf16>
    %c0_6 = arith.constant 0 : index
    %c0_7 = arith.constant 0 : index
    %9 = vector.load %arg3[%c0_6, %c0_7] : memref<8x1352xbf16, #tpu.memory_space<vmem>>, vector<8x1352xbf16>
    tpu.vector_store %arg3[%c0_6, %c0_7], %8 {strides = array<i32>} : memref<8x1352xbf16, #tpu.memory_space<vmem>>, vector<8x1352xbf16>,
    return
  }
}

module attributes {stable_mosaic.version = 11 : i64} {
  func.func @_conv_matmul_kernel(%arg0: memref<16x128xbf16, #tpu.memory_space<vmem>>, %arg1: memref<128x288xbf16, #tpu.memory_space<vmem>>, %arg2: memref<16x1xf32, #tpu.memory_space<vmem>>, %arg3: memref<16x288xbf16, #tpu.memory_space<vmem>>) attributes {dimension_semantics = [], scalar_prefetch = 0 : i64, scratch_operands = 0 : i64, tpu.core_type = #tpu.core_type<tc>} {
    %c0 = arith.constant 0 : index
    %c0_0 = arith.constant 0 : index
    %0 = vector.load %arg0[%c0, %c0_0] : memref<16x128xbf16, #tpu.memory_space<vmem>>, vector<16x128xbf16>
    %c0_1 = arith.constant 0 : index
    %c0_2 = arith.constant 0 : index
    %1 = vector.load %arg1[%c0_1, %c0_2] : memref<128x288xbf16, #tpu.memory_space<vmem>>, vector<128x288xbf16>
    %cst = arith.constant dense<0.000000e+00> : vector<16x288xf32>
    %2 = tpu.matmul %0, %1, %cst {dimension_numbers = #tpu.dot_dimension_numbers<[1], [0], [0], [1], [0, 0, 1, 1], [], []>} : vector<16x128xbf16>, vector<128x288xbf16>, vector<16x288xf32> -> vector<16x288xf32>
    %c0_3 = arith.constant 0 : index
    %c0_4 = arith.constant 0 : index
    %3 = vector.load %arg2[%c0_3, %c0_4] : memref<16x1xf32, #tpu.memory_space<vmem>>, vector<16x1xf32>
    %4 = vector.broadcast %3 : vector<16x1xf32> to vector<16x288xf32>
    %5 = arith.addf %2, %4 : vector<16x288xf32>
    %cst_5 = arith.constant 0.000000e+00 : f32
    %6 = vector.broadcast %cst_5 : f32 to vector<16x288xf32>
    %7 = arith.maximumf %5, %6 : vector<16x288xf32>
    %8 = arith.truncf %7 : vector<16x288xf32> to vector<16x288xbf16>
    %c0_6 = arith.constant 0 : index
    %c0_7 = arith.constant 0 : index
    %9 = vector.load %arg3[%c0_6, %c0_7] : memref<16x288xbf16, #tpu.memory_space<vmem>>, vector<16x288xbf16>
    tpu.vector_store %arg3[%c0_6, %c0_7], %8 {strides = array<i32>} : memref<16x288xbf16, #tpu.memory_space<vmem>>, vector<16x288xbf16>,
    return
  }
}

module attributes {stable_mosaic.version = 11 : i64} {
  func.func @_conv_matmul_kernel(%arg0: memref<32x64xbf16, #tpu.memory_space<vmem>>, %arg1: memref<64x242xbf16, #tpu.memory_space<vmem>>, %arg2: memref<32x1xf32, #tpu.memory_space<vmem>>, %arg3: memref<32x242xbf16, #tpu.memory_space<vmem>>) attributes {dimension_semantics = [], scalar_prefetch = 0 : i64, scratch_operands = 0 : i64, tpu.core_type = #tpu.core_type<tc>} {
    %c0 = arith.constant 0 : index
    %c0_0 = arith.constant 0 : index
    %0 = vector.load %arg0[%c0, %c0_0] : memref<32x64xbf16, #tpu.memory_space<vmem>>, vector<32x64xbf16>
    %c0_1 = arith.constant 0 : index
    %c0_2 = arith.constant 0 : index
    %1 = vector.load %arg1[%c0_1, %c0_2] : memref<64x242xbf16, #tpu.memory_space<vmem>>, vector<64x242xbf16>
    %cst = arith.constant dense<0.000000e+00> : vector<32x242xf32>
    %2 = tpu.matmul %0, %1, %cst {dimension_numbers = #tpu.dot_dimension_numbers<[1], [0], [0], [1], [0, 0, 1, 1], [], []>} : vector<32x64xbf16>, vector<64x242xbf16>, vector<32x242xf32> -> vector<32x242xf32>
    %c0_3 = arith.constant 0 : index
    %c0_4 = arith.constant 0 : index
    %3 = vector.load %arg2[%c0_3, %c0_4] : memref<32x1xf32, #tpu.memory_space<vmem>>, vector<32x1xf32>
    %4 = vector.broadcast %3 : vector<32x1xf32> to vector<32x242xf32>
    %5 = arith.addf %2, %4 : vector<32x242xf32>
    %cst_5 = arith.constant 0.000000e+00 : f32
    %6 = vector.broadcast %cst_5 : f32 to vector<32x242xf32>
    %7 = arith.maximumf %5, %6 : vector<32x242xf32>
    %8 = arith.truncf %7 : vector<32x242xf32> to vector<32x242xbf16>
    %c0_6 = arith.constant 0 : index
    %c0_7 = arith.constant 0 : index
    %9 = vector.load %arg3[%c0_6, %c0_7] : memref<32x242xbf16, #tpu.memory_space<vmem>>, vector<32x242xbf16>
    tpu.vector_store %arg3[%c0_6, %c0_7], %8 {strides = array<i32>} : memref<32x242xbf16, #tpu.memory_space<vmem>>, vector<32x242xbf16>,
    return
  }
}

module attributes {stable_mosaic.version = 11 : i64} {
  func.func @_fc_fused_kernel(%arg0: memref<2x3872xbf16, #tpu.memory_space<vmem>>, %arg1: memref<3872x512xbf16, #tpu.memory_space<vmem>>, %arg2: memref<1x512xf32, #tpu.memory_space<vmem>>, %arg3: memref<512x4xbf16, #tpu.memory_space<vmem>>, %arg4: memref<1x4xf32, #tpu.memory_space<vmem>>, %arg5: memref<2x4xf32, #tpu.memory_space<vmem>>) attributes {dimension_semantics = [], scalar_prefetch = 0 : i64, scratch_operands = 0 : i64, tpu.core_type = #tpu.core_type<tc>} {
    %c0 = arith.constant 0 : index
    %c0_0 = arith.constant 0 : index
    %0 = vector.load %arg0[%c0, %c0_0] : memref<2x3872xbf16, #tpu.memory_space<vmem>>, vector<2x3872xbf16>
    %c0_1 = arith.constant 0 : index
    %c0_2 = arith.constant 0 : index
    %1 = vector.load %arg1[%c0_1, %c0_2] : memref<3872x512xbf16, #tpu.memory_space<vmem>>, vector<3872x512xbf16>
    %cst = arith.constant dense<0.000000e+00> : vector<2x512xf32>
    %2 = tpu.matmul %0, %1, %cst {dimension_numbers = #tpu.dot_dimension_numbers<[1], [0], [0], [1], [0, 0, 1, 1], [], []>} : vector<2x3872xbf16>, vector<3872x512xbf16>, vector<2x512xf32> -> vector<2x512xf32>
    %c0_3 = arith.constant 0 : index
    %c0_4 = arith.constant 0 : index
    %3 = vector.load %arg2[%c0_3, %c0_4] : memref<1x512xf32, #tpu.memory_space<vmem>>, vector<1x512xf32>
    %4 = vector.broadcast %3 : vector<1x512xf32> to vector<2x512xf32>
    %5 = arith.addf %2, %4 : vector<2x512xf32>
    %cst_5 = arith.constant 0.000000e+00 : f32
    %6 = vector.broadcast %cst_5 : f32 to vector<2x512xf32>
    %7 = arith.maximumf %5, %6 : vector<2x512xf32>
    %8 = arith.truncf %7 : vector<2x512xf32> to vector<2x512xbf16>
    %c0_6 = arith.constant 0 : index
    %c0_7 = arith.constant 0 : index
    %9 = vector.load %arg3[%c0_6, %c0_7] : memref<512x4xbf16, #tpu.memory_space<vmem>>, vector<512x4xbf16>
    %cst_8 = arith.constant dense<0.000000e+00> : vector<2x4xf32>
    %10 = tpu.matmul %8, %9, %cst_8 {dimension_numbers = #tpu.dot_dimension_numbers<[1], [0], [0], [1], [0, 0, 1, 1], [], []>} : vector<2x512xbf16>, vector<512x4xbf16>, vector<2x4xf32> -> vector<2x4xf32>
    %c0_9 = arith.constant 0 : index
    %c0_10 = arith.constant 0 : index
    %11 = vector.load %arg4[%c0_9, %c0_10] : memref<1x4xf32, #tpu.memory_space<vmem>>, vector<1x4xf32>
    %12 = vector.broadcast %11 : vector<1x4xf32> to vector<2x4xf32>
    %13 = arith.addf %10, %12 : vector<2x4xf32>
    %c0_11 = arith.constant 0 : index
    %c0_12 = arith.constant 0 : index
    %14 = vector.load %arg5[%c0_11, %c0_12] : memref<2x4xf32, #tpu.memory_space<vmem>>, vector<2x4xf32>
    tpu.vector_store %arg5[%c0_11, %c0_12], %13 {strides = array<i32>} : memref<2x4xf32, #tpu.memory_space<vmem>>, vector<2x4xf32>,
    return
  }
}

</mosaic_0001>

<bundles_post_ra>
// kernel: qnetwork_cnn_forward.4
= control target key start
LH: loop header
LB: loop body
LE: loop exit
PB: predicated region body
PF: predicated region fallthrough
CT: control target
= control target key end

     0   :  { %vm294_vm0 = vcmask 523264   ;;  %vm463_vm1 = vcmask 584704   ;;  %s1035_s1 = inlined_call_operand.vmem [shape: bf16[64,1352], index: 1, kind: input, shape index: {}]   ;;  %s1036_s0 = inlined_call_operand.vmem [shape: bf16[8,64], index: 0, kind: input, shape index: {}]   ;;  %s1037_s2 = inlined_call_operand.vmem [shape: f32[8,1], index: 2, kind: input, shape index: {}]   ;;  %s1038_s3 = inlined_call_operand.vmem [shape: bf16[8,1352], index: 3, kind: output, shape index: {}]  }
   0x1   :  { %v603_v0 = vld [vmem:[%s1035_s1 + $0x108] sm:$0xf]  ;;  %v694_v1 = vld [vmem:[%s1035_s1 + $0x130] sm:$0xf0]  ;;  %v689_v2 = vld [vmem:[%s1035_s1 + $0x10c] sm:$0xf] }
   0x2   :  { %v604_v3 = vor.u32 %v694_v1, %v603_v0  ;;  %v605_v4 = vld [vmem:[%s1035_s1 + $0x134] sm:$0xf0]  ;;  %v611_v5 = vld [vmem:[%s1035_s1 + $0x110] sm:$0xf]  ;;  %v695_v6 = vld [vmem:[%s1035_s1 + $0x138] sm:$0xf0] }
   0x3   :  { %v608_v7 = vor.u32 %v689_v2, %v605_v4  ;;  %v612_v8 = vor.u32 %v695_v6, %v611_v5  ;;  %v690_v9 = vld [vmem:[%s1035_s1 + $0x114] sm:$0xf]  ;;  %v613_v10 = vld [vmem:[%s1035_s1 + $0x13c] sm:$0xf0]  ;;  %v559_v11 = vld [vmem:[%s1035_s1 + $0xb0] sm:$0xf] }
   0x4   :  { %302 = vmatpush.bf16.msra.mxu0 %v604_v3  ;;  %v616_v12 = vor.u32 %v690_v9, %v613_v10  ;;  %v683_v13 = vld [vmem:[%s1035_s1 + $0xd8] sm:$0xf0]  ;;  %v678_v14 = vld [vmem:[%s1035_s1 + $0xb4] sm:$0xf]  ;;  %v561_v15 = vld [vmem:[%s1035_s1 + $0xdc] sm:$0xf0] }
   0x5   :  { %315 = vmatpush.bf16.msra.mxu1 %v608_v7  ;;  %328 = vmatpush.bf16.msra.mxu2 %v612_v8  ;;  %v560_v16 = vor.u32 %v683_v13, %v559_v11  ;;  %v564_v17 = vor.u32 %v678_v14, %v561_v15  ;;  %v567_v18 = vld [vmem:[%s1035_s1 + $0xb8] sm:$0xf]  ;;  %v684_v19 = vld [vmem:[%s1035_s1 + $0xe0] sm:$0xf0]  ;;  %v679_v20 = vld [vmem:[%s1035_s1 + $0xbc] sm:$0xf] }
   0x6   :  { %341 = vmatpush.bf16.msra.mxu3 %v616_v12  ;;  %v568_v21 = vor.u32 %v684_v19, %v567_v18  ;;  %v569_v22 = vld [vmem:[%s1035_s1 + $0xe4] sm:$0xf0]  ;;  %v515_v23 = vld [vmem:[%s1035_s1 + $0x58] sm:$0xf]  ;;  %v672_v24 = vld [vmem:[%s1035_s1 + $0x80] sm:$0xf0] }
   0x7   :  { %v572_v25 = vor.u32 %v679_v20, %v569_v22  ;;  %v667_v26 = vld [vmem:[%s1035_s1 + $0x5c] sm:$0xf]  ;;  %v517_v27 = vld [vmem:[%s1035_s1 + $0x84] sm:$0xf0]  ;;  %v523_v28 = vld [vmem:[%s1035_s1 + $0x60] sm:$0xf]  ;;  %v516_v29 = vor.u32 %v672_v24, %v515_v23 }
   0x8   :  { %303 = vmatpush.bf16.msra.mxu0 %v560_v16  ;;  %v673_v30 = vld [vmem:[%s1035_s1 + $0x88] sm:$0xf0]  ;;  %v668_v31 = vld [vmem:[%s1035_s1 + $0x64] sm:$0xf]  ;;  %v525_v32 = vld [vmem:[%s1035_s1 + $0x8c] sm:$0xf0]  ;;  %v520_v33 = vor.u32 %v667_v26, %v517_v27 }
   0x9   :  { %316 = vmatpush.bf16.msra.mxu1 %v564_v17  ;;  %329 = vmatpush.bf16.msra.mxu2 %v568_v21  ;;  %v524_v34 = vor.u32 %v673_v30, %v523_v28  ;;  %v471_v35 = vld [vmem:[%s1035_s1] sm:$0xf]  ;;  %v661_v36 = vld [vmem:[%s1035_s1 + $0x28] sm:$0xf0]  ;;  %v656_v37 = vld [vmem:[%s1035_s1 + $0x4] sm:$0xf]  ;;  %v528_v38 = vor.u32 %v668_v31, %v525_v32 }
   0xa   :  { %342 = vmatpush.bf16.msra.mxu3 %v572_v25  ;;  %v473_v39 = vld [vmem:[%s1035_s1 + $0x2c] sm:$0xf0]  ;;  %v479_v40 = vld [vmem:[%s1035_s1 + $0x8] sm:$0xf]  ;;  %v662_v41 = vld [vmem:[%s1035_s1 + $0x30] sm:$0xf0]  ;;  %v472_v44 = vor.u32 %v661_v36, %v471_v35 }
   0xb   :  { %v657_v42 = vld [vmem:[%s1035_s1 + $0xc] sm:$0xf]  ;;  %v481_v43 = vld [vmem:[%s1035_s1 + $0x34] sm:$0xf0]  ;;  %v627_v45 = vld [vmem:[%s1035_s1 + $0x120] sm:$0xf]  ;;  %v476_v47 = vor.u32 %v656_v37, %v473_v39  ;;  %v480_v48 = vor.u32 %v662_v41, %v479_v40 }
   0xc   :  { %304 = vmatpush.bf16.msra.mxu0 %v516_v29  ;;  %v697_v46 = vld [vmem:[%s1035_s1 + $0x148] sm:$0xf0]  ;;  %v691_v49 = vld [vmem:[%s1035_s1 + $0x11c] sm:$0xf]  ;;  %v621_v50 = vld [vmem:[%s1035_s1 + $0x144] sm:$0xf0]  ;;  %v484_v51 = vor.u32 %v657_v42, %v481_v43 }
   0xd   :  { %317 = vmatpush.bf16.msra.mxu1 %v520_v33  ;;  %330 = vmatpush.bf16.msra.mxu2 %v524_v34  ;;  %v628_v52 = vor.u32 %v697_v46, %v627_v45  ;;  %v619_v53 = vld [vmem:[%s1035_s1 + $0x118] sm:$0xf]  ;;  %v696_v54 = vld [vmem:[%s1035_s1 + $0x140] sm:$0xf0]  ;;  %v624_v56 = vor.u32 %v691_v49, %v621_v50  ;;  %v629_v57 = vld [vmem:[%s1035_s1 + $0x14c] sm:$0xf0] }
   0xe   :  { %343 = vmatpush.bf16.msra.mxu3 %v528_v38  ;;  %v692_v55 = vld [vmem:[%s1035_s1 + $0x124] sm:$0xf]  ;;  %v583_v58 = vld [vmem:[%s1035_s1 + $0xc8] sm:$0xf]  ;;  %v686_v59 = vld [vmem:[%s1035_s1 + $0xf0] sm:$0xf0]  ;;  %v620_v63 = vor.u32 %v696_v54, %v619_v53 }
   0xf   :  { %v852_v60 = vld [vmem:[%s1036_s0] sm:$0xf]  ;;  %v680_v61 = vld [vmem:[%s1035_s1 + $0xc4] sm:$0xf]  ;;  %v577_v62 = vld [vmem:[%s1035_s1 + $0xec] sm:$0xf0]  ;;  %v632_v0 = vor.u32 %v692_v55, %v629_v57  ;;  %v584_v1 = vor.u32 %v686_v59, %v583_v58 }
  0x10   :  { %305 = vmatpush.bf16.msra.mxu0 %v472_v44  ;;  %v575_v2 = vld [vmem:[%s1035_s1 + $0xc0] sm:$0xf]  ;;  %v685_v3 = vld [vmem:[%s1035_s1 + $0xe8] sm:$0xf0]  ;;  %v580_v5 = vor.u32 %v680_v61, %v577_v62  ;;  %v585_v6 = vld [vmem:[%s1035_s1 + $0xf4] sm:$0xf0] }
  0x11   :  { %318 = vmatpush.bf16.msra.mxu1 %v476_v47  ;;  %331 = vmatpush.bf16.msra.mxu2 %v480_v48  ;;  %v681_v4 = vld [vmem:[%s1035_s1 + $0xcc] sm:$0xf]  ;;  %v539_v7 = vld [vmem:[%s1035_s1 + $0x70] sm:$0xf]  ;;  %v675_v8 = vld [vmem:[%s1035_s1 + $0x98] sm:$0xf0]  ;;  %v576_v11 = vor.u32 %v685_v3, %v575_v2 }
  0x12   :  { %344 = vmatpush.bf16.msra.mxu3 %v484_v51  ;;  %v669_v9 = vld [vmem:[%s1035_s1 + $0x6c] sm:$0xf]  ;;  %v533_v10 = vld [vmem:[%s1035_s1 + $0x94] sm:$0xf0]  ;;  %v531_v12 = vld [vmem:[%s1035_s1 + $0x68] sm:$0xf]  ;;  %v588_v14 = vor.u32 %v681_v4, %v585_v6  ;;  %v540_v15 = vor.u32 %v675_v8, %v539_v7 }
  0x13   :  { %645 = vmatmul.msk.bf16.vlgmr.msra.gmra.mxu0 %vm294_vm0, %v852_v60  ;;  %v674_v13 = vld [vmem:[%s1035_s1 + $0x90] sm:$0xf0]  ;;  %v541_v17 = vld [vmem:[%s1035_s1 + $0x9c] sm:$0xf0]  ;;  %v536_v19 = vor.u32 %v669_v9, %v533_v10  ;;  %v495_v20 = vld [vmem:[%s1035_s1 + $0x18] sm:$0xf] }
  0x14   :  { %646 = vmatmul.msk.bf16.vlgmr.msra.gmra.mxu1 %vm294_vm0, %v852_v60  ;;  %647 = vmatmul.msk.bf16.vlgmr.msra.gmra.mxu2 %vm294_vm0, %v852_v60  ;;  %v670_v16 = vld [vmem:[%s1035_s1 + $0x74] sm:$0xf]  ;;  %v64_v18 = vld [vmem:[%s1037_s2] sm:$0xff]  ;;  %v702_v23 = vmov 0   ;;  %v643_v25 = vld [vmem:[%s1035_s1 + $0x130] sm:$0xf]  ;;  %v532_v27 = vor.u32 %v674_v13, %v531_v12 }
  0x15   :  { %380 = vmatpush.bf16.msrb.mxu2 %v628_v52  ;;  %367 = vmatpush.bf16.msrb.mxu1 %v624_v56  ;;  %v664_v21 = vld [vmem:[%s1035_s1 + $0x40] sm:$0xf0]  ;;  %v658_v22 = vld [vmem:[%s1035_s1 + $0x14] sm:$0xf]  ;;  %v489_v24 = vld [vmem:[%s1035_s1 + $0x3c] sm:$0xf0]  ;;  %v544_v30 = vor.u32 %v670_v16, %v541_v17 }
  0x16   :  { %648 = vmatmul.msk.bf16.vlgmr.msra.gmra.mxu3 %vm294_vm0, %v852_v60  ;;  %354 = vmatpush.bf16.msrb.mxu0 %v620_v63  ;;  %v699_v26 = vld [vmem:[%s1035_s1 + $0x158] sm:$0xf0]  ;;  %v693_v28 = vld [vmem:[%s1035_s1 + $0x12c] sm:$0xf]  ;;  %v637_v29 = vld [vmem:[%s1035_s1 + $0x154] sm:$0xf0]  ;;  %v496_v31 = vor.u32 %v664_v21, %v495_v20  ;;  %v492_v35 = vor.u32 %v658_v22, %v489_v24 }
  0x17   :  { %393 = vmatpush.bf16.msrb.mxu3 %v632_v0  ;;  %701 = vset.pattern.permute.xlu0 %v702_v23  ;;  %v487_v32 = vld [vmem:[%s1035_s1 + $0x10] sm:$0xf]  ;;  %v663_v33 = vld [vmem:[%s1035_s1 + $0x38] sm:$0xf0]  ;;  %v497_v36 = vld [vmem:[%s1035_s1 + $0x44] sm:$0xf0]  ;;  %v644_v37 = vor.u32 %v699_v26, %v643_v25  ;;  %v640_v40 = vor.u32 %v693_v28, %v637_v29 }
  0x18   :  { %67 = vperm.xlu0 %701, %v64_v18   ;;  %v659_v34 = vld [vmem:[%s1035_s1 + $0x1c] sm:$0xf]  ;;  %v635_v38 = vld [vmem:[%s1035_s1 + $0x128] sm:$0xf]  ;;  %v698_v39 = vld [vmem:[%s1035_s1 + $0x150] sm:$0xf0]  ;;  %v488_v43 = vor.u32 %v663_v33, %v487_v32 }
  0x19   :  { %381 = vmatpush.bf16.msrb.mxu2 %v584_v1  ;;  %368 = vmatpush.bf16.msrb.mxu1 %v580_v5  ;;  %v599_v41 = vld [vmem:[%s1035_s1 + $0xd8] sm:$0xf]  ;;  %v688_v42 = vld [vmem:[%s1035_s1 + $0x100] sm:$0xf0]  ;;  %v500_v44 = vor.u32 %v659_v34, %v497_v36  ;;  %v636_v45 = vor.u32 %v698_v39, %v635_v38  ;;  %v591_v46 = vld [vmem:[%s1035_s1 + $0xd0] sm:$0xf] }
  0x1a   :  { %355 = vmatpush.bf16.msrb.mxu0 %v576_v11  ;;  %v600_v47 = vor.u32 %v688_v42, %v599_v41  ;;  %v687_v48 = vld [vmem:[%s1035_s1 + $0xf8] sm:$0xf0]  ;;  %v682_v49 = vld [vmem:[%s1035_s1 + $0xd4] sm:$0xf]  ;;  %v593_v50 = vld [vmem:[%s1035_s1 + $0xfc] sm:$0xf0] }
  0x1b   :  { %394 = vmatpush.bf16.msrb.mxu3 %v588_v14  ;;  %v555_v51 = vld [vmem:[%s1035_s1 + $0x80] sm:$0xf]  ;;  %v677_v52 = vld [vmem:[%s1035_s1 + $0xa8] sm:$0xf0]  ;;  %v592_v53 = vor.u32 %v687_v48, %v591_v46  ;;  %v596_v54 = vor.u32 %v682_v49, %v593_v50  ;;  %v547_v55 = vld [vmem:[%s1035_s1 + $0x78] sm:$0xf] }
  0x1c   :  { %v556_v56 = vor.u32 %v677_v52, %v555_v51  ;;  %v676_v57 = vld [vmem:[%s1035_s1 + $0xa0] sm:$0xf0]  ;;  %v671_v58 = vld [vmem:[%s1035_s1 + $0x7c] sm:$0xf]  ;;  %v549_v59 = vld [vmem:[%s1035_s1 + $0xa4] sm:$0xf0] }
  0x1d   :  { %382 = vmatpush.bf16.msrb.mxu2 %v540_v15  ;;  %369 = vmatpush.bf16.msrb.mxu1 %v536_v19  ;;  %v511_v61 = vld [vmem:[%s1035_s1 + $0x28] sm:$0xf]  ;;  %v666_v62 = vld [vmem:[%s1035_s1 + $0x50] sm:$0xf0]  ;;  %v548_v63 = vor.u32 %v676_v57, %v547_v55  ;;  %v552_v0 = vor.u32 %v671_v58, %v549_v59  ;;  %v503_v1 = vld [vmem:[%s1035_s1 + $0x20] sm:$0xf] }
  0x1e   :  { %356 = vmatpush.bf16.msrb.mxu0 %v532_v27  ;;  %v512_v2 = vor.u32 %v666_v62, %v511_v61  ;;  %v665_v3 = vld [vmem:[%s1035_s1 + $0x48] sm:$0xf0]  ;;  %v660_v4 = vld [vmem:[%s1035_s1 + $0x24] sm:$0xf]  ;;  %v505_v5 = vld [vmem:[%s1035_s1 + $0x4c] sm:$0xf0] }
  0x1f   :  { %395 = vmatpush.bf16.msrb.mxu3 %v544_v30  ;;  %v504_v6 = vor.u32 %v665_v3, %v503_v1  ;;  %v508_v7 = vor.u32 %v660_v4, %v505_v5 }
  0x21   :  { %383 = vmatpush.bf16.msrb.mxu2 %v496_v31  ;;  %370 = vmatpush.bf16.msrb.mxu1 %v492_v35 }
  0x22   :  { %357 = vmatpush.bf16.msrb.mxu0 %v488_v43 }
  0x23   :  { %396 = vmatpush.bf16.msrb.mxu3 %v500_v44 }
  0x24   :  { %650 = vmatmul.msk.bf16.vlgmr.msrb.gmra.mxu1 %vm294_vm0, %v852_v60  ;;  %651 = vmatmul.msk.bf16.vlgmr.msrb.gmra.mxu2 %vm294_vm0, %v852_v60 }
  0x25   :  { %432 = vmatpush.bf16.msra.mxu2 %v644_v37  ;;  %419 = vmatpush.bf16.msra.mxu1 %v640_v40 }
  0x26   :  { %406 = vmatpush.bf16.msra.mxu0 %v636_v45  ;;  %652 = vmatmul.msk.bf16.vlgmr.msrb.gmra.mxu3 %vm294_vm0, %v852_v60 }
  0x27   :  { %649 = vmatmul.msk.bf16.vlgmr.msrb.gmra.mxu0 %vm294_vm0, %v852_v60 }
  0x29   :  { %433 = vmatpush.bf16.msra.mxu2 %v600_v47  ;;  %420 = vmatpush.bf16.msra.mxu1 %v596_v54 }
  0x2a   :  { %407 = vmatpush.bf16.msra.mxu0 %v592_v53 }
  0x2d   :  { %434 = vmatpush.bf16.msra.mxu2 %v556_v56  ;;  %421 = vmatpush.bf16.msra.mxu1 %v552_v0 }
  0x2e   :  { %408 = vmatpush.bf16.msra.mxu0 %v548_v63 }
  0x31   :  { %435 = vmatpush.bf16.msra.mxu2 %v512_v2  ;;  %422 = vmatpush.bf16.msra.mxu1 %v508_v7 }
  0x32   :  { %409 = vmatpush.bf16.msra.mxu0 %v504_v6 }
  0x34   :  { %654 = vmatmul.msk.bf16.vlgmr.msra.gmra.mxu1 %vm294_vm0, %v852_v60  ;;  %655 = vmatmul.msk.bf16.vlgmr.msra.gmra.mxu2 %vm294_vm0, %v852_v60 }
  0x37   :  { %653 = vmatmul.msk.bf16.vlgmr.msra.gmra.mxu0 %vm294_vm0, %v852_v60 }
  0x8a   :  { %v68_v8 = vpop.permute.xlu0 %67 }
  0x90   :  { %v307_v9 = vpop.f32.mrf.mxu0 }
  0x91   :  { %v320_v10 = vpop.f32.mrf.mxu1  ;;  %v308_v11 = vadd.f32 %v307_v9, %v68_v8 }
  0x92   :  { %v321_v12 = vadd.f32 %v320_v10, %v68_v8 }
  0x93   :  { %v441_v13 = vmax.f32 %v308_v11, 0.0 }
  0x94   :  { %v442_v14 = vmax.f32 %v321_v12, 0.0 }
  0x96   :  { %v452_v15 = vpack.c.bf16 %v442_v14, %v441_v13 }
  0x97   :  { %v333_v16 = vpop.f32.mrf.mxu2 }
  0x98   :  { %v334_v17 = vadd.f32 %v333_v16, %v68_v8  ;;  %458 = vst [vmem:[%s1038_s3] sm:$0xff] %v452_v15  ;;  %v309_v19 = vpop.f32.mrf.mxu0 }
  0x99   :  { %v346_v18 = vpop.f32.mrf.mxu3  ;;  %v322_v21 = vpop.f32.mrf.mxu1 }
  0x9a   :  { %v347_v20 = vadd.f32 %v346_v18, %v68_v8  ;;  %v443_v22 = vmax.f32 %v334_v17, 0.0 }
  0x9c   :  { %v444_v60 = vmax.f32 %v347_v20, 0.0 }
  0x9e   :  { %v453_v23 = vpack.c.bf16 %v444_v60, %v443_v22 }
  0x9f   :  { %v335_v24 = vpop.f32.mrf.mxu2 }
  0xa0   :  { %459 = vst [vmem:[%s1038_s3 + $0x8] sm:$0xff] %v453_v23 }
  0xa1   :  { %v348_v25 = vpop.f32.mrf.mxu3  ;;  %v372_v27 = vpop.f32.mrf.mxu1 }
  0xa2   :  { %v373_v29 = vadd.f32 %v372_v27, %v68_v8 }
  0xa4   :  { %v359_v26 = vpop.f32.mrf.mxu0  ;;  %v446_v31 = vmax.f32 %v373_v29, 0.0 }
  0xa5   :  { %v360_v28 = vadd.f32 %v359_v26, %v68_v8 }
  0xa7   :  { %v445_v30 = vmax.f32 %v360_v28, 0.0  ;;  %v385_v33 = vpop.f32.mrf.mxu2 }
  0xa8   :  { %v386_v35 = vadd.f32 %v385_v33, %v68_v8 }
  0xa9   :  { %v454_v32 = vpack.c.bf16 %v446_v31, %v445_v30  ;;  %v398_v34 = vpop.f32.mrf.mxu3  ;;  %v374_v38 = vpop.f32.mrf.mxu1 }
  0xaa   :  { %v399_v36 = vadd.f32 %v398_v34, %v68_v8  ;;  %v447_v39 = vmax.f32 %v386_v35, 0.0 }
  0xab   :  { %460 = vst [vmem:[%s1038_s3 + $0x10] sm:$0xff] %v454_v32 }
  0xac   :  { %v361_v37 = vpop.f32.mrf.mxu0  ;;  %v448_v40 = vmax.f32 %v399_v36, 0.0 }
  0xae   :  { %v455_v41 = vpack.c.bf16 %v448_v40, %v447_v39 }
  0xaf   :  { %v387_v42 = vpop.f32.mrf.mxu2 }
  0xb0   :  { %461 = vst [vmem:[%s1038_s3 + $0x18] sm:$0xff] %v455_v41 }
  0xb1   :  { %v400_v43 = vpop.f32.mrf.mxu3  ;;  %v424_v45 = vpop.f32.mrf.mxu1 }
  0xb2   :  { %v425_v47 = vadd.f32 %v424_v45, %v68_v8 }
  0xb4   :  { %v411_v44 = vpop.f32.mrf.mxu0  ;;  %v450_v49 = vmax.f32 %v425_v47, 0.0 }
  0xb5   :  { %v412_v46 = vadd.f32 %v411_v44, %v68_v8 }
  0xb7   :  { %v449_v48 = vmax.f32 %v412_v46, 0.0  ;;  %v437_v51 = vpop.f32.mrf.mxu2 }
  0xb8   :  { %v438_v52 = vadd.f32 %v437_v51, %v68_v8 }
  0xb9   :  { %v456_v50 = vpack.c.bf16 %v450_v49, %v449_v48  ;;  %v426_v54 = vpop.f32.mrf.mxu1 }
  0xba   :  { %v451_v55 = vmax.f32 %v438_v52, 0.0 }
  0xbb   :  { %462 = vst [vmem:[%s1038_s3 + $0x20] sm:$0xff] %v456_v50 }
  0xbc   :  { %v413_v53 = vpop.f32.mrf.mxu0  ;;  %v457_v56 = vpack.c.bf16 %v451_v55, %v451_v55 }
  0xbe   :  { %464 = vst.msk [vmem:[%s1038_s3 + $0x28] sm:$0xf] %vm463_vm1, %v457_v56 }
  0xbf   :  { %v439_v57 = vpop.f32.mrf.mxu2 }

// kernel: qnetwork_cnn_forward.5
= control target key start
LH: loop header
LB: loop body
LE: loop exit
PB: predicated region body
PF: predicated region fallthrough
CT: control target
= control target key end

     0   :  { %v382_v52 = vmov 0   ;;  %vm247_vm0 = vcmask 257024   ;;  %s568_s1 = inlined_call_operand.vmem [shape: bf16[128,288], index: 1, kind: input, shape index: {}]   ;;  %s569_s2 = inlined_call_operand.vmem [shape: f32[16,1], index: 2, kind: input, shape index: {}]   ;;  %s570_s0 = inlined_call_operand.vmem [shape: bf16[16,128], index: 0, kind: input, shape index: {}]   ;;  %s571_s3 = inlined_call_operand.vmem [shape: bf16[16,288], index: 3, kind: output, shape index: {}]  }
   0x1   :  { %v345_v0 = vld [vmem:[%s568_s1 + $0xa8] sm:$0xf]  ;;  %v378_v1 = vld [vmem:[%s568_s1 + $0xb0] sm:$0xf0]  ;;  %v377_v2 = vld [vmem:[%s568_s1 + $0xac] sm:$0xf]  ;;  %381 = vset.pattern.permute.xlu0 %v382_v52 }
   0x2   :  { %v346_v3 = vor.u32 %v378_v1, %v345_v0  ;;  %v347_v4 = vld [vmem:[%s568_s1 + $0xb4] sm:$0xf0]  ;;  %v353_v5 = vld [vmem:[%s568_s1 + $0xb0] sm:$0xf]  ;;  %v379_v6 = vld [vmem:[%s568_s1 + $0xb8] sm:$0xf0] }
   0x3   :  { %v350_v7 = vor.u32 %v377_v2, %v347_v4  ;;  %v354_v8 = vor.u32 %v379_v6, %v353_v5  ;;  %v333_v9 = vld [vmem:[%s568_s1 + $0x90] sm:$0xf]  ;;  %v375_v10 = vld [vmem:[%s568_s1 + $0x98] sm:$0xf0]  ;;  %v374_v11 = vld [vmem:[%s568_s1 + $0x94] sm:$0xf] }
   0x4   :  { %194 = vmatpush.bf16.msra.mxu0 %v346_v3  ;;  %v334_v12 = vor.u32 %v375_v10, %v333_v9  ;;  %v335_v13 = vld [vmem:[%s568_s1 + $0x9c] sm:$0xf0]  ;;  %v341_v14 = vld [vmem:[%s568_s1 + $0x98] sm:$0xf]  ;;  %v376_v15 = vld [vmem:[%s568_s1 + $0xa0] sm:$0xf0] }
   0x5   :  { %208 = vmatpush.bf16.msra.mxu1 %v350_v7  ;;  %222 = vmatpush.bf16.msra.mxu2 %v354_v8  ;;  %v338_v16 = vor.u32 %v374_v11, %v335_v13  ;;  %v342_v17 = vor.u32 %v376_v15, %v341_v14  ;;  %v321_v18 = vld [vmem:[%s568_s1 + $0x78] sm:$0xf]  ;;  %v372_v19 = vld [vmem:[%s568_s1 + $0x80] sm:$0xf0]  ;;  %v371_v20 = vld [vmem:[%s568_s1 + $0x7c] sm:$0xf] }
   0x6   :  { %v323_v21 = vld [vmem:[%s568_s1 + $0x84] sm:$0xf0]  ;;  %v329_v22 = vld [vmem:[%s568_s1 + $0x80] sm:$0xf]  ;;  %v373_v23 = vld [vmem:[%s568_s1 + $0x88] sm:$0xf0]  ;;  %v322_v24 = vor.u32 %v372_v19, %v321_v18 }
   0x7   :  { %v326_v25 = vor.u32 %v371_v20, %v323_v21  ;;  %v330_v26 = vor.u32 %v373_v23, %v329_v22  ;;  %v309_v27 = vld [vmem:[%s568_s1 + $0x60] sm:$0xf]  ;;  %v369_v28 = vld [vmem:[%s568_s1 + $0x68] sm:$0xf0]  ;;  %v368_v29 = vld [vmem:[%s568_s1 + $0x64] sm:$0xf] }
   0x8   :  { %195 = vmatpush.bf16.msra.mxu0 %v334_v12  ;;  %v311_v30 = vld [vmem:[%s568_s1 + $0x6c] sm:$0xf0]  ;;  %v317_v31 = vld [vmem:[%s568_s1 + $0x68] sm:$0xf]  ;;  %v370_v32 = vld [vmem:[%s568_s1 + $0x70] sm:$0xf0]  ;;  %v310_v33 = vor.u32 %v369_v28, %v309_v27 }
   0x9   :  { %209 = vmatpush.bf16.msra.mxu1 %v338_v16  ;;  %223 = vmatpush.bf16.msra.mxu2 %v342_v17  ;;  %v314_v34 = vor.u32 %v368_v29, %v311_v30  ;;  %v318_v35 = vor.u32 %v370_v32, %v317_v31  ;;  %v297_v36 = vld [vmem:[%s568_s1 + $0x48] sm:$0xf]  ;;  %v366_v37 = vld [vmem:[%s568_s1 + $0x50] sm:$0xf0]  ;;  %v365_v38 = vld [vmem:[%s568_s1 + $0x4c] sm:$0xf] }
   0xa   :  { %v299_v39 = vld [vmem:[%s568_s1 + $0x54] sm:$0xf0]  ;;  %v305_v40 = vld [vmem:[%s568_s1 + $0x50] sm:$0xf]  ;;  %v367_v41 = vld [vmem:[%s568_s1 + $0x58] sm:$0xf0]  ;;  %v298_v42 = vor.u32 %v366_v37, %v297_v36 }
   0xb   :  { %v285_v43 = vld [vmem:[%s568_s1 + $0x30] sm:$0xf]  ;;  %v302_v44 = vor.u32 %v365_v38, %v299_v39  ;;  %v306_v45 = vor.u32 %v367_v41, %v305_v40  ;;  %v363_v46 = vld [vmem:[%s568_s1 + $0x38] sm:$0xf0]  ;;  %v362_v47 = vld [vmem:[%s568_s1 + $0x34] sm:$0xf] }
   0xc   :  { %196 = vmatpush.bf16.msra.mxu0 %v322_v24  ;;  %v48_v48 = vld [vmem:[%s569_s2] sm:$0xff]  ;;  %v293_v50 = vld [vmem:[%s568_s1 + $0x38] sm:$0xf]  ;;  %v286_v53 = vor.u32 %v363_v46, %v285_v43  ;;  %v359_v58 = vld [vmem:[%s568_s1 + $0x1c] sm:$0xf] }
   0xd   :  { %210 = vmatpush.bf16.msra.mxu1 %v326_v25  ;;  %224 = vmatpush.bf16.msra.mxu2 %v330_v26  ;;  %v287_v49 = vld [vmem:[%s568_s1 + $0x3c] sm:$0xf0]  ;;  %v364_v51 = vld [vmem:[%s568_s1 + $0x40] sm:$0xf0]  ;;  %v273_v56 = vld [vmem:[%s568_s1 + $0x18] sm:$0xf] }
   0xe   :  { %52 = vperm.xlu0 %381, %v48_v48   ;;  %v290_v54 = vor.u32 %v362_v47, %v287_v49  ;;  %v294_v55 = vor.u32 %v364_v51, %v293_v50  ;;  %v360_v57 = vld [vmem:[%s568_s1 + $0x20] sm:$0xf0]  ;;  %v275_v59 = vld [vmem:[%s568_s1 + $0x24] sm:$0xf0]  ;;  %v281_v60 = vld [vmem:[%s568_s1 + $0x20] sm:$0xf] }
   0xf   :  { %v361_v61 = vld [vmem:[%s568_s1 + $0x28] sm:$0xf0]  ;;  %v274_v62 = vor.u32 %v360_v57, %v273_v56  ;;  %v278_v0 = vor.u32 %v359_v58, %v275_v59  ;;  %v261_v2 = vld [vmem:[%s568_s1] sm:$0xf]  ;;  %v356_v4 = vld [vmem:[%s568_s1 + $0x4] sm:$0xf] }
  0x10   :  { %197 = vmatpush.bf16.msra.mxu0 %v310_v33  ;;  %v49_v63 = vld [vmem:[%s569_s2 + $0x8] sm:$0xff]  ;;  %v282_v1 = vor.u32 %v361_v61, %v281_v60  ;;  %v263_v5 = vld [vmem:[%s568_s1 + $0xc] sm:$0xf0]  ;;  %v358_v7 = vld [vmem:[%s568_s1 + $0x10] sm:$0xf0] }
  0x11   :  { %211 = vmatpush.bf16.msra.mxu1 %v314_v34  ;;  %225 = vmatpush.bf16.msra.mxu2 %v318_v35  ;;  %v357_v3 = vld [vmem:[%s568_s1 + $0x8] sm:$0xf0]  ;;  %v269_v6 = vld [vmem:[%s568_s1 + $0x8] sm:$0xf]  ;;  %v266_v9 = vor.u32 %v356_v4, %v263_v5  ;;  %v355_v11 = vld [vmem:[%s570_s0] sm:$0xff] }
  0x12   :  { %v262_v8 = vor.u32 %v357_v3, %v261_v2  ;;  %v270_v10 = vor.u32 %v358_v7, %v269_v6 }
  0x14   :  { %198 = vmatpush.bf16.msra.mxu0 %v298_v42 }
  0x15   :  { %212 = vmatpush.bf16.msra.mxu1 %v302_v44  ;;  %226 = vmatpush.bf16.msra.mxu2 %v306_v45 }
  0x16   :  { %57 = vperm.xlu0 %381, %v49_v63  }
  0x18   :  { %199 = vmatpush.bf16.msra.mxu0 %v286_v53 }
  0x19   :  { %213 = vmatpush.bf16.msra.mxu1 %v290_v54  ;;  %227 = vmatpush.bf16.msra.mxu2 %v294_v55 }
  0x1c   :  { %200 = vmatpush.bf16.msra.mxu0 %v274_v62 }
  0x1d   :  { %214 = vmatpush.bf16.msra.mxu1 %v278_v0  ;;  %228 = vmatpush.bf16.msra.mxu2 %v282_v1 }
  0x20   :  { %201 = vmatpush.bf16.msra.mxu0 %v262_v8 }
  0x21   :  { %215 = vmatpush.bf16.msra.mxu1 %v266_v9  ;;  %229 = vmatpush.bf16.msra.mxu2 %v270_v10 }
  0x23   :  { %202 = vmatmul.bf16.vlgmr.msra.gmra.mxu0 %v355_v11 }
  0x24   :  { %216 = vmatmul.bf16.vlgmr.msra.gmra.mxu1 %v355_v11  ;;  %230 = vmatmul.bf16.vlgmr.msra.gmra.mxu2 %v355_v11 }
  0x80   :  { %v53_v12 = vpop.permute.xlu0 %52 }
  0x88   :  { %v58_v21 = vpop.permute.xlu0 %57 }
  0xa0   :  { %v203_v13 = vpop.f32.mrf.mxu0 }
  0xa1   :  { %v204_v14 = vadd.f32 %v203_v13, %v53_v12  ;;  %v217_v15 = vpop.f32.mrf.mxu1 }
  0xa2   :  { %v218_v16 = vadd.f32 %v217_v15, %v53_v12 }
  0xa3   :  { %v236_v17 = vmax.f32 %v204_v14, 0.0 }
  0xa4   :  { %v237_v18 = vmax.f32 %v218_v16, 0.0 }
  0xa6   :  { %v242_v19 = vpack.c.bf16 %v237_v18, %v236_v17 }
  0xa7   :  { %v231_v20 = vpop.f32.mrf.mxu2 }
  0xa8   :  { %246 = vst [vmem:[%s571_s3] sm:$0xff] %v242_v19  ;;  %v232_v22 = vadd.f32 %v231_v20, %v53_v12  ;;  %v205_v23 = vpop.f32.mrf.mxu0 }
  0xa9   :  { %v206_v24 = vadd.f32 %v205_v23, %v58_v21  ;;  %v219_v25 = vpop.f32.mrf.mxu1 }
  0xaa   :  { %v238_v26 = vmax.f32 %v232_v22, 0.0  ;;  %v220_v27 = vadd.f32 %v219_v25, %v58_v21 }
  0xab   :  { %v239_v28 = vmax.f32 %v206_v24, 0.0 }
  0xac   :  { %v243_v29 = vpack.c.bf16 %v238_v26, %v238_v26  ;;  %v240_v30 = vmax.f32 %v220_v27, 0.0 }
  0xae   :  { %248 = vst.msk [vmem:[%s571_s3 + $0x8] sm:$0xf] %vm247_vm0, %v243_v29  ;;  %v244_v31 = vpack.c.bf16 %v240_v30, %v239_v28 }
  0xaf   :  { %v233_v32 = vpop.f32.mrf.mxu2 }
  0xb0   :  { %249 = vst [vmem:[%s571_s3 + $0xc] sm:$0xff] %v244_v31  ;;  %v234_v33 = vadd.f32 %v233_v32, %v58_v21 }
  0xb2   :  { %v241_v34 = vmax.f32 %v234_v33, 0.0 }
  0xb4   :  { %v245_v35 = vpack.c.bf16 %v241_v34, %v241_v34 }
  0xb6   :  { %250 = vst.msk [vmem:[%s571_s3 + $0x14] sm:$0xf] %vm247_vm0, %v245_v35 }

// kernel: qnetwork_cnn_forward.6
= control target key start
LH: loop header
LB: loop body
LE: loop exit
PB: predicated region body
PF: predicated region fallthrough
CT: control target
= control target key end

     0   :  { %v234_v3 = vmov 0   ;;  %vm101_vm0 = vcmask 523264   ;;  %vm158_vm1 = vcmask 1043456   ;;  %vm159_vm2 = vcmask 932868   ;;  %s345_s1 = inlined_call_operand.vmem [shape: bf16[64,242], index: 1, kind: input, shape index: {}]   ;;  %s346_s2 = inlined_call_operand.vmem [shape: f32[32,1], index: 2, kind: input, shape index: {}]   ;;  %s347_s0 = inlined_call_operand.vmem [shape: bf16[32,64], index: 0, kind: input, shape index: {}]   ;;  %s348_s3 = inlined_call_operand.vmem [shape: bf16[32,242], index: 3, kind: output, shape index: {}]  }
   0x1   :  { %v203_v0 = vld [vmem:[%s345_s1 + $0x30] sm:$0xf]  ;;  %v222_v1 = vld [vmem:[%s345_s1 + $0x34] sm:$0xf0]  ;;  %v221_v2 = vld [vmem:[%s345_s1 + $0x34] sm:$0xf]  ;;  %233 = vset.pattern.permute.xlu1 %v234_v3  ;;  %232 = vset.pattern.permute.xlu0 %v234_v3 }
   0x2   :  { %v204_v4 = vor.u32 %v222_v1, %v203_v0  ;;  %v205_v5 = vld [vmem:[%s345_s1 + $0x38] sm:$0xf0]  ;;  %v195_v6 = vld [vmem:[%s345_s1 + $0x20] sm:$0xf]  ;;  %v220_v7 = vld [vmem:[%s345_s1 + $0x24] sm:$0xf0] }
   0x3   :  { %v208_v8 = vor.u32 %v221_v2, %v205_v5  ;;  %v219_v9 = vld [vmem:[%s345_s1 + $0x24] sm:$0xf]  ;;  %v197_v10 = vld [vmem:[%s345_s1 + $0x28] sm:$0xf0]  ;;  %v196_v11 = vor.u32 %v220_v7, %v195_v6  ;;  %v187_v13 = vld [vmem:[%s345_s1 + $0x10] sm:$0xf] }
   0x4   :  { %112 = vmatpush.bf16.msra.mxu0 %v204_v4  ;;  %223 = vmatpush.bf16.msra.mxu2 %v204_v4  ;;  %v200_v12 = vor.u32 %v219_v9, %v197_v10  ;;  %v218_v14 = vld [vmem:[%s345_s1 + $0x14] sm:$0xf0]  ;;  %v217_v15 = vld [vmem:[%s345_s1 + $0x14] sm:$0xf]  ;;  %v189_v16 = vld [vmem:[%s345_s1 + $0x18] sm:$0xf0] }
   0x5   :  { %131 = vmatpush.bf16.msra.mxu1 %v208_v8  ;;  %227 = vmatpush.bf16.msra.mxu3 %v208_v8  ;;  %v29_v17 = vld [vmem:[%s346_s2 + $0x10] sm:$0xff]  ;;  %v27_v18 = vld [vmem:[%s346_s2] sm:$0xff]  ;;  %v188_v19 = vor.u32 %v218_v14, %v187_v13  ;;  %v192_v20 = vor.u32 %v217_v15, %v189_v16  ;;  %v216_v22 = vld [vmem:[%s345_s1 + $0x4] sm:$0xf0] }
   0x6   :  { %v179_v21 = vld [vmem:[%s345_s1] sm:$0xf]  ;;  %v215_v23 = vld [vmem:[%s345_s1 + $0x4] sm:$0xf]  ;;  %v181_v24 = vld [vmem:[%s345_s1 + $0x8] sm:$0xf0]  ;;  %43 = vperm.xlu1 %233, %v29_v17   ;;  %33 = vperm.xlu0 %232, %v27_v18  }
   0x7   :  { %v180_v25 = vor.u32 %v216_v22, %v179_v21  ;;  %v184_v26 = vor.u32 %v215_v23, %v181_v24  ;;  %v213_v27 = vld [vmem:[%s347_s0] sm:$0xff]  ;;  %v214_v28 = vld [vmem:[%s347_s0 + $0x8] sm:$0xff]  ;;  %v30_v29 = vld [vmem:[%s346_s2 + $0x18] sm:$0xff] }
   0x8   :  { %113 = vmatpush.bf16.msra.mxu0 %v196_v11  ;;  %224 = vmatpush.bf16.msra.mxu2 %v196_v11  ;;  %v28_v30 = vld [vmem:[%s346_s2 + $0x8] sm:$0xff]  ;;  %vm321_vm3 = vmor %vm159_vm2, %vm158_vm1 }
   0x9   :  { %132 = vmatpush.bf16.msra.mxu1 %v200_v12  ;;  %228 = vmatpush.bf16.msra.mxu3 %v200_v12 }
   0xc   :  { %114 = vmatpush.bf16.msra.mxu0 %v188_v19  ;;  %225 = vmatpush.bf16.msra.mxu2 %v188_v19 }
   0xd   :  { %133 = vmatpush.bf16.msra.mxu1 %v192_v20  ;;  %229 = vmatpush.bf16.msra.mxu3 %v192_v20 }
   0xe   :  { %48 = vperm.xlu1 %233, %v30_v29   ;;  %38 = vperm.xlu0 %232, %v28_v30  }
  0x10   :  { %115 = vmatpush.bf16.msra.mxu0 %v180_v25  ;;  %226 = vmatpush.bf16.msra.mxu2 %v180_v25 }
  0x11   :  { %134 = vmatpush.bf16.msra.mxu1 %v184_v26  ;;  %230 = vmatpush.bf16.msra.mxu3 %v184_v26 }
  0x13   :  { %209 = vmatmul.msk.bf16.vlgmr.msra.gmra.mxu0 %vm101_vm0, %v213_v27  ;;  %210 = vmatmul.msk.bf16.vlgmr.msra.gmra.mxu2 %vm101_vm0, %v214_v28 }
  0x14   :  { %211 = vmatmul.msk.bf16.vlgmr.msra.gmra.mxu1 %vm101_vm0, %v213_v27  ;;  %212 = vmatmul.msk.bf16.vlgmr.msra.gmra.mxu3 %vm101_vm0, %v214_v28 }
  0x78   :  { %v34_v31 = vpop.permute.xlu0 %33  ;;  %v44_v37 = vpop.permute.xlu1 %43 }
  0x80   :  { %v39_v44 = vpop.permute.xlu0 %38  ;;  %v49_v55 = vpop.permute.xlu1 %48 }
  0x90   :  { %v117_v32 = vpop.f32.mrf.mxu0 }
  0x91   :  { %v118_v33 = vadd.f32 %v117_v32, %v34_v31  ;;  %v136_v34 = vpop.f32.mrf.mxu1 }
  0x92   :  { %v137_v35 = vadd.f32 %v136_v34, %v34_v31 }
  0x93   :  { %v146_v36 = vmax.f32 %v118_v33, 0.0 }
  0x94   :  { %v147_v38 = vmax.f32 %v137_v35, 0.0 }
  0x96   :  { %v154_v40 = vpack.c.bf16 %v147_v38, %v146_v36  ;;  %v122_v41 = vpop.f32.mrf.mxu2 }
  0x97   :  { %v123_v42 = vadd.f32 %v122_v41, %v44_v37  ;;  %v141_v43 = vpop.f32.mrf.mxu3 }
  0x98   :  { %161 = vst.msk [vmem:[%s348_s3] sm:$0xff] %vm321_vm3, %v154_v40  ;;  %v142_v45 = vadd.f32 %v141_v43, %v44_v37  ;;  %v119_v46 = vpop.f32.mrf.mxu0 }
  0x99   :  { %v150_v47 = vmax.f32 %v123_v42, 0.0  ;;  %v120_v48 = vadd.f32 %v119_v46, %v39_v44  ;;  %v138_v49 = vpop.f32.mrf.mxu1 }
  0x9a   :  { %v151_v50 = vmax.f32 %v142_v45, 0.0  ;;  %v139_v51 = vadd.f32 %v138_v49, %v39_v44 }
  0x9b   :  { %v148_v52 = vmax.f32 %v120_v48, 0.0 }
  0x9c   :  { %v156_v53 = vpack.c.bf16 %v151_v50, %v150_v47  ;;  %v149_v54 = vmax.f32 %v139_v51, 0.0 }
  0x9e   :  { %163 = vst.msk [vmem:[%s348_s3 + $0x10] sm:$0xff] %vm321_vm3, %v156_v53  ;;  %v155_v56 = vpack.c.bf16 %v149_v54, %v148_v52  ;;  %v124_v57 = vpop.f32.mrf.mxu2 }
  0x9f   :  { %v125_v58 = vadd.f32 %v124_v57, %v49_v55  ;;  %v143_v59 = vpop.f32.mrf.mxu3 }
  0xa0   :  { %162 = vst.msk [vmem:[%s348_s3 + $0x8] sm:$0xff] %vm321_vm3, %v155_v56  ;;  %v144_v60 = vadd.f32 %v143_v59, %v49_v55 }
  0xa1   :  { %v152_v61 = vmax.f32 %v125_v58, 0.0 }
  0xa2   :  { %v153_v62 = vmax.f32 %v144_v60, 0.0 }
  0xa4   :  { %v157_v63 = vpack.c.bf16 %v153_v62, %v152_v61 }
  0xa6   :  { %164 = vst.msk [vmem:[%s348_s3 + $0x18] sm:$0xff] %vm321_vm3, %v157_v63 }

// kernel: qnetwork_cnn_forward.7
= control target key start
LH: loop header
LB: loop body
LE: loop exit
PB: predicated region body
PF: predicated region fallthrough
CT: control target
= control target key end

     0   :  { %s19128_s0 = inlined_call_operand.vmem [shape: bf16[2,3872], index: 0, kind: input, shape index: {}]   ;;  %s19129_s1 = inlined_call_operand.vmem [shape: bf16[3872,512], index: 1, kind: input, shape index: {}]   ;;  %s19130_s2 = inlined_call_operand.vmem [shape: f32[1,512], index: 2, kind: input, shape index: {}]   ;;  %s19131_s3 = inlined_call_operand.vmem [shape: bf16[512,4], index: 3, kind: input, shape index: {}]   ;;  %s19132_s4 = inlined_call_operand.vmem [shape: f32[1,4], index: 4, kind: input, shape index: {}]   ;;  %s19133_s5 = inlined_call_operand.hbm [shape: f32[2,4], index: 5, kind: output, shape index: {}]  }
   0x1   :  { %v7980_v0 = vld [vmem:[%s19129_s1 + $0xe0] sm:$0xf]  ;;  %v11900_v1 = vld [vmem:[%s19129_s1 + $0xec] sm:$0xf0] }
   0x2   :  { %v8108_v2 = vld [vmem:[%s19129_s1 + $0x1e0] sm:$0xf]  ;;  %v7981_v3 = vor.u32 %v11900_v1, %v7980_v0  ;;  %v11932_v4 = vld [vmem:[%s19129_s1 + $0x1ec] sm:$0xf0] }
   0x3   :  { %v8236_v5 = vld [vmem:[%s19129_s1 + $0x2e0] sm:$0xf]  ;;  %v11964_v6 = vld [vmem:[%s19129_s1 + $0x2ec] sm:$0xf0]  ;;  %v8109_v7 = vor.u32 %v11932_v4, %v8108_v2 }
   0x4   :  { %v8237_v8 = vor.u32 %v11964_v6, %v8236_v5  ;;  %v8364_v9 = vld [vmem:[%s19129_s1 + $0x3e0] sm:$0xf]  ;;  %v11996_v10 = vld [vmem:[%s19129_s1 + $0x3ec] sm:$0xf0]  ;;  %5916 = vmatpush.bf16.msra.mxu0 %v7981_v3 }
   0x5   :  { %v7964_v11 = vld [vmem:[%s19129_s1 + $0xc0] sm:$0xf]  ;;  %v8365_v12 = vor.u32 %v11996_v10, %v8364_v9  ;;  %v11896_v13 = vld [vmem:[%s19129_s1 + $0xcc] sm:$0xf0]  ;;  %5929 = vmatpush.bf16.msra.mxu1 %v8109_v7 }
   0x6   :  { %v8092_v14 = vld [vmem:[%s19129_s1 + $0x1c0] sm:$0xf]  ;;  %v11928_v15 = vld [vmem:[%s19129_s1 + $0x1cc] sm:$0xf0]  ;;  %5942 = vmatpush.bf16.msra.mxu2 %v8237_v8  ;;  %v7965_v16 = vor.u32 %v11896_v13, %v7964_v11 }
   0x7   :  { %v8093_v17 = vor.u32 %v11928_v15, %v8092_v14  ;;  %v8220_v18 = vld [vmem:[%s19129_s1 + $0x2c0] sm:$0xf]  ;;  %v11960_v19 = vld [vmem:[%s19129_s1 + $0x2cc] sm:$0xf0]  ;;  %5955 = vmatpush.bf16.msra.mxu3 %v8365_v12 }
   0x8   :  { %v8348_v20 = vld [vmem:[%s19129_s1 + $0x3c0] sm:$0xf]  ;;  %v8221_v21 = vor.u32 %v11960_v19, %v8220_v18  ;;  %v11992_v22 = vld [vmem:[%s19129_s1 + $0x3cc] sm:$0xf0]  ;;  %5917 = vmatpush.bf16.msra.mxu0 %v7965_v16 }
   0x9   :  { %v7948_v23 = vld [vmem:[%s19129_s1 + $0xa0] sm:$0xf]  ;;  %v11892_v24 = vld [vmem:[%s19129_s1 + $0xac] sm:$0xf0]  ;;  %v8349_v25 = vor.u32 %v11992_v22, %v8348_v20  ;;  %5930 = vmatpush.bf16.msra.mxu1 %v8093_v17 }
   0xa   :  { %v8076_v26 = vld [vmem:[%s19129_s1 + $0x1a0] sm:$0xf]  ;;  %v11924_v27 = vld [vmem:[%s19129_s1 + $0x1ac] sm:$0xf0]  ;;  %v7949_v29 = vor.u32 %v11892_v24, %v7948_v23  ;;  %5943 = vmatpush.bf16.msra.mxu2 %v8221_v21 }
   0xb   :  { %v8204_v28 = vld [vmem:[%s19129_s1 + $0x2a0] sm:$0xf]  ;;  %v11956_v30 = vld [vmem:[%s19129_s1 + $0x2ac] sm:$0xf0]  ;;  %v8077_v33 = vor.u32 %v11924_v27, %v8076_v26  ;;  %5956 = vmatpush.bf16.msra.mxu3 %v8349_v25 }
   0xc   :  { %v8332_v31 = vld [vmem:[%s19129_s1 + $0x3a0] sm:$0xf]  ;;  %v11988_v32 = vld [vmem:[%s19129_s1 + $0x3ac] sm:$0xf0]  ;;  %v8205_v34 = vor.u32 %v11956_v30, %v8204_v28  ;;  %5918 = vmatpush.bf16.msra.mxu0 %v7949_v29 }
   0xd   :  { %v7932_v35 = vld [vmem:[%s19129_s1 + $0x80] sm:$0xf]  ;;  %v11888_v36 = vld [vmem:[%s19129_s1 + $0x8c] sm:$0xf0]  ;;  %v8333_v38 = vor.u32 %v11988_v32, %v8332_v31  ;;  %5931 = vmatpush.bf16.msra.mxu1 %v8077_v33 }
   0xe   :  { %v8060_v37 = vld [vmem:[%s19129_s1 + $0x180] sm:$0xf]  ;;  %v11920_v39 = vld [vmem:[%s19129_s1 + $0x18c] sm:$0xf0]  ;;  %v7933_v44 = vor.u32 %v11888_v36, %v7932_v35  ;;  %5944 = vmatpush.bf16.msra.mxu2 %v8205_v34 }
   0xf   :  { %v8188_v40 = vld [vmem:[%s19129_s1 + $0x280] sm:$0xf]  ;;  %v11952_v41 = vld [vmem:[%s19129_s1 + $0x28c] sm:$0xf0]  ;;  %v8061_v45 = vor.u32 %v11920_v39, %v8060_v37  ;;  %5957 = vmatpush.bf16.msra.mxu3 %v8333_v38 }
  0x10   :  { %v8316_v42 = vld [vmem:[%s19129_s1 + $0x380] sm:$0xf]  ;;  %v11984_v43 = vld [vmem:[%s19129_s1 + $0x38c] sm:$0xf0]  ;;  %v8189_v46 = vor.u32 %v11952_v41, %v8188_v40  ;;  %5919 = vmatpush.bf16.msra.mxu0 %v7933_v44 }
  0x11   :  { %v7916_v47 = vld [vmem:[%s19129_s1 + $0x60] sm:$0xf]  ;;  %v11884_v48 = vld [vmem:[%s19129_s1 + $0x6c] sm:$0xf0]  ;;  %v8317_v50 = vor.u32 %v11984_v43, %v8316_v42  ;;  %5932 = vmatpush.bf16.msra.mxu1 %v8061_v45 }
  0x12   :  { %v8044_v49 = vld [vmem:[%s19129_s1 + $0x160] sm:$0xf]  ;;  %v11916_v51 = vld [vmem:[%s19129_s1 + $0x16c] sm:$0xf0]  ;;  %v7917_v56 = vor.u32 %v11884_v48, %v7916_v47  ;;  %5945 = vmatpush.bf16.msra.mxu2 %v8189_v46 }
  0x13   :  { %v8172_v52 = vld [vmem:[%s19129_s1 + $0x260] sm:$0xf]  ;;  %v11948_v53 = vld [vmem:[%s19129_s1 + $0x26c] sm:$0xf0]  ;;  %v8045_v57 = vor.u32 %v11916_v51, %v8044_v49  ;;  %5958 = vmatpush.bf16.msra.mxu3 %v8317_v50 }
  0x14   :  { %v8300_v54 = vld [vmem:[%s19129_s1 + $0x360] sm:$0xf]  ;;  %v11980_v55 = vld [vmem:[%s19129_s1 + $0x36c] sm:$0xf0]  ;;  %v8173_v58 = vor.u32 %v11948_v53, %v8172_v52  ;;  %5920 = vmatpush.bf16.msra.mxu0 %v7917_v56 }
  0x15   :  { %v7900_v59 = vld [vmem:[%s19129_s1 + $0x40] sm:$0xf]  ;;  %v11880_v60 = vld [vmem:[%s19129_s1 + $0x4c] sm:$0xf0]  ;;  %v8301_v62 = vor.u32 %v11980_v55, %v8300_v54  ;;  %5933 = vmatpush.bf16.msra.mxu1 %v8045_v57 }
  0x16   :  { %v8028_v61 = vld [vmem:[%s19129_s1 + $0x140] sm:$0xf]  ;;  %v11912_v63 = vld [vmem:[%s19129_s1 + $0x14c] sm:$0xf0]  ;;  %v7901_v4 = vor.u32 %v11880_v60, %v7900_v59  ;;  %5946 = vmatpush.bf16.msra.mxu2 %v8173_v58 }
  0x17   :  { %v8156_v0 = vld [vmem:[%s19129_s1 + $0x240] sm:$0xf]  ;;  %v11944_v1 = vld [vmem:[%s19129_s1 + $0x24c] sm:$0xf0]  ;;  %v8029_v5 = vor.u32 %v11912_v63, %v8028_v61  ;;  %5959 = vmatpush.bf16.msra.mxu3 %v8301_v62 }
  0x18   :  { %v8284_v2 = vld [vmem:[%s19129_s1 + $0x340] sm:$0xf]  ;;  %v11976_v3 = vld [vmem:[%s19129_s1 + $0x34c] sm:$0xf0]  ;;  %v8157_v6 = vor.u32 %v11944_v1, %v8156_v0  ;;  %5921 = vmatpush.bf16.msra.mxu0 %v7901_v4 }
  0x19   :  { %v7884_v7 = vld [vmem:[%s19129_s1 + $0x20] sm:$0xf]  ;;  %v11876_v8 = vld [vmem:[%s19129_s1 + $0x2c] sm:$0xf0]  ;;  %v8285_v10 = vor.u32 %v11976_v3, %v8284_v2  ;;  %5934 = vmatpush.bf16.msra.mxu1 %v8029_v5 }
  0x1a   :  { %v8012_v9 = vld [vmem:[%s19129_s1 + $0x120] sm:$0xf]  ;;  %v11908_v11 = vld [vmem:[%s19129_s1 + $0x12c] sm:$0xf0]  ;;  %v7885_v16 = vor.u32 %v11876_v8, %v7884_v7  ;;  %5947 = vmatpush.bf16.msra.mxu2 %v8157_v6 }
  0x1b   :  { %v8140_v12 = vld [vmem:[%s19129_s1 + $0x220] sm:$0xf]  ;;  %v11940_v13 = vld [vmem:[%s19129_s1 + $0x22c] sm:$0xf0]  ;;  %v8013_v19 = vor.u32 %v11908_v11, %v8012_v9  ;;  %5960 = vmatpush.bf16.msra.mxu3 %v8285_v10 }
  0x1c   :  { %v8268_v14 = vld [vmem:[%s19129_s1 + $0x320] sm:$0xf]  ;;  %v11972_v15 = vld [vmem:[%s19129_s1 + $0x32c] sm:$0xf0]  ;;  %v8141_v20 = vor.u32 %v11940_v13, %v8140_v12  ;;  %5922 = vmatpush.bf16.msra.mxu0 %v7885_v16 }
  0x1d   :  { %v7868_v17 = vld [vmem:[%s19129_s1] sm:$0xf]  ;;  %v11872_v18 = vld [vmem:[%s19129_s1 + $0xc] sm:$0xf0]  ;;  %v8269_v24 = vor.u32 %v11972_v15, %v8268_v14  ;;  %5935 = vmatpush.bf16.msra.mxu1 %v8013_v19 }
  0x1e   :  { %v7996_v21 = vld [vmem:[%s19129_s1 + $0x100] sm:$0xf]  ;;  %v11904_v22 = vld [vmem:[%s19129_s1 + $0x10c] sm:$0xf0]  ;;  %v7869_v31 = vor.u32 %v11872_v18, %v7868_v17  ;;  %5948 = vmatpush.bf16.msra.mxu2 %v8141_v20 }
  0x1f   :  { %v8124_v23 = vld [vmem:[%s19129_s1 + $0x200] sm:$0xf]  ;;  %v11936_v25 = vld [vmem:[%s19129_s1 + $0x20c] sm:$0xf0]  ;;  %v7997_v35 = vor.u32 %v11904_v22, %v7996_v21  ;;  %5961 = vmatpush.bf16.msra.mxu3 %v8269_v24 }
  0x20   :  { %v8252_v26 = vld [vmem:[%s19129_s1 + $0x300] sm:$0xf]  ;;  %v11968_v27 = vld [vmem:[%s19129_s1 + $0x30c] sm:$0xf0]  ;;  %v8125_v36 = vor.u32 %v11936_v25, %v8124_v23  ;;  %5923 = vmatpush.bf16.msra.mxu0 %v7869_v31 }
  0x21   :  { %v8492_v28 = vld [vmem:[%s19129_s1 + $0x4e0] sm:$0xf]  ;;  %v12028_v29 = vld [vmem:[%s19129_s1 + $0x4ec] sm:$0xf0]  ;;  %v8253_v39 = vor.u32 %v11968_v27, %v8252_v26  ;;  %5936 = vmatpush.bf16.msra.mxu1 %v7997_v35 }
  0x22   :  { %v8620_v30 = vld [vmem:[%s19129_s1 + $0x5e0] sm:$0xf]  ;;  %v12060_v32 = vld [vmem:[%s19129_s1 + $0x5ec] sm:$0xf0]  ;;  %v8493_v40 = vor.u32 %v12028_v29, %v8492_v28  ;;  %5949 = vmatpush.bf16.msra.mxu2 %v8125_v36 }
  0x23   :  { %v8748_v33 = vld [vmem:[%s19129_s1 + $0x6e0] sm:$0xf]  ;;  %v12092_v34 = vld [vmem:[%s19129_s1 + $0x6ec] sm:$0xf0]  ;;  %v8621_v41 = vor.u32 %v12060_v32, %v8620_v30  ;;  %5962 = vmatpush.bf16.msra.mxu3 %v8253_v39 }
  0x24   :  { %v8876_v37 = vld [vmem:[%s19129_s1 + $0x7e0] sm:$0xf]  ;;  %v12124_v38 = vld [vmem:[%s19129_s1 + $0x7ec] sm:$0xf0]  ;;  %v8749_v42 = vor.u32 %v12092_v34, %v8748_v33  ;;  %5968 = vmatpush.bf16.msrb.mxu0 %v8493_v40 }
  0x25   :  { %v8476_v43 = vld [vmem:[%s19129_s1 + $0x4c0] sm:$0xf]  ;;  %v12024_v44 = vld [vmem:[%s19129_s1 + $0x4cc] sm:$0xf0]  ;;  %v8877_v46 = vor.u32 %v12124_v38, %v8876_v37  ;;  %5981 = vmatpush.bf16.msrb.mxu1 %v8621_v41 }
  0x26   :  { %v8604_v45 = vld [vmem:[%s19129_s1 + $0x5c0] sm:$0xf]  ;;  %v12056_v47 = vld [vmem:[%s19129_s1 + $0x5cc] sm:$0xf0]  ;;  %v8477_v52 = vor.u32 %v12024_v44, %v8476_v43  ;;  %5994 = vmatpush.bf16.msrb.mxu2 %v8749_v42 }
  0x27   :  { %v8732_v48 = vld [vmem:[%s19129_s1 + $0x6c0] sm:$0xf]  ;;  %v12088_v49 = vld [vmem:[%s19129_s1 + $0x6cc] sm:$0xf0]  ;;  %v8605_v55 = vor.u32 %v12056_v47, %v8604_v45  ;;  %6007 = vmatpush.bf16.msrb.mxu3 %v8877_v46 }
  0x28   :  { %v8860_v50 = vld [vmem:[%s19129_s1 + $0x7c0] sm:$0xf]  ;;  %v12120_v51 = vld [vmem:[%s19129_s1 + $0x7cc] sm:$0xf0]  ;;  %v8733_v56 = vor.u32 %v12088_v49, %v8732_v48  ;;  %5969 = vmatpush.bf16.msrb.mxu0 %v8477_v52 }
  0x29   :  { %v8460_v53 = vld [vmem:[%s19129_s1 + $0x4a0] sm:$0xf]  ;;  %v12020_v54 = vld [vmem:[%s19129_s1 + $0x4ac] sm:$0xf0]  ;;  %v8861_v60 = vor.u32 %v12120_v51, %v8860_v50  ;;  %5982 = vmatpush.bf16.msrb.mxu1 %v8605_v55 }
  0x2a   :  { %v8588_v57 = vld [vmem:[%s19129_s1 + $0x5a0] sm:$0xf]  ;;  %v12052_v58 = vld [vmem:[%s19129_s1 + $0x5ac] sm:$0xf0]  ;;  %v8461_v1 = vor.u32 %v12020_v54, %v8460_v53  ;;  %5995 = vmatpush.bf16.msrb.mxu2 %v8733_v56 }
  0x2b   :  { %v22_v59 = vld [vmem:[%s19128_s0] sm:$0xff]  ;;  %v12084_v62 = vld [vmem:[%s19129_s1 + $0x6ac] sm:$0xf0]  ;;  %v8589_v2 = vor.u32 %v12052_v58, %v8588_v57  ;;  %6008 = vmatpush.bf16.msrb.mxu3 %v8861_v60 }
  0x2c   :  { %v8716_v61 = vld [vmem:[%s19129_s1 + $0x6a0] sm:$0xf]  ;;  %1005 = vst [vmem:[#allocation1] ss:$9 sm:$0xff] %v22_v59  ;;  %v12116_v0 = vld [vmem:[%s19129_s1 + $0x7ac] sm:$0xf0]  ;;  %5970 = vmatpush.bf16.msrb.mxu0 %v8461_v1 }
  0x2d   :  { %v8844_v63 = vld [vmem:[%s19129_s1 + $0x7a0] sm:$0xf]  ;;  %v8717_v3 = vor.u32 %v12084_v62, %v8716_v61  ;;  %v12016_v5 = vld [vmem:[%s19129_s1 + $0x48c] sm:$0xf0]  ;;  %5983 = vmatpush.bf16.msrb.mxu1 %v8589_v2  ;;  %v23_v61 = vld [vmem:[%s19128_s0 + $0x8] sm:$0xff] }
  0x2e   :  { %v8444_v4 = vld [vmem:[%s19129_s1 + $0x480] sm:$0xf]  ;;  %v8845_v7 = vor.u32 %v12116_v0, %v8844_v63  ;;  %v12048_v8 = vld [vmem:[%s19129_s1 + $0x58c] sm:$0xf0] }
  0x2f   :  { %v8572_v6 = vld [vmem:[%s19129_s1 + $0x580] sm:$0xf]  ;;  %v12080_v10 = vld [vmem:[%s19129_s1 + $0x68c] sm:$0xf0]  ;;  %v8445_v14 = vor.u32 %v12016_v5, %v8444_v4  ;;  %5996 = vmatpush.bf16.msrb.mxu2 %v8717_v3 }
  0x30   :  { %v8700_v9 = vld [vmem:[%s19129_s1 + $0x680] sm:$0xf]  ;;  %v12112_v12 = vld [vmem:[%s19129_s1 + $0x78c] sm:$0xf0]  ;;  %v8573_v18 = vor.u32 %v12048_v8, %v8572_v6  ;;  %6009 = vmatpush.bf16.msrb.mxu3 %v8845_v7 }
  0x31   :  { %v8828_v11 = vld [vmem:[%s19129_s1 + $0x780] sm:$0xf]  ;;  %v12012_v15 = vld [vmem:[%s19129_s1 + $0x46c] sm:$0xf0]  ;;  %v8701_v19 = vor.u32 %v12080_v10, %v8700_v9  ;;  %5971 = vmatpush.bf16.msrb.mxu0 %v8445_v14 }
  0x32   :  { %v8428_v13 = vld [vmem:[%s19129_s1 + $0x460] sm:$0xf]  ;;  %v12044_v17 = vld [vmem:[%s19129_s1 + $0x56c] sm:$0xf0]  ;;  %v8829_v23 = vor.u32 %v12112_v12, %v8828_v11  ;;  %5984 = vmatpush.bf16.msrb.mxu1 %v8573_v18 }
  0x33   :  { %v8556_v16 = vld [vmem:[%s19129_s1 + $0x560] sm:$0xf]  ;;  %v13256_v20 = vld [vmem:[#allocation1 + $0x12] sm:$0xff]  ;;  %v13269_v26 = vld [vmem:[#allocation1 + $0x9] sm:$0xff]  ;;  %v8429_v29 = vor.u32 %v12012_v15, %v8428_v13  ;;  %5997 = vmatpush.bf16.msrb.mxu2 %v8701_v19 }
  0x34   :  { %v13258_v21 = vld [vmem:[#allocation1] sm:$0xff]  ;;  %v12076_v25 = vld [vmem:[%s19129_s1 + $0x66c] sm:$0xf0]  ;;  %5950 = vmatmul.bf16.vlgmr.msra.gmra.mxu2 %v13256_v20  ;;  %5937 = vmatmul.bf16.vlgmr.msra.gmra.mxu1 %v13269_v26  ;;  %v8557_v30 = vor.u32 %v12044_v17, %v8556_v16  ;;  %v13346_v60 = vld [vmem:[#allocation1 + $0x36] sm:$0xff] }
  0x35   :  { %v13260_v22 = vld [vmem:[#allocation1 + $0x1b] sm:$0xff]  ;;  %v12108_v28 = vld [vmem:[%s19129_s1 + $0x76c] sm:$0xf0]  ;;  %5924 = vmatmul.bf16.vlgmr.msra.gmra.mxu0 %v13258_v21  ;;  %6010 = vmatpush.bf16.msrb.mxu3 %v8829_v23  ;;  %v13351_v0 = vld [vmem:[#allocation1 + $0x24] sm:$0xff] }
  0x36   :  { %v8684_v24 = vld [vmem:[%s19129_s1 + $0x660] sm:$0xf]  ;;  %5963 = vmatmul.bf16.vlgmr.msra.gmra.mxu3 %v13260_v22  ;;  %v12008_v33 = vld [vmem:[%s19129_s1 + $0x44c] sm:$0xf0]  ;;  %5972 = vmatpush.bf16.msrb.mxu0 %v8429_v29 }
  0x37   :  { %v8812_v27 = vld [vmem:[%s19129_s1 + $0x760] sm:$0xf]  ;;  %v8685_v31 = vor.u32 %v12076_v25, %v8684_v24  ;;  %v12040_v36 = vld [vmem:[%s19129_s1 + $0x54c] sm:$0xf0]  ;;  %5985 = vmatpush.bf16.msrb.mxu1 %v8557_v30 }
  0x38   :  { %v8412_v32 = vld [vmem:[%s19129_s1 + $0x440] sm:$0xf]  ;;  %v8813_v35 = vor.u32 %v12108_v28, %v8812_v27  ;;  %v12072_v38 = vld [vmem:[%s19129_s1 + $0x64c] sm:$0xf0] }
  0x39   :  { %v8540_v34 = vld [vmem:[%s19129_s1 + $0x540] sm:$0xf]  ;;  %v12104_v40 = vld [vmem:[%s19129_s1 + $0x74c] sm:$0xf0]  ;;  %v8413_v41 = vor.u32 %v12008_v33, %v8412_v32  ;;  %5998 = vmatpush.bf16.msrb.mxu2 %v8685_v31 }
  0x3a   :  { %v8668_v37 = vld [vmem:[%s19129_s1 + $0x640] sm:$0xf]  ;;  %v8541_v43 = vor.u32 %v12040_v36, %v8540_v34  ;;  %v12004_v45 = vld [vmem:[%s19129_s1 + $0x42c] sm:$0xf0]  ;;  %6011 = vmatpush.bf16.msrb.mxu3 %v8813_v35 }
  0x3b   :  { %v8796_v39 = vld [vmem:[%s19129_s1 + $0x740] sm:$0xf]  ;;  %v8669_v44 = vor.u32 %v12072_v38, %v8668_v37  ;;  %v12036_v47 = vld [vmem:[%s19129_s1 + $0x52c] sm:$0xf0]  ;;  %5973 = vmatpush.bf16.msrb.mxu0 %v8413_v41 }
  0x3c   :  { %v8396_v42 = vld [vmem:[%s19129_s1 + $0x420] sm:$0xf]  ;;  %v8797_v48 = vor.u32 %v12104_v40, %v8796_v39  ;;  %v12068_v50 = vld [vmem:[%s19129_s1 + $0x62c] sm:$0xf0]  ;;  %5986 = vmatpush.bf16.msrb.mxu1 %v8541_v43 }
  0x3d   :  { %v8524_v46 = vld [vmem:[%s19129_s1 + $0x520] sm:$0xf]  ;;  %v12100_v52 = vld [vmem:[%s19129_s1 + $0x72c] sm:$0xf0]  ;;  %v8397_v55 = vor.u32 %v12004_v45, %v8396_v42  ;;  %5999 = vmatpush.bf16.msrb.mxu2 %v8669_v44 }
  0x3e   :  { %v8652_v49 = vld [vmem:[%s19129_s1 + $0x620] sm:$0xf]  ;;  %v12000_v54 = vld [vmem:[%s19129_s1 + $0x40c] sm:$0xf0]  ;;  %v8525_v62 = vor.u32 %v12036_v47, %v8524_v46  ;;  %6012 = vmatpush.bf16.msrb.mxu3 %v8797_v48 }
  0x3f   :  { %v8780_v51 = vld [vmem:[%s19129_s1 + $0x720] sm:$0xf]  ;;  %v12032_v57 = vld [vmem:[%s19129_s1 + $0x50c] sm:$0xf0]  ;;  %v8653_v63 = vor.u32 %v12068_v50, %v8652_v49  ;;  %5974 = vmatpush.bf16.msrb.mxu0 %v8397_v55 }
  0x40   :  { %v8380_v53 = vld [vmem:[%s19129_s1 + $0x400] sm:$0xf]  ;;  %v12064_v59 = vld [vmem:[%s19129_s1 + $0x60c] sm:$0xf0]  ;;  %v8781_v3 = vor.u32 %v12100_v52, %v8780_v51  ;;  %5987 = vmatpush.bf16.msrb.mxu1 %v8525_v62 }
  0x41   :  { %v8508_v56 = vld [vmem:[%s19129_s1 + $0x500] sm:$0xf]  ;;  %v13355_v2 = vld [vmem:[#allocation1 + $0x2d] sm:$0xff]  ;;  %v8381_v9 = vor.u32 %v12000_v54, %v8380_v53  ;;  %6000 = vmatpush.bf16.msrb.mxu2 %v8653_v63 }
  0x42   :  { %v8636_v58 = vld [vmem:[%s19129_s1 + $0x600] sm:$0xf]  ;;  %v12096_v5 = vld [vmem:[%s19129_s1 + $0x70c] sm:$0xf0]  ;;  %v8509_v13 = vor.u32 %v12032_v57, %v8508_v56  ;;  %6013 = vmatpush.bf16.msrb.mxu3 %v8781_v3 }
  0x43   :  { %v13353_v1 = vld [vmem:[#allocation1 + $0x3f] sm:$0xff]  ;;  %v12156_v7 = vld [vmem:[%s19129_s1 + $0x8ec] sm:$0xf0]  ;;  %v8637_v14 = vor.u32 %v12064_v59, %v8636_v58  ;;  %5975 = vmatpush.bf16.msrb.mxu0 %v8381_v9 }
  0x44   :  { %v8764_v4 = vld [vmem:[%s19129_s1 + $0x700] sm:$0xf]  ;;  %1015 = vst [vmem:[#allocation1] ss:$9 sm:$0xff] %v23_v61  ;;  %v12188_v10 = vld [vmem:[%s19129_s1 + $0x9ec] sm:$0xf0]  ;;  %5988 = vmatpush.bf16.msrb.mxu1 %v8509_v13 }
  0x45   :  { %v9004_v6 = vld [vmem:[%s19129_s1 + $0x8e0] sm:$0xf]  ;;  %v12220_v12 = vld [vmem:[%s19129_s1 + $0xaec] sm:$0xf0]  ;;  %v8765_v17 = vor.u32 %v12096_v5, %v8764_v4  ;;  %6001 = vmatpush.bf16.msrb.mxu2 %v8637_v14 }
  0x46   :  { %v9132_v8 = vld [vmem:[%s19129_s1 + $0x9e0] sm:$0xf]  ;;  %v12252_v16 = vld [vmem:[%s19129_s1 + $0xbec] sm:$0xf0]  ;;  %v9005_v18 = vor.u32 %v12156_v7, %v9004_v6  ;;  %5976 = vmatmul.bf16.vlgmr.msrb.gmra.mxu0 %v13351_v0 }
  0x47   :  { %v9260_v11 = vld [vmem:[%s19129_s1 + $0xae0] sm:$0xf]  ;;  %v9133_v19 = vor.u32 %v12188_v10, %v9132_v8  ;;  %v12152_v25 = vld [vmem:[%s19129_s1 + $0x8cc] sm:$0xf0]  ;;  %6014 = vmatpush.bf16.msrb.mxu3 %v8765_v17  ;;  %5989 = vmatmul.bf16.vlgmr.msrb.gmra.mxu1 %v13355_v2 }
  0x48   :  { %v9388_v15 = vld [vmem:[%s19129_s1 + $0xbe0] sm:$0xf]  ;;  %v9261_v23 = vor.u32 %v12220_v12, %v9260_v11  ;;  %v12184_v29 = vld [vmem:[%s19129_s1 + $0x9cc] sm:$0xf0]  ;;  %6020 = vmatpush.bf16.msra.mxu0 %v9005_v18  ;;  %6002 = vmatmul.bf16.vlgmr.msrb.gmra.mxu2 %v13346_v60 }
  0x49   :  { %v8988_v24 = vld [vmem:[%s19129_s1 + $0x8c0] sm:$0xf]  ;;  %v9389_v28 = vor.u32 %v12252_v16, %v9388_v15  ;;  %v12216_v31 = vld [vmem:[%s19129_s1 + $0xacc] sm:$0xf0]  ;;  %6033 = vmatpush.bf16.msra.mxu1 %v9133_v19 }
  0x4a   :  { %v9116_v27 = vld [vmem:[%s19129_s1 + $0x9c0] sm:$0xf]  ;;  %v12248_v33 = vld [vmem:[%s19129_s1 + $0xbcc] sm:$0xf0]  ;;  %v8989_v34 = vor.u32 %v12152_v25, %v8988_v24  ;;  %6046 = vmatpush.bf16.msra.mxu2 %v9261_v23  ;;  %6015 = vmatmul.bf16.vlgmr.msrb.gmra.mxu3 %v13353_v1 }
  0x4b   :  { %v9244_v30 = vld [vmem:[%s19129_s1 + $0xac0] sm:$0xf]  ;;  %v9117_v35 = vor.u32 %v12184_v29, %v9116_v27  ;;  %v12148_v38 = vld [vmem:[%s19129_s1 + $0x8ac] sm:$0xf0]  ;;  %6059 = vmatpush.bf16.msra.mxu3 %v9389_v28 }
  0x4c   :  { %v9372_v32 = vld [vmem:[%s19129_s1 + $0xbc0] sm:$0xf]  ;;  %v9245_v36 = vor.u32 %v12216_v31, %v9244_v30  ;;  %v12180_v41 = vld [vmem:[%s19129_s1 + $0x9ac] sm:$0xf0]  ;;  %6021 = vmatpush.bf16.msra.mxu0 %v8989_v34 }
  0x4d   :  { %v8972_v37 = vld [vmem:[%s19129_s1 + $0x8a0] sm:$0xf]  ;;  %v9373_v40 = vor.u32 %v12248_v33, %v9372_v32  ;;  %v12212_v43 = vld [vmem:[%s19129_s1 + $0xaac] sm:$0xf0]  ;;  %6034 = vmatpush.bf16.msra.mxu1 %v9117_v35 }
  0x4e   :  { %v9100_v39 = vld [vmem:[%s19129_s1 + $0x9a0] sm:$0xf]  ;;  %v12244_v45 = vld [vmem:[%s19129_s1 + $0xbac] sm:$0xf0]  ;;  %v8973_v46 = vor.u32 %v12148_v38, %v8972_v37  ;;  %6047 = vmatpush.bf16.msra.mxu2 %v9245_v36 }
  0x4f   :  { %v9228_v42 = vld [vmem:[%s19129_s1 + $0xaa0] sm:$0xf]  ;;  %v9101_v47 = vor.u32 %v12180_v41, %v9100_v39  ;;  %v12144_v50 = vld [vmem:[%s19129_s1 + $0x88c] sm:$0xf0]  ;;  %6060 = vmatpush.bf16.msra.mxu3 %v9373_v40 }
  0x50   :  { %v9356_v44 = vld [vmem:[%s19129_s1 + $0xba0] sm:$0xf]  ;;  %v9229_v48 = vor.u32 %v12212_v43, %v9228_v42  ;;  %v12176_v53 = vld [vmem:[%s19129_s1 + $0x98c] sm:$0xf0]  ;;  %6022 = vmatpush.bf16.msra.mxu0 %v8973_v46 }
  0x51   :  { %v8956_v49 = vld [vmem:[%s19129_s1 + $0x880] sm:$0xf]  ;;  %v9357_v52 = vor.u32 %v12244_v45, %v9356_v44  ;;  %v12208_v55 = vld [vmem:[%s19129_s1 + $0xa8c] sm:$0xf0]  ;;  %6035 = vmatpush.bf16.msra.mxu1 %v9101_v47 }
  0x52   :  { %v9084_v51 = vld [vmem:[%s19129_s1 + $0x980] sm:$0xf]  ;;  %v12240_v57 = vld [vmem:[%s19129_s1 + $0xb8c] sm:$0xf0]  ;;  %v8957_v58 = vor.u32 %v12144_v50, %v8956_v49  ;;  %6048 = vmatpush.bf16.msra.mxu2 %v9229_v48 }
  0x53   :  { %v9212_v54 = vld [vmem:[%s19129_s1 + $0xa80] sm:$0xf]  ;;  %v9085_v59 = vor.u32 %v12176_v53, %v9084_v51  ;;  %v12140_v63 = vld [vmem:[%s19129_s1 + $0x86c] sm:$0xf0]  ;;  %6061 = vmatpush.bf16.msra.mxu3 %v9357_v52 }
  0x54   :  { %v9340_v56 = vld [vmem:[%s19129_s1 + $0xb80] sm:$0xf]  ;;  %v9213_v61 = vor.u32 %v12208_v55, %v9212_v54  ;;  %v12172_v5 = vld [vmem:[%s19129_s1 + $0x96c] sm:$0xf0]  ;;  %6023 = vmatpush.bf16.msra.mxu0 %v8957_v58 }
  0x55   :  { %v8940_v62 = vld [vmem:[%s19129_s1 + $0x860] sm:$0xf]  ;;  %v9341_v4 = vor.u32 %v12240_v57, %v9340_v56  ;;  %v12204_v7 = vld [vmem:[%s19129_s1 + $0xa6c] sm:$0xf0]  ;;  %6036 = vmatpush.bf16.msra.mxu1 %v9085_v59 }
  0x56   :  { %v9068_v3 = vld [vmem:[%s19129_s1 + $0x960] sm:$0xf]  ;;  %v12236_v9 = vld [vmem:[%s19129_s1 + $0xb6c] sm:$0xf0]  ;;  %v8941_v10 = vor.u32 %v12140_v63, %v8940_v62  ;;  %6049 = vmatpush.bf16.msra.mxu2 %v9213_v61 }
  0x57   :  { %v9196_v6 = vld [vmem:[%s19129_s1 + $0xa60] sm:$0xf]  ;;  %v9069_v11 = vor.u32 %v12172_v5, %v9068_v3  ;;  %v12136_v14 = vld [vmem:[%s19129_s1 + $0x84c] sm:$0xf0]  ;;  %6062 = vmatpush.bf16.msra.mxu3 %v9341_v4 }
  0x58   :  { %v9324_v8 = vld [vmem:[%s19129_s1 + $0xb60] sm:$0xf]  ;;  %v9197_v12 = vor.u32 %v12204_v7, %v9196_v6  ;;  %v12168_v17 = vld [vmem:[%s19129_s1 + $0x94c] sm:$0xf0]  ;;  %6024 = vmatpush.bf16.msra.mxu0 %v8941_v10 }
  0x59   :  { %v8924_v13 = vld [vmem:[%s19129_s1 + $0x840] sm:$0xf]  ;;  %v9325_v16 = vor.u32 %v12236_v9, %v9324_v8  ;;  %v12200_v19 = vld [vmem:[%s19129_s1 + $0xa4c] sm:$0xf0]  ;;  %6037 = vmatpush.bf16.msra.mxu1 %v9069_v11 }
  0x5a   :  { %v9052_v15 = vld [vmem:[%s19129_s1 + $0x940] sm:$0xf]  ;;  %v12232_v24 = vld [vmem:[%s19129_s1 + $0xb4c] sm:$0xf0]  ;;  %v8925_v25 = vor.u32 %v12136_v14, %v8924_v13  ;;  %6050 = vmatpush.bf16.msra.mxu2 %v9197_v12 }
  0x5b   :  { %v9180_v18 = vld [vmem:[%s19129_s1 + $0xa40] sm:$0xf]  ;;  %v9053_v27 = vor.u32 %v12168_v17, %v9052_v15  ;;  %v12132_v30 = vld [vmem:[%s19129_s1 + $0x82c] sm:$0xf0]  ;;  %6063 = vmatpush.bf16.msra.mxu3 %v9325_v16 }
  0x5c   :  { %v9308_v23 = vld [vmem:[%s19129_s1 + $0xb40] sm:$0xf]  ;;  %v9181_v28 = vor.u32 %v12200_v19, %v9180_v18  ;;  %v12164_v33 = vld [vmem:[%s19129_s1 + $0x92c] sm:$0xf0]  ;;  %6025 = vmatpush.bf16.msra.mxu0 %v8925_v25 }
  0x5d   :  { %v8908_v29 = vld [vmem:[%s19129_s1 + $0x820] sm:$0xf]  ;;  %v9309_v32 = vor.u32 %v12232_v24, %v9308_v23  ;;  %v12196_v35 = vld [vmem:[%s19129_s1 + $0xa2c] sm:$0xf0]  ;;  %6038 = vmatpush.bf16.msra.mxu1 %v9053_v27 }
  0x5e   :  { %v9036_v31 = vld [vmem:[%s19129_s1 + $0x920] sm:$0xf]  ;;  %v12228_v37 = vld [vmem:[%s19129_s1 + $0xb2c] sm:$0xf0]  ;;  %v8909_v38 = vor.u32 %v12132_v30, %v8908_v29  ;;  %6051 = vmatpush.bf16.msra.mxu2 %v9181_v28 }
  0x5f   :  { %v9164_v34 = vld [vmem:[%s19129_s1 + $0xa20] sm:$0xf]  ;;  %v12128_v40 = vld [vmem:[%s19129_s1 + $0x80c] sm:$0xf0]  ;;  %v9037_v41 = vor.u32 %v12164_v33, %v9036_v31  ;;  %6064 = vmatpush.bf16.msra.mxu3 %v9309_v32 }
  0x60   :  { %v9292_v36 = vld [vmem:[%s19129_s1 + $0xb20] sm:$0xf]  ;;  %v9165_v42 = vor.u32 %v12196_v35, %v9164_v34  ;;  %v12160_v44 = vld [vmem:[%s19129_s1 + $0x90c] sm:$0xf0]  ;;  %6026 = vmatpush.bf16.msra.mxu0 %v8909_v38 }
  0x61   :  { %v8892_v39 = vld [vmem:[%s19129_s1 + $0x800] sm:$0xf]  ;;  %v9293_v46 = vor.u32 %v12228_v37, %v9292_v36  ;;  %v12192_v47 = vld [vmem:[%s19129_s1 + $0xa0c] sm:$0xf0]  ;;  %6039 = vmatpush.bf16.msra.mxu1 %v9037_v41 }
  0x62   :  { %v9020_v43 = vld [vmem:[%s19129_s1 + $0x900] sm:$0xf]  ;;  %v12224_v49 = vld [vmem:[%s19129_s1 + $0xb0c] sm:$0xf0]  ;;  %v8893_v53 = vor.u32 %v12128_v40, %v8892_v39  ;;  %6052 = vmatpush.bf16.msra.mxu2 %v9165_v42 }
  0x63   :  { %v9148_v45 = vld [vmem:[%s19129_s1 + $0xa00] sm:$0xf]  ;;  %v12284_v51 = vld [vmem:[%s19129_s1 + $0xcec] sm:$0xf0]  ;;  %v9021_v57 = vor.u32 %v12160_v44, %v9020_v43  ;;  %6065 = vmatpush.bf16.msra.mxu3 %v9293_v46 }
  0x64   :  { %v9276_v48 = vld [vmem:[%s19129_s1 + $0xb00] sm:$0xf]  ;;  %v12316_v54 = vld [vmem:[%s19129_s1 + $0xdec] sm:$0xf0]  ;;  %v9149_v58 = vor.u32 %v12192_v47, %v9148_v45  ;;  %6027 = vmatpush.bf16.msra.mxu0 %v8893_v53 }
  0x65   :  { %v9516_v50 = vld [vmem:[%s19129_s1 + $0xce0] sm:$0xf]  ;;  %v12348_v56 = vld [vmem:[%s19129_s1 + $0xeec] sm:$0xf0]  ;;  %v9277_v62 = vor.u32 %v12224_v49, %v9276_v48  ;;  %6040 = vmatpush.bf16.msra.mxu1 %v9021_v57 }
  0x66   :  { %v9644_v52 = vld [vmem:[%s19129_s1 + $0xde0] sm:$0xf]  ;;  %v12380_v61 = vld [vmem:[%s19129_s1 + $0xfec] sm:$0xf0]  ;;  %v9517_v63 = vor.u32 %v12284_v51, %v9516_v50  ;;  %6053 = vmatpush.bf16.msra.mxu2 %v9149_v58 }
  0x67   :  { %v9772_v55 = vld [vmem:[%s19129_s1 + $0xee0] sm:$0xf]  ;;  %v9645_v3 = vor.u32 %v12316_v54, %v9644_v52  ;;  %v12280_v6 = vld [vmem:[%s19129_s1 + $0xccc] sm:$0xf0]  ;;  %6066 = vmatpush.bf16.msra.mxu3 %v9277_v62 }
  0x68   :  { %v9900_v59 = vld [vmem:[%s19129_s1 + $0xfe0] sm:$0xf]  ;;  %v9773_v4 = vor.u32 %v12348_v56, %v9772_v55  ;;  %v12312_v9 = vld [vmem:[%s19129_s1 + $0xdcc] sm:$0xf0]  ;;  %6072 = vmatpush.bf16.msrb.mxu0 %v9517_v63 }
  0x69   :  { %v9500_v5 = vld [vmem:[%s19129_s1 + $0xcc0] sm:$0xf]  ;;  %v9901_v8 = vor.u32 %v12380_v61, %v9900_v59  ;;  %v12344_v11 = vld [vmem:[%s19129_s1 + $0xecc] sm:$0xf0]  ;;  %6085 = vmatpush.bf16.msrb.mxu1 %v9645_v3 }
  0x6a   :  { %v9628_v7 = vld [vmem:[%s19129_s1 + $0xdc0] sm:$0xf]  ;;  %v12376_v14 = vld [vmem:[%s19129_s1 + $0xfcc] sm:$0xf0]  ;;  %v9501_v18 = vor.u32 %v12280_v6, %v9500_v5  ;;  %6098 = vmatpush.bf16.msrb.mxu2 %v9773_v4 }
  0x6b   :  { %v9756_v10 = vld [vmem:[%s19129_s1 + $0xec0] sm:$0xf]  ;;  %v13609_v15 = vld [vmem:[#allocation1 + $0x12] sm:$0xff]  ;;  %v13611_v16 = vld [vmem:[#allocation1 + $0x9] sm:$0xff]  ;;  %v9629_v19 = vor.u32 %v12312_v9, %v9628_v7  ;;  %6111 = vmatpush.bf16.msrb.mxu3 %v9901_v8 }
  0x6c   :  { %v13601_v12 = vld [vmem:[#allocation1] sm:$0xff]  ;;  %v9757_v23 = vor.u32 %v12344_v11, %v9756_v10  ;;  %v12276_v25 = vld [vmem:[%s19129_s1 + $0xcac] sm:$0xf0]  ;;  %6054 = vmatmul.bf16.vlgmr.msra.gmra.mxu2 %v13609_v15  ;;  %6041 = vmatmul.bf16.vlgmr.msra.gmra.mxu1 %v13611_v16 }
  0x6d   :  { %v9884_v13 = vld [vmem:[%s19129_s1 + $0xfc0] sm:$0xf]  ;;  %6028 = vmatmul.bf16.vlgmr.msra.gmra.mxu0 %v13601_v12  ;;  %v12308_v29 = vld [vmem:[%s19129_s1 + $0xdac] sm:$0xf0]  ;;  %6086 = vmatpush.bf16.msrb.mxu1 %v9629_v19 }
  0x6e   :  { %v13613_v17 = vld [vmem:[#allocation1 + $0x1b] sm:$0xff]  ;;  %v9885_v28 = vor.u32 %v12376_v14, %v9884_v13  ;;  %v12340_v31 = vld [vmem:[%s19129_s1 + $0xeac] sm:$0xf0]  ;;  %6073 = vmatpush.bf16.msrb.mxu0 %v9501_v18  ;;  %6099 = vmatpush.bf16.msrb.mxu2 %v9757_v23 }
  0x6f   :  { %v9484_v24 = vld [vmem:[%s19129_s1 + $0xca0] sm:$0xf]  ;;  %v12372_v33 = vld [vmem:[%s19129_s1 + $0xfac] sm:$0xf0]  ;;  %6067 = vmatmul.bf16.vlgmr.msra.gmra.mxu3 %v13613_v17 }
  0x70   :  { %v9612_v27 = vld [vmem:[%s19129_s1 + $0xda0] sm:$0xf]  ;;  %v9485_v34 = vor.u32 %v12276_v25, %v9484_v24  ;;  %v12272_v38 = vld [vmem:[%s19129_s1 + $0xc8c] sm:$0xf0]  ;;  %6112 = vmatpush.bf16.msrb.mxu3 %v9885_v28 }
  0x71   :  { %v9740_v30 = vld [vmem:[%s19129_s1 + $0xea0] sm:$0xf]  ;;  %v9613_v36 = vor.u32 %v12308_v29, %v9612_v27  ;;  %v12304_v40 = vld [vmem:[%s19129_s1 + $0xd8c] sm:$0xf0] }
  0x72   :  { %v9868_v32 = vld [vmem:[%s19129_s1 + $0xfa0] sm:$0xf]  ;;  %v9741_v37 = vor.u32 %v12340_v31, %v9740_v30  ;;  %v12336_v43 = vld [vmem:[%s19129_s1 + $0xe8c] sm:$0xf0] }
  0x73   :  { %v9468_v35 = vld [vmem:[%s19129_s1 + $0xc80] sm:$0xf]  ;;  %v9869_v41 = vor.u32 %v12372_v33, %v9868_v32  ;;  %v12368_v45 = vld [vmem:[%s19129_s1 + $0xf8c] sm:$0xf0] }
  0x74   :  { %v9596_v39 = vld [vmem:[%s19129_s1 + $0xd80] sm:$0xf] }
  0x75   :  { %v9724_v42 = vld [vmem:[%s19129_s1 + $0xe80] sm:$0xf] }
  0x76   :  { %v9852_v44 = vld [vmem:[%s19129_s1 + $0xf80] sm:$0xf] }
  0x77   :  { %10 = vsyncpa [#allocation3], 0  ;;  %6074 = vmatpush.bf16.msrb.mxu0 %v9485_v34  ;;  %v9469_v46 = vor.u32 %v12272_v38, %v9468_v35  ;;  %6087 = vmatpush.bf16.msrb.mxu1 %v9613_v36  ;;  %v9597_v47 = vor.u32 %v12304_v40, %v9596_v39  ;;  %v9725_v48 = vor.u32 %v12336_v43, %v9724_v42  ;;  %v9452_v49 = vld [vmem:[%s19129_s1 + $0xc60] sm:$0xf]  ;;  %v12268_v50 = vld [vmem:[%s19129_s1 + $0xc6c] sm:$0xf0] }
  0x78   :  { %6100 = vmatpush.bf16.msrb.mxu2 %v9741_v37  ;;  %v9580_v51 = vld [vmem:[%s19129_s1 + $0xd60] sm:$0xf]  ;;  %6113 = vmatpush.bf16.msrb.mxu3 %v9869_v41  ;;  %v9853_v52 = vor.u32 %v12368_v45, %v9852_v44  ;;  %v12300_v53 = vld [vmem:[%s19129_s1 + $0xd6c] sm:$0xf0]  ;;  %v9453_v58 = vor.u32 %v12268_v50, %v9452_v49  ;;  %vm5913_vm0 = vcmask 261120   ;;  %s7857_s11 = sshll.u32 %s19133_s5, 4  ;;  %s7858_s11 = int_to_ptr.hbm [resolvable:$true] %s7857_s11 }
  0x79   :  { %v9708_v54 = vld [vmem:[%s19129_s1 + $0xe60] sm:$0xf]  ;;  %v12332_v55 = vld [vmem:[%s19129_s1 + $0xe6c] sm:$0xf0]  ;;  %v9581_v59 = vor.u32 %v12300_v53, %v9580_v51  ;;  %vm7848_vm1 = vcmask 25600  }
  0x7a   :  { %v9836_v56 = vld [vmem:[%s19129_s1 + $0xf60] sm:$0xf]  ;;  %v12364_v57 = vld [vmem:[%s19129_s1 + $0xf6c] sm:$0xf0]  ;;  %v9709_v61 = vor.u32 %v12332_v55, %v9708_v54 }
  0x7b   :  { %6075 = vmatpush.bf16.msrb.mxu0 %v9469_v46  ;;  %6088 = vmatpush.bf16.msrb.mxu1 %v9597_v47  ;;  %v9436_v62 = vld [vmem:[%s19129_s1 + $0xc40] sm:$0xf]  ;;  %v12264_v63 = vld [vmem:[%s19129_s1 + $0xc4c] sm:$0xf0]  ;;  %v9837_v4 = vor.u32 %v12364_v57, %v9836_v56  ;;  %v13775_v46 = vld [vmem:[#allocation1 + $0x24] sm:$0xff] }
  0x7c   :  { %6101 = vmatpush.bf16.msrb.mxu2 %v9725_v48  ;;  %v9564_v3 = vld [vmem:[%s19129_s1 + $0xd40] sm:$0xf]  ;;  %6114 = vmatpush.bf16.msrb.mxu3 %v9853_v52  ;;  %v12296_v5 = vld [vmem:[%s19129_s1 + $0xd4c] sm:$0xf0]  ;;  %v9437_v10 = vor.u32 %v12264_v63, %v9436_v62  ;;  %v13777_v47 = vld [vmem:[#allocation1 + $0x36] sm:$0xff] }
  0x7d   :  { %v9692_v6 = vld [vmem:[%s19129_s1 + $0xe40] sm:$0xf]  ;;  %v12328_v7 = vld [vmem:[%s19129_s1 + $0xe4c] sm:$0xf0]  ;;  %v9565_v13 = vor.u32 %v12296_v5, %v9564_v3 }
  0x7e   :  { %v9820_v8 = vld [vmem:[%s19129_s1 + $0xf40] sm:$0xf]  ;;  %v12360_v9 = vld [vmem:[%s19129_s1 + $0xf4c] sm:$0xf0]  ;;  %v9693_v14 = vor.u32 %v12328_v7, %v9692_v6 }
  0x7f   :  { %6076 = vmatpush.bf16.msrb.mxu0 %v9453_v58  ;;  %v9420_v11 = vld [vmem:[%s19129_s1 + $0xc20] sm:$0xf]  ;;  %6089 = vmatpush.bf16.msrb.mxu1 %v9581_v59  ;;  %v12260_v18 = vld [vmem:[%s19129_s1 + $0xc2c] sm:$0xf0]  ;;  %v9821_v24 = vor.u32 %v12360_v9, %v9820_v8 }
  0x80   :  { %6102 = vmatpush.bf16.msrb.mxu2 %v9709_v61  ;;  %v9548_v19 = vld [vmem:[%s19129_s1 + $0xd20] sm:$0xf]  ;;  %v12292_v23 = vld [vmem:[%s19129_s1 + $0xd2c] sm:$0xf0]  ;;  %6115 = vmatpush.bf16.msrb.mxu3 %v9837_v4  ;;  %v9421_v32 = vor.u32 %v12260_v18, %v9420_v11 }
  0x81   :  { %v9676_v25 = vld [vmem:[%s19129_s1 + $0xe20] sm:$0xf]  ;;  %v12324_v27 = vld [vmem:[%s19129_s1 + $0xe2c] sm:$0xf0]  ;;  %v9549_v37 = vor.u32 %v12292_v23, %v9548_v19 }
  0x82   :  { %v9804_v28 = vld [vmem:[%s19129_s1 + $0xf20] sm:$0xf]  ;;  %v12356_v29 = vld [vmem:[%s19129_s1 + $0xf2c] sm:$0xf0]  ;;  %v9677_v38 = vor.u32 %v12324_v27, %v9676_v25 }
  0x83   :  { %v9404_v30 = vld [vmem:[%s19129_s1 + $0xc00] sm:$0xf]  ;;  %v12256_v31 = vld [vmem:[%s19129_s1 + $0xc0c] sm:$0xf0]  ;;  %6077 = vmatpush.bf16.msrb.mxu0 %v9437_v10  ;;  %6090 = vmatpush.bf16.msrb.mxu1 %v9565_v13  ;;  %v9805_v43 = vor.u32 %v12356_v29, %v9804_v28 }
  0x84   :  { %v9532_v33 = vld [vmem:[%s19129_s1 + $0xd00] sm:$0xf]  ;;  %v12288_v34 = vld [vmem:[%s19129_s1 + $0xd0c] sm:$0xf0]  ;;  %6103 = vmatpush.bf16.msrb.mxu2 %v9693_v14  ;;  %6116 = vmatpush.bf16.msrb.mxu3 %v9821_v24  ;;  %v9405_v51 = vor.u32 %v12256_v31, %v9404_v30 }
  0x85   :  { %v9660_v35 = vld [vmem:[%s19129_s1 + $0xe00] sm:$0xf]  ;;  %v12320_v36 = vld [vmem:[%s19129_s1 + $0xe0c] sm:$0xf0]  ;;  %v9533_v54 = vor.u32 %v12288_v34, %v9532_v33 }
  0x86   :  { %v9788_v39 = vld [vmem:[%s19129_s1 + $0xf00] sm:$0xf]  ;;  %v12352_v40 = vld [vmem:[%s19129_s1 + $0xf0c] sm:$0xf0]  ;;  %v9661_v55 = vor.u32 %v12320_v36, %v9660_v35 }
  0x87   :  { %v10028_v41 = vld [vmem:[%s19129_s1 + $0x10e0] sm:$0xf]  ;;  %v12412_v42 = vld [vmem:[%s19129_s1 + $0x10ec] sm:$0xf0]  ;;  %6078 = vmatpush.bf16.msrb.mxu0 %v9421_v32  ;;  %6091 = vmatpush.bf16.msrb.mxu1 %v9549_v37  ;;  %v9789_v58 = vor.u32 %v12352_v40, %v9788_v39 }
  0x88   :  { %v10156_v44 = vld [vmem:[%s19129_s1 + $0x11e0] sm:$0xf]  ;;  %v12444_v45 = vld [vmem:[%s19129_s1 + $0x11ec] sm:$0xf0]  ;;  %6104 = vmatpush.bf16.msrb.mxu2 %v9677_v38  ;;  %6117 = vmatpush.bf16.msrb.mxu3 %v9805_v43  ;;  %v10029_v59 = vor.u32 %v12412_v42, %v10028_v41 }
  0x89   :  { %v13779_v48 = vld [vmem:[#allocation1 + $0x2d] sm:$0xff]  ;;  %v13781_v49 = vld [vmem:[#allocation1 + $0x3f] sm:$0xff]  ;;  %v10157_v61 = vor.u32 %v12444_v45, %v10156_v44 }
  0x8a   :  { %v24_v50 = vld [vmem:[%s19128_s0 + $0x10] sm:$0xff]  ;;  %v10284_v52 = vld [vmem:[%s19129_s1 + $0x12e0] sm:$0xf] }
  0x8b   :  { %v12476_v53 = vld [vmem:[%s19129_s1 + $0x12ec] sm:$0xf0]  ;;  %1025 = vst [vmem:[#allocation1] ss:$9 sm:$0xff] %v24_v50  ;;  %v10412_v56 = vld [vmem:[%s19129_s1 + $0x13e0] sm:$0xf]  ;;  %6079 = vmatpush.bf16.msrb.mxu0 %v9405_v51  ;;  %6092 = vmatpush.bf16.msrb.mxu1 %v9533_v54 }
  0x8c   :  { %v12508_v57 = vld [vmem:[%s19129_s1 + $0x13ec] sm:$0xf0]  ;;  %v10285_v62 = vor.u32 %v12476_v53, %v10284_v52  ;;  %v10012_v63 = vld [vmem:[%s19129_s1 + $0x10c0] sm:$0xf]  ;;  %6105 = vmatpush.bf16.msrb.mxu2 %v9661_v55  ;;  %6118 = vmatpush.bf16.msrb.mxu3 %v9789_v58 }
  0x8d   :  { %v12408_v3 = vld [vmem:[%s19129_s1 + $0x10cc] sm:$0xf0]  ;;  %v10140_v4 = vld [vmem:[%s19129_s1 + $0x11c0] sm:$0xf]  ;;  %v10413_v5 = vor.u32 %v12508_v57, %v10412_v56 }
  0x8e   :  { %v12440_v6 = vld [vmem:[%s19129_s1 + $0x11cc] sm:$0xf0]  ;;  %v10268_v7 = vld [vmem:[%s19129_s1 + $0x12c0] sm:$0xf]  ;;  %v10013_v11 = vor.u32 %v12408_v3, %v10012_v63  ;;  %6080 = vmatmul.bf16.vlgmr.msrb.gmra.mxu0 %v13775_v46  ;;  %6093 = vmatmul.bf16.vlgmr.msrb.gmra.mxu1 %v13779_v48 }
  0x8f   :  { %v12472_v8 = vld [vmem:[%s19129_s1 + $0x12cc] sm:$0xf0]  ;;  %v10396_v9 = vld [vmem:[%s19129_s1 + $0x13c0] sm:$0xf]  ;;  %6124 = vmatpush.bf16.msra.mxu0 %v10029_v59  ;;  %6137 = vmatpush.bf16.msra.mxu1 %v10157_v61  ;;  %v10141_v13 = vor.u32 %v12440_v6, %v10140_v4 }
  0x90   :  { %v12504_v10 = vld [vmem:[%s19129_s1 + $0x13cc] sm:$0xf0]  ;;  %6150 = vmatpush.bf16.msra.mxu2 %v10285_v62  ;;  %v10269_v14 = vor.u32 %v12472_v8, %v10268_v7  ;;  %v9996_v18 = vld [vmem:[%s19129_s1 + $0x10a0] sm:$0xf]  ;;  %6163 = vmatpush.bf16.msra.mxu3 %v10413_v5 }
  0x91   :  { %v12404_v19 = vld [vmem:[%s19129_s1 + $0x10ac] sm:$0xf0]  ;;  %v10124_v23 = vld [vmem:[%s19129_s1 + $0x11a0] sm:$0xf]  ;;  %v10397_v24 = vor.u32 %v12504_v10, %v10396_v9  ;;  %6106 = vmatmul.bf16.vlgmr.msrb.gmra.mxu2 %v13777_v47  ;;  %6119 = vmatmul.bf16.vlgmr.msrb.gmra.mxu3 %v13781_v49 }
  0x92   :  { %v12436_v25 = vld [vmem:[%s19129_s1 + $0x11ac] sm:$0xf0]  ;;  %v10252_v27 = vld [vmem:[%s19129_s1 + $0x12a0] sm:$0xf]  ;;  %v9997_v31 = vor.u32 %v12404_v19, %v9996_v18 }
  0x93   :  { %v12468_v28 = vld [vmem:[%s19129_s1 + $0x12ac] sm:$0xf0]  ;;  %v10380_v29 = vld [vmem:[%s19129_s1 + $0x13a0] sm:$0xf]  ;;  %6125 = vmatpush.bf16.msra.mxu0 %v10013_v11  ;;  %6138 = vmatpush.bf16.msra.mxu1 %v10141_v13  ;;  %v10125_v32 = vor.u32 %v12436_v25, %v10124_v23 }
  0x94   :  { %v12500_v30 = vld [vmem:[%s19129_s1 + $0x13ac] sm:$0xf0]  ;;  %6151 = vmatpush.bf16.msra.mxu2 %v10269_v14  ;;  %v10253_v33 = vor.u32 %v12468_v28, %v10252_v27  ;;  %v9980_v34 = vld [vmem:[%s19129_s1 + $0x1080] sm:$0xf]  ;;  %6164 = vmatpush.bf16.msra.mxu3 %v10397_v24 }
  0x95   :  { %v12400_v35 = vld [vmem:[%s19129_s1 + $0x108c] sm:$0xf0]  ;;  %v10108_v36 = vld [vmem:[%s19129_s1 + $0x1180] sm:$0xf]  ;;  %v10381_v37 = vor.u32 %v12500_v30, %v10380_v29 }
  0x96   :  { %v12432_v38 = vld [vmem:[%s19129_s1 + $0x118c] sm:$0xf0]  ;;  %v10236_v39 = vld [vmem:[%s19129_s1 + $0x1280] sm:$0xf]  ;;  %v9981_v43 = vor.u32 %v12400_v35, %v9980_v34 }
  0x97   :  { %v12464_v40 = vld [vmem:[%s19129_s1 + $0x128c] sm:$0xf0]  ;;  %v10364_v41 = vld [vmem:[%s19129_s1 + $0x1380] sm:$0xf]  ;;  %6126 = vmatpush.bf16.msra.mxu0 %v9997_v31  ;;  %6139 = vmatpush.bf16.msra.mxu1 %v10125_v32  ;;  %v10109_v44 = vor.u32 %v12432_v38, %v10108_v36 }
  0x98   :  { %v12496_v42 = vld [vmem:[%s19129_s1 + $0x138c] sm:$0xf0]  ;;  %6152 = vmatpush.bf16.msra.mxu2 %v10253_v33  ;;  %v10237_v45 = vor.u32 %v12464_v40, %v10236_v39  ;;  %v9964_v50 = vld [vmem:[%s19129_s1 + $0x1060] sm:$0xf]  ;;  %6165 = vmatpush.bf16.msra.mxu3 %v10381_v37 }
  0x99   :  { %v12396_v51 = vld [vmem:[%s19129_s1 + $0x106c] sm:$0xf0]  ;;  %v10092_v52 = vld [vmem:[%s19129_s1 + $0x1160] sm:$0xf]  ;;  %v10365_v53 = vor.u32 %v12496_v42, %v10364_v41 }
  0x9a   :  { %v12428_v54 = vld [vmem:[%s19129_s1 + $0x116c] sm:$0xf0]  ;;  %v10220_v55 = vld [vmem:[%s19129_s1 + $0x1260] sm:$0xf]  ;;  %v9965_v59 = vor.u32 %v12396_v51, %v9964_v50 }
  0x9b   :  { %v12460_v56 = vld [vmem:[%s19129_s1 + $0x126c] sm:$0xf0]  ;;  %v10348_v57 = vld [vmem:[%s19129_s1 + $0x1360] sm:$0xf]  ;;  %6127 = vmatpush.bf16.msra.mxu0 %v9981_v43  ;;  %6140 = vmatpush.bf16.msra.mxu1 %v10109_v44  ;;  %v10093_v61 = vor.u32 %v12428_v54, %v10092_v52 }
  0x9c   :  { %v12492_v58 = vld [vmem:[%s19129_s1 + $0x136c] sm:$0xf0]  ;;  %6153 = vmatpush.bf16.msra.mxu2 %v10237_v45  ;;  %v10221_v62 = vor.u32 %v12460_v56, %v10220_v55  ;;  %v9948_v63 = vld [vmem:[%s19129_s1 + $0x1040] sm:$0xf]  ;;  %6166 = vmatpush.bf16.msra.mxu3 %v10365_v53 }
  0x9d   :  { %v12392_v3 = vld [vmem:[%s19129_s1 + $0x104c] sm:$0xf0]  ;;  %v10076_v4 = vld [vmem:[%s19129_s1 + $0x1140] sm:$0xf]  ;;  %v10349_v5 = vor.u32 %v12492_v58, %v10348_v57 }
  0x9e   :  { %v12424_v6 = vld [vmem:[%s19129_s1 + $0x114c] sm:$0xf0]  ;;  %v10204_v7 = vld [vmem:[%s19129_s1 + $0x1240] sm:$0xf]  ;;  %v9949_v11 = vor.u32 %v12392_v3, %v9948_v63 }
  0x9f   :  { %v12456_v8 = vld [vmem:[%s19129_s1 + $0x124c] sm:$0xf0]  ;;  %v10332_v9 = vld [vmem:[%s19129_s1 + $0x1340] sm:$0xf]  ;;  %6128 = vmatpush.bf16.msra.mxu0 %v9965_v59  ;;  %6141 = vmatpush.bf16.msra.mxu1 %v10093_v61  ;;  %v10077_v13 = vor.u32 %v12424_v6, %v10076_v4 }
  0xa0   :  { %v12488_v10 = vld [vmem:[%s19129_s1 + $0x134c] sm:$0xf0]  ;;  %6154 = vmatpush.bf16.msra.mxu2 %v10221_v62  ;;  %v10205_v14 = vor.u32 %v12456_v8, %v10204_v7  ;;  %v9932_v18 = vld [vmem:[%s19129_s1 + $0x1020] sm:$0xf]  ;;  %6167 = vmatpush.bf16.msra.mxu3 %v10349_v5 }
  0xa1   :  { %v12388_v19 = vld [vmem:[%s19129_s1 + $0x102c] sm:$0xf0]  ;;  %v10060_v23 = vld [vmem:[%s19129_s1 + $0x1120] sm:$0xf]  ;;  %v10333_v24 = vor.u32 %v12488_v10, %v10332_v9 }
  0xa2   :  { %v12420_v25 = vld [vmem:[%s19129_s1 + $0x112c] sm:$0xf0]  ;;  %v10188_v27 = vld [vmem:[%s19129_s1 + $0x1220] sm:$0xf]  ;;  %v9933_v31 = vor.u32 %v12388_v19, %v9932_v18 }
  0xa3   :  { %v12452_v28 = vld [vmem:[%s19129_s1 + $0x122c] sm:$0xf0]  ;;  %v10316_v29 = vld [vmem:[%s19129_s1 + $0x1320] sm:$0xf]  ;;  %6129 = vmatpush.bf16.msra.mxu0 %v9949_v11  ;;  %6142 = vmatpush.bf16.msra.mxu1 %v10077_v13  ;;  %v10061_v34 = vor.u32 %v12420_v25, %v10060_v23 }
  0xa4   :  { %v12484_v30 = vld [vmem:[%s19129_s1 + $0x132c] sm:$0xf0]  ;;  %v9916_v32 = vld [vmem:[%s19129_s1 + $0x1000] sm:$0xf]  ;;  %6155 = vmatpush.bf16.msra.mxu2 %v10205_v14  ;;  %v10189_v35 = vor.u32 %v12452_v28, %v10188_v27  ;;  %6168 = vmatpush.bf16.msra.mxu3 %v10333_v24 }
  0xa5   :  { %v12384_v33 = vld [vmem:[%s19129_s1 + $0x100c] sm:$0xf0]  ;;  %v10044_v36 = vld [vmem:[%s19129_s1 + $0x1100] sm:$0xf]  ;;  %v10317_v39 = vor.u32 %v12484_v30, %v10316_v29 }
  0xa6   :  { %v12416_v37 = vld [vmem:[%s19129_s1 + $0x110c] sm:$0xf0]  ;;  %v10172_v38 = vld [vmem:[%s19129_s1 + $0x1200] sm:$0xf]  ;;  %v9917_v50 = vor.u32 %v12384_v33, %v9916_v32 }
  0xa7   :  { %v12448_v40 = vld [vmem:[%s19129_s1 + $0x120c] sm:$0xf0]  ;;  %v10300_v41 = vld [vmem:[%s19129_s1 + $0x1300] sm:$0xf]  ;;  %6130 = vmatpush.bf16.msra.mxu0 %v9933_v31  ;;  %6143 = vmatpush.bf16.msra.mxu1 %v10061_v34  ;;  %v10045_v54 = vor.u32 %v12416_v37, %v10044_v36 }
  0xa8   :  { %v12480_v42 = vld [vmem:[%s19129_s1 + $0x130c] sm:$0xf0]  ;;  %v10540_v43 = vld [vmem:[%s19129_s1 + $0x14e0] sm:$0xf]  ;;  %6156 = vmatpush.bf16.msra.mxu2 %v10189_v35  ;;  %v10173_v55 = vor.u32 %v12448_v40, %v10172_v38  ;;  %6169 = vmatpush.bf16.msra.mxu3 %v10317_v39 }
  0xa9   :  { %v12540_v44 = vld [vmem:[%s19129_s1 + $0x14ec] sm:$0xf0]  ;;  %v10668_v45 = vld [vmem:[%s19129_s1 + $0x15e0] sm:$0xf]  ;;  %v10301_v58 = vor.u32 %v12480_v42, %v10300_v41 }
  0xaa   :  { %v12572_v51 = vld [vmem:[%s19129_s1 + $0x15ec] sm:$0xf0]  ;;  %v10796_v52 = vld [vmem:[%s19129_s1 + $0x16e0] sm:$0xf]  ;;  %v10541_v59 = vor.u32 %v12540_v44, %v10540_v43 }
  0xab   :  { %v12604_v53 = vld [vmem:[%s19129_s1 + $0x16ec] sm:$0xf0]  ;;  %v10924_v56 = vld [vmem:[%s19129_s1 + $0x17e0] sm:$0xf]  ;;  %v10669_v61 = vor.u32 %v12572_v51, %v10668_v45  ;;  %6131 = vmatpush.bf16.msra.mxu0 %v9917_v50  ;;  %6144 = vmatpush.bf16.msra.mxu1 %v10045_v54 }
  0xac   :  { %v12636_v57 = vld [vmem:[%s19129_s1 + $0x17ec] sm:$0xf0]  ;;  %v10797_v62 = vor.u32 %v12604_v53, %v10796_v52  ;;  %v10524_v63 = vld [vmem:[%s19129_s1 + $0x14c0] sm:$0xf]  ;;  %6157 = vmatpush.bf16.msra.mxu2 %v10173_v55  ;;  %6170 = vmatpush.bf16.msra.mxu3 %v10301_v58 }
  0xad   :  { %v12536_v3 = vld [vmem:[%s19129_s1 + $0x14cc] sm:$0xf0]  ;;  %v10652_v4 = vld [vmem:[%s19129_s1 + $0x15c0] sm:$0xf]  ;;  %v10925_v5 = vor.u32 %v12636_v57, %v10924_v56 }
  0xae   :  { %v12568_v6 = vld [vmem:[%s19129_s1 + $0x15cc] sm:$0xf0]  ;;  %v10780_v7 = vld [vmem:[%s19129_s1 + $0x16c0] sm:$0xf]  ;;  %v10525_v19 = vor.u32 %v12536_v3, %v10524_v63 }
  0xaf   :  { %v12600_v8 = vld [vmem:[%s19129_s1 + $0x16cc] sm:$0xf0]  ;;  %v14012_v9 = vld [vmem:[#allocation1] sm:$0xff]  ;;  %6176 = vmatpush.bf16.msrb.mxu0 %v10541_v59  ;;  %6189 = vmatpush.bf16.msrb.mxu1 %v10669_v61  ;;  %v10653_v23 = vor.u32 %v12568_v6, %v10652_v4 }
  0xb0   :  { %v10908_v10 = vld [vmem:[%s19129_s1 + $0x17c0] sm:$0xf]  ;;  %v12632_v11 = vld [vmem:[%s19129_s1 + $0x17cc] sm:$0xf0]  ;;  %6202 = vmatpush.bf16.msrb.mxu2 %v10797_v62  ;;  %v10781_v24 = vor.u32 %v12600_v8, %v10780_v7  ;;  %6215 = vmatpush.bf16.msrb.mxu3 %v10925_v5 }
  0xb1   :  { %v14020_v13 = vld [vmem:[#allocation1 + $0x12] sm:$0xff]  ;;  %v14022_v14 = vld [vmem:[#allocation1 + $0x9] sm:$0xff]  ;;  %v14024_v18 = vld [vmem:[#allocation1 + $0x1b] sm:$0xff]  ;;  %6132 = vmatmul.bf16.vlgmr.msra.gmra.mxu0 %v14012_v9  ;;  %v10909_v29 = vor.u32 %v12632_v11, %v10908_v10 }
  0xb2   :  { %v10508_v25 = vld [vmem:[%s19129_s1 + $0x14a0] sm:$0xf]  ;;  %v12532_v27 = vld [vmem:[%s19129_s1 + $0x14ac] sm:$0xf0]  ;;  %6158 = vmatmul.bf16.vlgmr.msra.gmra.mxu2 %v14020_v13  ;;  %6145 = vmatmul.bf16.vlgmr.msra.gmra.mxu1 %v14022_v14 }
  0xb3   :  { %v10636_v28 = vld [vmem:[%s19129_s1 + $0x15a0] sm:$0xf]  ;;  %v12564_v30 = vld [vmem:[%s19129_s1 + $0x15ac] sm:$0xf0]  ;;  %6171 = vmatmul.bf16.vlgmr.msra.gmra.mxu3 %v14024_v18  ;;  %6177 = vmatpush.bf16.msrb.mxu0 %v10525_v19  ;;  %v10509_v35 = vor.u32 %v12532_v27, %v10508_v25 }
  0xb4   :  { %v10764_v31 = vld [vmem:[%s19129_s1 + $0x16a0] sm:$0xf]  ;;  %v12596_v32 = vld [vmem:[%s19129_s1 + $0x16ac] sm:$0xf0]  ;;  %6190 = vmatpush.bf16.msrb.mxu1 %v10653_v23  ;;  %6203 = vmatpush.bf16.msrb.mxu2 %v10781_v24  ;;  %v10637_v36 = vor.u32 %v12564_v30, %v10636_v28 }
  0xb5   :  { %v10892_v33 = vld [vmem:[%s19129_s1 + $0x17a0] sm:$0xf]  ;;  %v12628_v34 = vld [vmem:[%s19129_s1 + $0x17ac] sm:$0xf0]  ;;  %v10765_v37 = vor.u32 %v12596_v32, %v10764_v31  ;;  %6216 = vmatpush.bf16.msrb.mxu3 %v10909_v29  ;;  %v5925_v31 = vpop.f32.mrf.mxu0 }
  0xb6   :  { %v10492_v38 = vld [vmem:[%s19129_s1 + $0x1480] sm:$0xf]  ;;  %v12528_v39 = vld [vmem:[%s19129_s1 + $0x148c] sm:$0xf0]  ;;  %v10893_v41 = vor.u32 %v12628_v34, %v10892_v33 }
  0xb7   :  { %v10620_v40 = vld [vmem:[%s19129_s1 + $0x1580] sm:$0xf]  ;;  %v12560_v42 = vld [vmem:[%s19129_s1 + $0x158c] sm:$0xf0]  ;;  %6178 = vmatpush.bf16.msrb.mxu0 %v10509_v35  ;;  %v10493_v51 = vor.u32 %v12528_v39, %v10492_v38  ;;  %v5938_v38 = vpop.f32.mrf.mxu1 }
  0xb8   :  { %v10748_v43 = vld [vmem:[%s19129_s1 + $0x1680] sm:$0xf]  ;;  %v12592_v44 = vld [vmem:[%s19129_s1 + $0x168c] sm:$0xf0]  ;;  %6191 = vmatpush.bf16.msrb.mxu1 %v10637_v36  ;;  %6204 = vmatpush.bf16.msrb.mxu2 %v10765_v37  ;;  %v10621_v53 = vor.u32 %v12560_v42, %v10620_v40 }
  0xb9   :  { %v10876_v45 = vld [vmem:[%s19129_s1 + $0x1780] sm:$0xf]  ;;  %v12624_v50 = vld [vmem:[%s19129_s1 + $0x178c] sm:$0xf0]  ;;  %v10749_v54 = vor.u32 %v12592_v44, %v10748_v43  ;;  %6217 = vmatpush.bf16.msrb.mxu3 %v10893_v41 }
  0xba   :  { %v10476_v52 = vld [vmem:[%s19129_s1 + $0x1460] sm:$0xf]  ;;  %v12524_v55 = vld [vmem:[%s19129_s1 + $0x146c] sm:$0xf0]  ;;  %v10877_v58 = vor.u32 %v12624_v50, %v10876_v45 }
  0xbb   :  { %v10604_v56 = vld [vmem:[%s19129_s1 + $0x1560] sm:$0xf]  ;;  %v12556_v57 = vld [vmem:[%s19129_s1 + $0x156c] sm:$0xf0]  ;;  %6179 = vmatpush.bf16.msrb.mxu0 %v10493_v51  ;;  %v10477_v4 = vor.u32 %v12524_v55, %v10476_v52 }
  0xbc   :  { %v10732_v59 = vld [vmem:[%s19129_s1 + $0x1660] sm:$0xf]  ;;  %v12588_v61 = vld [vmem:[%s19129_s1 + $0x166c] sm:$0xf0]  ;;  %6192 = vmatpush.bf16.msrb.mxu1 %v10621_v53  ;;  %6205 = vmatpush.bf16.msrb.mxu2 %v10749_v54  ;;  %v10605_v6 = vor.u32 %v12556_v57, %v10604_v56 }
  0xbd   :  { %v994_v62 = vld [vmem:[%s19130_s2] sm:$0xf]  ;;  %v12620_v3 = vld [vmem:[%s19129_s1 + $0x176c] sm:$0xf0]  ;;  %v10733_v7 = vor.u32 %v12588_v61, %v10732_v59  ;;  %6218 = vmatpush.bf16.msrb.mxu3 %v10877_v58 }
  0xbe   :  { %v10860_v63 = vld [vmem:[%s19129_s1 + $0x1760] sm:$0xf]  ;;  %v12520_v8 = vld [vmem:[%s19129_s1 + $0x144c] sm:$0xf0]  ;;  %v996_v11 = vperm.slane %v994_v62, 0 }
  0xbf   :  { %v10460_v5 = vld [vmem:[%s19129_s1 + $0x1440] sm:$0xf]  ;;  %v10861_v19 = vor.u32 %v12620_v3, %v10860_v63  ;;  %v12552_v23 = vld [vmem:[%s19129_s1 + $0x154c] sm:$0xf0]  ;;  %6180 = vmatpush.bf16.msrb.mxu0 %v10477_v4  ;;  %v5951_v63 = vpop.f32.mrf.mxu2 }
  0xc0   :  { %v10588_v10 = vld [vmem:[%s19129_s1 + $0x1540] sm:$0xf]  ;;  %v12584_v25 = vld [vmem:[%s19129_s1 + $0x164c] sm:$0xf0]  ;;  %v10461_v29 = vor.u32 %v12520_v8, %v10460_v5  ;;  %6193 = vmatpush.bf16.msrb.mxu1 %v10605_v6  ;;  %6206 = vmatpush.bf16.msrb.mxu2 %v10733_v7  ;;  %v5926_v37 = vadd.f32 %v5925_v31, %v996_v11  ;;  %v14189_v6 = vld [vmem:[#allocation1 + $0x24] sm:$0xff] }
  0xc1   :  { %v10716_v24 = vld [vmem:[%s19129_s1 + $0x1640] sm:$0xf]  ;;  %v12616_v28 = vld [vmem:[%s19129_s1 + $0x174c] sm:$0xf0]  ;;  %v10589_v32 = vor.u32 %v12552_v23, %v10588_v10  ;;  %6219 = vmatpush.bf16.msrb.mxu3 %v10861_v19  ;;  %v14191_v7 = vld [vmem:[#allocation1 + $0x36] sm:$0xff]  ;;  %v5964_v10 = vpop.f32.mrf.mxu3 }
  0xc2   :  { %v10844_v27 = vld [vmem:[%s19129_s1 + $0x1740] sm:$0xf]  ;;  %v10717_v33 = vor.u32 %v12584_v25, %v10716_v24  ;;  %v12516_v34 = vld [vmem:[%s19129_s1 + $0x142c] sm:$0xf0]  ;;  %v5939_v50 = vadd.f32 %v5938_v38, %v5926_v37  ;;  %v25_v23 = vld [vmem:[%s19128_s0 + $0x18] sm:$0x7f] }
  0xc3   :  { %v10444_v30 = vld [vmem:[%s19129_s1 + $0x1420] sm:$0xf]  ;;  %v12548_v36 = vld [vmem:[%s19129_s1 + $0x152c] sm:$0xf0]  ;;  %v10845_v39 = vor.u32 %v12616_v28, %v10844_v27  ;;  %6181 = vmatpush.bf16.msrb.mxu0 %v10461_v29  ;;  %v5927_v29 = vpop.f32.mrf.mxu0  ;;  %s12922_s0 = smov [#allocation2]  }
  0xc4   :  { %v10572_v35 = vld [vmem:[%s19129_s1 + $0x1520] sm:$0xf]  ;;  %v12580_v41 = vld [vmem:[%s19129_s1 + $0x162c] sm:$0xf0]  ;;  %v10445_v51 = vor.u32 %v12516_v34, %v10444_v30  ;;  %6194 = vmatpush.bf16.msrb.mxu1 %v10589_v32  ;;  %6207 = vmatpush.bf16.msrb.mxu2 %v10717_v33  ;;  %v5952_v8 = vadd.f32 %v5951_v63, %v5939_v50  ;;  %v5940_v34 = vpop.f32.mrf.mxu1 }
  0xc5   :  { %v10700_v40 = vld [vmem:[%s19129_s1 + $0x1620] sm:$0xf]  ;;  %v12612_v43 = vld [vmem:[%s19129_s1 + $0x172c] sm:$0xf0]  ;;  %v10573_v56 = vor.u32 %v12548_v36, %v10572_v35  ;;  %6220 = vmatpush.bf16.msrb.mxu3 %v10845_v39 }
  0xc6   :  { %v10828_v42 = vld [vmem:[%s19129_s1 + $0x1720] sm:$0xf]  ;;  %v12512_v45 = vld [vmem:[%s19129_s1 + $0x140c] sm:$0xf0]  ;;  %v10701_v57 = vor.u32 %v12580_v41, %v10700_v40  ;;  %v14206_v28 = vadd.f32 %v5964_v10, %v5952_v8 }
  0xc7   :  { %v10428_v44 = vld [vmem:[%s19129_s1 + $0x1400] sm:$0xf]  ;;  %v12544_v53 = vld [vmem:[%s19129_s1 + $0x150c] sm:$0xf0]  ;;  %v10829_v3 = vor.u32 %v12612_v43, %v10828_v42  ;;  %6182 = vmatpush.bf16.msrb.mxu0 %v10445_v51 }
  0xc8   :  { %v10556_v52 = vld [vmem:[%s19129_s1 + $0x1500] sm:$0xf]  ;;  %v12576_v55 = vld [vmem:[%s19129_s1 + $0x160c] sm:$0xf0]  ;;  %v10429_v24 = vor.u32 %v12512_v45, %v10428_v44  ;;  %6195 = vmatpush.bf16.msrb.mxu1 %v10573_v56  ;;  %6208 = vmatpush.bf16.msrb.mxu2 %v10701_v57 }
  0xc9   :  { %v10684_v54 = vld [vmem:[%s19129_s1 + $0x1600] sm:$0xf]  ;;  %v12608_v59 = vld [vmem:[%s19129_s1 + $0x170c] sm:$0xf0]  ;;  %v10557_v30 = vor.u32 %v12544_v53, %v10556_v52  ;;  %6221 = vmatpush.bf16.msrb.mxu3 %v10829_v3  ;;  %v5953_v52 = vpop.f32.mrf.mxu2 }
  0xca   :  { %v10812_v58 = vld [vmem:[%s19129_s1 + $0x1700] sm:$0xf]  ;;  %v12668_v62 = vld [vmem:[%s19129_s1 + $0x18ec] sm:$0xf0]  ;;  %v10685_v31 = vor.u32 %v12576_v55, %v10684_v54  ;;  %v5966_v54 = vpop.f32.mrf.mxu3 }
  0xcb   :  { %v11052_v61 = vld [vmem:[%s19129_s1 + $0x18e0] sm:$0xf]  ;;  %v12700_v5 = vld [vmem:[%s19129_s1 + $0x19ec] sm:$0xf0]  ;;  %v10813_v35 = vor.u32 %v12608_v59, %v10812_v58  ;;  %6183 = vmatpush.bf16.msrb.mxu0 %v10429_v24 }
  0xcc   :  { %v11180_v4 = vld [vmem:[%s19129_s1 + $0x19e0] sm:$0xf]  ;;  %v14193_v11 = vld [vmem:[#allocation1 + $0x2d] sm:$0xff]  ;;  %v11053_v36 = vor.u32 %v12668_v62, %v11052_v61  ;;  %6196 = vmatpush.bf16.msrb.mxu1 %v10557_v30  ;;  %6209 = vmatpush.bf16.msrb.mxu2 %v10685_v31 }
  0xcd   :  { %v14195_v19 = vld [vmem:[#allocation1 + $0x3f] sm:$0xff]  ;;  %v12732_v27 = vld [vmem:[%s19129_s1 + $0x1aec] sm:$0xf0]  ;;  %v11181_v37 = vor.u32 %v12700_v5, %v11180_v4  ;;  %6222 = vmatpush.bf16.msrb.mxu3 %v10813_v35 }
  0xce   :  { %v11308_v25 = vld [vmem:[%s19129_s1 + $0x1ae0] sm:$0xf]  ;;  %1035 = vst [vmem:[#allocation1] ss:$9 sm:$0xff] %v25_v23  ;;  %v12764_v33 = vld [vmem:[%s19129_s1 + $0x1bec] sm:$0xf0]  ;;  %6184 = vmatmul.bf16.vlgmr.msrb.gmra.mxu0 %v14189_v6 }
  0xcf   :  { %v11436_v32 = vld [vmem:[%s19129_s1 + $0x1be0] sm:$0xf]  ;;  %v11309_v38 = vor.u32 %v12732_v27, %v11308_v25  ;;  %v12664_v40 = vld [vmem:[%s19129_s1 + $0x18cc] sm:$0xf0]  ;;  %6228 = vmatpush.bf16.msra.mxu0 %v11053_v36  ;;  %6210 = vmatmul.bf16.vlgmr.msrb.gmra.mxu2 %v14191_v7  ;;  %v5977_v36 = vpop.f32.mrf.mxu0 }
  0xd0   :  { %v11036_v39 = vld [vmem:[%s19129_s1 + $0x18c0] sm:$0xf]  ;;  %v11437_v42 = vor.u32 %v12764_v33, %v11436_v32  ;;  %v12696_v43 = vld [vmem:[%s19129_s1 + $0x19cc] sm:$0xf0]  ;;  %6241 = vmatpush.bf16.msra.mxu1 %v11181_v37  ;;  %6223 = vmatmul.bf16.vlgmr.msrb.gmra.mxu3 %v14195_v19 }
  0xd1   :  { %v11164_v41 = vld [vmem:[%s19129_s1 + $0x19c0] sm:$0xf]  ;;  %v12728_v45 = vld [vmem:[%s19129_s1 + $0x1acc] sm:$0xf0]  ;;  %v11037_v53 = vor.u32 %v12664_v40, %v11036_v39  ;;  %6254 = vmatpush.bf16.msra.mxu2 %v11309_v38  ;;  %6197 = vmatmul.bf16.vlgmr.msrb.gmra.mxu1 %v14193_v11  ;;  %v5978_v39 = vadd.f32 %v5977_v36, %v14206_v28 }
  0xd2   :  { %v11292_v44 = vld [vmem:[%s19129_s1 + $0x1ac0] sm:$0xf]  ;;  %v12760_v51 = vld [vmem:[%s19129_s1 + $0x1bcc] sm:$0xf0]  ;;  %v11165_v55 = vor.u32 %v12696_v43, %v11164_v41  ;;  %6267 = vmatpush.bf16.msra.mxu3 %v11437_v42  ;;  %v5990_v43 = vpop.f32.mrf.mxu1 }
  0xd3   :  { %v11420_v50 = vld [vmem:[%s19129_s1 + $0x1bc0] sm:$0xf]  ;;  %v11293_v56 = vor.u32 %v12728_v45, %v11292_v44  ;;  %v12660_v58 = vld [vmem:[%s19129_s1 + $0x18ac] sm:$0xf0]  ;;  %6229 = vmatpush.bf16.msra.mxu0 %v11037_v53  ;;  %v5991_v53 = vadd.f32 %v5990_v43, %v5978_v39 }
  0xd4   :  { %v11020_v57 = vld [vmem:[%s19129_s1 + $0x18a0] sm:$0xf]  ;;  %v11421_v61 = vor.u32 %v12760_v51, %v11420_v50  ;;  %v12692_v62 = vld [vmem:[%s19129_s1 + $0x19ac] sm:$0xf0]  ;;  %6242 = vmatpush.bf16.msra.mxu1 %v11165_v55 }
  0xd5   :  { %v11148_v59 = vld [vmem:[%s19129_s1 + $0x19a0] sm:$0xf]  ;;  %v12724_v3 = vld [vmem:[%s19129_s1 + $0x1aac] sm:$0xf0]  ;;  %v11021_v8 = vor.u32 %v12660_v58, %v11020_v57  ;;  %6255 = vmatpush.bf16.msra.mxu2 %v11293_v56  ;;  %v6003_v57 = vpop.f32.mrf.mxu2 }
  0xd6   :  { %v11276_v63 = vld [vmem:[%s19129_s1 + $0x1aa0] sm:$0xf]  ;;  %v12756_v5 = vld [vmem:[%s19129_s1 + $0x1bac] sm:$0xf0]  ;;  %v11149_v10 = vor.u32 %v12692_v62, %v11148_v59  ;;  %6268 = vmatpush.bf16.msra.mxu3 %v11421_v61 }
  0xd7   :  { %v11404_v4 = vld [vmem:[%s19129_s1 + $0x1ba0] sm:$0xf]  ;;  %v11277_v23 = vor.u32 %v12724_v3, %v11276_v63  ;;  %v12656_v25 = vld [vmem:[%s19129_s1 + $0x188c] sm:$0xf0]  ;;  %6230 = vmatpush.bf16.msra.mxu0 %v11021_v8  ;;  %v6004_v63 = vadd.f32 %v6003_v57, %v5991_v53  ;;  %v6016_v8 = vpop.f32.mrf.mxu3 }
  0xd8   :  { %v11004_v24 = vld [vmem:[%s19129_s1 + $0x1880] sm:$0xf]  ;;  %v11405_v29 = vor.u32 %v12756_v5, %v11404_v4  ;;  %v12688_v30 = vld [vmem:[%s19129_s1 + $0x198c] sm:$0xf0]  ;;  %6243 = vmatpush.bf16.msra.mxu1 %v11149_v10 }
  0xd9   :  { %v11132_v27 = vld [vmem:[%s19129_s1 + $0x1980] sm:$0xf]  ;;  %v12720_v32 = vld [vmem:[%s19129_s1 + $0x1a8c] sm:$0xf0]  ;;  %v11005_v35 = vor.u32 %v12656_v25, %v11004_v24  ;;  %6256 = vmatpush.bf16.msra.mxu2 %v11277_v23  ;;  %v14339_v25 = vadd.f32 %v6016_v8, %v6004_v63 }
  0xda   :  { %v11260_v31 = vld [vmem:[%s19129_s1 + $0x1a80] sm:$0xf]  ;;  %v12752_v34 = vld [vmem:[%s19129_s1 + $0x1b8c] sm:$0xf0]  ;;  %v11133_v37 = vor.u32 %v12688_v30, %v11132_v27  ;;  %6269 = vmatpush.bf16.msra.mxu3 %v11405_v29  ;;  %v5979_v27 = vpop.f32.mrf.mxu0 }
  0xdb   :  { %v11388_v33 = vld [vmem:[%s19129_s1 + $0x1b80] sm:$0xf]  ;;  %v11261_v38 = vor.u32 %v12720_v32, %v11260_v31  ;;  %v12652_v41 = vld [vmem:[%s19129_s1 + $0x186c] sm:$0xf0]  ;;  %6231 = vmatpush.bf16.msra.mxu0 %v11005_v35 }
  0xdc   :  { %v10988_v40 = vld [vmem:[%s19129_s1 + $0x1860] sm:$0xf]  ;;  %v11389_v44 = vor.u32 %v12752_v34, %v11388_v33  ;;  %v12684_v45 = vld [vmem:[%s19129_s1 + $0x196c] sm:$0xf0]  ;;  %6244 = vmatpush.bf16.msra.mxu1 %v11133_v37  ;;  %v5992_v34 = vpop.f32.mrf.mxu1 }
  0xdd   :  { %v11116_v42 = vld [vmem:[%s19129_s1 + $0x1960] sm:$0xf]  ;;  %v12716_v50 = vld [vmem:[%s19129_s1 + $0x1a6c] sm:$0xf0]  ;;  %v10989_v54 = vor.u32 %v12652_v41, %v10988_v40  ;;  %6257 = vmatpush.bf16.msra.mxu2 %v11261_v38 }
  0xde   :  { %v11244_v28 = vld [vmem:[%s19129_s1 + $0x1a60] sm:$0xf]  ;;  %v12748_v52 = vld [vmem:[%s19129_s1 + $0x1b6c] sm:$0xf0]  ;;  %v11117_v55 = vor.u32 %v12684_v45, %v11116_v42  ;;  %6270 = vmatpush.bf16.msra.mxu3 %v11389_v44 }
  0xdf   :  { %v11372_v51 = vld [vmem:[%s19129_s1 + $0x1b60] sm:$0xf]  ;;  %v11245_v56 = vor.u32 %v12716_v50, %v11244_v28  ;;  %v12648_v59 = vld [vmem:[%s19129_s1 + $0x184c] sm:$0xf0]  ;;  %6232 = vmatpush.bf16.msra.mxu0 %v10989_v54  ;;  %v6018_v57 = vpop.f32.mrf.mxu3 }
  0xe0   :  { %v10972_v58 = vld [vmem:[%s19129_s1 + $0x1840] sm:$0xf]  ;;  %v11373_v62 = vor.u32 %v12748_v52, %v11372_v51  ;;  %v12680_v3 = vld [vmem:[%s19129_s1 + $0x194c] sm:$0xf0]  ;;  %6245 = vmatpush.bf16.msra.mxu1 %v11117_v55  ;;  %v6005_v52 = vpop.f32.mrf.mxu2 }
  0xe1   :  { %v11100_v61 = vld [vmem:[%s19129_s1 + $0x1940] sm:$0xf]  ;;  %v12712_v5 = vld [vmem:[%s19129_s1 + $0x1a4c] sm:$0xf0]  ;;  %v10973_v24 = vor.u32 %v12648_v59, %v10972_v58  ;;  %6258 = vmatpush.bf16.msra.mxu2 %v11245_v56 }
  0xe2   :  { %v11228_v4 = vld [vmem:[%s19129_s1 + $0x1a40] sm:$0xf]  ;;  %v12744_v23 = vld [vmem:[%s19129_s1 + $0x1b4c] sm:$0xf0]  ;;  %v11101_v29 = vor.u32 %v12680_v3, %v11100_v61  ;;  %6271 = vmatpush.bf16.msra.mxu3 %v11373_v62 }
  0xe3   :  { %v11356_v10 = vld [vmem:[%s19129_s1 + $0x1b40] sm:$0xf]  ;;  %v11229_v30 = vor.u32 %v12712_v5, %v11228_v4  ;;  %v12644_v32 = vld [vmem:[%s19129_s1 + $0x182c] sm:$0xf0]  ;;  %6233 = vmatpush.bf16.msra.mxu0 %v10973_v24 }
  0xe4   :  { %v10956_v31 = vld [vmem:[%s19129_s1 + $0x1820] sm:$0xf]  ;;  %v11357_v35 = vor.u32 %v12744_v23, %v11356_v10  ;;  %v12676_v36 = vld [vmem:[%s19129_s1 + $0x192c] sm:$0xf0]  ;;  %6246 = vmatpush.bf16.msra.mxu1 %v11101_v29  ;;  %v11898_v10 = vld [vmem:[%s19129_s1 + $0xe4] sm:$0xf] }
  0xe5   :  { %v11084_v33 = vld [vmem:[%s19129_s1 + $0x1920] sm:$0xf]  ;;  %v12708_v38 = vld [vmem:[%s19129_s1 + $0x1a2c] sm:$0xf0]  ;;  %v10957_v41 = vor.u32 %v12644_v32, %v10956_v31  ;;  %6259 = vmatpush.bf16.msra.mxu2 %v11229_v30  ;;  %v7982_v23 = vld [vmem:[%s19129_s1 + $0xf0] sm:$0xf0] }
  0xe6   :  { %v11212_v37 = vld [vmem:[%s19129_s1 + $0x1a20] sm:$0xf]  ;;  %v12740_v40 = vld [vmem:[%s19129_s1 + $0x1b2c] sm:$0xf0]  ;;  %v11085_v44 = vor.u32 %v12676_v36, %v11084_v33  ;;  %6272 = vmatpush.bf16.msra.mxu3 %v11357_v35  ;;  %v7985_v36 = vor.u32 %v11898_v10, %v7982_v23 }
  0xe7   :  { %v11340_v39 = vld [vmem:[%s19129_s1 + $0x1b20] sm:$0xf]  ;;  %v12640_v43 = vld [vmem:[%s19129_s1 + $0x180c] sm:$0xf0]  ;;  %v11213_v45 = vor.u32 %v12708_v38, %v11212_v37  ;;  %6234 = vmatpush.bf16.msra.mxu0 %v10957_v41  ;;  %v11930_v41 = vld [vmem:[%s19129_s1 + $0x1e4] sm:$0xf] }
  0xe8   :  { %v10940_v42 = vld [vmem:[%s19129_s1 + $0x1800] sm:$0xf]  ;;  %v12672_v50 = vld [vmem:[%s19129_s1 + $0x190c] sm:$0xf0]  ;;  %v11341_v53 = vor.u32 %v12740_v40, %v11340_v39  ;;  %6247 = vmatpush.bf16.msra.mxu1 %v11085_v44  ;;  %v11894_v39 = vld [vmem:[%s19129_s1 + $0xc4] sm:$0xf] }
  0xe9   :  { %v11068_v28 = vld [vmem:[%s19129_s1 + $0x1900] sm:$0xf]  ;;  %v12704_v54 = vld [vmem:[%s19129_s1 + $0x1a0c] sm:$0xf0]  ;;  %v10941_v62 = vor.u32 %v12640_v43, %v10940_v42  ;;  %6260 = vmatpush.bf16.msra.mxu2 %v11213_v45  ;;  %v7966_v40 = vld [vmem:[%s19129_s1 + $0xd0] sm:$0xf0] }
  0xea   :  { %v11196_v51 = vld [vmem:[%s19129_s1 + $0x1a00] sm:$0xf]  ;;  %v12736_v56 = vld [vmem:[%s19129_s1 + $0x1b0c] sm:$0xf0]  ;;  %v11069_v5 = vor.u32 %v12672_v50, %v11068_v28  ;;  %6273 = vmatpush.bf16.msra.mxu3 %v11341_v53  ;;  %v8110_v42 = vld [vmem:[%s19129_s1 + $0x1f0] sm:$0xf0] }
  0xeb   :  { %v11324_v55 = vld [vmem:[%s19129_s1 + $0x1b00] sm:$0xf]  ;;  %v12796_v59 = vld [vmem:[%s19129_s1 + $0x1cec] sm:$0xf0]  ;;  %v11197_v8 = vor.u32 %v12704_v54, %v11196_v51  ;;  %6235 = vmatpush.bf16.msra.mxu0 %v10941_v62  ;;  %v7969_v54 = vor.u32 %v11894_v39, %v7966_v40  ;;  %v8094_v62 = vld [vmem:[%s19129_s1 + $0x1d0] sm:$0xf0] }
  0xec   :  { %v11564_v58 = vld [vmem:[%s19129_s1 + $0x1ce0] sm:$0xf]  ;;  %v12828_v63 = vld [vmem:[%s19129_s1 + $0x1dec] sm:$0xf0]  ;;  %v11325_v24 = vor.u32 %v12736_v56, %v11324_v55  ;;  %6248 = vmatpush.bf16.msra.mxu1 %v11069_v5  ;;  %v8113_v55 = vor.u32 %v11930_v41, %v8110_v42 }
  0xed   :  { %v11692_v61 = vld [vmem:[%s19129_s1 + $0x1de0] sm:$0xf]  ;;  %v12836_v4 = vld [vmem:[%s19129_s1 + $0x1e2c] sm:$0xf0]  ;;  %v11565_v27 = vor.u32 %v12796_v59, %v11564_v58  ;;  %6261 = vmatpush.bf16.msra.mxu2 %v11197_v8  ;;  %v11890_v58 = vld [vmem:[%s19129_s1 + $0xa4] sm:$0xf] }
  0xee   :  { %v11724_v3 = vld [vmem:[%s19129_s1 + $0x1e20] sm:$0xf]  ;;  %v11693_v30 = vor.u32 %v12828_v63, %v11692_v61  ;;  %v12792_v33 = vld [vmem:[%s19129_s1 + $0x1ccc] sm:$0xf0]  ;;  %6274 = vmatpush.bf16.msra.mxu3 %v11325_v24  ;;  %v7950_v59 = vld [vmem:[%s19129_s1 + $0xb0] sm:$0xf0] }
  0xef   :  { %v11548_v29 = vld [vmem:[%s19129_s1 + $0x1cc0] sm:$0xf]  ;;  %v11725_v31 = vor.u32 %v12836_v4, %v11724_v3  ;;  %v12824_v35 = vld [vmem:[%s19129_s1 + $0x1dcc] sm:$0xf0]  ;;  %6280 = vmatpush.bf16.msrb.mxu0 %v11565_v27  ;;  %v11926_v61 = vld [vmem:[%s19129_s1 + $0x1c4] sm:$0xf]  ;;  %v7953_v8 = vor.u32 %v11890_v58, %v7950_v59 }
  0xf0   :  { %v1036_v32 = vld [vmem:[#allocation1] sm:$0xff]  ;;  %v12832_v38 = vld [vmem:[%s19129_s1 + $0x1e0c] sm:$0xf0]  ;;  %v11549_v45 = vor.u32 %v12792_v33, %v11548_v29  ;;  %6293 = vmatpush.bf16.msrb.mxu1 %v11693_v30  ;;  %v8097_v10 = vor.u32 %v11926_v61, %v8094_v62  ;;  %v6029_v29 = vpop.f32.mrf.mxu0  ;;  %v7934_v30 = vld [vmem:[%s19129_s1 + $0x90] sm:$0xf0] }
  0xf1   :  { %v11676_v34 = vld [vmem:[%s19129_s1 + $0x1dc0] sm:$0xf]  ;;  %v1038_v43 = vld [vmem:[#allocation1 + $0x12] sm:$0xff]  ;;  %v1037_v44 = vld [vmem:[#allocation1 + $0x9] sm:$0xff]  ;;  %6312 = vmatpush.bf16.msrb.mxu2 %v11725_v31  ;;  %6236 = vmatmul.bf16.vlgmr.msra.gmra.mxu0 %v1036_v32  ;;  %v6030_v33 = vadd.f32 %v6029_v29, %v14339_v25 }
  0xf2   :  { %v11708_v37 = vld [vmem:[%s19129_s1 + $0x1e00] sm:$0xf]  ;;  %v11677_v50 = vor.u32 %v12824_v35, %v11676_v34  ;;  %v12788_v53 = vld [vmem:[%s19129_s1 + $0x1cac] sm:$0xf0]  ;;  %6319 = vmatpush.bf16.msrb.mxu3 %v7985_v36  ;;  %6262 = vmatmul.bf16.vlgmr.msra.gmra.mxu2 %v1038_v43  ;;  %v11886_v27 = vld [vmem:[%s19129_s1 + $0x84] sm:$0xf]  ;;  %v6042_v35 = vpop.f32.mrf.mxu1  ;;  %v6068_v62 = vpop.f32.mrf.mxu3 }
  0xf3   :  { %v1039_v28 = vld [vmem:[#allocation1 + $0x1b] sm:$0xff]  ;;  %v11709_v51 = vor.u32 %v12832_v38, %v11708_v37  ;;  %v12820_v57 = vld [vmem:[%s19129_s1 + $0x1dac] sm:$0xf0]  ;;  %6249 = vmatmul.bf16.vlgmr.msra.gmra.mxu1 %v1037_v44  ;;  %6281 = vmatpush.bf16.msrb.mxu0 %v11549_v45  ;;  %v11922_v31 = vld [vmem:[%s19129_s1 + $0x1a4] sm:$0xf]  ;;  %v7937_v39 = vor.u32 %v11886_v27, %v7934_v30  ;;  %v6043_v40 = vadd.f32 %v6042_v35, %v6030_v33 }
  0xf4   :  { %v11532_v52 = vld [vmem:[%s19129_s1 + $0x1ca0] sm:$0xf]  ;;  %6275 = vmatmul.bf16.vlgmr.msra.gmra.mxu3 %v1039_v28  ;;  %6294 = vmatpush.bf16.msrb.mxu1 %v11677_v50  ;;  %v12784_v5 = vld [vmem:[%s19129_s1 + $0x1c8c] sm:$0xf0]  ;;  %v8078_v32 = vld [vmem:[%s19129_s1 + $0x1b0] sm:$0xf0] }
  0xf5   :  { %v11660_v56 = vld [vmem:[%s19129_s1 + $0x1da0] sm:$0xf]  ;;  %v11533_v63 = vor.u32 %v12788_v53, %v11532_v52  ;;  %6313 = vmatpush.bf16.msrb.mxu2 %v11709_v51  ;;  %v12816_v24 = vld [vmem:[%s19129_s1 + $0x1d8c] sm:$0xf0]  ;;  %v8081_v41 = vor.u32 %v11922_v31, %v8078_v32  ;;  %v11882_v43 = vld [vmem:[%s19129_s1 + $0x64] sm:$0xf] }
  0xf6   :  { %v11661_v3 = vor.u32 %v12820_v57, %v11660_v56  ;;  %v11516_v4 = vld [vmem:[%s19129_s1 + $0x1c80] sm:$0xf]  ;;  %6320 = vmatpush.bf16.msrb.mxu3 %v7969_v54  ;;  %v12780_v38 = vld [vmem:[%s19129_s1 + $0x1c6c] sm:$0xf0]  ;;  %v7918_v44 = vld [vmem:[%s19129_s1 + $0x70] sm:$0xf0] }
  0xf7   :  { %v11644_v23 = vld [vmem:[%s19129_s1 + $0x1d80] sm:$0xf]  ;;  %6282 = vmatpush.bf16.msrb.mxu0 %v11533_v63  ;;  %v11517_v34 = vor.u32 %v12784_v5, %v11516_v4  ;;  %v12812_v42 = vld [vmem:[%s19129_s1 + $0x1d6c] sm:$0xf0]  ;;  %v11918_v45 = vld [vmem:[%s19129_s1 + $0x184] sm:$0xf]  ;;  %v7921_v54 = vor.u32 %v11882_v43, %v7918_v44 }
  0xf8   :  { %6295 = vmatpush.bf16.msrb.mxu1 %v11661_v3  ;;  %v11645_v36 = vor.u32 %v12816_v24, %v11644_v23  ;;  %v11500_v37 = vld [vmem:[%s19129_s1 + $0x1c60] sm:$0xf]  ;;  %v8062_v28 = vld [vmem:[%s19129_s1 + $0x190] sm:$0xf0]  ;;  %v12776_v53 = vld [vmem:[%s19129_s1 + $0x1c4c] sm:$0xf0]  ;;  %v6031_v5 = vpop.f32.mrf.mxu0 }
  0xf9   :  { %6332 = vmatpush.bf16.msra.mxu2 %v8113_v55  ;;  %v11628_v25 = vld [vmem:[%s19129_s1 + $0x1d60] sm:$0xf]  ;;  %v11501_v50 = vor.u32 %v12780_v38, %v11500_v37  ;;  %v6055_v55 = vpop.f32.mrf.mxu2  ;;  %v8065_v56 = vor.u32 %v11918_v45, %v8062_v28  ;;  %v12808_v58 = vld [vmem:[%s19129_s1 + $0x1d4c] sm:$0xf0]  ;;  %v11878_v59 = vld [vmem:[%s19129_s1 + $0x44] sm:$0xf] }
  0xfa   :  { %6321 = vmatpush.bf16.msrb.mxu3 %v7953_v8  ;;  %v11629_v51 = vor.u32 %v12812_v42, %v11628_v25  ;;  %v11484_v52 = vld [vmem:[%s19129_s1 + $0x1c40] sm:$0xf]  ;;  %v6056_v61 = vadd.f32 %v6055_v55, %v6043_v40  ;;  %v7902_v63 = vld [vmem:[%s19129_s1 + $0x50] sm:$0xf0]  ;;  %v11914_v3 = vld [vmem:[%s19129_s1 + $0x164] sm:$0xf]  ;;  %v6044_v23 = vpop.f32.mrf.mxu1 }
  0xfb   :  { %6283 = vmatpush.bf16.msrb.mxu0 %v11517_v34  ;;  %v11612_v57 = vld [vmem:[%s19129_s1 + $0x1d40] sm:$0xf]  ;;  %v8046_v4 = vld [vmem:[%s19129_s1 + $0x170] sm:$0xf0]  ;;  %v11485_v8 = vor.u32 %v12776_v53, %v11484_v52  ;;  %v12772_v30 = vld [vmem:[%s19129_s1 + $0x1c2c] sm:$0xf0]  ;;  %v7905_v31 = vor.u32 %v11878_v59, %v7902_v63 }
  0xfc   :  { %6296 = vmatpush.bf16.msrb.mxu1 %v11645_v36  ;;  %v14540_v24 = vadd.f32 %v6068_v62, %v6056_v61  ;;  %v11613_v27 = vor.u32 %v12808_v58, %v11612_v57  ;;  %v11468_v29 = vld [vmem:[%s19129_s1 + $0x1c20] sm:$0xf]  ;;  %v8049_v32 = vor.u32 %v11914_v3, %v8046_v4  ;;  %v12804_v34 = vld [vmem:[%s19129_s1 + $0x1d2c] sm:$0xf0]  ;;  %v11874_v35 = vld [vmem:[%s19129_s1 + $0x24] sm:$0xf]  ;;  %v6070_v57 = vpop.f32.mrf.mxu3 }
  0xfd   :  { %6333 = vmatpush.bf16.msra.mxu2 %v8097_v10  ;;  %v1042_v10 = vld [vmem:[#allocation1 + $0x36] sm:$0xff]  ;;  %v11596_v33 = vld [vmem:[%s19129_s1 + $0x1d20] sm:$0xf]  ;;  %v11910_v37 = vld [vmem:[%s19129_s1 + $0x144] sm:$0xf] }
  0xfe   :  { %6322 = vmatpush.bf16.msrb.mxu3 %v7937_v39  ;;  %v7886_v36 = vld [vmem:[%s19129_s1 + $0x30] sm:$0xf0]  ;;  %v11469_v39 = vor.u32 %v12772_v30, %v11468_v29  ;;  %v11452_v40 = vld [vmem:[%s19129_s1 + $0x1c00] sm:$0xf]  ;;  %v11597_v25 = vor.u32 %v12804_v34, %v11596_v33  ;;  %v12800_v43 = vld [vmem:[%s19129_s1 + $0x1d0c] sm:$0xf0] }
  0xff   :  { %6284 = vmatpush.bf16.msrb.mxu0 %v11501_v50  ;;  %v8030_v38 = vld [vmem:[%s19129_s1 + $0x150] sm:$0xf0]  ;;  %v11580_v42 = vld [vmem:[%s19129_s1 + $0x1d00] sm:$0xf]  ;;  %v11870_v44 = vld [vmem:[%s19129_s1 + $0x4] sm:$0xf]  ;;  %v7889_v45 = vor.u32 %v11874_v35, %v7886_v36 }
 0x100   :  { %6297 = vmatpush.bf16.msrb.mxu1 %v11629_v51  ;;  %v8033_v28 = vor.u32 %v11910_v37, %v8030_v38  ;;  %v7870_v50 = vld [vmem:[%s19129_s1 + $0x10] sm:$0xf0]  ;;  %v11962_v51 = vld [vmem:[%s19129_s1 + $0x2e4] sm:$0xf]  ;;  %v11581_v63 = vor.u32 %v12800_v43, %v11580_v42 }
 0x101   :  { %6334 = vmatpush.bf16.msra.mxu2 %v8081_v41  ;;  %v12768_v41 = vld [vmem:[%s19129_s1 + $0x1c0c] sm:$0xf0]  ;;  %v8238_v52 = vld [vmem:[%s19129_s1 + $0x2f0] sm:$0xf0]  ;;  %v6057_v53 = vpop.f32.mrf.mxu2  ;;  %v12026_v61 = vld [vmem:[%s19129_s1 + $0x4e4] sm:$0xf]  ;;  %v7873_v4 = vor.u32 %v11870_v44, %v7870_v50 }
 0x102   :  { %6323 = vmatpush.bf16.msrb.mxu3 %v7921_v54  ;;  %11738 = vmatmul.msk.bf16.vlgmr.msrb.gmra.mxu2 %vm5913_vm0, %v1042_v10  ;;  %v11906_v54 = vld [vmem:[%s19129_s1 + $0x124] sm:$0xf]  ;;  %v8014_v55 = vld [vmem:[%s19129_s1 + $0x130] sm:$0xf0]  ;;  %v11453_v58 = vor.u32 %v12768_v41, %v11452_v40  ;;  %v8241_v3 = vor.u32 %v11962_v51, %v8238_v52 }
 0x103   :  { %6285 = vmatpush.bf16.msrb.mxu0 %v11485_v8  ;;  %v8366_v59 = vld [vmem:[%s19129_s1 + $0x3f0] sm:$0xf0]  ;;  %v8017_v5 = vor.u32 %v11906_v54, %v8014_v55  ;;  %v11958_v8 = vld [vmem:[%s19129_s1 + $0x2c4] sm:$0xf] }
 0x104   :  { %6298 = vmatpush.bf16.msrb.mxu1 %v11613_v27  ;;  %v8494_v62 = vld [vmem:[%s19129_s1 + $0x4f0] sm:$0xf0]  ;;  %v1040_v29 = vld [vmem:[#allocation1 + $0x24] sm:$0xff] }
 0x105   :  { %6335 = vmatpush.bf16.msra.mxu2 %v8065_v56  ;;  %v11994_v56 = vld [vmem:[%s19129_s1 + $0x3e4] sm:$0xf]  ;;  %v8222_v10 = vld [vmem:[%s19129_s1 + $0x2d0] sm:$0xf0]  ;;  %v8497_v27 = vor.u32 %v12026_v61, %v8494_v62 }
 0x106   :  { %6324 = vmatpush.bf16.msrb.mxu3 %v7905_v31  ;;  %v8369_v23 = vor.u32 %v11994_v56, %v8366_v59  ;;  %v11902_v30 = vld [vmem:[%s19129_s1 + $0x104] sm:$0xf]  ;;  %v7998_v31 = vld [vmem:[%s19129_s1 + $0x110] sm:$0xf0]  ;;  %v8225_v37 = vor.u32 %v11958_v8, %v8222_v10 }
 0x107   :  { %6286 = vmatpush.bf16.msrb.mxu0 %v11469_v39  ;;  %v8350_v33 = vld [vmem:[%s19129_s1 + $0x3d0] sm:$0xf0]  ;;  %v12022_v34 = vld [vmem:[%s19129_s1 + $0x4c4] sm:$0xf]  ;;  %v8001_v40 = vor.u32 %v11902_v30, %v7998_v31 }
 0x108   :  { %6299 = vmatpush.bf16.msrb.mxu1 %v11597_v25  ;;  %v8478_v35 = vld [vmem:[%s19129_s1 + $0x4d0] sm:$0xf0]  ;;  %v12058_v38 = vld [vmem:[%s19129_s1 + $0x5e4] sm:$0xf] }
 0x109   :  { %6336 = vmatpush.bf16.msra.mxu2 %v8049_v32  ;;  %v11990_v32 = vld [vmem:[%s19129_s1 + $0x3c4] sm:$0xf]  ;;  %v1041_v36 = vld [vmem:[#allocation1 + $0x2d] sm:$0xff]  ;;  %v8481_v43 = vor.u32 %v12022_v34, %v8478_v35 }
 0x10a   :  { %6325 = vmatpush.bf16.msrb.mxu3 %v7889_v45  ;;  %v8622_v39 = vld [vmem:[%s19129_s1 + $0x5f0] sm:$0xf0]  ;;  %v11954_v41 = vld [vmem:[%s19129_s1 + $0x2a4] sm:$0xf]  ;;  %v8353_v42 = vor.u32 %v11990_v32, %v8350_v33 }
 0x10b   :  { %6287 = vmatpush.bf16.msrb.mxu0 %v11453_v58  ;;  %v8206_v25 = vld [vmem:[%s19129_s1 + $0x2b0] sm:$0xf0]  ;;  %v11986_v44 = vld [vmem:[%s19129_s1 + $0x3a4] sm:$0xf]  ;;  %v8625_v45 = vor.u32 %v12058_v38, %v8622_v39 }
 0x10c   :  { %6300 = vmatpush.bf16.msrb.mxu1 %v11581_v63  ;;  %v12018_v50 = vld [vmem:[%s19129_s1 + $0x4a4] sm:$0xf]  ;;  %v8462_v51 = vld [vmem:[%s19129_s1 + $0x4b0] sm:$0xf0]  ;;  %v8209_v52 = vor.u32 %v11954_v41, %v8206_v25 }
 0x10d   :  { %6337 = vmatpush.bf16.msra.mxu2 %v8033_v28  ;;  %v8334_v28 = vld [vmem:[%s19129_s1 + $0x3b0] sm:$0xf0]  ;;  %v12054_v53 = vld [vmem:[%s19129_s1 + $0x5c4] sm:$0xf]  ;;  %v8465_v58 = vor.u32 %v12018_v50, %v8462_v51 }
 0x10e   :  { %6326 = vmatpush.bf16.msrb.mxu3 %v7873_v4  ;;  %6288 = vmatmul.bf16.vlgmr.msrb.gmra.mxu0 %v1040_v29  ;;  %v8606_v54 = vld [vmem:[%s19129_s1 + $0x5d0] sm:$0xf0]  ;;  %v11950_v55 = vld [vmem:[%s19129_s1 + $0x284] sm:$0xf]  ;;  %v8337_v57 = vor.u32 %v11986_v44, %v8334_v28  ;;  %v6081_v4 = vpop.f32.mrf.mxu0 }
 0x10f   :  { %6345 = vmatpush.bf16.msra.mxu0 %v8241_v3  ;;  %6301 = vmatmul.bf16.vlgmr.msrb.gmra.mxu1 %v1041_v36  ;;  %v8190_v56 = vld [vmem:[%s19129_s1 + $0x290] sm:$0xf0]  ;;  %v11982_v59 = vld [vmem:[%s19129_s1 + $0x384] sm:$0xf]  ;;  %v8609_v61 = vor.u32 %v12054_v53, %v8606_v54 }
 0x110   :  { %6358 = vmatpush.bf16.msra.mxu1 %v8369_v23  ;;  %v8318_v62 = vld [vmem:[%s19129_s1 + $0x390] sm:$0xf0]  ;;  %v12014_v63 = vld [vmem:[%s19129_s1 + $0x484] sm:$0xf]  ;;  %v6082_v23 = vadd.f32 %v6081_v4, %v14540_v24 }
 0x111   :  { %6338 = vmatpush.bf16.msra.mxu2 %v8017_v5  ;;  %6327 = vmatmul.bf16.vlgmr.msrb.gmra.mxu3 %v13258_v21  ;;  %v8446_v3 = vld [vmem:[%s19129_s1 + $0x490] sm:$0xf0]  ;;  %v8193_v5 = vor.u32 %v11950_v55, %v8190_v56  ;;  %v12050_v8 = vld [vmem:[%s19129_s1 + $0x5a4] sm:$0xf]  ;;  %v8321_v31 = vor.u32 %v11982_v59, %v8318_v62 }
 0x112   :  { %6371 = vmatpush.bf16.msra.mxu3 %v8497_v27  ;;  %v8590_v10 = vld [vmem:[%s19129_s1 + $0x5b0] sm:$0xf0]  ;;  %v6094_v27 = vpop.f32.mrf.mxu1  ;;  %v11946_v29 = vld [vmem:[%s19129_s1 + $0x264] sm:$0xf]  ;;  %v8449_v32 = vor.u32 %v12014_v63, %v8446_v3 }
 0x113   :  { %6346 = vmatpush.bf16.msra.mxu0 %v8225_v37  ;;  %v8174_v30 = vld [vmem:[%s19129_s1 + $0x270] sm:$0xf0]  ;;  %v11978_v33 = vld [vmem:[%s19129_s1 + $0x364] sm:$0xf]  ;;  %v6095_v34 = vadd.f32 %v6094_v27, %v6082_v23  ;;  %v8593_v24 = vor.u32 %v12050_v8, %v8590_v10 }
 0x114   :  { %6359 = vmatpush.bf16.msra.mxu1 %v8353_v42  ;;  %v8302_v35 = vld [vmem:[%s19129_s1 + $0x370] sm:$0xf0]  ;;  %v12010_v36 = vld [vmem:[%s19129_s1 + $0x464] sm:$0xf]  ;;  %v8177_v38 = vor.u32 %v11946_v29, %v8174_v30  ;;  %v6120_v54 = vpop.f32.mrf.mxu3 }
 0x115   :  { %6339 = vmatpush.bf16.msra.mxu2 %v8001_v40  ;;  %v8430_v37 = vld [vmem:[%s19129_s1 + $0x470] sm:$0xf0]  ;;  %v12046_v39 = vld [vmem:[%s19129_s1 + $0x584] sm:$0xf]  ;;  %v8305_v42 = vor.u32 %v11978_v33, %v8302_v35 }
 0x116   :  { %6372 = vmatpush.bf16.msra.mxu3 %v8481_v43  ;;  %v8574_v40 = vld [vmem:[%s19129_s1 + $0x590] sm:$0xf0]  ;;  %v11942_v41 = vld [vmem:[%s19129_s1 + $0x244] sm:$0xf]  ;;  %v8433_v43 = vor.u32 %v12010_v36, %v8430_v37 }
 0x117   :  { %6347 = vmatpush.bf16.msra.mxu0 %v8209_v52  ;;  %v8158_v25 = vld [vmem:[%s19129_s1 + $0x250] sm:$0xf0]  ;;  %v11974_v44 = vld [vmem:[%s19129_s1 + $0x344] sm:$0xf]  ;;  %v8577_v28 = vor.u32 %v12046_v39, %v8574_v40 }
 0x118   :  { %6340 = vmatmul.bf16.vlgmr.msra.gmra.mxu2 %v13269_v26  ;;  %6360 = vmatpush.bf16.msra.mxu1 %v8337_v57  ;;  %v8286_v50 = vld [vmem:[%s19129_s1 + $0x350] sm:$0xf0]  ;;  %v12006_v51 = vld [vmem:[%s19129_s1 + $0x444] sm:$0xf]  ;;  %v8161_v55 = vor.u32 %v11942_v41, %v8158_v25 }
 0x119   :  { %6384 = vmatpush.bf16.msrb.mxu2 %v8625_v45  ;;  %v6107_v45 = vpop.f32.mrf.mxu2  ;;  %v8414_v52 = vld [vmem:[%s19129_s1 + $0x450] sm:$0xf0]  ;;  %v12042_v56 = vld [vmem:[%s19129_s1 + $0x564] sm:$0xf]  ;;  %v8289_v3 = vor.u32 %v11974_v44, %v8286_v50 }
 0x11a   :  { %6373 = vmatpush.bf16.msra.mxu3 %v8465_v58  ;;  %v6108_v53 = vadd.f32 %v6107_v45, %v6095_v34  ;;  %v8558_v57 = vld [vmem:[%s19129_s1 + $0x570] sm:$0xf0]  ;;  %v6083_v58 = vpop.f32.mrf.mxu0  ;;  %v11938_v59 = vld [vmem:[%s19129_s1 + $0x224] sm:$0xf]  ;;  %v6096_v62 = vpop.f32.mrf.mxu1  ;;  %v8417_v4 = vor.u32 %v12006_v51, %v8414_v52 }
 0x11b   :  { %6348 = vmatpush.bf16.msra.mxu0 %v8193_v5  ;;  %v11970_v5 = vld [vmem:[%s19129_s1 + $0x324] sm:$0xf]  ;;  %v8561_v8 = vor.u32 %v12042_v56, %v8558_v57  ;;  %v8270_v10 = vld [vmem:[%s19129_s1 + $0x330] sm:$0xf0] }
 0x11c   :  { %6361 = vmatpush.bf16.msra.mxu1 %v8321_v31  ;;  %v14744_v63 = vadd.f32 %v6120_v54, %v6108_v53  ;;  %v12002_v23 = vld [vmem:[%s19129_s1 + $0x424] sm:$0xf]  ;;  %v8398_v27 = vld [vmem:[%s19129_s1 + $0x430] sm:$0xf0]  ;;  %v6122_v50 = vpop.f32.mrf.mxu3 }
 0x11d   :  { %6385 = vmatpush.bf16.msrb.mxu2 %v8609_v61  ;;  %v8142_v61 = vld [vmem:[%s19129_s1 + $0x230] sm:$0xf0]  ;;  %v12038_v30 = vld [vmem:[%s19129_s1 + $0x544] sm:$0xf]  ;;  %v8401_v35 = vor.u32 %v12002_v23, %v8398_v27 }
 0x11e   :  { %6374 = vmatpush.bf16.msra.mxu3 %v8449_v32  ;;  %v8145_v29 = vor.u32 %v11938_v59, %v8142_v61  ;;  %v8542_v31 = vld [vmem:[%s19129_s1 + $0x550] sm:$0xf0]  ;;  %v11934_v32 = vld [vmem:[%s19129_s1 + $0x204] sm:$0xf] }
 0x11f   :  { %6349 = vmatpush.bf16.msra.mxu0 %v8177_v38  ;;  %v8126_v33 = vld [vmem:[%s19129_s1 + $0x210] sm:$0xf0]  ;;  %v11966_v34 = vld [vmem:[%s19129_s1 + $0x304] sm:$0xf]  ;;  %v8545_v39 = vor.u32 %v12038_v30, %v8542_v31 }
 0x120   :  { %6362 = vmatpush.bf16.msra.mxu1 %v8305_v42  ;;  %v8254_v36 = vld [vmem:[%s19129_s1 + $0x310] sm:$0xf0]  ;;  %v12090_v37 = vld [vmem:[%s19129_s1 + $0x6e4] sm:$0xf] }
 0x121   :  { %6386 = vmatpush.bf16.msrb.mxu2 %v8593_v24  ;;  %v8273_v24 = vor.u32 %v11970_v5, %v8270_v10  ;;  %v8750_v38 = vld [vmem:[%s19129_s1 + $0x6f0] sm:$0xf0]  ;;  %v11998_v40 = vld [vmem:[%s19129_s1 + $0x404] sm:$0xf]  ;;  %v6109_v42 = vpop.f32.mrf.mxu2  ;;  %v8257_v54 = vor.u32 %v11966_v34, %v8254_v36 }
 0x122   :  { %6375 = vmatpush.bf16.msra.mxu3 %v8433_v43  ;;  %v8382_v41 = vld [vmem:[%s19129_s1 + $0x410] sm:$0xf0]  ;;  %v12034_v25 = vld [vmem:[%s19129_s1 + $0x524] sm:$0xf]  ;;  %v8129_v43 = vor.u32 %v11934_v32, %v8126_v33  ;;  %v8753_v51 = vor.u32 %v12090_v37, %v8750_v38 }
 0x123   :  { %6350 = vmatpush.bf16.msra.mxu0 %v8161_v55  ;;  %v8526_v44 = vld [vmem:[%s19129_s1 + $0x530] sm:$0xf0]  ;;  %v12122_v45 = vld [vmem:[%s19129_s1 + $0x7e4] sm:$0xf]  ;;  %v8385_v55 = vor.u32 %v11998_v40, %v8382_v41 }
 0x124   :  { %6363 = vmatpush.bf16.msra.mxu1 %v8289_v3  ;;  %v12154_v52 = vld [vmem:[%s19129_s1 + $0x8e4] sm:$0xf]  ;;  %v9006_v53 = vld [vmem:[%s19129_s1 + $0x8f0] sm:$0xf0]  ;;  %v8529_v58 = vor.u32 %v12034_v25, %v8526_v44 }
 0x125   :  { %6387 = vmatpush.bf16.msrb.mxu2 %v8577_v28  ;;  %v8878_v28 = vld [vmem:[%s19129_s1 + $0x7f0] sm:$0xf0]  ;;  %v12086_v56 = vld [vmem:[%s19129_s1 + $0x6c4] sm:$0xf]  ;;  %v9009_v3 = vor.u32 %v12154_v52, %v9006_v53 }
 0x126   :  { %6376 = vmatpush.bf16.msra.mxu3 %v8417_v4  ;;  %v8734_v57 = vld [vmem:[%s19129_s1 + $0x6d0] sm:$0xf0]  ;;  %v8881_v59 = vor.u32 %v12122_v45, %v8878_v28  ;;  %v12030_v61 = vld [vmem:[%s19129_s1 + $0x504] sm:$0xf] }
 0x127   :  { %6351 = vmatpush.bf16.msra.mxu0 %v8145_v29  ;;  %v8510_v62 = vld [vmem:[%s19129_s1 + $0x510] sm:$0xf0]  ;;  %v12118_v4 = vld [vmem:[%s19129_s1 + $0x7c4] sm:$0xf]  ;;  %v8737_v10 = vor.u32 %v12086_v56, %v8734_v57 }
 0x128   :  { %6364 = vmatpush.bf16.msra.mxu1 %v8273_v24  ;;  %v8862_v5 = vld [vmem:[%s19129_s1 + $0x7d0] sm:$0xf0]  ;;  %v12186_v27 = vld [vmem:[%s19129_s1 + $0x9e4] sm:$0xf]  ;;  %v8513_v32 = vor.u32 %v12030_v61, %v8510_v62 }
 0x129   :  { %6388 = vmatpush.bf16.msrb.mxu2 %v8561_v8  ;;  %v12150_v8 = vld [vmem:[%s19129_s1 + $0x8c4] sm:$0xf]  ;;  %v8990_v23 = vld [vmem:[%s19129_s1 + $0x8d0] sm:$0xf0]  ;;  %v8865_v33 = vor.u32 %v12118_v4, %v8862_v5 }
 0x12a   :  { %6377 = vmatpush.bf16.msra.mxu3 %v8401_v35  ;;  %v9134_v29 = vld [vmem:[%s19129_s1 + $0x9f0] sm:$0xf0]  ;;  %v12082_v30 = vld [vmem:[%s19129_s1 + $0x6a4] sm:$0xf]  ;;  %v8993_v34 = vor.u32 %v12150_v8, %v8990_v23 }
 0x12b   :  { %6352 = vmatpush.bf16.msra.mxu0 %v8129_v43  ;;  %v8718_v31 = vld [vmem:[%s19129_s1 + $0x6b0] sm:$0xf0]  ;;  %v9137_v24 = vor.u32 %v12186_v27, %v9134_v29  ;;  %v12114_v35 = vld [vmem:[%s19129_s1 + $0x7a4] sm:$0xf] }
 0x12c   :  { %6365 = vmatpush.bf16.msra.mxu1 %v8257_v54  ;;  %v8846_v36 = vld [vmem:[%s19129_s1 + $0x7b0] sm:$0xf0]  ;;  %v12146_v37 = vld [vmem:[%s19129_s1 + $0x8a4] sm:$0xf]  ;;  %v8721_v38 = vor.u32 %v12082_v30, %v8718_v31 }
 0x12d   :  { %6389 = vmatpush.bf16.msrb.mxu2 %v8545_v39  ;;  %v8974_v39 = vld [vmem:[%s19129_s1 + $0x8b0] sm:$0xf0]  ;;  %v12182_v40 = vld [vmem:[%s19129_s1 + $0x9c4] sm:$0xf]  ;;  %v8849_v43 = vor.u32 %v12114_v35, %v8846_v36 }
 0x12e   :  { %6378 = vmatpush.bf16.msra.mxu3 %v8385_v55  ;;  %6353 = vmatmul.bf16.vlgmr.msra.gmra.mxu0 %v13256_v20  ;;  %v9118_v41 = vld [vmem:[%s19129_s1 + $0x9d0] sm:$0xf0]  ;;  %v12078_v25 = vld [vmem:[%s19129_s1 + $0x684] sm:$0xf]  ;;  %v8977_v44 = vor.u32 %v12146_v37, %v8974_v39  ;;  %v6133_v56 = vpop.f32.mrf.mxu0 }
 0x12f   :  { %6397 = vmatpush.bf16.msrb.mxu0 %v8753_v51  ;;  %6366 = vmatmul.bf16.vlgmr.msra.gmra.mxu1 %v13260_v22  ;;  %v8702_v42 = vld [vmem:[%s19129_s1 + $0x690] sm:$0xf0]  ;;  %v9121_v45 = vor.u32 %v12182_v40, %v9118_v41  ;;  %v12110_v28 = vld [vmem:[%s19129_s1 + $0x784] sm:$0xf]  ;;  %v6146_v62 = vpop.f32.mrf.mxu1 }
 0x130   :  { %6410 = vmatpush.bf16.msrb.mxu1 %v8881_v59  ;;  %v8830_v50 = vld [vmem:[%s19129_s1 + $0x790] sm:$0xf0]  ;;  %v12142_v51 = vld [vmem:[%s19129_s1 + $0x884] sm:$0xf]  ;;  %v8705_v52 = vor.u32 %v12078_v25, %v8702_v42  ;;  %v6134_v59 = vadd.f32 %v6133_v56, %v14744_v63 }
 0x131   :  { %6390 = vmatpush.bf16.msrb.mxu2 %v8529_v58  ;;  %6379 = vmatmul.bf16.vlgmr.msra.gmra.mxu3 %v13351_v0  ;;  %v8958_v53 = vld [vmem:[%s19129_s1 + $0x890] sm:$0xf0]  ;;  %v12178_v54 = vld [vmem:[%s19129_s1 + $0x9a4] sm:$0xf]  ;;  %v8833_v61 = vor.u32 %v12110_v28, %v8830_v50 }
 0x132   :  { %6423 = vmatpush.bf16.msrb.mxu3 %v9009_v3  ;;  %v9102_v55 = vld [vmem:[%s19129_s1 + $0x9b0] sm:$0xf0]  ;;  %v12074_v57 = vld [vmem:[%s19129_s1 + $0x664] sm:$0xf]  ;;  %v8961_v3 = vor.u32 %v12142_v51, %v8958_v53  ;;  %v6147_v63 = vadd.f32 %v6146_v62, %v6134_v59 }
 0x133   :  { %6398 = vmatpush.bf16.msrb.mxu0 %v8737_v10  ;;  %v8686_v58 = vld [vmem:[%s19129_s1 + $0x670] sm:$0xf0]  ;;  %v9105_v4 = vor.u32 %v12178_v54, %v9102_v55  ;;  %v12106_v5 = vld [vmem:[%s19129_s1 + $0x764] sm:$0xf] }
 0x134   :  { %6411 = vmatpush.bf16.msrb.mxu1 %v8865_v33  ;;  %v8814_v8 = vld [vmem:[%s19129_s1 + $0x770] sm:$0xf0]  ;;  %v12138_v10 = vld [vmem:[%s19129_s1 + $0x864] sm:$0xf]  ;;  %v8689_v23 = vor.u32 %v12074_v57, %v8686_v58 }
 0x135   :  { %6391 = vmatpush.bf16.msrb.mxu2 %v8513_v32  ;;  %v8942_v27 = vld [vmem:[%s19129_s1 + $0x870] sm:$0xf0]  ;;  %v12174_v29 = vld [vmem:[%s19129_s1 + $0x984] sm:$0xf]  ;;  %v8817_v33 = vor.u32 %v12106_v5, %v8814_v8 }
 0x136   :  { %6424 = vmatpush.bf16.msrb.mxu3 %v8993_v34  ;;  %v9086_v30 = vld [vmem:[%s19129_s1 + $0x990] sm:$0xf0]  ;;  %v12070_v31 = vld [vmem:[%s19129_s1 + $0x644] sm:$0xf]  ;;  %v8945_v34 = vor.u32 %v12138_v10, %v8942_v27  ;;  %v6135_v28 = vpop.f32.mrf.mxu0 }
 0x137   :  { %6399 = vmatpush.bf16.msrb.mxu0 %v8721_v38  ;;  %v8670_v32 = vld [vmem:[%s19129_s1 + $0x650] sm:$0xf0]  ;;  %v12102_v35 = vld [vmem:[%s19129_s1 + $0x744] sm:$0xf]  ;;  %v6159_v38 = vpop.f32.mrf.mxu2  ;;  %v6148_v51 = vpop.f32.mrf.mxu1 }
 0x138   :  { %6392 = vmatmul.bf16.vlgmr.msrb.gmra.mxu2 %v13355_v2  ;;  %6412 = vmatpush.bf16.msrb.mxu1 %v8849_v43  ;;  %v8798_v36 = vld [vmem:[%s19129_s1 + $0x750] sm:$0xf0]  ;;  %v12134_v37 = vld [vmem:[%s19129_s1 + $0x844] sm:$0xf]  ;;  %v8673_v39 = vor.u32 %v12070_v31, %v8670_v32  ;;  %v6160_v42 = vadd.f32 %v6159_v38, %v6147_v63  ;;  %v6172_v43 = vpop.f32.mrf.mxu3 }
 0x139   :  { %6436 = vmatpush.bf16.msra.mxu2 %v9137_v24  ;;  %v9089_v24 = vor.u32 %v12174_v29, %v9086_v30  ;;  %v8926_v40 = vld [vmem:[%s19129_s1 + $0x850] sm:$0xf0]  ;;  %v12170_v41 = vld [vmem:[%s19129_s1 + $0x964] sm:$0xf]  ;;  %v8801_v50 = vor.u32 %v12102_v35, %v8798_v36 }
 0x13a   :  { %6425 = vmatpush.bf16.msrb.mxu3 %v8977_v44  ;;  %v9070_v25 = vld [vmem:[%s19129_s1 + $0x970] sm:$0xf0]  ;;  %v12066_v44 = vld [vmem:[%s19129_s1 + $0x624] sm:$0xf]  ;;  %v8929_v53 = vor.u32 %v12134_v37, %v8926_v40 }
 0x13b   :  { %6400 = vmatpush.bf16.msrb.mxu0 %v8705_v52  ;;  %v14943_v52 = vadd.f32 %v6172_v43, %v6160_v42  ;;  %v9073_v54 = vor.u32 %v12170_v41, %v9070_v25  ;;  %v12098_v55 = vld [vmem:[%s19129_s1 + $0x724] sm:$0xf]  ;;  %v8782_v56 = vld [vmem:[%s19129_s1 + $0x730] sm:$0xf0] }
 0x13c   :  { %6413 = vmatpush.bf16.msrb.mxu1 %v8833_v61  ;;  %v12130_v57 = vld [vmem:[%s19129_s1 + $0x824] sm:$0xf]  ;;  %v8910_v59 = vld [vmem:[%s19129_s1 + $0x830] sm:$0xf0]  ;;  %v8785_v5 = vor.u32 %v12098_v55, %v8782_v56 }
 0x13d   :  { %6437 = vmatpush.bf16.msra.mxu2 %v9121_v45  ;;  %v8654_v45 = vld [vmem:[%s19129_s1 + $0x630] sm:$0xf0]  ;;  %v12166_v61 = vld [vmem:[%s19129_s1 + $0x944] sm:$0xf] }
 0x13e   :  { %6426 = vmatpush.bf16.msrb.mxu3 %v8961_v3  ;;  %v8657_v58 = vor.u32 %v12066_v44, %v8654_v45  ;;  %v9054_v62 = vld [vmem:[%s19129_s1 + $0x950] sm:$0xf0]  ;;  %v12062_v3 = vld [vmem:[%s19129_s1 + $0x604] sm:$0xf] }
 0x13f   :  { %6401 = vmatpush.bf16.msrb.mxu0 %v8689_v23  ;;  %v12094_v8 = vld [vmem:[%s19129_s1 + $0x704] sm:$0xf]  ;;  %v9262_v63 = vld [vmem:[%s19129_s1 + $0xaf0] sm:$0xf0]  ;;  %v8913_v23 = vor.u32 %v12130_v57, %v8910_v59  ;;  %v9057_v27 = vor.u32 %v12166_v61, %v9054_v62  ;;  %v6161_v35 = vpop.f32.mrf.mxu2 }
 0x140   :  { %6414 = vmatpush.bf16.msrb.mxu1 %v8817_v33  ;;  %v12218_v10 = vld [vmem:[%s19129_s1 + $0xae4] sm:$0xf]  ;;  %v8766_v29 = vld [vmem:[%s19129_s1 + $0x710] sm:$0xf0]  ;;  %v6174_v40 = vpop.f32.mrf.mxu3 }
 0x141   :  { %6438 = vmatpush.bf16.msra.mxu2 %v9105_v4  ;;  %v8638_v4 = vld [vmem:[%s19129_s1 + $0x610] sm:$0xf0]  ;;  %v12126_v30 = vld [vmem:[%s19129_s1 + $0x804] sm:$0xf]  ;;  %v9265_v36 = vor.u32 %v12218_v10, %v9262_v63  ;;  %v8769_v41 = vor.u32 %v12094_v8, %v8766_v29 }
 0x142   :  { %6427 = vmatpush.bf16.msrb.mxu3 %v8945_v34  ;;  %v8894_v31 = vld [vmem:[%s19129_s1 + $0x810] sm:$0xf0]  ;;  %v8641_v32 = vor.u32 %v12062_v3, %v8638_v4  ;;  %v12162_v33 = vld [vmem:[%s19129_s1 + $0x924] sm:$0xf] }
 0x143   :  { %6402 = vmatpush.bf16.msrb.mxu0 %v8673_v39  ;;  %v9038_v34 = vld [vmem:[%s19129_s1 + $0x930] sm:$0xf0]  ;;  %v12282_v38 = vld [vmem:[%s19129_s1 + $0xce4] sm:$0xf]  ;;  %v8897_v25 = vor.u32 %v12126_v30, %v8894_v31 }
 0x144   :  { %6415 = vmatpush.bf16.msrb.mxu1 %v8801_v50  ;;  %v9390_v37 = vld [vmem:[%s19129_s1 + $0xbf0] sm:$0xf0]  ;;  %v9041_v42 = vor.u32 %v12162_v33, %v9038_v34  ;;  %v12214_v43 = vld [vmem:[%s19129_s1 + $0xac4] sm:$0xf] }
 0x145   :  { %6439 = vmatpush.bf16.msra.mxu2 %v9089_v24  ;;  %v12250_v24 = vld [vmem:[%s19129_s1 + $0xbe4] sm:$0xf]  ;;  %v9518_v39 = vld [vmem:[%s19129_s1 + $0xcf0] sm:$0xf0] }
 0x146   :  { %6428 = vmatpush.bf16.msrb.mxu3 %v8929_v53  ;;  %v9246_v44 = vld [vmem:[%s19129_s1 + $0xad0] sm:$0xf0]  ;;  %v9393_v45 = vor.u32 %v12250_v24, %v9390_v37  ;;  %v9521_v28 = vor.u32 %v12282_v38, %v9518_v39  ;;  %v12158_v50 = vld [vmem:[%s19129_s1 + $0x904] sm:$0xf] }
 0x147   :  { %6403 = vmatpush.bf16.msrb.mxu0 %v8657_v58  ;;  %v9022_v51 = vld [vmem:[%s19129_s1 + $0x910] sm:$0xf0]  ;;  %v12246_v53 = vld [vmem:[%s19129_s1 + $0xbc4] sm:$0xf]  ;;  %v9249_v57 = vor.u32 %v12214_v43, %v9246_v44 }
 0x148   :  { %6416 = vmatpush.bf16.msrb.mxu1 %v8785_v5  ;;  %v12278_v55 = vld [vmem:[%s19129_s1 + $0xcc4] sm:$0xf]  ;;  %v9502_v56 = vld [vmem:[%s19129_s1 + $0xcd0] sm:$0xf0]  ;;  %v9025_v61 = vor.u32 %v12158_v50, %v9022_v51 }
 0x149   :  { %6440 = vmatpush.bf16.msra.mxu2 %v9073_v54  ;;  %v9374_v54 = vld [vmem:[%s19129_s1 + $0xbd0] sm:$0xf0]  ;;  %v12314_v58 = vld [vmem:[%s19129_s1 + $0xde4] sm:$0xf]  ;;  %v9505_v5 = vor.u32 %v12278_v55, %v9502_v56 }
 0x14a   :  { %6429 = vmatpush.bf16.msrb.mxu3 %v8913_v23  ;;  %v9646_v59 = vld [vmem:[%s19129_s1 + $0xdf0] sm:$0xf0]  ;;  %v12210_v62 = vld [vmem:[%s19129_s1 + $0xaa4] sm:$0xf]  ;;  %v9377_v4 = vor.u32 %v12246_v53, %v9374_v54 }
 0x14b   :  { %6404 = vmatpush.bf16.msrb.mxu0 %v8641_v32  ;;  %v9230_v3 = vld [vmem:[%s19129_s1 + $0xab0] sm:$0xf0]  ;;  %v12242_v8 = vld [vmem:[%s19129_s1 + $0xba4] sm:$0xf]  ;;  %v9649_v10 = vor.u32 %v12314_v58, %v9646_v59 }
 0x14c   :  { %6417 = vmatpush.bf16.msrb.mxu1 %v8769_v41  ;;  %v9358_v63 = vld [vmem:[%s19129_s1 + $0xbb0] sm:$0xf0]  ;;  %v12274_v23 = vld [vmem:[%s19129_s1 + $0xca4] sm:$0xf]  ;;  %v9233_v29 = vor.u32 %v12210_v62, %v9230_v3 }
 0x14d   :  { %6441 = vmatpush.bf16.msra.mxu2 %v9057_v27  ;;  %v9486_v27 = vld [vmem:[%s19129_s1 + $0xcb0] sm:$0xf0]  ;;  %v12310_v30 = vld [vmem:[%s19129_s1 + $0xdc4] sm:$0xf]  ;;  %v9361_v34 = vor.u32 %v12242_v8, %v9358_v63 }
 0x14e   :  { %6430 = vmatpush.bf16.msrb.mxu3 %v8897_v25  ;;  %6405 = vmatmul.bf16.vlgmr.msrb.gmra.mxu0 %v13346_v60  ;;  %v9630_v31 = vld [vmem:[%s19129_s1 + $0xdd0] sm:$0xf0]  ;;  %v12206_v32 = vld [vmem:[%s19129_s1 + $0xa84] sm:$0xf]  ;;  %v9489_v24 = vor.u32 %v12274_v23, %v9486_v27  ;;  %v6198_v51 = vpop.f32.mrf.mxu1 }
 0x14f   :  { %6449 = vmatpush.bf16.msra.mxu0 %v9265_v36  ;;  %6418 = vmatmul.bf16.vlgmr.msrb.gmra.mxu1 %v13353_v1  ;;  %v9214_v33 = vld [vmem:[%s19129_s1 + $0xa90] sm:$0xf0]  ;;  %v12238_v35 = vld [vmem:[%s19129_s1 + $0xb84] sm:$0xf]  ;;  %v9633_v36 = vor.u32 %v12310_v30, %v9630_v31 }
 0x150   :  { %6462 = vmatpush.bf16.msra.mxu1 %v9393_v45  ;;  %v9342_v37 = vld [vmem:[%s19129_s1 + $0xb90] sm:$0xf0]  ;;  %v12270_v38 = vld [vmem:[%s19129_s1 + $0xc84] sm:$0xf]  ;;  %v9217_v40 = vor.u32 %v12206_v32, %v9214_v33 }
 0x151   :  { %6442 = vmatpush.bf16.msra.mxu2 %v9041_v42  ;;  %6431 = vmatmul.bf16.vlgmr.msrb.gmra.mxu3 %v13601_v12  ;;  %v9470_v39 = vld [vmem:[%s19129_s1 + $0xc90] sm:$0xf0]  ;;  %v12306_v41 = vld [vmem:[%s19129_s1 + $0xda4] sm:$0xf]  ;;  %v6185_v42 = vpop.f32.mrf.mxu0 }
 0x152   :  { %6475 = vmatpush.bf16.msra.mxu3 %v9521_v28  ;;  %v9614_v25 = vld [vmem:[%s19129_s1 + $0xdb0] sm:$0xf0]  ;;  %v12202_v43 = vld [vmem:[%s19129_s1 + $0xa64] sm:$0xf]  ;;  %v6186_v45 = vadd.f32 %v6185_v42, %v14943_v52  ;;  %v9345_v28 = vor.u32 %v12238_v35, %v9342_v37  ;;  %v9473_v50 = vor.u32 %v12270_v38, %v9470_v39 }
 0x153   :  { %6450 = vmatpush.bf16.msra.mxu0 %v9249_v57  ;;  %v9198_v44 = vld [vmem:[%s19129_s1 + $0xa70] sm:$0xf0]  ;;  %v12234_v53 = vld [vmem:[%s19129_s1 + $0xb64] sm:$0xf]  ;;  %v9617_v54 = vor.u32 %v12306_v41, %v9614_v25 }
 0x154   :  { %6463 = vmatpush.bf16.msra.mxu1 %v9377_v4  ;;  %v9326_v55 = vld [vmem:[%s19129_s1 + $0xb70] sm:$0xf0]  ;;  %v12266_v56 = vld [vmem:[%s19129_s1 + $0xc64] sm:$0xf]  ;;  %v6199_v57 = vadd.f32 %v6198_v51, %v6186_v45  ;;  %v9201_v58 = vor.u32 %v12202_v43, %v9198_v44 }
 0x155   :  { %6443 = vmatpush.bf16.msra.mxu2 %v9025_v61  ;;  %v9454_v52 = vld [vmem:[%s19129_s1 + $0xc70] sm:$0xf0]  ;;  %v12302_v59 = vld [vmem:[%s19129_s1 + $0xd84] sm:$0xf]  ;;  %v9329_v4 = vor.u32 %v12234_v53, %v9326_v55 }
 0x156   :  { %6476 = vmatpush.bf16.msra.mxu3 %v9505_v5  ;;  %v9598_v61 = vld [vmem:[%s19129_s1 + $0xd90] sm:$0xf0]  ;;  %v12198_v62 = vld [vmem:[%s19129_s1 + $0xa44] sm:$0xf]  ;;  %v9457_v5 = vor.u32 %v12266_v56, %v9454_v52 }
 0x157   :  { %6451 = vmatpush.bf16.msra.mxu0 %v9233_v29  ;;  %v9182_v3 = vld [vmem:[%s19129_s1 + $0xa50] sm:$0xf0]  ;;  %v12230_v8 = vld [vmem:[%s19129_s1 + $0xb44] sm:$0xf]  ;;  %v6211_v29 = vpop.f32.mrf.mxu2 }
 0x158   :  { %6444 = vmatmul.bf16.vlgmr.msra.gmra.mxu2 %v13611_v16  ;;  %6464 = vmatpush.bf16.msra.mxu1 %v9361_v34  ;;  %v9310_v63 = vld [vmem:[%s19129_s1 + $0xb50] sm:$0xf0]  ;;  %v12262_v23 = vld [vmem:[%s19129_s1 + $0xc44] sm:$0xf]  ;;  %v9185_v30 = vor.u32 %v12198_v62, %v9182_v3  ;;  %v6212_v33 = vadd.f32 %v6211_v29, %v6199_v57  ;;  %v6224_v34 = vpop.f32.mrf.mxu3 }
 0x159   :  { %6488 = vmatpush.bf16.msrb.mxu2 %v9649_v10  ;;  %v9601_v10 = vor.u32 %v12302_v59, %v9598_v61  ;;  %v9438_v27 = vld [vmem:[%s19129_s1 + $0xc50] sm:$0xf0]  ;;  %v12298_v31 = vld [vmem:[%s19129_s1 + $0xd64] sm:$0xf]  ;;  %v9313_v37 = vor.u32 %v12230_v8, %v9310_v63 }
 0x15a   :  { %6477 = vmatpush.bf16.msra.mxu3 %v9489_v24  ;;  %v9582_v32 = vld [vmem:[%s19129_s1 + $0xd70] sm:$0xf0]  ;;  %v12194_v24 = vld [vmem:[%s19129_s1 + $0xa24] sm:$0xf]  ;;  %v9441_v38 = vor.u32 %v12262_v23, %v9438_v27  ;;  %v15145_v41 = vadd.f32 %v6224_v34, %v6212_v33 }
 0x15b   :  { %6452 = vmatpush.bf16.msra.mxu0 %v9217_v40  ;;  %v9166_v35 = vld [vmem:[%s19129_s1 + $0xa30] sm:$0xf0]  ;;  %v12226_v39 = vld [vmem:[%s19129_s1 + $0xb24] sm:$0xf]  ;;  %v6200_v40 = vpop.f32.mrf.mxu1  ;;  %v9585_v25 = vor.u32 %v12298_v31, %v9582_v32 }
 0x15c   :  { %6465 = vmatpush.bf16.msra.mxu1 %v9345_v28  ;;  %v9294_v42 = vld [vmem:[%s19129_s1 + $0xb30] sm:$0xf0]  ;;  %v12258_v43 = vld [vmem:[%s19129_s1 + $0xc24] sm:$0xf]  ;;  %v9169_v45 = vor.u32 %v12194_v24, %v9166_v35 }
 0x15d   :  { %6489 = vmatpush.bf16.msrb.mxu2 %v9633_v36  ;;  %v6187_v36 = vpop.f32.mrf.mxu0  ;;  %v9422_v44 = vld [vmem:[%s19129_s1 + $0xc30] sm:$0xf0]  ;;  %v12294_v28 = vld [vmem:[%s19129_s1 + $0xd44] sm:$0xf]  ;;  %v9297_v55 = vor.u32 %v12226_v39, %v9294_v42 }
 0x15e   :  { %6478 = vmatpush.bf16.msra.mxu3 %v9473_v50  ;;  %v9566_v50 = vld [vmem:[%s19129_s1 + $0xd50] sm:$0xf0]  ;;  %v12190_v51 = vld [vmem:[%s19129_s1 + $0xa04] sm:$0xf]  ;;  %v9425_v56 = vor.u32 %v12258_v43, %v9422_v44 }
 0x15f   :  { %6453 = vmatpush.bf16.msra.mxu0 %v9201_v58  ;;  %v9150_v53 = vld [vmem:[%s19129_s1 + $0xa10] sm:$0xf0]  ;;  %v12346_v57 = vld [vmem:[%s19129_s1 + $0xee4] sm:$0xf]  ;;  %v9569_v59 = vor.u32 %v12294_v28, %v9566_v50  ;;  %v6213_v63 = vpop.f32.mrf.mxu2 }
 0x160   :  { %6466 = vmatpush.bf16.msra.mxu1 %v9329_v4  ;;  %v9278_v52 = vld [vmem:[%s19129_s1 + $0xb10] sm:$0xf0]  ;;  %v12254_v61 = vld [vmem:[%s19129_s1 + $0xc04] sm:$0xf]  ;;  %v9153_v4 = vor.u32 %v12190_v51, %v9150_v53 }
 0x161   :  { %6490 = vmatpush.bf16.msrb.mxu2 %v9617_v54  ;;  %v12222_v54 = vld [vmem:[%s19129_s1 + $0xb04] sm:$0xf]  ;;  %v9774_v58 = vld [vmem:[%s19129_s1 + $0xef0] sm:$0xf0] }
 0x162   :  { %6479 = vmatpush.bf16.msra.mxu3 %v9457_v5  ;;  %v9406_v62 = vld [vmem:[%s19129_s1 + $0xc10] sm:$0xf0]  ;;  %v12290_v3 = vld [vmem:[%s19129_s1 + $0xd24] sm:$0xf]  ;;  %v9777_v23 = vor.u32 %v12346_v57, %v9774_v58  ;;  %v9281_v31 = vor.u32 %v12222_v54, %v9278_v52 }
 0x163   :  { %6454 = vmatpush.bf16.msra.mxu0 %v9185_v30  ;;  %v9550_v5 = vld [vmem:[%s19129_s1 + $0xd30] sm:$0xf0]  ;;  %v12378_v8 = vld [vmem:[%s19129_s1 + $0xfe4] sm:$0xf]  ;;  %v6226_v30 = vpop.f32.mrf.mxu3  ;;  %v9409_v32 = vor.u32 %v12254_v61, %v9406_v62 }
 0x164   :  { %6467 = vmatpush.bf16.msra.mxu1 %v9313_v37  ;;  %v12410_v27 = vld [vmem:[%s19129_s1 + $0x10e4] sm:$0xf]  ;;  %v10030_v29 = vld [vmem:[%s19129_s1 + $0x10f0] sm:$0xf0]  ;;  %v9553_v34 = vor.u32 %v12290_v3, %v9550_v5 }
 0x165   :  { %6491 = vmatpush.bf16.msrb.mxu2 %v9601_v10  ;;  %v9902_v10 = vld [vmem:[%s19129_s1 + $0xff0] sm:$0xf0]  ;;  %v12286_v33 = vld [vmem:[%s19129_s1 + $0xd04] sm:$0xf] }
 0x166   :  { %6480 = vmatpush.bf16.msra.mxu3 %v9441_v38  ;;  %v9905_v24 = vor.u32 %v12378_v8, %v9902_v10  ;;  %v9534_v35 = vld [vmem:[%s19129_s1 + $0xd10] sm:$0xf0]  ;;  %v12342_v36 = vld [vmem:[%s19129_s1 + $0xec4] sm:$0xf]  ;;  %v10033_v38 = vor.u32 %v12410_v27, %v10030_v29 }
 0x167   :  { %6455 = vmatpush.bf16.msra.mxu0 %v9169_v45  ;;  %v9758_v37 = vld [vmem:[%s19129_s1 + $0xed0] sm:$0xf0]  ;;  %v12374_v39 = vld [vmem:[%s19129_s1 + $0xfc4] sm:$0xf]  ;;  %v9537_v28 = vor.u32 %v12286_v33, %v9534_v35 }
 0x168   :  { %6468 = vmatpush.bf16.msra.mxu1 %v9297_v55  ;;  %v9886_v40 = vld [vmem:[%s19129_s1 + $0xfd0] sm:$0xf0]  ;;  %v12442_v43 = vld [vmem:[%s19129_s1 + $0x11e4] sm:$0xf]  ;;  %v9761_v45 = vor.u32 %v12342_v36, %v9758_v37 }
 0x169   :  { %6492 = vmatpush.bf16.msrb.mxu2 %v9585_v25  ;;  %v12406_v25 = vld [vmem:[%s19129_s1 + $0x10c4] sm:$0xf]  ;;  %v10014_v42 = vld [vmem:[%s19129_s1 + $0x10d0] sm:$0xf0]  ;;  %v9889_v50 = vor.u32 %v12374_v39, %v9886_v40 }
 0x16a   :  { %6481 = vmatpush.bf16.msra.mxu3 %v9425_v56  ;;  %v10158_v44 = vld [vmem:[%s19129_s1 + $0x11f0] sm:$0xf0]  ;;  %v12338_v51 = vld [vmem:[%s19129_s1 + $0xea4] sm:$0xf]  ;;  %v10017_v54 = vor.u32 %v12406_v25, %v10014_v42 }
 0x16b   :  { %6456 = vmatpush.bf16.msra.mxu0 %v9153_v4  ;;  %v9742_v53 = vld [vmem:[%s19129_s1 + $0xeb0] sm:$0xf0]  ;;  %v10161_v55 = vor.u32 %v12442_v43, %v10158_v44  ;;  %v12370_v56 = vld [vmem:[%s19129_s1 + $0xfa4] sm:$0xf] }
 0x16c   :  { %6469 = vmatpush.bf16.msra.mxu1 %v9281_v31  ;;  %v9870_v52 = vld [vmem:[%s19129_s1 + $0xfb0] sm:$0xf0]  ;;  %v12402_v57 = vld [vmem:[%s19129_s1 + $0x10a4] sm:$0xf]  ;;  %v9745_v62 = vor.u32 %v12338_v51, %v9742_v53 }
 0x16d   :  { %6493 = vmatpush.bf16.msrb.mxu2 %v9569_v59  ;;  %v9998_v58 = vld [vmem:[%s19129_s1 + $0x10b0] sm:$0xf0]  ;;  %v12438_v59 = vld [vmem:[%s19129_s1 + $0x11c4] sm:$0xf]  ;;  %v9873_v3 = vor.u32 %v12370_v56, %v9870_v52 }
 0x16e   :  { %6482 = vmatpush.bf16.msra.mxu3 %v9409_v32  ;;  %6457 = vmatmul.bf16.vlgmr.msra.gmra.mxu0 %v13609_v15  ;;  %v10142_v61 = vld [vmem:[%s19129_s1 + $0x11d0] sm:$0xf0]  ;;  %v12334_v4 = vld [vmem:[%s19129_s1 + $0xe84] sm:$0xf]  ;;  %v10001_v8 = vor.u32 %v12402_v57, %v9998_v58  ;;  %v6237_v33 = vpop.f32.mrf.mxu0 }
 0x16f   :  { %6501 = vmatpush.bf16.msrb.mxu0 %v9777_v23  ;;  %6470 = vmatmul.bf16.vlgmr.msra.gmra.mxu1 %v13613_v17  ;;  %v9726_v5 = vld [vmem:[%s19129_s1 + $0xe90] sm:$0xf0]  ;;  %v10145_v10 = vor.u32 %v12438_v59, %v10142_v61  ;;  %v12366_v63 = vld [vmem:[%s19129_s1 + $0xf84] sm:$0xf]  ;;  %v6238_v36 = vadd.f32 %v6237_v33, %v15145_v41 }
 0x170   :  { %6514 = vmatpush.bf16.msrb.mxu1 %v9905_v24  ;;  %v9854_v23 = vld [vmem:[%s19129_s1 + $0xf90] sm:$0xf0]  ;;  %v12398_v27 = vld [vmem:[%s19129_s1 + $0x1084] sm:$0xf]  ;;  %v9729_v32 = vor.u32 %v12334_v4, %v9726_v5 }
 0x171   :  { %6494 = vmatpush.bf16.msrb.mxu2 %v9553_v34  ;;  %6483 = vmatmul.bf16.vlgmr.msra.gmra.mxu3 %v13775_v46  ;;  %v9982_v29 = vld [vmem:[%s19129_s1 + $0x1090] sm:$0xf0]  ;;  %v12434_v30 = vld [vmem:[%s19129_s1 + $0x11a4] sm:$0xf]  ;;  %v9857_v34 = vor.u32 %v12366_v63, %v9854_v23 }
 0x172   :  { %6527 = vmatpush.bf16.msrb.mxu3 %v10033_v38  ;;  %v10126_v31 = vld [vmem:[%s19129_s1 + $0x11b0] sm:$0xf0]  ;;  %v12330_v24 = vld [vmem:[%s19129_s1 + $0xe64] sm:$0xf]  ;;  %v9985_v37 = vor.u32 %v12398_v27, %v9982_v29  ;;  %v6250_v38 = vpop.f32.mrf.mxu1 }
 0x173   :  { %6502 = vmatpush.bf16.msrb.mxu0 %v9761_v45  ;;  %v9710_v35 = vld [vmem:[%s19129_s1 + $0xe70] sm:$0xf0]  ;;  %v10129_v39 = vor.u32 %v12434_v30, %v10126_v31  ;;  %v12362_v40 = vld [vmem:[%s19129_s1 + $0xf64] sm:$0xf]  ;;  %v6251_v45 = vadd.f32 %v6250_v38, %v6238_v36 }
 0x174   :  { %6515 = vmatpush.bf16.msrb.mxu1 %v9889_v50  ;;  %v9838_v25 = vld [vmem:[%s19129_s1 + $0xf70] sm:$0xf0]  ;;  %v12394_v42 = vld [vmem:[%s19129_s1 + $0x1064] sm:$0xf] }
 0x175   :  { %6495 = vmatpush.bf16.msrb.mxu2 %v9537_v28  ;;  %v9966_v43 = vld [vmem:[%s19129_s1 + $0x1070] sm:$0xf0]  ;;  %v12430_v41 = vld [vmem:[%s19129_s1 + $0x1184] sm:$0xf]  ;;  %v9713_v28 = vor.u32 %v12330_v24, %v9710_v35  ;;  %v9841_v50 = vor.u32 %v12362_v40, %v9838_v25 }
 0x176   :  { %6528 = vmatpush.bf16.msrb.mxu3 %v10017_v54  ;;  %v10110_v44 = vld [vmem:[%s19129_s1 + $0x1190] sm:$0xf0]  ;;  %v12326_v51 = vld [vmem:[%s19129_s1 + $0xe44] sm:$0xf]  ;;  %v9969_v54 = vor.u32 %v12394_v42, %v9966_v43  ;;  %v6239_v23 = vpop.f32.mrf.mxu0 }
 0x177   :  { %6503 = vmatpush.bf16.msrb.mxu0 %v9745_v62  ;;  %v9694_v53 = vld [vmem:[%s19129_s1 + $0xe50] sm:$0xf0]  ;;  %v12358_v56 = vld [vmem:[%s19129_s1 + $0xf44] sm:$0xf]  ;;  %v6263_v62 = vpop.f32.mrf.mxu2  ;;  %v6276_v5 = vpop.f32.mrf.mxu3 }
 0x178   :  { %6496 = vmatmul.bf16.vlgmr.msrb.gmra.mxu2 %v13779_v48  ;;  %6516 = vmatpush.bf16.msrb.mxu1 %v9873_v3  ;;  %v9822_v52 = vld [vmem:[%s19129_s1 + $0xf50] sm:$0xf0]  ;;  %v12390_v57 = vld [vmem:[%s19129_s1 + $0x1044] sm:$0xf]  ;;  %v9697_v3 = vor.u32 %v12326_v51, %v9694_v53  ;;  %v6264_v4 = vadd.f32 %v6263_v62, %v6251_v45 }
 0x179   :  { %6540 = vmatpush.bf16.msra.mxu2 %v10161_v55  ;;  %v10113_v55 = vor.u32 %v12430_v41, %v10110_v44  ;;  %v9950_v58 = vld [vmem:[%s19129_s1 + $0x1050] sm:$0xf0]  ;;  %v12426_v59 = vld [vmem:[%s19129_s1 + $0x1164] sm:$0xf] }
 0x17a   :  { %6529 = vmatpush.bf16.msrb.mxu3 %v10001_v8  ;;  %v10094_v61 = vld [vmem:[%s19129_s1 + $0x1170] sm:$0xf0]  ;;  %v9825_v8 = vor.u32 %v12358_v56, %v9822_v52  ;;  %v9953_v27 = vor.u32 %v12390_v57, %v9950_v58  ;;  %v12354_v30 = vld [vmem:[%s19129_s1 + $0xf24] sm:$0xf]  ;;  %v6252_v33 = vpop.f32.mrf.mxu1 }
 0x17b   :  { %6504 = vmatpush.bf16.msrb.mxu0 %v9729_v32  ;;  %v9678_v63 = vld [vmem:[%s19129_s1 + $0xe30] sm:$0xf0]  ;;  %v10097_v29 = vor.u32 %v12426_v59, %v10094_v61  ;;  %v12386_v32 = vld [vmem:[%s19129_s1 + $0x1024] sm:$0xf] }
 0x17c   :  { %6517 = vmatpush.bf16.msrb.mxu1 %v9857_v34  ;;  %v9806_v31 = vld [vmem:[%s19129_s1 + $0xf30] sm:$0xf0]  ;;  %v15350_v34 = vadd.f32 %v6276_v5, %v6264_v4  ;;  %v12422_v35 = vld [vmem:[%s19129_s1 + $0x1144] sm:$0xf] }
 0x17d   :  { %6541 = vmatpush.bf16.msra.mxu2 %v10145_v10  ;;  %v12322_v10 = vld [vmem:[%s19129_s1 + $0xe24] sm:$0xf]  ;;  %v9934_v24 = vld [vmem:[%s19129_s1 + $0x1030] sm:$0xf0]  ;;  %v9809_v40 = vor.u32 %v12354_v30, %v9806_v31 }
 0x17e   :  { %6530 = vmatpush.bf16.msrb.mxu3 %v9985_v37  ;;  %v10078_v36 = vld [vmem:[%s19129_s1 + $0x1150] sm:$0xf0]  ;;  %v9681_v37 = vor.u32 %v12322_v10, %v9678_v63  ;;  %v12318_v38 = vld [vmem:[%s19129_s1 + $0xe04] sm:$0xf]  ;;  %v9937_v41 = vor.u32 %v12386_v32, %v9934_v24 }
 0x17f   :  { %6505 = vmatpush.bf16.msrb.mxu0 %v9713_v28  ;;  %v12350_v25 = vld [vmem:[%s19129_s1 + $0xf04] sm:$0xf]  ;;  %v9790_v42 = vld [vmem:[%s19129_s1 + $0xf10] sm:$0xf0]  ;;  %v10081_v44 = vor.u32 %v12422_v35, %v10078_v36  ;;  %v6278_v62 = vpop.f32.mrf.mxu3 }
 0x180   :  { %6518 = vmatpush.bf16.msrb.mxu1 %v9841_v50  ;;  %v12382_v43 = vld [vmem:[%s19129_s1 + $0x1004] sm:$0xf]  ;;  %v9918_v45 = vld [vmem:[%s19129_s1 + $0x1010] sm:$0xf0]  ;;  %v9793_v59 = vor.u32 %v12350_v25, %v9790_v42 }
 0x181   :  { %6542 = vmatpush.bf16.msra.mxu2 %v10129_v39  ;;  %v9662_v39 = vld [vmem:[%s19129_s1 + $0xe10] sm:$0xf0]  ;;  %v12474_v28 = vld [vmem:[%s19129_s1 + $0x12e4] sm:$0xf] }
 0x182   :  { %6531 = vmatpush.bf16.msrb.mxu3 %v9969_v54  ;;  %v10286_v50 = vld [vmem:[%s19129_s1 + $0x12f0] sm:$0xf0]  ;;  %v12418_v51 = vld [vmem:[%s19129_s1 + $0x1124] sm:$0xf]  ;;  %v9665_v56 = vor.u32 %v12318_v38, %v9662_v39 }
 0x183   :  { %6506 = vmatpush.bf16.msrb.mxu0 %v9697_v3  ;;  %v10062_v53 = vld [vmem:[%s19129_s1 + $0x1130] sm:$0xf0]  ;;  %v12506_v54 = vld [vmem:[%s19129_s1 + $0x13e4] sm:$0xf]  ;;  %v10289_v61 = vor.u32 %v12474_v28, %v10286_v50  ;;  %v9921_v3 = vor.u32 %v12382_v43, %v9918_v45 }
 0x184   :  { %6519 = vmatpush.bf16.msrb.mxu1 %v9825_v8  ;;  %v10414_v52 = vld [vmem:[%s19129_s1 + $0x13f0] sm:$0xf0]  ;;  %v12538_v57 = vld [vmem:[%s19129_s1 + $0x14e4] sm:$0xf]  ;;  %v10065_v4 = vor.u32 %v12418_v51, %v10062_v53 }
 0x185   :  { %6543 = vmatpush.bf16.msra.mxu2 %v10113_v55  ;;  %v6265_v55 = vpop.f32.mrf.mxu2  ;;  %v10542_v58 = vld [vmem:[%s19129_s1 + $0x14f0] sm:$0xf0]  ;;  %v12470_v5 = vld [vmem:[%s19129_s1 + $0x12c4] sm:$0xf]  ;;  %v10417_v10 = vor.u32 %v12506_v54, %v10414_v52 }
 0x186   :  { %6532 = vmatpush.bf16.msrb.mxu3 %v9953_v27  ;;  %v10270_v8 = vld [vmem:[%s19129_s1 + $0x12d0] sm:$0xf0]  ;;  %v10545_v63 = vor.u32 %v12538_v57, %v10542_v58  ;;  %v12414_v23 = vld [vmem:[%s19129_s1 + $0x1104] sm:$0xf] }
 0x187   :  { %6507 = vmatpush.bf16.msrb.mxu0 %v9681_v37  ;;  %v10046_v27 = vld [vmem:[%s19129_s1 + $0x1110] sm:$0xf0]  ;;  %v12534_v31 = vld [vmem:[%s19129_s1 + $0x14c4] sm:$0xf]  ;;  %v10273_v33 = vor.u32 %v12470_v5, %v10270_v8 }
 0x188   :  { %6520 = vmatpush.bf16.msrb.mxu1 %v9809_v40  ;;  %v10398_v30 = vld [vmem:[%s19129_s1 + $0x13d0] sm:$0xf0]  ;;  %v12570_v24 = vld [vmem:[%s19129_s1 + $0x15e4] sm:$0xf]  ;;  %v10049_v36 = vor.u32 %v12414_v23, %v10046_v27 }
 0x189   :  { %6544 = vmatpush.bf16.msra.mxu2 %v10097_v29  ;;  %v12502_v29 = vld [vmem:[%s19129_s1 + $0x13c4] sm:$0xf]  ;;  %v10526_v32 = vld [vmem:[%s19129_s1 + $0x14d0] sm:$0xf0] }
 0x18a   :  { %6533 = vmatpush.bf16.msrb.mxu3 %v9937_v41  ;;  %v10670_v35 = vld [vmem:[%s19129_s1 + $0x15f0] sm:$0xf0]  ;;  %v12466_v37 = vld [vmem:[%s19129_s1 + $0x12a4] sm:$0xf]  ;;  %v10401_v39 = vor.u32 %v12502_v29, %v10398_v30  ;;  %v10529_v40 = vor.u32 %v12534_v31, %v10526_v32 }
 0x18b   :  { %6508 = vmatpush.bf16.msrb.mxu0 %v9665_v56  ;;  %v10254_v38 = vld [vmem:[%s19129_s1 + $0x12b0] sm:$0xf0]  ;;  %v12498_v25 = vld [vmem:[%s19129_s1 + $0x13a4] sm:$0xf]  ;;  %v10673_v42 = vor.u32 %v12570_v24, %v10670_v35 }
 0x18c   :  { %6521 = vmatpush.bf16.msrb.mxu1 %v9793_v59  ;;  %v10382_v43 = vld [vmem:[%s19129_s1 + $0x13b0] sm:$0xf0]  ;;  %v12530_v41 = vld [vmem:[%s19129_s1 + $0x14a4] sm:$0xf]  ;;  %v10257_v28 = vor.u32 %v12466_v37, %v10254_v38  ;;  %v6302_v27 = vpop.f32.mrf.mxu1 }
 0x18d   :  { %6545 = vmatpush.bf16.msra.mxu2 %v10081_v44  ;;  %v10510_v44 = vld [vmem:[%s19129_s1 + $0x14b0] sm:$0xf0]  ;;  %v6315_v45 = vpop.f32.mrf.mxu2  ;;  %v12566_v50 = vld [vmem:[%s19129_s1 + $0x15c4] sm:$0xf]  ;;  %v10385_v55 = vor.u32 %v12498_v25, %v10382_v43 }
 0x18e   :  { %6534 = vmatpush.bf16.msrb.mxu3 %v9921_v3  ;;  %6509 = vmatmul.bf16.vlgmr.msrb.gmra.mxu0 %v13777_v47  ;;  %v10654_v51 = vld [vmem:[%s19129_s1 + $0x15d0] sm:$0xf0]  ;;  %v12462_v53 = vld [vmem:[%s19129_s1 + $0x1284] sm:$0xf]  ;;  %v10513_v56 = vor.u32 %v12530_v41, %v10510_v44  ;;  %v12872_v41 = vld [vmem:[%s19130_s2] sm:$0xf] }
 0x18f   :  { %6553 = vmatpush.bf16.msra.mxu0 %v10289_v61  ;;  %6522 = vmatmul.bf16.vlgmr.msrb.gmra.mxu1 %v13781_v49  ;;  %v10238_v54 = vld [vmem:[%s19129_s1 + $0x1290] sm:$0xf0]  ;;  %v12494_v52 = vld [vmem:[%s19129_s1 + $0x1384] sm:$0xf]  ;;  %v10657_v57 = vor.u32 %v12566_v50, %v10654_v51  ;;  %v997_v44 = vperm.slane %v12872_v41, 1 }
 0x190   :  { %6566 = vmatpush.bf16.msra.mxu1 %v10417_v10  ;;  %v10366_v58 = vld [vmem:[%s19129_s1 + $0x1390] sm:$0xf0]  ;;  %v12526_v59 = vld [vmem:[%s19129_s1 + $0x1484] sm:$0xf]  ;;  %v10241_v62 = vor.u32 %v12462_v53, %v10238_v54  ;;  %v6289_v10 = vpop.f32.mrf.mxu0 }
 0x191   :  { %6546 = vmatpush.bf16.msra.mxu2 %v10065_v4  ;;  %6535 = vmatmul.bf16.vlgmr.msrb.gmra.mxu3 %v14012_v9  ;;  %v10494_v61 = vld [vmem:[%s19129_s1 + $0x1490] sm:$0xf0]  ;;  %v12562_v3 = vld [vmem:[%s19129_s1 + $0x15a4] sm:$0xf]  ;;  %v6290_v30 = vadd.f32 %v6289_v10, %v15350_v34 }
 0x192   :  { %6579 = vmatpush.bf16.msra.mxu3 %v10545_v63  ;;  %v10638_v4 = vld [vmem:[%s19129_s1 + $0x15b0] sm:$0xf0]  ;;  %v12458_v5 = vld [vmem:[%s19129_s1 + $0x1264] sm:$0xf]  ;;  %v10369_v63 = vor.u32 %v12494_v52, %v10366_v58  ;;  %v10497_v23 = vor.u32 %v12526_v59, %v10494_v61 }
 0x193   :  { %6554 = vmatpush.bf16.msra.mxu0 %v10273_v33  ;;  %v10222_v8 = vld [vmem:[%s19129_s1 + $0x1270] sm:$0xf0]  ;;  %v12490_v29 = vld [vmem:[%s19129_s1 + $0x1364] sm:$0xf]  ;;  %v10641_v31 = vor.u32 %v12562_v3, %v10638_v4  ;;  %v6303_v38 = vadd.f32 %v6302_v27, %v6290_v30 }
 0x194   :  { %6567 = vmatpush.bf16.msra.mxu1 %v10401_v39  ;;  %v10350_v32 = vld [vmem:[%s19129_s1 + $0x1370] sm:$0xf0]  ;;  %v12522_v33 = vld [vmem:[%s19129_s1 + $0x1464] sm:$0xf]  ;;  %v6328_v58 = vpop.f32.mrf.mxu3  ;;  %v6304_v4 = vpop.f32.mrf.mxu1 }
 0x195   :  { %6547 = vmatpush.bf16.msra.mxu2 %v10049_v36  ;;  %v10478_v24 = vld [vmem:[%s19129_s1 + $0x1470] sm:$0xf0]  ;;  %v6317_v35 = vpop.f32.mrf.mxu2  ;;  %v10225_v36 = vor.u32 %v12458_v5, %v10222_v8  ;;  %v12558_v34 = vld [vmem:[%s19129_s1 + $0x1584] sm:$0xf]  ;;  %v10353_v25 = vor.u32 %v12490_v29, %v10350_v32  ;;  %v6329_v3 = vadd.f32 %v6328_v58, %v997_v44 }
 0x196   :  { %6580 = vmatpush.bf16.msra.mxu3 %v10529_v40  ;;  %v10622_v37 = vld [vmem:[%s19129_s1 + $0x1590] sm:$0xf0]  ;;  %v12454_v39 = vld [vmem:[%s19129_s1 + $0x1244] sm:$0xf] }
 0x197   :  { %6555 = vmatpush.bf16.msra.mxu0 %v10257_v28  ;;  %v10206_v40 = vld [vmem:[%s19129_s1 + $0x1250] sm:$0xf0]  ;;  %v12486_v43 = vld [vmem:[%s19129_s1 + $0x1344] sm:$0xf]  ;;  %v15522_v28 = vadd.f32 %v6315_v45, %v6303_v38  ;;  %v10625_v50 = vor.u32 %v12558_v34, %v10622_v37 }
 0x198   :  { %6548 = vmatmul.bf16.vlgmr.msra.gmra.mxu2 %v14022_v14  ;;  %6568 = vmatpush.bf16.msra.mxu1 %v10385_v55  ;;  %v10334_v51 = vld [vmem:[%s19129_s1 + $0x1350] sm:$0xf0]  ;;  %v12518_v53 = vld [vmem:[%s19129_s1 + $0x1444] sm:$0xf]  ;;  %v10209_v55 = vor.u32 %v12454_v39, %v10206_v40  ;;  %v6291_v5 = vpop.f32.mrf.mxu0 }
 0x199   :  { %6592 = vmatpush.bf16.msrb.mxu2 %v10673_v42  ;;  %v10481_v42 = vor.u32 %v12522_v33, %v10478_v24  ;;  %v10462_v54 = vld [vmem:[%s19129_s1 + $0x1450] sm:$0xf0]  ;;  %v12554_v45 = vld [vmem:[%s19129_s1 + $0x1564] sm:$0xf]  ;;  %v10337_v59 = vor.u32 %v12486_v43, %v10334_v51 }
 0x19a   :  { %6581 = vmatpush.bf16.msra.mxu3 %v10513_v56  ;;  %v10606_v56 = vld [vmem:[%s19129_s1 + $0x1570] sm:$0xf0]  ;;  %v12450_v52 = vld [vmem:[%s19129_s1 + $0x1224] sm:$0xf]  ;;  %v10465_v61 = vor.u32 %v12518_v53, %v10462_v54 }
 0x19b   :  { %6556 = vmatpush.bf16.msra.mxu0 %v10241_v62  ;;  %v12482_v62 = vld [vmem:[%s19129_s1 + $0x1324] sm:$0xf]  ;;  %v10609_v8 = vor.u32 %v12554_v45, %v10606_v56  ;;  %v10318_v10 = vld [vmem:[%s19129_s1 + $0x1330] sm:$0xf0] }
 0x19c   :  { %6569 = vmatpush.bf16.msra.mxu1 %v10369_v63  ;;  %v12514_v63 = vld [vmem:[%s19129_s1 + $0x1424] sm:$0xf]  ;;  %v10590_v30 = vld [vmem:[%s19129_s1 + $0x1550] sm:$0xf0]  ;;  %v10321_v35 = vor.u32 %v12482_v62, %v10318_v10  ;;  %v6330_v45 = vpop.f32.mrf.mxu3 }
 0x19d   :  { %6593 = vmatpush.bf16.msrb.mxu2 %v10657_v57  ;;  %v10190_v57 = vld [vmem:[%s19129_s1 + $0x1230] sm:$0xf0]  ;;  %v12550_v29 = vld [vmem:[%s19129_s1 + $0x1544] sm:$0xf]  ;;  %v6341_v24 = vpop.f32.mrf.mxu2 }
 0x19e   :  { %6582 = vmatpush.bf16.msra.mxu3 %v10497_v23  ;;  %v10446_v23 = vld [vmem:[%s19129_s1 + $0x1430] sm:$0xf0]  ;;  %v10193_v27 = vor.u32 %v12450_v52, %v10190_v57  ;;  %v12478_v33 = vld [vmem:[%s19129_s1 + $0x1304] sm:$0xf]  ;;  %v15581_v39 = vadd.f32 %v6341_v24, %v6329_v3  ;;  %v10593_v40 = vor.u32 %v12550_v29, %v10590_v30 }
 0x19f   :  { %6557 = vmatpush.bf16.msra.mxu0 %v10225_v36  ;;  %v10174_v32 = vld [vmem:[%s19129_s1 + $0x1210] sm:$0xf0]  ;;  %v10449_v36 = vor.u32 %v12514_v63, %v10446_v23  ;;  %v12602_v37 = vld [vmem:[%s19129_s1 + $0x16e4] sm:$0xf] }
 0x1a0   :  { %6570 = vmatpush.bf16.msra.mxu1 %v10353_v25  ;;  %v10302_v34 = vld [vmem:[%s19129_s1 + $0x1310] sm:$0xf0]  ;;  %v12510_v25 = vld [vmem:[%s19129_s1 + $0x1404] sm:$0xf] }
 0x1a1   :  { %6594 = vmatpush.bf16.msrb.mxu2 %v10641_v31  ;;  %v12446_v31 = vld [vmem:[%s19129_s1 + $0x1204] sm:$0xf]  ;;  %v10798_v38 = vld [vmem:[%s19129_s1 + $0x16f0] sm:$0xf0]  ;;  %v10305_v56 = vor.u32 %v12478_v33, %v10302_v34 }
 0x1a2   :  { %6583 = vmatpush.bf16.msra.mxu3 %v10481_v42  ;;  %v10430_v42 = vld [vmem:[%s19129_s1 + $0x1410] sm:$0xf0]  ;;  %v12546_v43 = vld [vmem:[%s19129_s1 + $0x1524] sm:$0xf]  ;;  %v10177_v41 = vor.u32 %v12446_v31, %v10174_v32  ;;  %v10801_v53 = vor.u32 %v12602_v37, %v10798_v38 }
 0x1a3   :  { %6558 = vmatpush.bf16.msra.mxu0 %v10209_v55  ;;  %v10574_v44 = vld [vmem:[%s19129_s1 + $0x1530] sm:$0xf0]  ;;  %v12666_v54 = vld [vmem:[%s19129_s1 + $0x18e4] sm:$0xf]  ;;  %v10433_v52 = vor.u32 %v12510_v25, %v10430_v42 }
 0x1a4   :  { %6571 = vmatpush.bf16.msra.mxu1 %v10337_v59  ;;  %v10926_v51 = vld [vmem:[%s19129_s1 + $0x17f0] sm:$0xf0]  ;;  %v12542_v57 = vld [vmem:[%s19129_s1 + $0x1504] sm:$0xf]  ;;  %v10577_v58 = vor.u32 %v12546_v43, %v10574_v44 }
 0x1a5   :  { %6595 = vmatpush.bf16.msrb.mxu2 %v10625_v50  ;;  %v12634_v50 = vld [vmem:[%s19129_s1 + $0x17e4] sm:$0xf]  ;;  %v11054_v55 = vld [vmem:[%s19129_s1 + $0x18f0] sm:$0xf0]  ;;  %v6343_v29 = vpop.f32.mrf.mxu2 }
 0x1a6   :  { %6584 = vmatpush.bf16.msra.mxu3 %v10465_v61  ;;  %v10929_v59 = vor.u32 %v12634_v50, %v10926_v51  ;;  %v10558_v61 = vld [vmem:[%s19129_s1 + $0x1510] sm:$0xf0]  ;;  %v12598_v62 = vld [vmem:[%s19129_s1 + $0x16c4] sm:$0xf]  ;;  %v11057_v4 = vor.u32 %v12666_v54, %v11054_v55 }
 0x1a7   :  { %6559 = vmatpush.bf16.msra.mxu0 %v10193_v27  ;;  %v10782_v3 = vld [vmem:[%s19129_s1 + $0x16d0] sm:$0xf0]  ;;  %v12630_v5 = vld [vmem:[%s19129_s1 + $0x17c4] sm:$0xf]  ;;  %v10561_v31 = vor.u32 %v12542_v57, %v10558_v61 }
 0x1a8   :  { %6572 = vmatpush.bf16.msra.mxu1 %v10321_v35  ;;  %v12662_v10 = vld [vmem:[%s19129_s1 + $0x18c4] sm:$0xf]  ;;  %v11038_v63 = vld [vmem:[%s19129_s1 + $0x18d0] sm:$0xf0]  ;;  %v10785_v30 = vor.u32 %v12598_v62, %v10782_v3 }
 0x1a9   :  { %6596 = vmatpush.bf16.msrb.mxu2 %v10609_v8  ;;  %v10910_v8 = vld [vmem:[%s19129_s1 + $0x17d0] sm:$0xf0]  ;;  %v12698_v23 = vld [vmem:[%s19129_s1 + $0x19e4] sm:$0xf]  ;;  %v11041_v35 = vor.u32 %v12662_v10, %v11038_v63 }
 0x1aa   :  { %6585 = vmatpush.bf16.msra.mxu3 %v10449_v36  ;;  %v11182_v27 = vld [vmem:[%s19129_s1 + $0x19f0] sm:$0xf0]  ;;  %v10913_v32 = vor.u32 %v12630_v5, %v10910_v8  ;;  %v12594_v33 = vld [vmem:[%s19129_s1 + $0x16a4] sm:$0xf] }
 0x1ab   :  { %6560 = vmatpush.bf16.msra.mxu0 %v10177_v41  ;;  %v10766_v24 = vld [vmem:[%s19129_s1 + $0x16b0] sm:$0xf0]  ;;  %v11185_v36 = vor.u32 %v12698_v23, %v11182_v27  ;;  %v12626_v34 = vld [vmem:[%s19129_s1 + $0x17a4] sm:$0xf]  ;;  %v6354_v3 = vpop.f32.mrf.mxu0 }
 0x1ac   :  { %6573 = vmatpush.bf16.msra.mxu1 %v10305_v56  ;;  %v10894_v37 = vld [vmem:[%s19129_s1 + $0x17b0] sm:$0xf0]  ;;  %v12658_v38 = vld [vmem:[%s19129_s1 + $0x18a4] sm:$0xf]  ;;  %v10769_v43 = vor.u32 %v12594_v33, %v10766_v24  ;;  %v6355_v23 = vadd.f32 %v6354_v3, %v15581_v39 }
 0x1ad   :  { %6597 = vmatpush.bf16.msrb.mxu2 %v10593_v40  ;;  %v11022_v40 = vld [vmem:[%s19129_s1 + $0x18b0] sm:$0xf0]  ;;  %v12694_v25 = vld [vmem:[%s19129_s1 + $0x19c4] sm:$0xf]  ;;  %v10897_v41 = vor.u32 %v12626_v34, %v10894_v37 }
 0x1ae   :  { %6586 = vmatpush.bf16.msra.mxu3 %v10433_v52  ;;  %6561 = vmatmul.bf16.vlgmr.msra.gmra.mxu0 %v14020_v13  ;;  %v11166_v42 = vld [vmem:[%s19129_s1 + $0x19d0] sm:$0xf0]  ;;  %v12590_v44 = vld [vmem:[%s19129_s1 + $0x1684] sm:$0xf]  ;;  %v11025_v51 = vor.u32 %v12658_v38, %v11022_v40 }
 0x1af   :  { %6605 = vmatpush.bf16.msrb.mxu0 %v10801_v53  ;;  %6574 = vmatmul.bf16.vlgmr.msra.gmra.mxu1 %v14024_v18  ;;  %v10750_v50 = vld [vmem:[%s19129_s1 + $0x1690] sm:$0xf0]  ;;  %v11169_v53 = vor.u32 %v12694_v25, %v11166_v42  ;;  %v12622_v54 = vld [vmem:[%s19129_s1 + $0x1784] sm:$0xf] }
 0x1b0   :  { %6618 = vmatpush.bf16.msrb.mxu1 %v10929_v59  ;;  %v10878_v55 = vld [vmem:[%s19129_s1 + $0x1790] sm:$0xf0]  ;;  %v12654_v45 = vld [vmem:[%s19129_s1 + $0x1884] sm:$0xf] }
 0x1b1   :  { %6598 = vmatpush.bf16.msrb.mxu2 %v10577_v58  ;;  %6587 = vmatmul.bf16.vlgmr.msra.gmra.mxu3 %v14189_v6  ;;  %v11006_v56 = vld [vmem:[%s19129_s1 + $0x1890] sm:$0xf0]  ;;  %v12690_v52 = vld [vmem:[%s19129_s1 + $0x19a4] sm:$0xf]  ;;  %v10753_v58 = vor.u32 %v12590_v44, %v10750_v50  ;;  %v10881_v59 = vor.u32 %v12622_v54, %v10878_v55 }
 0x1b2   :  { %6631 = vmatpush.bf16.msrb.mxu3 %v11057_v4  ;;  %v11150_v57 = vld [vmem:[%s19129_s1 + $0x19b0] sm:$0xf0]  ;;  %v12586_v61 = vld [vmem:[%s19129_s1 + $0x1664] sm:$0xf]  ;;  %v11009_v4 = vor.u32 %v12654_v45, %v11006_v56 }
 0x1b3   :  { %6606 = vmatpush.bf16.msrb.mxu0 %v10785_v30  ;;  %v10734_v62 = vld [vmem:[%s19129_s1 + $0x1670] sm:$0xf0]  ;;  %v11153_v5 = vor.u32 %v12690_v52, %v11150_v57  ;;  %v12618_v8 = vld [vmem:[%s19129_s1 + $0x1764] sm:$0xf]  ;;  %v6356_v55 = vpop.f32.mrf.mxu0 }
 0x1b4   :  { %6619 = vmatpush.bf16.msrb.mxu1 %v10913_v32  ;;  %v10862_v10 = vld [vmem:[%s19129_s1 + $0x1770] sm:$0xf0]  ;;  %v12650_v63 = vld [vmem:[%s19129_s1 + $0x1864] sm:$0xf]  ;;  %v10737_v32 = vor.u32 %v12586_v61, %v10734_v62  ;;  %v6380_v44 = vpop.f32.mrf.mxu3 }
 0x1b5   :  { %6599 = vmatpush.bf16.msrb.mxu2 %v10561_v31  ;;  %v10990_v27 = vld [vmem:[%s19129_s1 + $0x1870] sm:$0xf0]  ;;  %v12686_v29 = vld [vmem:[%s19129_s1 + $0x1984] sm:$0xf]  ;;  %v6367_v31 = vpop.f32.mrf.mxu1  ;;  %v10865_v24 = vor.u32 %v12618_v8, %v10862_v10 }
 0x1b6   :  { %6632 = vmatpush.bf16.msrb.mxu3 %v11041_v35  ;;  %v11134_v30 = vld [vmem:[%s19129_s1 + $0x1990] sm:$0xf0]  ;;  %v6368_v33 = vadd.f32 %v6367_v31, %v6355_v23  ;;  %v12582_v39 = vld [vmem:[%s19129_s1 + $0x1644] sm:$0xf] }
 0x1b7   :  { %6607 = vmatpush.bf16.msrb.mxu0 %v10769_v43  ;;  %v10718_v35 = vld [vmem:[%s19129_s1 + $0x1650] sm:$0xf0]  ;;  %v11137_v34 = vor.u32 %v12686_v29, %v11134_v30  ;;  %v12614_v37 = vld [vmem:[%s19129_s1 + $0x1744] sm:$0xf] }
 0x1b8   :  { %6600 = vmatmul.bf16.vlgmr.msrb.gmra.mxu2 %v14193_v11  ;;  %6620 = vmatpush.bf16.msrb.mxu1 %v10897_v41  ;;  %v10846_v38 = vld [vmem:[%s19129_s1 + $0x1750] sm:$0xf0]  ;;  %v12646_v40 = vld [vmem:[%s19129_s1 + $0x1844] sm:$0xf]  ;;  %v10721_v41 = vor.u32 %v12582_v39, %v10718_v35 }
 0x1b9   :  { %6644 = vmatpush.bf16.msra.mxu2 %v11185_v36  ;;  %v10993_v36 = vor.u32 %v12650_v63, %v10990_v27  ;;  %v10974_v25 = vld [vmem:[%s19129_s1 + $0x1850] sm:$0xf0]  ;;  %v12682_v42 = vld [vmem:[%s19129_s1 + $0x1964] sm:$0xf]  ;;  %v10849_v50 = vor.u32 %v12614_v37, %v10846_v38 }
 0x1ba   :  { %6633 = vmatpush.bf16.msrb.mxu3 %v11025_v51  ;;  %v11118_v43 = vld [vmem:[%s19129_s1 + $0x1970] sm:$0xf0]  ;;  %v6381_v51 = vadd.f32 %v6380_v44, %v6368_v33  ;;  %v10977_v45 = vor.u32 %v12646_v40, %v10974_v25  ;;  %v12610_v52 = vld [vmem:[%s19129_s1 + $0x1724] sm:$0xf] }
 0x1bb   :  { %6608 = vmatpush.bf16.msrb.mxu0 %v10753_v58  ;;  %v10702_v54 = vld [vmem:[%s19129_s1 + $0x1630] sm:$0xf0]  ;;  %v11121_v56 = vor.u32 %v12682_v42, %v11118_v43  ;;  %v12642_v58 = vld [vmem:[%s19129_s1 + $0x1824] sm:$0xf]  ;;  %v6393_v63 = vpop.f32.mrf.mxu2 }
 0x1bc   :  { %6621 = vmatpush.bf16.msrb.mxu1 %v10881_v59  ;;  %v10830_v57 = vld [vmem:[%s19129_s1 + $0x1730] sm:$0xf0]  ;;  %v12678_v61 = vld [vmem:[%s19129_s1 + $0x1944] sm:$0xf]  ;;  %v15777_v31 = vadd.f32 %v6393_v63, %v6381_v51  ;;  %v6382_v42 = vpop.f32.mrf.mxu3 }
 0x1bd   :  { %6645 = vmatpush.bf16.msra.mxu2 %v11169_v53  ;;  %v12578_v53 = vld [vmem:[%s19129_s1 + $0x1624] sm:$0xf]  ;;  %v10958_v59 = vld [vmem:[%s19129_s1 + $0x1830] sm:$0xf0]  ;;  %v6369_v3 = vpop.f32.mrf.mxu1  ;;  %v10833_v10 = vor.u32 %v12610_v52, %v10830_v57 }
 0x1be   :  { %6634 = vmatpush.bf16.msrb.mxu3 %v11009_v4  ;;  %v11102_v62 = vld [vmem:[%s19129_s1 + $0x1950] sm:$0xf0]  ;;  %v10705_v4 = vor.u32 %v12578_v53, %v10702_v54  ;;  %v12606_v23 = vld [vmem:[%s19129_s1 + $0x1704] sm:$0xf]  ;;  %v10961_v30 = vor.u32 %v12642_v58, %v10958_v59 }
 0x1bf   :  { %6609 = vmatpush.bf16.msrb.mxu0 %v10737_v32  ;;  %v10686_v8 = vld [vmem:[%s19129_s1 + $0x1610] sm:$0xf0]  ;;  %v12638_v29 = vld [vmem:[%s19129_s1 + $0x1804] sm:$0xf]  ;;  %v11105_v32 = vor.u32 %v12678_v61, %v11102_v62 }
 0x1c0   :  { %6622 = vmatpush.bf16.msrb.mxu1 %v10865_v24  ;;  %v10814_v27 = vld [vmem:[%s19129_s1 + $0x1710] sm:$0xf0]  ;;  %v12730_v24 = vld [vmem:[%s19129_s1 + $0x1ae4] sm:$0xf] }
 0x1c1   :  { %6646 = vmatpush.bf16.msra.mxu2 %v11153_v5  ;;  %v12574_v5 = vld [vmem:[%s19129_s1 + $0x1604] sm:$0xf]  ;;  %v10942_v33 = vld [vmem:[%s19129_s1 + $0x1810] sm:$0xf0]  ;;  %v10817_v43 = vor.u32 %v12606_v23, %v10814_v27 }
 0x1c2   :  { %6635 = vmatpush.bf16.msrb.mxu3 %v10993_v36  ;;  %v11310_v39 = vld [vmem:[%s19129_s1 + $0x1af0] sm:$0xf0]  ;;  %v12674_v35 = vld [vmem:[%s19129_s1 + $0x1924] sm:$0xf]  ;;  %v10689_v37 = vor.u32 %v12574_v5, %v10686_v8  ;;  %v10945_v44 = vor.u32 %v12638_v29, %v10942_v33 }
 0x1c3   :  { %6610 = vmatpush.bf16.msrb.mxu0 %v10721_v41  ;;  %v11086_v36 = vld [vmem:[%s19129_s1 + $0x1930] sm:$0xf0]  ;;  %v12794_v40 = vld [vmem:[%s19129_s1 + $0x1ce4] sm:$0xf]  ;;  %v11313_v41 = vor.u32 %v12730_v24, %v11310_v39 }
 0x1c4   :  { %6623 = vmatpush.bf16.msrb.mxu1 %v10849_v50  ;;  %v11438_v38 = vld [vmem:[%s19129_s1 + $0x1bf0] sm:$0xf0]  ;;  %v11089_v50 = vor.u32 %v12674_v35, %v11086_v36  ;;  %v12726_v51 = vld [vmem:[%s19129_s1 + $0x1ac4] sm:$0xf] }
 0x1c5   :  { %6647 = vmatpush.bf16.msra.mxu2 %v11137_v34  ;;  %v12762_v34 = vld [vmem:[%s19129_s1 + $0x1be4] sm:$0xf]  ;;  %v11566_v25 = vld [vmem:[%s19129_s1 + $0x1cf0] sm:$0xf0] }
 0x1c6   :  { %6636 = vmatpush.bf16.msrb.mxu3 %v10977_v45  ;;  %v11294_v53 = vld [vmem:[%s19129_s1 + $0x1ad0] sm:$0xf0]  ;;  %v11441_v54 = vor.u32 %v12762_v34, %v11438_v38  ;;  %v11569_v55 = vor.u32 %v12794_v40, %v11566_v25  ;;  %v12670_v45 = vld [vmem:[%s19129_s1 + $0x1904] sm:$0xf] }
 0x1c7   :  { %6611 = vmatpush.bf16.msrb.mxu0 %v10705_v4  ;;  %v12758_v52 = vld [vmem:[%s19129_s1 + $0x1bc4] sm:$0xf]  ;;  %v11422_v57 = vld [vmem:[%s19129_s1 + $0x1bd0] sm:$0xf0]  ;;  %v11297_v61 = vor.u32 %v12726_v51, %v11294_v53  ;;  %v6395_v4 = vpop.f32.mrf.mxu2 }
 0x1c8   :  { %6624 = vmatpush.bf16.msrb.mxu1 %v10833_v10  ;;  %v12790_v58 = vld [vmem:[%s19129_s1 + $0x1cc4] sm:$0xf]  ;;  %v11550_v59 = vld [vmem:[%s19129_s1 + $0x1cd0] sm:$0xf0]  ;;  %v11425_v63 = vor.u32 %v12758_v52, %v11422_v57 }
 0x1c9   :  { %6648 = vmatpush.bf16.msra.mxu2 %v11121_v56  ;;  %v11070_v56 = vld [vmem:[%s19129_s1 + $0x1910] sm:$0xf0]  ;;  %v12826_v62 = vld [vmem:[%s19129_s1 + $0x1de4] sm:$0xf]  ;;  %v11553_v23 = vor.u32 %v12790_v58, %v11550_v59 }
 0x1ca   :  { %6637 = vmatpush.bf16.msrb.mxu3 %v10961_v30  ;;  %v11694_v3 = vld [vmem:[%s19129_s1 + $0x1df0] sm:$0xf0]  ;;  %v11073_v5 = vor.u32 %v12670_v45, %v11070_v56  ;;  %v12722_v8 = vld [vmem:[%s19129_s1 + $0x1aa4] sm:$0xf] }
 0x1cb   :  { %6612 = vmatpush.bf16.msrb.mxu0 %v10689_v37  ;;  %v11278_v10 = vld [vmem:[%s19129_s1 + $0x1ab0] sm:$0xf0]  ;;  %v12754_v27 = vld [vmem:[%s19129_s1 + $0x1ba4] sm:$0xf]  ;;  %v11697_v29 = vor.u32 %v12826_v62, %v11694_v3  ;;  %v6406_v56 = vpop.f32.mrf.mxu0 }
 0x1cc   :  { %6625 = vmatpush.bf16.msrb.mxu1 %v10817_v43  ;;  %v11406_v30 = vld [vmem:[%s19129_s1 + $0x1bb0] sm:$0xf0]  ;;  %v12873_v24 = vld [vmem:[#allocation1] sm:$0xff]  ;;  %v11281_v39 = vor.u32 %v12722_v8, %v11278_v10  ;;  %v6419_v58 = vpop.f32.mrf.mxu1 }
 0x1cd   :  { %6649 = vmatpush.bf16.msra.mxu2 %v11105_v32  ;;  %v12786_v32 = vld [vmem:[%s19129_s1 + $0x1ca4] sm:$0xf]  ;;  %v11534_v33 = vld [vmem:[%s19129_s1 + $0x1cb0] sm:$0xf0]  ;;  %v11409_v38 = vor.u32 %v12754_v27, %v11406_v30 }
 0x1ce   :  { %6638 = vmatpush.bf16.msrb.mxu3 %v10945_v44  ;;  %6613 = vmatmul.bf16.vlgmr.msrb.gmra.mxu0 %v14191_v7  ;;  %v12822_v35 = vld [vmem:[%s19129_s1 + $0x1dc4] sm:$0xf]  ;;  %v11678_v36 = vld [vmem:[%s19129_s1 + $0x1dd0] sm:$0xf0]  ;;  %v11537_v40 = vor.u32 %v12786_v32, %v11534_v33 }
 0x1cf   :  { %6657 = vmatpush.bf16.msra.mxu0 %v11313_v41  ;;  %6626 = vmatmul.bf16.vlgmr.msrb.gmra.mxu1 %v14195_v19  ;;  %v12718_v34 = vld [vmem:[%s19129_s1 + $0x1a84] sm:$0xf]  ;;  %v11262_v37 = vld [vmem:[%s19129_s1 + $0x1a90] sm:$0xf0]  ;;  %v11681_v42 = vor.u32 %v12822_v35, %v11678_v36 }
 0x1d0   :  { %6670 = vmatpush.bf16.msra.mxu1 %v11441_v54  ;;  %v12750_v25 = vld [vmem:[%s19129_s1 + $0x1b84] sm:$0xf]  ;;  %v11390_v43 = vld [vmem:[%s19129_s1 + $0x1b90] sm:$0xf0]  ;;  %v11265_v51 = vor.u32 %v12718_v34, %v11262_v37 }
 0x1d1   :  { %6650 = vmatpush.bf16.msra.mxu2 %v11089_v50  ;;  %6639 = vmatmul.bf16.vlgmr.msrb.gmra.mxu3 %v12873_v24  ;;  %v12782_v41 = vld [vmem:[%s19129_s1 + $0x1c84] sm:$0xf]  ;;  %v11518_v44 = vld [vmem:[%s19129_s1 + $0x1c90] sm:$0xf0]  ;;  %v12874_v50 = vld [vmem:[#allocation1 + $0x9] sm:$0xff]  ;;  %v11393_v52 = vor.u32 %v12750_v25, %v11390_v43 }
 0x1d2   :  { %6683 = vmatpush.bf16.msra.mxu3 %v11569_v55  ;;  %v12818_v53 = vld [vmem:[%s19129_s1 + $0x1da4] sm:$0xf]  ;;  %v11662_v54 = vld [vmem:[%s19129_s1 + $0x1db0] sm:$0xf0]  ;;  %v11521_v57 = vor.u32 %v12782_v41, %v11518_v44 }
 0x1d3   :  { %6658 = vmatpush.bf16.msra.mxu0 %v11297_v61  ;;  %v12714_v55 = vld [vmem:[%s19129_s1 + $0x1a64] sm:$0xf]  ;;  %v11246_v45 = vld [vmem:[%s19129_s1 + $0x1a70] sm:$0xf0]  ;;  %v6407_v61 = vadd.f32 %v6406_v56, %v15777_v31  ;;  %v11665_v62 = vor.u32 %v12818_v53, %v11662_v54 }
 0x1d4   :  { %6671 = vmatpush.bf16.msra.mxu1 %v11425_v63  ;;  %v12746_v59 = vld [vmem:[%s19129_s1 + $0x1b64] sm:$0xf]  ;;  %v11374_v3 = vld [vmem:[%s19129_s1 + $0x1b70] sm:$0xf0]  ;;  %v11249_v8 = vor.u32 %v12714_v55, %v11246_v45 }
 0x1d5   :  { %6651 = vmatpush.bf16.msra.mxu2 %v11073_v5  ;;  %v12778_v4 = vld [vmem:[%s19129_s1 + $0x1c64] sm:$0xf]  ;;  %v11502_v5 = vld [vmem:[%s19129_s1 + $0x1c70] sm:$0xf0]  ;;  %v6420_v63 = vadd.f32 %v6419_v58, %v6407_v61 }
 0x1d6   :  { %6684 = vmatpush.bf16.msra.mxu3 %v11553_v23  ;;  %v12814_v10 = vld [vmem:[%s19129_s1 + $0x1d84] sm:$0xf]  ;;  %v11646_v31 = vld [vmem:[%s19129_s1 + $0x1d90] sm:$0xf0]  ;;  %v11505_v30 = vor.u32 %v12778_v4, %v11502_v5 }
 0x1d7   :  { %6659 = vmatpush.bf16.msra.mxu0 %v11281_v39  ;;  %v12710_v23 = vld [vmem:[%s19129_s1 + $0x1a44] sm:$0xf]  ;;  %v11230_v27 = vld [vmem:[%s19129_s1 + $0x1a50] sm:$0xf0]  ;;  %v11649_v33 = vor.u32 %v12814_v10, %v11646_v31  ;;  %v8244_v10 = vld [vmem:[%s19129_s1 + $0x2e8] sm:$0xf] }
 0x1d8   :  { %6652 = vmatmul.bf16.vlgmr.msra.gmra.mxu2 %v12874_v50  ;;  %6672 = vmatpush.bf16.msra.mxu1 %v11409_v38  ;;  %v12742_v32 = vld [vmem:[%s19129_s1 + $0x1b44] sm:$0xf]  ;;  %v11358_v24 = vld [vmem:[%s19129_s1 + $0x1b50] sm:$0xf0]  ;;  %v11233_v36 = vor.u32 %v12710_v23, %v11230_v27  ;;  %v6432_v38 = vpop.f32.mrf.mxu3  ;;  %v6408_v50 = vpop.f32.mrf.mxu0  ;;  %v11965_v31 = vld [vmem:[%s19129_s1 + $0x2f4] sm:$0xf0] }
 0x1d9   :  { %6696 = vmatpush.bf16.msrb.mxu2 %v11697_v29  ;;  %v11377_v29 = vor.u32 %v12746_v59, %v11374_v3  ;;  %v12774_v39 = vld [vmem:[%s19129_s1 + $0x1c44] sm:$0xf]  ;;  %v11486_v35 = vld [vmem:[%s19129_s1 + $0x1c50] sm:$0xf0]  ;;  %v11361_v43 = vor.u32 %v12742_v32, %v11358_v24 }
 0x1da   :  { %6685 = vmatpush.bf16.msra.mxu3 %v11537_v40  ;;  %v12810_v34 = vld [vmem:[%s19129_s1 + $0x1d64] sm:$0xf]  ;;  %v11630_v37 = vld [vmem:[%s19129_s1 + $0x1d70] sm:$0xf0]  ;;  %v11489_v41 = vor.u32 %v12774_v39, %v11486_v35  ;;  %v7988_v39 = vld [vmem:[%s19129_s1 + $0xe8] sm:$0xf] }
 0x1db   :  { %6660 = vmatpush.bf16.msra.mxu0 %v11265_v51  ;;  %v12706_v40 = vld [vmem:[%s19129_s1 + $0x1a24] sm:$0xf]  ;;  %v11214_v25 = vld [vmem:[%s19129_s1 + $0x1a30] sm:$0xf0]  ;;  %v6421_v51 = vpop.f32.mrf.mxu1  ;;  %v11633_v53 = vor.u32 %v12810_v34, %v11630_v37  ;;  %v6445_v58 = vpop.f32.mrf.mxu2  ;;  %v11901_v35 = vld [vmem:[%s19129_s1 + $0xf4] sm:$0xf0] }
 0x1dc   :  { %6673 = vmatpush.bf16.msra.mxu1 %v11393_v52  ;;  %v12738_v44 = vld [vmem:[%s19129_s1 + $0x1b24] sm:$0xf]  ;;  %v11342_v54 = vld [vmem:[%s19129_s1 + $0x1b30] sm:$0xf0]  ;;  %v11217_v56 = vor.u32 %v12706_v40, %v11214_v25  ;;  %v7989_v50 = vor.u32 %v11901_v35, %v7988_v39  ;;  %v11993_v39 = vld [vmem:[%s19129_s1 + $0x3d4] sm:$0xf0] }
 0x1dd   :  { %6697 = vmatpush.bf16.msrb.mxu2 %v11681_v42  ;;  %v6433_v42 = vadd.f32 %v6432_v38, %v6420_v63  ;;  %v12770_v55 = vld [vmem:[%s19129_s1 + $0x1c24] sm:$0xf]  ;;  %v11470_v45 = vld [vmem:[%s19129_s1 + $0x1c30] sm:$0xf0]  ;;  %v11345_v4 = vor.u32 %v12738_v44, %v11342_v54  ;;  %v11961_v44 = vld [vmem:[%s19129_s1 + $0x2d4] sm:$0xf0] }
 0x1de   :  { %6686 = vmatpush.bf16.msra.mxu3 %v11521_v57  ;;  %v12806_v52 = vld [vmem:[%s19129_s1 + $0x1d44] sm:$0xf]  ;;  %v11614_v57 = vld [vmem:[%s19129_s1 + $0x1d50] sm:$0xf0]  ;;  %v11473_v5 = vor.u32 %v12770_v55, %v11470_v45  ;;  %v7972_v54 = vld [vmem:[%s19129_s1 + $0xc8] sm:$0xf] }
 0x1df   :  { %6661 = vmatpush.bf16.msra.mxu0 %v11249_v8  ;;  %v12702_v59 = vld [vmem:[%s19129_s1 + $0x1a04] sm:$0xf]  ;;  %v11198_v61 = vld [vmem:[%s19129_s1 + $0x1a10] sm:$0xf0]  ;;  %v15968_v3 = vadd.f32 %v6445_v58, %v6433_v42  ;;  %v11617_v63 = vor.u32 %v12806_v52, %v11614_v57  ;;  %v11897_v55 = vld [vmem:[%s19129_s1 + $0xd4] sm:$0xf0] }
 0x1e0   :  { %6674 = vmatpush.bf16.msra.mxu1 %v11377_v29  ;;  %v11326_v8 = vld [vmem:[%s19129_s1 + $0x1b10] sm:$0xf0]  ;;  %v12766_v23 = vld [vmem:[%s19129_s1 + $0x1c04] sm:$0xf]  ;;  %v6434_v34 = vpop.f32.mrf.mxu3  ;;  %v8116_v45 = vld [vmem:[%s19129_s1 + $0x1e8] sm:$0xf] }
 0x1e1   :  { %6698 = vmatpush.bf16.msrb.mxu2 %v11665_v62  ;;  %v12734_v62 = vld [vmem:[%s19129_s1 + $0x1b04] sm:$0xf]  ;;  %v11454_v27 = vld [vmem:[%s19129_s1 + $0x1c10] sm:$0xf0]  ;;  %v8372_v57 = vld [vmem:[%s19129_s1 + $0x3e8] sm:$0xf] }
 0x1e2   :  { %6687 = vmatpush.bf16.msra.mxu3 %v11505_v30  ;;  %v12802_v29 = vld [vmem:[%s19129_s1 + $0x1d24] sm:$0xf]  ;;  %v11201_v30 = vor.u32 %v12702_v59, %v11198_v61  ;;  %v11598_v32 = vld [vmem:[%s19129_s1 + $0x1d30] sm:$0xf0]  ;;  %v11329_v37 = vor.u32 %v12734_v62, %v11326_v8  ;;  %v11457_v38 = vor.u32 %v12766_v23, %v11454_v27  ;;  %v11997_v58 = vld [vmem:[%s19129_s1 + $0x3f4] sm:$0xf0] }
 0x1e3   :  { %6662 = vmatpush.bf16.msra.mxu0 %v11233_v36  ;;  %v11726_v24 = vld [vmem:[%s19129_s1 + $0x1e30] sm:$0xf0]  ;;  %v8245_v36 = vor.u32 %v11965_v31, %v8244_v10  ;;  %v12798_v40 = vld [vmem:[%s19129_s1 + $0x1d04] sm:$0xf]  ;;  %v11601_v25 = vor.u32 %v12802_v29, %v11598_v32  ;;  %v6447_v52 = vpop.f32.mrf.mxu2  ;;  %v7973_v10 = vor.u32 %v11897_v55, %v7972_v54  ;;  %v12877_v27 = vld [vmem:[#allocation1 + $0x1b] sm:$0xff]  ;;  %v8373_v29 = vor.u32 %v11997_v58, %v8372_v57 }
 0x1e4   :  { %6675 = vmatpush.bf16.msra.mxu1 %v11361_v43  ;;  %v11582_v43 = vld [vmem:[%s19129_s1 + $0x1d10] sm:$0xf0]  ;;  %v12830_v51 = vld [vmem:[%s19129_s1 + $0x1e04] sm:$0xf]  ;;  %v8100_v32 = vld [vmem:[%s19129_s1 + $0x1c8] sm:$0xf] }
 0x1e5   :  { %6699 = vmatpush.bf16.msrb.mxu2 %v11649_v33  ;;  %v12834_v33 = vld [vmem:[%s19129_s1 + $0x1e24] sm:$0xf]  ;;  %v11585_v61 = vor.u32 %v12798_v40, %v11582_v43  ;;  %v12875_v8 = vld [vmem:[#allocation1 + $0x12] sm:$0xff]  ;;  %v7940_v40 = vld [vmem:[%s19129_s1 + $0x88] sm:$0xf] }
 0x1e6   :  { %6688 = vmatpush.bf16.msra.mxu3 %v11489_v41  ;;  %v11729_v42 = vor.u32 %v12834_v33, %v11726_v24  ;;  %v8228_v41 = vld [vmem:[%s19129_s1 + $0x2c8] sm:$0xf]  ;;  %v11929_v33 = vld [vmem:[%s19129_s1 + $0x1d4] sm:$0xf0] }
 0x1e7   :  { %6663 = vmatpush.bf16.msra.mxu0 %v11217_v56  ;;  %v11933_v56 = vld [vmem:[%s19129_s1 + $0x1f4] sm:$0xf0]  ;;  %v8229_v59 = vor.u32 %v11961_v44, %v8228_v41  ;;  %v12876_v23 = vld [vmem:[#allocation1 + $0x24] sm:$0xff]  ;;  %v12878_v44 = vld [vmem:[#allocation1 + $0x2d] sm:$0xff] }
 0x1e8   :  { %6676 = vmatpush.bf16.msra.mxu1 %v11345_v4  ;;  %v8212_v4 = vld [vmem:[%s19129_s1 + $0x2a8] sm:$0xf]  ;;  %v8117_v31 = vor.u32 %v11933_v56, %v8116_v45  ;;  %v11953_v34 = vld [vmem:[%s19129_s1 + $0x294] sm:$0xf0] }
 0x1e9   :  { %6700 = vmatpush.bf16.msrb.mxu2 %v11633_v53  ;;  %v11710_v53 = vld [vmem:[%s19129_s1 + $0x1e10] sm:$0xf0]  ;;  %v8356_v24 = vld [vmem:[%s19129_s1 + $0x3c8] sm:$0xf]  ;;  %v11925_v41 = vld [vmem:[%s19129_s1 + $0x1b4] sm:$0xf0] }
 0x1ea   :  { %6689 = vmatpush.bf16.msra.mxu3 %v11473_v5  ;;  %v11713_v62 = vor.u32 %v12830_v51, %v11710_v53  ;;  %v11957_v5 = vld [vmem:[%s19129_s1 + $0x2b4] sm:$0xf0]  ;;  %v8084_v43 = vld [vmem:[%s19129_s1 + $0x1a8] sm:$0xf] }
 0x1eb   :  { %6664 = vmatpush.bf16.msra.mxu0 %v11201_v30  ;;  %v11893_v30 = vld [vmem:[%s19129_s1 + $0xb4] sm:$0xf0]  ;;  %v8213_v35 = vor.u32 %v11957_v5, %v8212_v4  ;;  %v6458_v54 = vpop.f32.mrf.mxu0  ;;  %v8180_v55 = vld [vmem:[%s19129_s1 + $0x268] sm:$0xf]  ;;  %v8085_v58 = vor.u32 %v11925_v41, %v8084_v43 }
 0x1ec   :  { %6677 = vmatpush.bf16.msra.mxu1 %v11329_v37  ;;  %v11989_v51 = vld [vmem:[%s19129_s1 + $0x3b4] sm:$0xf0]  ;;  %v6459_v56 = vadd.f32 %v6458_v54, %v15968_v3  ;;  %v6471_v57 = vpop.f32.mrf.mxu1  ;;  %v8068_v4 = vld [vmem:[%s19129_s1 + $0x188] sm:$0xf] }
 0x1ed   :  { %6701 = vmatpush.bf16.msrb.mxu2 %v11617_v63  ;;  %v7956_v63 = vld [vmem:[%s19129_s1 + $0xa8] sm:$0xf]  ;;  %v11949_v45 = vld [vmem:[%s19129_s1 + $0x274] sm:$0xf0] }
 0x1ee   :  { %6690 = vmatpush.bf16.msra.mxu3 %v11457_v38  ;;  %6665 = vmatmul.bf16.vlgmr.msra.gmra.mxu0 %v12875_v8  ;;  %v7957_v37 = vor.u32 %v11893_v30, %v7956_v63  ;;  %v8101_v38 = vor.u32 %v11929_v33, %v8100_v32  ;;  %v11921_v3 = vld [vmem:[%s19129_s1 + $0x194] sm:$0xf0]  ;;  %v6472_v5 = vadd.f32 %v6471_v57, %v6459_v56  ;;  %v8324_v8 = vld [vmem:[%s19129_s1 + $0x388] sm:$0xf] }
 0x1ef   :  { %6748 = vmatpush.bf16.msrb.mxu0 %v8245_v36  ;;  %6678 = vmatmul.bf16.vlgmr.msra.gmra.mxu1 %v12877_v27  ;;  %v8196_v36 = vld [vmem:[%s19129_s1 + $0x288] sm:$0xf]  ;;  %v11881_v33 = vld [vmem:[%s19129_s1 + $0x54] sm:$0xf0] }
 0x1f0   :  { %6722 = vmatpush.bf16.msrb.mxu1 %v7989_v50  ;;  %v8340_v50 = vld [vmem:[%s19129_s1 + $0x3a8] sm:$0xf]  ;;  %v8197_v53 = vor.u32 %v11953_v34, %v8196_v36  ;;  %v11981_v34 = vld [vmem:[%s19129_s1 + $0x374] sm:$0xf0] }
 0x1f1   :  { %6702 = vmatpush.bf16.msrb.mxu2 %v11601_v25  ;;  %6691 = vmatmul.bf16.vlgmr.msra.gmra.mxu3 %v12876_v23  ;;  %v8357_v25 = vor.u32 %v11993_v39, %v8356_v24  ;;  %v8164_v63 = vld [vmem:[%s19129_s1 + $0x248] sm:$0xf]  ;;  %v11945_v23 = vld [vmem:[%s19129_s1 + $0x254] sm:$0xf0] }
 0x1f2   :  { %6715 = vmatpush.bf16.msrb.mxu3 %v11729_v42  ;;  %v11889_v42 = vld [vmem:[%s19129_s1 + $0x94] sm:$0xf0]  ;;  %v7908_v30 = vld [vmem:[%s19129_s1 + $0x48] sm:$0xf] }
 0x1f3   :  { %6749 = vmatpush.bf16.msrb.mxu0 %v8229_v59  ;;  %v7941_v52 = vor.u32 %v11889_v42, %v7940_v40  ;;  %v7924_v59 = vld [vmem:[%s19129_s1 + $0x68] sm:$0xf]  ;;  %v11917_v39 = vld [vmem:[%s19129_s1 + $0x174] sm:$0xf0]  ;;  %v6460_v42 = vpop.f32.mrf.mxu0  ;;  %v7909_v43 = vor.u32 %v11881_v33, %v7908_v30 }
 0x1f4   :  { %6723 = vmatpush.bf16.msrb.mxu1 %v7973_v10  ;;  %v11985_v10 = vld [vmem:[%s19129_s1 + $0x394] sm:$0xf0]  ;;  %v8052_v24 = vld [vmem:[%s19129_s1 + $0x168] sm:$0xf] }
 0x1f5   :  { %6703 = vmatpush.bf16.msrb.mxu2 %v11585_v61  ;;  %v8341_v61 = vor.u32 %v11989_v51, %v8340_v50  ;;  %v8325_v32 = vor.u32 %v11985_v10, %v8324_v8  ;;  %v8308_v36 = vld [vmem:[%s19129_s1 + $0x368] sm:$0xf]  ;;  %v8053_v41 = vor.u32 %v11917_v39, %v8052_v24  ;;  %v6473_v50 = vpop.f32.mrf.mxu1  ;;  %v12879_v51 = vld [vmem:[#allocation1 + $0x36] sm:$0xff] }
 0x1f6   :  { %6716 = vmatpush.bf16.msrb.mxu3 %v11713_v62  ;;  %v11885_v62 = vld [vmem:[%s19129_s1 + $0x74] sm:$0xf0]  ;;  %v8148_v40 = vld [vmem:[%s19129_s1 + $0x228] sm:$0xf] }
 0x1f7   :  { %6750 = vmatpush.bf16.msrb.mxu0 %v8213_v35  ;;  %v7925_v27 = vor.u32 %v11885_v62, %v7924_v59  ;;  %v6484_v35 = vpop.f32.mrf.mxu3  ;;  %v11877_v54 = vld [vmem:[%s19129_s1 + $0x34] sm:$0xf0]  ;;  %v8292_v56 = vld [vmem:[%s19129_s1 + $0x348] sm:$0xf] }
 0x1f8   :  { %6704 = vmatmul.bf16.vlgmr.msrb.gmra.mxu2 %v12878_v44  ;;  %6724 = vmatpush.bf16.msrb.mxu1 %v7957_v37  ;;  %v8165_v37 = vor.u32 %v11945_v23, %v8164_v63  ;;  %v7892_v44 = vld [vmem:[%s19129_s1 + $0x28] sm:$0xf]  ;;  %v11937_v62 = vld [vmem:[%s19129_s1 + $0x214] sm:$0xf0] }
 0x1f9   :  { %6761 = vmatpush.bf16.msra.mxu2 %v8373_v29  ;;  %v8069_v29 = vor.u32 %v11921_v3, %v8068_v4  ;;  %v7876_v59 = vld [vmem:[%s19129_s1 + $0x8] sm:$0xf]  ;;  %v7893_v3 = vor.u32 %v11877_v54, %v7892_v44  ;;  %v11873_v8 = vld [vmem:[%s19129_s1 + $0x14] sm:$0xf0] }
 0x1fa   :  { %6735 = vmatpush.bf16.msra.mxu3 %v8117_v31  ;;  %v8181_v31 = vor.u32 %v11949_v45, %v8180_v55  ;;  %v8036_v55 = vld [vmem:[%s19129_s1 + $0x148] sm:$0xf]  ;;  %v11913_v45 = vld [vmem:[%s19129_s1 + $0x154] sm:$0xf0] }
 0x1fb   :  { %6751 = vmatpush.bf16.msrb.mxu0 %v8197_v53  ;;  %v8309_v53 = vor.u32 %v11981_v34, %v8308_v36  ;;  %v8756_v10 = vld [vmem:[%s19129_s1 + $0x6e8] sm:$0xf]  ;;  %v11973_v30 = vld [vmem:[%s19129_s1 + $0x334] sm:$0xf0]  ;;  %v7877_v36 = vor.u32 %v11873_v8, %v7876_v59 }
 0x1fc   :  { %6725 = vmatpush.bf16.msrb.mxu1 %v7941_v52  ;;  %v11977_v52 = vld [vmem:[%s19129_s1 + $0x354] sm:$0xf0]  ;;  %v8020_v23 = vld [vmem:[%s19129_s1 + $0x128] sm:$0xf] }
 0x1fd   :  { %6762 = vmatpush.bf16.msra.mxu2 %v8357_v25  ;;  %v11941_v25 = vld [vmem:[%s19129_s1 + $0x234] sm:$0xf0]  ;;  %v8293_v63 = vor.u32 %v11977_v52, %v8292_v56  ;;  %v8484_v50 = vld [vmem:[%s19129_s1 + $0x4c8] sm:$0xf] }
 0x1fe   :  { %6736 = vmatpush.bf16.msra.mxu3 %v8101_v38  ;;  %v6485_v38 = vadd.f32 %v6484_v35, %v6472_v5  ;;  %v8149_v57 = vor.u32 %v11941_v25, %v8148_v40  ;;  %v8037_v5 = vor.u32 %v11913_v45, %v8036_v55  ;;  %v12029_v33 = vld [vmem:[%s19129_s1 + $0x4f4] sm:$0xf0]  ;;  %v8884_v55 = vld [vmem:[%s19129_s1 + $0x7e8] sm:$0xf] }
 0x1ff   :  { %6752 = vmatpush.bf16.msrb.mxu0 %v8181_v31  ;;  %v12093_v31 = vld [vmem:[%s19129_s1 + $0x6f4] sm:$0xf0]  ;;  %v6486_v39 = vpop.f32.mrf.mxu3  ;;  %v8468_v8 = vld [vmem:[%s19129_s1 + $0x4a8] sm:$0xf] }
 0x200   :  { %6726 = vmatpush.bf16.msrb.mxu1 %v7925_v27  ;;  %v11909_v27 = vld [vmem:[%s19129_s1 + $0x134] sm:$0xf0]  ;;  %v8757_v35 = vor.u32 %v12093_v31, %v8756_v10  ;;  %v8612_v31 = vld [vmem:[%s19129_s1 + $0x5c8] sm:$0xf] }
 0x201   :  { %6763 = vmatpush.bf16.msra.mxu2 %v8341_v61  ;;  %11739 = vmatmul.msk.bf16.vlgmr.msrb.gmra.mxu3 %vm5913_vm0, %v12879_v51  ;;  %v8132_v61 = vld [vmem:[%s19129_s1 + $0x208] sm:$0xf]  ;;  %v8021_v34 = vor.u32 %v11909_v27, %v8020_v23  ;;  %v12089_v40 = vld [vmem:[%s19129_s1 + $0x6d4] sm:$0xf0] }
 0x202   :  { %6737 = vmatpush.bf16.msra.mxu3 %v8085_v58  ;;  %v6497_v58 = vpop.f32.mrf.mxu2  ;;  %v8133_v24 = vor.u32 %v11937_v62, %v8132_v61  ;;  %v11969_v44 = vld [vmem:[%s19129_s1 + $0x314] sm:$0xf0]  ;;  %v8868_v23 = vld [vmem:[%s19129_s1 + $0x7c8] sm:$0xf] }
 0x203   :  { %6753 = vmatpush.bf16.msrb.mxu0 %v8165_v37  ;;  %v16170_v4 = vadd.f32 %v6497_v58, %v6485_v38  ;;  %v8004_v37 = vld [vmem:[%s19129_s1 + $0x108] sm:$0xf]  ;;  %v12025_v51 = vld [vmem:[%s19129_s1 + $0x4d4] sm:$0xf0] }
 0x204   :  { %6727 = vmatpush.bf16.msrb.mxu1 %v7909_v43  ;;  %v8740_v38 = vld [vmem:[%s19129_s1 + $0x6c8] sm:$0xf]  ;;  %v11905_v43 = vld [vmem:[%s19129_s1 + $0x114] sm:$0xf0]  ;;  %v8485_v62 = vor.u32 %v12025_v51, %v8484_v50 }
 0x205   :  { %6764 = vmatpush.bf16.msra.mxu2 %v8325_v32  ;;  %v8500_v32 = vld [vmem:[%s19129_s1 + $0x4e8] sm:$0xf]  ;;  %v12061_v54 = vld [vmem:[%s19129_s1 + $0x5f4] sm:$0xf0]  ;;  %v8741_v56 = vor.u32 %v12089_v40, %v8740_v38 }
 0x206   :  { %6738 = vmatpush.bf16.msra.mxu3 %v8069_v29  ;;  %v8276_v29 = vld [vmem:[%s19129_s1 + $0x328] sm:$0xf]  ;;  %v8501_v42 = vor.u32 %v12029_v33, %v8500_v32  ;;  %v12125_v45 = vld [vmem:[%s19129_s1 + $0x7f4] sm:$0xf0] }
 0x207   :  { %6754 = vmatpush.bf16.msrb.mxu0 %v8149_v57  ;;  %v8277_v25 = vor.u32 %v11973_v30, %v8276_v29  ;;  %v8005_v57 = vor.u32 %v11905_v43, %v8004_v37  ;;  %v8724_v58 = vld [vmem:[%s19129_s1 + $0x6a8] sm:$0xf]  ;;  %v12085_v59 = vld [vmem:[%s19129_s1 + $0x6b4] sm:$0xf0] }
 0x208   :  { %6728 = vmatpush.bf16.msrb.mxu1 %v7893_v3  ;;  %v12021_v10 = vld [vmem:[%s19129_s1 + $0x4b4] sm:$0xf0]  ;;  %v8725_v29 = vor.u32 %v12085_v59, %v8724_v58  ;;  %v8708_v30 = vld [vmem:[%s19129_s1 + $0x688] sm:$0xf] }
 0x209   :  { %6765 = vmatpush.bf16.msra.mxu2 %v8309_v53  ;;  %v8628_v53 = vld [vmem:[%s19129_s1 + $0x5e8] sm:$0xf]  ;;  %v12121_v27 = vld [vmem:[%s19129_s1 + $0x7d4] sm:$0xf0]  ;;  %v8469_v33 = vor.u32 %v12021_v10, %v8468_v8 }
 0x20a   :  { %6739 = vmatpush.bf16.msra.mxu3 %v8053_v41  ;;  %v8260_v41 = vld [vmem:[%s19129_s1 + $0x308] sm:$0xf]  ;;  %v6499_v52 = vpop.f32.mrf.mxu2  ;;  %v8629_v3 = vor.u32 %v12061_v54, %v8628_v53  ;;  %v12081_v32 = vld [vmem:[%s19129_s1 + $0x694] sm:$0xf0]  ;;  %v8869_v39 = vor.u32 %v12121_v27, %v8868_v23 }
 0x20b   :  { %6755 = vmatpush.bf16.msrb.mxu0 %v8133_v24  ;;  %v8261_v61 = vor.u32 %v11969_v44, %v8260_v41  ;;  %v12053_v37 = vld [vmem:[%s19129_s1 + $0x5b4] sm:$0xf0]  ;;  %v8852_v38 = vld [vmem:[%s19129_s1 + $0x7a8] sm:$0xf]  ;;  %v6510_v41 = vpop.f32.mrf.mxu0 }
 0x20c   :  { %6729 = vmatpush.bf16.msrb.mxu1 %v7877_v36  ;;  %v12017_v36 = vld [vmem:[%s19129_s1 + $0x494] sm:$0xf0]  ;;  %v6523_v50 = vpop.f32.mrf.mxu1  ;;  %v6511_v51 = vadd.f32 %v6510_v41, %v16170_v4  ;;  %v8836_v4 = vld [vmem:[%s19129_s1 + $0x788] sm:$0xf] }
 0x20d   :  { %6766 = vmatpush.bf16.msra.mxu2 %v8293_v63  ;;  %v12057_v63 = vld [vmem:[%s19129_s1 + $0x5d4] sm:$0xf0]  ;;  %v8420_v10 = vld [vmem:[%s19129_s1 + $0x448] sm:$0xf] }
 0x20e   :  { %6740 = vmatpush.bf16.msra.mxu3 %v8037_v5  ;;  %v8885_v5 = vor.u32 %v12125_v45, %v8884_v55  ;;  %6756 = vmatmul.bf16.vlgmr.msrb.gmra.mxu0 %v13256_v20  ;;  %v8613_v24 = vor.u32 %v12057_v63, %v8612_v31  ;;  %v12117_v40 = vld [vmem:[%s19129_s1 + $0x7b4] sm:$0xf0]  ;;  %v8436_v55 = vld [vmem:[%s19129_s1 + $0x468] sm:$0xf]  ;;  %v6524_v59 = vadd.f32 %v6523_v50, %v6511_v51 }
 0x20f   :  { %6800 = vmatpush.bf16.msra.mxu0 %v8757_v35  ;;  %6730 = vmatmul.bf16.vlgmr.msrb.gmra.mxu1 %v13258_v21  ;;  %v8452_v35 = vld [vmem:[%s19129_s1 + $0x488] sm:$0xf]  ;;  %v12077_v43 = vld [vmem:[%s19129_s1 + $0x674] sm:$0xf0]  ;;  %v8853_v54 = vor.u32 %v12117_v40, %v8852_v38 }
 0x210   :  { %6774 = vmatpush.bf16.msra.mxu1 %v8501_v42  ;;  %v8692_v42 = vld [vmem:[%s19129_s1 + $0x668] sm:$0xf]  ;;  %v8453_v44 = vor.u32 %v12017_v36, %v8452_v35  ;;  %v12013_v45 = vld [vmem:[%s19129_s1 + $0x474] sm:$0xf0] }
 0x211   :  { %6767 = vmatpush.bf16.msra.mxu2 %v8277_v25  ;;  %v8709_v25 = vor.u32 %v12081_v32, %v8708_v30  ;;  %v12049_v52 = vld [vmem:[%s19129_s1 + $0x594] sm:$0xf0]  ;;  %v8693_v58 = vor.u32 %v12077_v43, %v8692_v42  ;;  %v8564_v63 = vld [vmem:[%s19129_s1 + $0x568] sm:$0xf] }
 0x212   :  { %6741 = vmatpush.bf16.msra.mxu3 %v8021_v34  ;;  %v8596_v34 = vld [vmem:[%s19129_s1 + $0x5a8] sm:$0xf]  ;;  %v12009_v31 = vld [vmem:[%s19129_s1 + $0x454] sm:$0xf0] }
 0x213   :  { %6801 = vmatpush.bf16.msra.mxu0 %v8741_v56  ;;  %v8597_v53 = vor.u32 %v12053_v37, %v8596_v34  ;;  %v8580_v56 = vld [vmem:[%s19129_s1 + $0x588] sm:$0xf]  ;;  %v12045_v23 = vld [vmem:[%s19129_s1 + $0x574] sm:$0xf0]  ;;  %v8421_v35 = vor.u32 %v12009_v31, %v8420_v10  ;;  %v6512_v36 = vpop.f32.mrf.mxu0 }
 0x214   :  { %6775 = vmatpush.bf16.msra.mxu1 %v8485_v62  ;;  %v12073_v62 = vld [vmem:[%s19129_s1 + $0x654] sm:$0xf0]  ;;  %v8820_v27 = vld [vmem:[%s19129_s1 + $0x768] sm:$0xf]  ;;  %v6536_v32 = vpop.f32.mrf.mxu3  ;;  %v6525_v34 = vpop.f32.mrf.mxu1  ;;  %v8565_v37 = vor.u32 %v12045_v23, %v8564_v63 }
 0x215   :  { %6768 = vmatpush.bf16.msra.mxu2 %v8261_v61  ;;  %v8676_v61 = vld [vmem:[%s19129_s1 + $0x648] sm:$0xf]  ;;  %v12041_v43 = vld [vmem:[%s19129_s1 + $0x554] sm:$0xf0] }
 0x216   :  { %6742 = vmatpush.bf16.msra.mxu3 %v8005_v57  ;;  %v12113_v57 = vld [vmem:[%s19129_s1 + $0x794] sm:$0xf0]  ;;  %v8677_v30 = vor.u32 %v12073_v62, %v8676_v61  ;;  %v8404_v40 = vld [vmem:[%s19129_s1 + $0x428] sm:$0xf] }
 0x217   :  { %6802 = vmatpush.bf16.msra.mxu0 %v8725_v29  ;;  %v8837_v8 = vor.u32 %v12113_v57, %v8836_v4  ;;  %v12109_v29 = vld [vmem:[%s19129_s1 + $0x774] sm:$0xf0]  ;;  %v8548_v42 = vld [vmem:[%s19129_s1 + $0x548] sm:$0xf] }
 0x218   :  { %6769 = vmatmul.bf16.vlgmr.msra.gmra.mxu2 %v13260_v22  ;;  %6776 = vmatpush.bf16.msra.mxu1 %v8469_v33  ;;  %v8660_v33 = vld [vmem:[%s19129_s1 + $0x628] sm:$0xf]  ;;  %v8821_v38 = vor.u32 %v12109_v29, %v8820_v27  ;;  %v8549_v4 = vor.u32 %v12041_v43, %v8548_v42  ;;  %v12037_v62 = vld [vmem:[%s19129_s1 + $0x534] sm:$0xf0] }
 0x219   :  { %6813 = vmatpush.bf16.msrb.mxu2 %v8885_v5  ;;  %6743 = vmatmul.bf16.vlgmr.msra.gmra.mxu3 %v13269_v26  ;;  %v8581_v5 = vor.u32 %v12049_v52, %v8580_v56  ;;  %v8804_v41 = vld [vmem:[%s19129_s1 + $0x748] sm:$0xf]  ;;  %v12221_v52 = vld [vmem:[%s19129_s1 + $0xaf4] sm:$0xf0] }
 0x21a   :  { %6787 = vmatpush.bf16.msrb.mxu3 %v8629_v3  ;;  %v8437_v3 = vor.u32 %v12013_v45, %v8436_v55  ;;  %v9268_v56 = vld [vmem:[%s19129_s1 + $0xae8] sm:$0xf]  ;;  %v12157_v31 = vld [vmem:[%s19129_s1 + $0x8f4] sm:$0xf0] }
 0x21b   :  { %6803 = vmatpush.bf16.msra.mxu0 %v8709_v25  ;;  %v12005_v25 = vld [vmem:[%s19129_s1 + $0x434] sm:$0xf0]  ;;  %v6549_v51 = vpop.f32.mrf.mxu2  ;;  %v8532_v61 = vld [vmem:[%s19129_s1 + $0x528] sm:$0xf]  ;;  %v9269_v63 = vor.u32 %v12221_v52, %v9268_v56 }
 0x21c   :  { %6777 = vmatpush.bf16.msra.mxu1 %v8453_v44  ;;  %v12105_v44 = vld [vmem:[%s19129_s1 + $0x754] sm:$0xf0]  ;;  %v8405_v45 = vor.u32 %v12005_v25, %v8404_v40  ;;  %v9012_v10 = vld [vmem:[%s19129_s1 + $0x8e8] sm:$0xf]  ;;  %v6538_v23 = vpop.f32.mrf.mxu3 }
 0x21d   :  { %6814 = vmatpush.bf16.msrb.mxu2 %v8869_v39  ;;  %v6537_v39 = vadd.f32 %v6536_v32, %v6524_v59  ;;  %v8805_v57 = vor.u32 %v12105_v44, %v8804_v41  ;;  %v12001_v59 = vld [vmem:[%s19129_s1 + $0x414] sm:$0xf0]  ;;  %v9252_v29 = vld [vmem:[%s19129_s1 + $0xac8] sm:$0xf]  ;;  %v8533_v32 = vor.u32 %v12037_v62, %v8532_v61  ;;  %v9013_v36 = vor.u32 %v12157_v31, %v9012_v10 }
 0x21e   :  { %6788 = vmatpush.bf16.msrb.mxu3 %v8613_v24  ;;  %v12069_v24 = vld [vmem:[%s19129_s1 + $0x634] sm:$0xf0]  ;;  %v9140_v40 = vld [vmem:[%s19129_s1 + $0x9e8] sm:$0xf] }
 0x21f   :  { %6804 = vmatpush.bf16.msra.mxu0 %v8693_v58  ;;  %v8661_v50 = vor.u32 %v12069_v24, %v8660_v33  ;;  %v16366_v55 = vadd.f32 %v6549_v51, %v6537_v39  ;;  %v8388_v58 = vld [vmem:[%s19129_s1 + $0x408] sm:$0xf]  ;;  %v12033_v39 = vld [vmem:[%s19129_s1 + $0x514] sm:$0xf0] }
 0x220   :  { %6778 = vmatpush.bf16.msra.mxu1 %v8437_v3  ;;  %v8788_v3 = vld [vmem:[%s19129_s1 + $0x728] sm:$0xf]  ;;  %v8389_v27 = vor.u32 %v12001_v59, %v8388_v58  ;;  %v12097_v34 = vld [vmem:[%s19129_s1 + $0x714] sm:$0xf0] }
 0x221   :  { %6815 = vmatpush.bf16.msrb.mxu2 %v8853_v54  ;;  %v12065_v54 = vld [vmem:[%s19129_s1 + $0x614] sm:$0xf0]  ;;  %v8516_v24 = vld [vmem:[%s19129_s1 + $0x508] sm:$0xf] }
 0x222   :  { %6789 = vmatpush.bf16.msrb.mxu3 %v8597_v53  ;;  %v8644_v53 = vld [vmem:[%s19129_s1 + $0x608] sm:$0xf]  ;;  %v12189_v25 = vld [vmem:[%s19129_s1 + $0x9f4] sm:$0xf0] }
 0x223   :  { %6805 = vmatpush.bf16.msra.mxu0 %v8677_v30  ;;  %v12217_v30 = vld [vmem:[%s19129_s1 + $0xad4] sm:$0xf0]  ;;  %v9396_v42 = vld [vmem:[%s19129_s1 + $0xbe8] sm:$0xf]  ;;  %v6551_v41 = vpop.f32.mrf.mxu2  ;;  %v9141_v56 = vor.u32 %v12189_v25, %v9140_v40 }
 0x224   :  { %6779 = vmatpush.bf16.msra.mxu1 %v8421_v35  ;;  %v8772_v35 = vld [vmem:[%s19129_s1 + $0x708] sm:$0xf]  ;;  %v9253_v43 = vor.u32 %v12217_v30, %v9252_v29  ;;  %v12253_v44 = vld [vmem:[%s19129_s1 + $0xbf4] sm:$0xf0] }
 0x225   :  { %6816 = vmatpush.bf16.msrb.mxu2 %v8837_v8  ;;  %v8645_v8 = vor.u32 %v12065_v54, %v8644_v53  ;;  %v12213_v51 = vld [vmem:[%s19129_s1 + $0xab4] sm:$0xf0]  ;;  %v8517_v53 = vor.u32 %v12033_v39, %v8516_v24  ;;  %v8773_v54 = vor.u32 %v12097_v34, %v8772_v35  ;;  %v8980_v52 = vld [vmem:[%s19129_s1 + $0x8a8] sm:$0xf] }
 0x226   :  { %6790 = vmatpush.bf16.msrb.mxu3 %v8581_v5  ;;  %v12101_v5 = vld [vmem:[%s19129_s1 + $0x734] sm:$0xf0]  ;;  %v9124_v58 = vld [vmem:[%s19129_s1 + $0x9c8] sm:$0xf] }
 0x227   :  { %6806 = vmatpush.bf16.msra.mxu0 %v8661_v50  ;;  %v8789_v33 = vor.u32 %v12101_v5, %v8788_v3  ;;  %v9236_v50 = vld [vmem:[%s19129_s1 + $0xaa8] sm:$0xf]  ;;  %v12185_v59 = vld [vmem:[%s19129_s1 + $0x9d4] sm:$0xf0] }
 0x228   :  { %6780 = vmatpush.bf16.msra.mxu1 %v8405_v45  ;;  %v9380_v61 = vld [vmem:[%s19129_s1 + $0xbc8] sm:$0xf]  ;;  %v9237_v62 = vor.u32 %v12213_v51, %v9236_v50  ;;  %v12249_v3 = vld [vmem:[%s19129_s1 + $0xbd4] sm:$0xf0]  ;;  %v9125_v31 = vor.u32 %v12185_v59, %v9124_v58 }
 0x229   :  { %6817 = vmatpush.bf16.msrb.mxu2 %v8821_v38  ;;  %v12153_v38 = vld [vmem:[%s19129_s1 + $0x8d4] sm:$0xf0]  ;;  %v9220_v5 = vld [vmem:[%s19129_s1 + $0xa88] sm:$0xf] }
 0x22a   :  { %6791 = vmatpush.bf16.msrb.mxu3 %v8565_v37  ;;  %v8996_v37 = vld [vmem:[%s19129_s1 + $0x8c8] sm:$0xf]  ;;  %v12145_v23 = vld [vmem:[%s19129_s1 + $0x894] sm:$0xf0] }
 0x22b   :  { %6807 = vmatpush.bf16.msra.mxu0 %v8645_v8  ;;  %v8997_v45 = vor.u32 %v12153_v38, %v8996_v37  ;;  %v12209_v8 = vld [vmem:[%s19129_s1 + $0xa94] sm:$0xf0]  ;;  %v9108_v29 = vld [vmem:[%s19129_s1 + $0x9a8] sm:$0xf] }
 0x22c   :  { %6781 = vmatpush.bf16.msra.mxu1 %v8389_v27  ;;  %v9381_v27 = vor.u32 %v12249_v3, %v9380_v61  ;;  %v12181_v30 = vld [vmem:[%s19129_s1 + $0x9b4] sm:$0xf0]  ;;  %v9204_v39 = vld [vmem:[%s19129_s1 + $0xa68] sm:$0xf]  ;;  %v6575_v38 = vpop.f32.mrf.mxu1 }
 0x22d   :  { %6818 = vmatpush.bf16.msrb.mxu2 %v8805_v57  ;;  %v9397_v57 = vor.u32 %v12253_v44, %v9396_v42  ;;  %v12245_v24 = vld [vmem:[%s19129_s1 + $0xbb4] sm:$0xf0]  ;;  %v9109_v40 = vor.u32 %v12181_v30, %v9108_v29  ;;  %v8948_v25 = vld [vmem:[%s19129_s1 + $0x868] sm:$0xf] }
 0x22e   :  { %6792 = vmatpush.bf16.msrb.mxu3 %v8549_v4  ;;  %v12149_v4 = vld [vmem:[%s19129_s1 + $0x8b4] sm:$0xf0]  ;;  %6808 = vmatmul.bf16.vlgmr.msra.gmra.mxu0 %v13346_v60  ;;  %v9092_v41 = vld [vmem:[%s19129_s1 + $0x988] sm:$0xf] }
 0x22f   :  { %6852 = vmatpush.bf16.msrb.mxu0 %v9269_v63  ;;  %6782 = vmatmul.bf16.vlgmr.msra.gmra.mxu1 %v13351_v0  ;;  %v8981_v10 = vor.u32 %v12149_v4, %v8980_v52  ;;  %v8964_v63 = vld [vmem:[%s19129_s1 + $0x888] sm:$0xf]  ;;  %v12205_v35 = vld [vmem:[%s19129_s1 + $0xa74] sm:$0xf0] }
 0x230   :  { %6826 = vmatpush.bf16.msrb.mxu1 %v9013_v36  ;;  %v6562_v36 = vpop.f32.mrf.mxu0  ;;  %v8965_v37 = vor.u32 %v12145_v23, %v8964_v63  ;;  %v12141_v42 = vld [vmem:[%s19129_s1 + $0x874] sm:$0xf0]  ;;  %v9348_v44 = vld [vmem:[%s19129_s1 + $0xb88] sm:$0xf]  ;;  %v9205_v50 = vor.u32 %v12205_v35, %v9204_v39 }
 0x231   :  { %6819 = vmatpush.bf16.msrb.mxu2 %v8789_v33  ;;  %v9221_v33 = vor.u32 %v12209_v8, %v9220_v5  ;;  %v6563_v34 = vadd.f32 %v6562_v36, %v16366_v55  ;;  %v12177_v55 = vld [vmem:[%s19129_s1 + $0x994] sm:$0xf0]  ;;  %v8932_v4 = vld [vmem:[%s19129_s1 + $0x848] sm:$0xf] }
 0x232   :  { %6793 = vmatpush.bf16.msrb.mxu3 %v8533_v32  ;;  %v9364_v32 = vld [vmem:[%s19129_s1 + $0xba8] sm:$0xf]  ;;  %v9093_v52 = vor.u32 %v12177_v55, %v9092_v41  ;;  %v12173_v61 = vld [vmem:[%s19129_s1 + $0x974] sm:$0xf0] }
 0x233   :  { %6853 = vmatpush.bf16.msrb.mxu0 %v9253_v43  ;;  %v9365_v43 = vor.u32 %v12245_v24, %v9364_v32  ;;  %v6576_v51 = vadd.f32 %v6575_v38, %v6563_v34  ;;  %v9076_v59 = vld [vmem:[%s19129_s1 + $0x968] sm:$0xf]  ;;  %v12237_v8 = vld [vmem:[%s19129_s1 + $0xb74] sm:$0xf0] }
 0x234   :  { %6827 = vmatpush.bf16.msrb.mxu1 %v8997_v45  ;;  %v12201_v45 = vld [vmem:[%s19129_s1 + $0xa54] sm:$0xf0]  ;;  %v6588_v5 = vpop.f32.mrf.mxu3  ;;  %v9077_v29 = vor.u32 %v12173_v61, %v9076_v59  ;;  %v8916_v30 = vld [vmem:[%s19129_s1 + $0x828] sm:$0xf] }
 0x235   :  { %6820 = vmatpush.bf16.msrb.mxu2 %v8773_v54  ;;  %v9188_v54 = vld [vmem:[%s19129_s1 + $0xa48] sm:$0xf]  ;;  %v6589_v63 = vadd.f32 %v6588_v5, %v6576_v51  ;;  %v12133_v32 = vld [vmem:[%s19129_s1 + $0x834] sm:$0xf0] }
 0x236   :  { %6794 = vmatpush.bf16.msrb.mxu3 %v8517_v53  ;;  %v12241_v53 = vld [vmem:[%s19129_s1 + $0xb94] sm:$0xf0]  ;;  %v9189_v3 = vor.u32 %v12201_v45, %v9188_v54  ;;  %v9060_v39 = vld [vmem:[%s19129_s1 + $0x948] sm:$0xf]  ;;  %v8917_v55 = vor.u32 %v12133_v32, %v8916_v30 }
 0x237   :  { %6854 = vmatpush.bf16.msrb.mxu0 %v9237_v62  ;;  %v9349_v58 = vor.u32 %v12241_v53, %v9348_v44  ;;  %v9332_v62 = vld [vmem:[%s19129_s1 + $0xb68] sm:$0xf]  ;;  %v12169_v35 = vld [vmem:[%s19129_s1 + $0x954] sm:$0xf0] }
 0x238   :  { %6821 = vmatmul.bf16.vlgmr.msrb.gmra.mxu2 %v13353_v1  ;;  %6828 = vmatpush.bf16.msrb.mxu1 %v8981_v10  ;;  %v9172_v10 = vld [vmem:[%s19129_s1 + $0xa28] sm:$0xf]  ;;  %v6564_v23 = vpop.f32.mrf.mxu0  ;;  %v9333_v24 = vor.u32 %v12237_v8, %v9332_v62  ;;  %v9061_v44 = vor.u32 %v12169_v35, %v9060_v39  ;;  %v12129_v51 = vld [vmem:[%s19129_s1 + $0x814] sm:$0xf0] }
 0x239   :  { %6865 = vmatpush.bf16.msra.mxu2 %v9397_v57  ;;  %6795 = vmatmul.bf16.vlgmr.msrb.gmra.mxu3 %v13355_v2  ;;  %v12137_v57 = vld [vmem:[%s19129_s1 + $0x854] sm:$0xf0]  ;;  %v9316_v36 = vld [vmem:[%s19129_s1 + $0xb48] sm:$0xf] }
 0x23a   :  { %6839 = vmatpush.bf16.msra.mxu3 %v9141_v56  ;;  %v8949_v56 = vor.u32 %v12141_v42, %v8948_v25  ;;  %v9156_v38 = vld [vmem:[%s19129_s1 + $0xa08] sm:$0xf]  ;;  %v12165_v45 = vld [vmem:[%s19129_s1 + $0x934] sm:$0xf0] }
 0x23b   :  { %6855 = vmatpush.bf16.msrb.mxu0 %v9221_v33  ;;  %v6577_v33 = vpop.f32.mrf.mxu1  ;;  %v6601_v25 = vpop.f32.mrf.mxu2  ;;  %v9780_v42 = vld [vmem:[%s19129_s1 + $0xee8] sm:$0xf]  ;;  %v12161_v23 = vld [vmem:[%s19129_s1 + $0x914] sm:$0xf0] }
 0x23c   :  { %6829 = vmatpush.bf16.msrb.mxu1 %v8965_v37  ;;  %v12233_v37 = vld [vmem:[%s19129_s1 + $0xb54] sm:$0xf0]  ;;  %v16571_v41 = vadd.f32 %v6601_v25, %v6589_v63  ;;  %v9044_v54 = vld [vmem:[%s19129_s1 + $0x928] sm:$0xf]  ;;  %v6590_v61 = vpop.f32.mrf.mxu3 }
 0x23d   :  { %6866 = vmatpush.bf16.msra.mxu2 %v9381_v27  ;;  %v8933_v27 = vor.u32 %v12137_v57, %v8932_v4  ;;  %v9317_v53 = vor.u32 %v12233_v37, %v9316_v36  ;;  %v12229_v4 = vld [vmem:[%s19129_s1 + $0xb34] sm:$0xf0]  ;;  %v9524_v57 = vld [vmem:[%s19129_s1 + $0xce8] sm:$0xf]  ;;  %v9045_v8 = vor.u32 %v12165_v45, %v9044_v54 }
 0x23e   :  { %6840 = vmatpush.bf16.msra.mxu3 %v9125_v31  ;;  %v12197_v31 = vld [vmem:[%s19129_s1 + $0xa34] sm:$0xf0]  ;;  %v9764_v62 = vld [vmem:[%s19129_s1 + $0xec8] sm:$0xf] }
 0x23f   :  { %6856 = vmatpush.bf16.msrb.mxu0 %v9205_v50  ;;  %v9173_v34 = vor.u32 %v12197_v31, %v9172_v10  ;;  %v8900_v50 = vld [vmem:[%s19129_s1 + $0x808] sm:$0xf]  ;;  %v12281_v32 = vld [vmem:[%s19129_s1 + $0xcd4] sm:$0xf0] }
 0x240   :  { %6830 = vmatpush.bf16.msrb.mxu1 %v8949_v56  ;;  %v9300_v56 = vld [vmem:[%s19129_s1 + $0xb28] sm:$0xf]  ;;  %v8901_v5 = vor.u32 %v12129_v51, %v8900_v50  ;;  %v12317_v39 = vld [vmem:[%s19129_s1 + $0xdf4] sm:$0xf0] }
 0x241   :  { %6867 = vmatpush.bf16.msra.mxu2 %v9365_v43  ;;  %v12349_v43 = vld [vmem:[%s19129_s1 + $0xef4] sm:$0xf0]  ;;  %v9028_v10 = vld [vmem:[%s19129_s1 + $0x908] sm:$0xf]  ;;  %v9301_v31 = vor.u32 %v12229_v4, %v9300_v56 }
 0x242   :  { %6841 = vmatpush.bf16.msra.mxu3 %v9109_v40  ;;  %v12193_v40 = vld [vmem:[%s19129_s1 + $0xa14] sm:$0xf0]  ;;  %v9781_v59 = vor.u32 %v12349_v43, %v9780_v42  ;;  %v9508_v30 = vld [vmem:[%s19129_s1 + $0xcc8] sm:$0xf]  ;;  %v9029_v37 = vor.u32 %v12161_v23, %v9028_v10 }
 0x243   :  { %6857 = vmatpush.bf16.msrb.mxu0 %v9189_v3  ;;  %v12345_v3 = vld [vmem:[%s19129_s1 + $0xed4] sm:$0xf0]  ;;  %v9652_v33 = vld [vmem:[%s19129_s1 + $0xde8] sm:$0xf]  ;;  %v9509_v42 = vor.u32 %v12281_v32, %v9508_v30 }
 0x244   :  { %6831 = vmatpush.bf16.msrb.mxu1 %v8933_v27  ;;  %v9284_v27 = vld [vmem:[%s19129_s1 + $0xb08] sm:$0xf]  ;;  %v12381_v36 = vld [vmem:[%s19129_s1 + $0xff4] sm:$0xf0]  ;;  %v9653_v43 = vor.u32 %v12317_v39, %v9652_v33 }
 0x245   :  { %6868 = vmatpush.bf16.msra.mxu2 %v9349_v58  ;;  %v12285_v58 = vld [vmem:[%s19129_s1 + $0xcf4] sm:$0xf0]  ;;  %v9908_v35 = vld [vmem:[%s19129_s1 + $0xfe8] sm:$0xf] }
 0x246   :  { %6842 = vmatpush.bf16.msra.mxu3 %v9093_v52  ;;  %v9157_v52 = vor.u32 %v12193_v40, %v9156_v38  ;;  %v9525_v63 = vor.u32 %v12285_v58, %v9524_v57  ;;  %v9748_v38 = vld [vmem:[%s19129_s1 + $0xea8] sm:$0xf]  ;;  %v12341_v40 = vld [vmem:[%s19129_s1 + $0xeb4] sm:$0xf0] }
 0x247   :  { %6858 = vmatpush.bf16.msrb.mxu0 %v9173_v34  ;;  %v6603_v34 = vpop.f32.mrf.mxu2  ;;  %v12277_v50 = vld [vmem:[%s19129_s1 + $0xcb4] sm:$0xf0]  ;;  %v9636_v51 = vld [vmem:[%s19129_s1 + $0xdc8] sm:$0xf]  ;;  %v9749_v56 = vor.u32 %v12341_v40, %v9748_v38 }
 0x248   :  { %6832 = vmatpush.bf16.msrb.mxu1 %v8917_v55  ;;  %v9909_v55 = vor.u32 %v12381_v36, %v9908_v35  ;;  %v9892_v54 = vld [vmem:[%s19129_s1 + $0xfc8] sm:$0xf]  ;;  %v12377_v45 = vld [vmem:[%s19129_s1 + $0xfd4] sm:$0xf0] }
 0x249   :  { %6869 = vmatpush.bf16.msra.mxu2 %v9333_v24  ;;  %v9765_v24 = vor.u32 %v12345_v3, %v9764_v62  ;;  %v12337_v4 = vld [vmem:[%s19129_s1 + $0xe94] sm:$0xf0]  ;;  %v9476_v61 = vld [vmem:[%s19129_s1 + $0xc88] sm:$0xf] }
 0x24a   :  { %6843 = vmatpush.bf16.msra.mxu3 %v9077_v29  ;;  %v12225_v29 = vld [vmem:[%s19129_s1 + $0xb14] sm:$0xf0]  ;;  %v9620_v3 = vld [vmem:[%s19129_s1 + $0xda8] sm:$0xf] }
 0x24b   :  { %6859 = vmatpush.bf16.msrb.mxu0 %v9157_v52  ;;  %v9285_v25 = vor.u32 %v12225_v29, %v9284_v27  ;;  %v9732_v52 = vld [vmem:[%s19129_s1 + $0xe88] sm:$0xf]  ;;  %v12273_v62 = vld [vmem:[%s19129_s1 + $0xc94] sm:$0xf0]  ;;  %v6614_v27 = vpop.f32.mrf.mxu0 }
 0x24c   :  { %6833 = vmatpush.bf16.msrb.mxu1 %v8901_v5  ;;  %v12309_v5 = vld [vmem:[%s19129_s1 + $0xdb4] sm:$0xf0]  ;;  %v9477_v29 = vor.u32 %v12273_v62, %v9476_v61  ;;  %v6627_v30 = vpop.f32.mrf.mxu1  ;;  %v6615_v32 = vadd.f32 %v6614_v27, %v16571_v41  ;;  %v9460_v39 = vld [vmem:[%s19129_s1 + $0xc68] sm:$0xf] }
 0x24d   :  { %6870 = vmatpush.bf16.msra.mxu2 %v9317_v53  ;;  %v12313_v53 = vld [vmem:[%s19129_s1 + $0xdd4] sm:$0xf0]  ;;  %v9621_v33 = vor.u32 %v12309_v5, %v9620_v3  ;;  %v9604_v36 = vld [vmem:[%s19129_s1 + $0xd88] sm:$0xf] }
 0x24e   :  { %6844 = vmatpush.bf16.msra.mxu3 %v9061_v44  ;;  %v9492_v44 = vld [vmem:[%s19129_s1 + $0xca8] sm:$0xf]  ;;  %6860 = vmatmul.bf16.vlgmr.msrb.gmra.mxu0 %v13609_v15  ;;  %v9637_v58 = vor.u32 %v12313_v53, %v9636_v51  ;;  %v12373_v10 = vld [vmem:[%s19129_s1 + $0xfb4] sm:$0xf0]  ;;  %v6628_v40 = vadd.f32 %v6627_v30, %v6615_v32 }
 0x24f   :  { %6904 = vmatpush.bf16.msra.mxu0 %v9781_v59  ;;  %6834 = vmatmul.bf16.vlgmr.msrb.gmra.mxu1 %v13601_v12  ;;  %v9493_v57 = vor.u32 %v12277_v50, %v9492_v44  ;;  %v9893_v59 = vor.u32 %v12377_v45, %v9892_v54  ;;  %v12333_v23 = vld [vmem:[%s19129_s1 + $0xe74] sm:$0xf0]  ;;  %v9860_v41 = vld [vmem:[%s19129_s1 + $0xf88] sm:$0xf] }
 0x250   :  { %6878 = vmatpush.bf16.msra.mxu1 %v9525_v63  ;;  %v9716_v63 = vld [vmem:[%s19129_s1 + $0xe68] sm:$0xf]  ;;  %v12269_v35 = vld [vmem:[%s19129_s1 + $0xc74] sm:$0xf0] }
 0x251   :  { %6871 = vmatpush.bf16.msra.mxu2 %v9301_v31  ;;  %v9733_v31 = vor.u32 %v12337_v4, %v9732_v52  ;;  %v12305_v34 = vld [vmem:[%s19129_s1 + $0xd94] sm:$0xf0]  ;;  %v9717_v38 = vor.u32 %v12333_v23, %v9716_v63  ;;  %v9444_v50 = vld [vmem:[%s19129_s1 + $0xc48] sm:$0xf] }
 0x252   :  { %6845 = vmatpush.bf16.msra.mxu3 %v9045_v8  ;;  %v9876_v8 = vld [vmem:[%s19129_s1 + $0xfa8] sm:$0xf]  ;;  %v12265_v51 = vld [vmem:[%s19129_s1 + $0xc54] sm:$0xf0] }
 0x253   :  { %6905 = vmatpush.bf16.msra.mxu0 %v9765_v24  ;;  %v9877_v24 = vor.u32 %v12373_v10, %v9876_v8  ;;  %v9588_v53 = vld [vmem:[%s19129_s1 + $0xd68] sm:$0xf]  ;;  %v12301_v54 = vld [vmem:[%s19129_s1 + $0xd74] sm:$0xf0]  ;;  %v9445_v61 = vor.u32 %v12265_v51, %v9444_v50  ;;  %v6616_v62 = vpop.f32.mrf.mxu0 }
 0x254   :  { %6879 = vmatpush.bf16.msra.mxu1 %v9509_v42  ;;  %v12329_v42 = vld [vmem:[%s19129_s1 + $0xe54] sm:$0xf0]  ;;  %v9844_v45 = vld [vmem:[%s19129_s1 + $0xf68] sm:$0xf]  ;;  %v6640_v4 = vpop.f32.mrf.mxu3  ;;  %v6629_v3 = vpop.f32.mrf.mxu1  ;;  %v9589_v5 = vor.u32 %v12301_v54, %v9588_v53 }
 0x255   :  { %6872 = vmatpush.bf16.msra.mxu2 %v9285_v25  ;;  %v9700_v25 = vld [vmem:[%s19129_s1 + $0xe48] sm:$0xf]  ;;  %v12297_v23 = vld [vmem:[%s19129_s1 + $0xd54] sm:$0xf0] }
 0x256   :  { %6846 = vmatpush.bf16.msra.mxu3 %v9029_v37  ;;  %v12369_v37 = vld [vmem:[%s19129_s1 + $0xf94] sm:$0xf0]  ;;  %v9701_v52 = vor.u32 %v12329_v42, %v9700_v25  ;;  %v9428_v10 = vld [vmem:[%s19129_s1 + $0xc28] sm:$0xf] }
 0x257   :  { %6906 = vmatpush.bf16.msra.mxu0 %v9749_v56  ;;  %v9861_v44 = vor.u32 %v12369_v37, %v9860_v41  ;;  %v12365_v56 = vld [vmem:[%s19129_s1 + $0xf74] sm:$0xf0]  ;;  %v9572_v63 = vld [vmem:[%s19129_s1 + $0xd48] sm:$0xf] }
 0x258   :  { %6873 = vmatmul.bf16.vlgmr.msra.gmra.mxu2 %v13613_v17  ;;  %6880 = vmatpush.bf16.msra.mxu1 %v9493_v57  ;;  %v9684_v57 = vld [vmem:[%s19129_s1 + $0xe28] sm:$0xf]  ;;  %v9845_v8 = vor.u32 %v12365_v56, %v9844_v45  ;;  %v9573_v41 = vor.u32 %v12297_v23, %v9572_v63  ;;  %v12293_v42 = vld [vmem:[%s19129_s1 + $0xd34] sm:$0xf0] }
 0x259   :  { %6917 = vmatpush.bf16.msrb.mxu2 %v9909_v55  ;;  %6847 = vmatmul.bf16.vlgmr.msra.gmra.mxu3 %v13611_v16  ;;  %v9605_v55 = vor.u32 %v12305_v34, %v9604_v36  ;;  %v9828_v27 = vld [vmem:[%s19129_s1 + $0xf48] sm:$0xf]  ;;  %v12477_v34 = vld [vmem:[%s19129_s1 + $0x12f4] sm:$0xf0] }
 0x25a   :  { %6891 = vmatpush.bf16.msrb.mxu3 %v9653_v43  ;;  %v9461_v43 = vor.u32 %v12269_v35, %v9460_v39  ;;  %v10292_v36 = vld [vmem:[%s19129_s1 + $0x12e8] sm:$0xf]  ;;  %v12413_v51 = vld [vmem:[%s19129_s1 + $0x10f4] sm:$0xf0] }
 0x25b   :  { %6907 = vmatpush.bf16.msra.mxu0 %v9733_v31  ;;  %v12261_v31 = vld [vmem:[%s19129_s1 + $0xc34] sm:$0xf0]  ;;  %v6653_v32 = vpop.f32.mrf.mxu2  ;;  %v9556_v25 = vld [vmem:[%s19129_s1 + $0xd28] sm:$0xf]  ;;  %v10293_v53 = vor.u32 %v12477_v34, %v10292_v36 }
 0x25c   :  { %6881 = vmatpush.bf16.msra.mxu1 %v9477_v29  ;;  %v12361_v29 = vld [vmem:[%s19129_s1 + $0xf54] sm:$0xf0]  ;;  %v9429_v35 = vor.u32 %v12261_v31, %v9428_v10  ;;  %v10036_v50 = vld [vmem:[%s19129_s1 + $0x10e8] sm:$0xf]  ;;  %v6642_v54 = vpop.f32.mrf.mxu3 }
 0x25d   :  { %6918 = vmatpush.bf16.msrb.mxu2 %v9893_v59  ;;  %v6641_v59 = vadd.f32 %v6640_v4, %v6628_v40  ;;  %v9829_v37 = vor.u32 %v12361_v29, %v9828_v27  ;;  %v12257_v40 = vld [vmem:[%s19129_s1 + $0xc14] sm:$0xf0]  ;;  %v10276_v56 = vld [vmem:[%s19129_s1 + $0x12c8] sm:$0xf]  ;;  %v9557_v4 = vor.u32 %v12293_v42, %v9556_v25  ;;  %v10037_v62 = vor.u32 %v12413_v51, %v10036_v50 }
 0x25e   :  { %6892 = vmatpush.bf16.msrb.mxu3 %v9637_v58  ;;  %v12325_v58 = vld [vmem:[%s19129_s1 + $0xe34] sm:$0xf0]  ;;  %v10164_v10 = vld [vmem:[%s19129_s1 + $0x11e8] sm:$0xf] }
 0x25f   :  { %6908 = vmatpush.bf16.msra.mxu0 %v9717_v38  ;;  %v9685_v30 = vor.u32 %v12325_v58, %v9684_v57  ;;  %v16764_v39 = vadd.f32 %v6653_v32, %v6641_v59  ;;  %v9412_v38 = vld [vmem:[%s19129_s1 + $0xc08] sm:$0xf]  ;;  %v12289_v59 = vld [vmem:[%s19129_s1 + $0xd14] sm:$0xf0] }
 0x260   :  { %6882 = vmatpush.bf16.msra.mxu1 %v9461_v43  ;;  %v9812_v43 = vld [vmem:[%s19129_s1 + $0xf28] sm:$0xf]  ;;  %v9413_v45 = vor.u32 %v12257_v40, %v9412_v38  ;;  %v12353_v3 = vld [vmem:[%s19129_s1 + $0xf14] sm:$0xf0] }
 0x261   :  { %6919 = vmatpush.bf16.msrb.mxu2 %v9877_v24  ;;  %v12321_v24 = vld [vmem:[%s19129_s1 + $0xe14] sm:$0xf0]  ;;  %v9540_v58 = vld [vmem:[%s19129_s1 + $0xd08] sm:$0xf] }
 0x262   :  { %6893 = vmatpush.bf16.msrb.mxu3 %v9621_v33  ;;  %v9668_v33 = vld [vmem:[%s19129_s1 + $0xe08] sm:$0xf]  ;;  %v12445_v31 = vld [vmem:[%s19129_s1 + $0x11f4] sm:$0xf0] }
 0x263   :  { %6909 = vmatpush.bf16.msra.mxu0 %v9701_v52  ;;  %v12473_v52 = vld [vmem:[%s19129_s1 + $0x12d4] sm:$0xf0]  ;;  %v10420_v63 = vld [vmem:[%s19129_s1 + $0x13e8] sm:$0xf]  ;;  %v6655_v27 = vpop.f32.mrf.mxu2  ;;  %v10165_v36 = vor.u32 %v12445_v31, %v10164_v10 }
 0x264   :  { %6883 = vmatpush.bf16.msra.mxu1 %v9445_v61  ;;  %v9796_v61 = vld [vmem:[%s19129_s1 + $0xf08] sm:$0xf]  ;;  %v10277_v23 = vor.u32 %v12473_v52, %v10276_v56  ;;  %v12509_v29 = vld [vmem:[%s19129_s1 + $0x13f4] sm:$0xf0] }
 0x265   :  { %6920 = vmatpush.bf16.msrb.mxu2 %v9861_v44  ;;  %v9669_v44 = vor.u32 %v12321_v24, %v9668_v33  ;;  %v12469_v32 = vld [vmem:[%s19129_s1 + $0x12b4] sm:$0xf0]  ;;  %v9541_v33 = vor.u32 %v12289_v59, %v9540_v58  ;;  %v9797_v24 = vor.u32 %v12353_v3, %v9796_v61  ;;  %v10004_v34 = vld [vmem:[%s19129_s1 + $0x10a8] sm:$0xf] }
 0x266   :  { %6894 = vmatpush.bf16.msrb.mxu3 %v9605_v55  ;;  %v12357_v55 = vld [vmem:[%s19129_s1 + $0xf34] sm:$0xf0]  ;;  %v10148_v38 = vld [vmem:[%s19129_s1 + $0x11c8] sm:$0xf] }
 0x267   :  { %6910 = vmatpush.bf16.msra.mxu0 %v9685_v30  ;;  %v9813_v57 = vor.u32 %v12357_v55, %v9812_v43  ;;  %v10260_v30 = vld [vmem:[%s19129_s1 + $0x12a8] sm:$0xf]  ;;  %v12441_v40 = vld [vmem:[%s19129_s1 + $0x11d4] sm:$0xf0] }
 0x268   :  { %6884 = vmatpush.bf16.msra.mxu1 %v9429_v35  ;;  %v10404_v25 = vld [vmem:[%s19129_s1 + $0x13c8] sm:$0xf]  ;;  %v10261_v42 = vor.u32 %v12469_v32, %v10260_v30  ;;  %v12505_v43 = vld [vmem:[%s19129_s1 + $0x13d4] sm:$0xf0]  ;;  %v10149_v51 = vor.u32 %v12441_v40, %v10148_v38 }
 0x269   :  { %6921 = vmatpush.bf16.msrb.mxu2 %v9845_v8  ;;  %v12409_v8 = vld [vmem:[%s19129_s1 + $0x10d4] sm:$0xf0]  ;;  %v10244_v55 = vld [vmem:[%s19129_s1 + $0x1288] sm:$0xf] }
 0x26a   :  { %6895 = vmatpush.bf16.msrb.mxu3 %v9589_v5  ;;  %v10020_v5 = vld [vmem:[%s19129_s1 + $0x10c8] sm:$0xf]  ;;  %v12401_v54 = vld [vmem:[%s19129_s1 + $0x1094] sm:$0xf0] }
 0x26b   :  { %6911 = vmatpush.bf16.msra.mxu0 %v9669_v44  ;;  %v10021_v35 = vor.u32 %v12409_v8, %v10020_v5  ;;  %v12465_v44 = vld [vmem:[%s19129_s1 + $0x1294] sm:$0xf0]  ;;  %v10132_v56 = vld [vmem:[%s19129_s1 + $0x11a8] sm:$0xf] }
 0x26c   :  { %6885 = vmatpush.bf16.msra.mxu1 %v9413_v45  ;;  %v10405_v45 = vor.u32 %v12505_v43, %v10404_v25  ;;  %v12437_v52 = vld [vmem:[%s19129_s1 + $0x11b4] sm:$0xf0]  ;;  %v10228_v59 = vld [vmem:[%s19129_s1 + $0x1268] sm:$0xf]  ;;  %v6679_v8 = vpop.f32.mrf.mxu1 }
 0x26d   :  { %6922 = vmatpush.bf16.msrb.mxu2 %v9829_v37  ;;  %v10421_v37 = vor.u32 %v12509_v29, %v10420_v63  ;;  %v12501_v58 = vld [vmem:[%s19129_s1 + $0x13b4] sm:$0xf0]  ;;  %v10133_v10 = vor.u32 %v12437_v52, %v10132_v56  ;;  %v9972_v31 = vld [vmem:[%s19129_s1 + $0x1068] sm:$0xf] }
 0x26e   :  { %6896 = vmatpush.bf16.msrb.mxu3 %v9573_v41  ;;  %v12405_v41 = vld [vmem:[%s19129_s1 + $0x10b4] sm:$0xf0]  ;;  %6912 = vmatmul.bf16.vlgmr.msra.gmra.mxu0 %v13777_v47  ;;  %v10116_v27 = vld [vmem:[%s19129_s1 + $0x1188] sm:$0xf] }
 0x26f   :  { %6956 = vmatpush.bf16.msrb.mxu0 %v10293_v53  ;;  %6886 = vmatmul.bf16.vlgmr.msra.gmra.mxu1 %v13775_v46  ;;  %v10005_v50 = vor.u32 %v12405_v41, %v10004_v34  ;;  %v9988_v53 = vld [vmem:[%s19129_s1 + $0x1088] sm:$0xf]  ;;  %v12461_v61 = vld [vmem:[%s19129_s1 + $0x1274] sm:$0xf0] }
 0x270   :  { %6930 = vmatpush.bf16.msrb.mxu1 %v10037_v62  ;;  %v6666_v62 = vpop.f32.mrf.mxu0  ;;  %v9989_v5 = vor.u32 %v12401_v54, %v9988_v53  ;;  %v12397_v63 = vld [vmem:[%s19129_s1 + $0x1074] sm:$0xf0]  ;;  %v10372_v29 = vld [vmem:[%s19129_s1 + $0x1388] sm:$0xf]  ;;  %v10229_v30 = vor.u32 %v12461_v61, %v10228_v59 }
 0x271   :  { %6923 = vmatpush.bf16.msrb.mxu2 %v9813_v57  ;;  %v10245_v57 = vor.u32 %v12465_v44, %v10244_v55  ;;  %v6667_v3 = vadd.f32 %v6666_v62, %v16764_v39  ;;  %v12433_v39 = vld [vmem:[%s19129_s1 + $0x1194] sm:$0xf0]  ;;  %v9956_v41 = vld [vmem:[%s19129_s1 + $0x1048] sm:$0xf] }
 0x272   :  { %6897 = vmatpush.bf16.msrb.mxu3 %v9557_v4  ;;  %v10388_v4 = vld [vmem:[%s19129_s1 + $0x13a8] sm:$0xf]  ;;  %v10117_v34 = vor.u32 %v12433_v39, %v10116_v27  ;;  %v12429_v25 = vld [vmem:[%s19129_s1 + $0x1174] sm:$0xf0] }
 0x273   :  { %6957 = vmatpush.bf16.msrb.mxu0 %v10277_v23  ;;  %v10389_v23 = vor.u32 %v12501_v58, %v10388_v4  ;;  %v6680_v32 = vadd.f32 %v6679_v8, %v6667_v3  ;;  %v10100_v40 = vld [vmem:[%s19129_s1 + $0x1168] sm:$0xf]  ;;  %v12493_v44 = vld [vmem:[%s19129_s1 + $0x1374] sm:$0xf0] }
 0x274   :  { %6931 = vmatpush.bf16.msrb.mxu1 %v10021_v35  ;;  %v12457_v35 = vld [vmem:[%s19129_s1 + $0x1254] sm:$0xf0]  ;;  %v6692_v55 = vpop.f32.mrf.mxu3  ;;  %v10101_v56 = vor.u32 %v12429_v25, %v10100_v40  ;;  %v9940_v52 = vld [vmem:[%s19129_s1 + $0x1028] sm:$0xf] }
 0x275   :  { %6924 = vmatpush.bf16.msrb.mxu2 %v9797_v24  ;;  %v10212_v24 = vld [vmem:[%s19129_s1 + $0x1248] sm:$0xf]  ;;  %v6693_v53 = vadd.f32 %v6692_v55, %v6680_v32  ;;  %v12389_v4 = vld [vmem:[%s19129_s1 + $0x1034] sm:$0xf0] }
 0x276   :  { %6898 = vmatpush.bf16.msrb.mxu3 %v9541_v33  ;;  %v12497_v33 = vld [vmem:[%s19129_s1 + $0x1394] sm:$0xf0]  ;;  %v10213_v43 = vor.u32 %v12457_v35, %v10212_v24  ;;  %v10084_v59 = vld [vmem:[%s19129_s1 + $0x1148] sm:$0xf]  ;;  %v9941_v39 = vor.u32 %v12389_v4, %v9940_v52 }
 0x277   :  { %6958 = vmatpush.bf16.msrb.mxu0 %v10261_v42  ;;  %v10373_v38 = vor.u32 %v12497_v33, %v10372_v29  ;;  %v10356_v42 = vld [vmem:[%s19129_s1 + $0x1368] sm:$0xf]  ;;  %v12425_v61 = vld [vmem:[%s19129_s1 + $0x1154] sm:$0xf0] }
 0x278   :  { %6925 = vmatmul.bf16.vlgmr.msrb.gmra.mxu2 %v13781_v49  ;;  %6932 = vmatpush.bf16.msrb.mxu1 %v10005_v50  ;;  %v10196_v50 = vld [vmem:[%s19129_s1 + $0x1228] sm:$0xf]  ;;  %v6668_v54 = vpop.f32.mrf.mxu0  ;;  %v10357_v58 = vor.u32 %v12493_v44, %v10356_v42  ;;  %v10085_v29 = vor.u32 %v12425_v61, %v10084_v59  ;;  %v12385_v32 = vld [vmem:[%s19129_s1 + $0x1014] sm:$0xf0] }
 0x279   :  { %6969 = vmatpush.bf16.msra.mxu2 %v10421_v37  ;;  %6899 = vmatmul.bf16.vlgmr.msrb.gmra.mxu3 %v13779_v48  ;;  %v12393_v37 = vld [vmem:[%s19129_s1 + $0x1054] sm:$0xf0]  ;;  %v10340_v62 = vld [vmem:[%s19129_s1 + $0x1348] sm:$0xf] }
 0x27a   :  { %6943 = vmatpush.bf16.msra.mxu3 %v10165_v36  ;;  %v9973_v36 = vor.u32 %v12397_v63, %v9972_v31  ;;  %v10180_v8 = vld [vmem:[%s19129_s1 + $0x1208] sm:$0xf]  ;;  %v12421_v35 = vld [vmem:[%s19129_s1 + $0x1134] sm:$0xf0] }
 0x27b   :  { %6959 = vmatpush.bf16.msrb.mxu0 %v10245_v57  ;;  %v6681_v57 = vpop.f32.mrf.mxu1  ;;  %v6705_v31 = vpop.f32.mrf.mxu2  ;;  %v10804_v63 = vld [vmem:[%s19129_s1 + $0x16e8] sm:$0xf]  ;;  %v12541_v40 = vld [vmem:[%s19129_s1 + $0x14f4] sm:$0xf0] }
 0x27c   :  { %6933 = vmatpush.bf16.msrb.mxu1 %v9989_v5  ;;  %v12489_v5 = vld [vmem:[%s19129_s1 + $0x1354] sm:$0xf0]  ;;  %v6706_v27 = vadd.f32 %v6705_v31, %v6693_v53  ;;  %v10068_v24 = vld [vmem:[%s19129_s1 + $0x1128] sm:$0xf] }
 0x27d   :  { %6970 = vmatpush.bf16.msra.mxu2 %v10405_v45  ;;  %v9957_v45 = vor.u32 %v12393_v37, %v9956_v41  ;;  %v10341_v33 = vor.u32 %v12489_v5, %v10340_v62  ;;  %v6694_v41 = vpop.f32.mrf.mxu3  ;;  %v12485_v37 = vld [vmem:[%s19129_s1 + $0x1334] sm:$0xf0]  ;;  %v10788_v42 = vld [vmem:[%s19129_s1 + $0x16c8] sm:$0xf]  ;;  %v10069_v44 = vor.u32 %v12421_v35, %v10068_v24 }
 0x27e   :  { %6944 = vmatpush.bf16.msra.mxu3 %v10149_v51  ;;  %v12453_v51 = vld [vmem:[%s19129_s1 + $0x1234] sm:$0xf0]  ;;  %v10532_v52 = vld [vmem:[%s19129_s1 + $0x14c8] sm:$0xf] }
 0x27f   :  { %6960 = vmatpush.bf16.msrb.mxu0 %v10229_v30  ;;  %v10197_v3 = vor.u32 %v12453_v51, %v10196_v50  ;;  %v9924_v30 = vld [vmem:[%s19129_s1 + $0x1008] sm:$0xf]  ;;  %v12417_v54 = vld [vmem:[%s19129_s1 + $0x1114] sm:$0xf0] }
 0x280   :  { %6934 = vmatpush.bf16.msrb.mxu1 %v9973_v36  ;;  %v10324_v36 = vld [vmem:[%s19129_s1 + $0x1328] sm:$0xf]  ;;  %v9925_v55 = vor.u32 %v12385_v32, %v9924_v30  ;;  %v12537_v4 = vld [vmem:[%s19129_s1 + $0x14d4] sm:$0xf0] }
 0x281   :  { %6971 = vmatpush.bf16.msra.mxu2 %v10389_v23  ;;  %v12605_v23 = vld [vmem:[%s19129_s1 + $0x16f4] sm:$0xf0]  ;;  %v10052_v50 = vld [vmem:[%s19129_s1 + $0x1108] sm:$0xf]  ;;  %v10325_v51 = vor.u32 %v12485_v37, %v10324_v36 }
 0x282   :  { %6945 = vmatpush.bf16.msra.mxu3 %v10133_v10  ;;  %v12449_v10 = vld [vmem:[%s19129_s1 + $0x1214] sm:$0xf0]  ;;  %v10805_v25 = vor.u32 %v12605_v23, %v10804_v63  ;;  %v10676_v57 = vld [vmem:[%s19129_s1 + $0x15e8] sm:$0xf]  ;;  %v10053_v5 = vor.u32 %v12417_v54, %v10052_v50  ;;  %v10533_v63 = vor.u32 %v12537_v4, %v10532_v52 }
 0x283   :  { %6961 = vmatpush.bf16.msrb.mxu0 %v10213_v43  ;;  %v12601_v43 = vld [vmem:[%s19129_s1 + $0x16d4] sm:$0xf0]  ;;  %v10932_v61 = vld [vmem:[%s19129_s1 + $0x17e8] sm:$0xf] }
 0x284   :  { %6935 = vmatpush.bf16.msrb.mxu1 %v9957_v45  ;;  %v10308_v45 = vld [vmem:[%s19129_s1 + $0x1308] sm:$0xf]  ;;  %v12573_v59 = vld [vmem:[%s19129_s1 + $0x15f4] sm:$0xf0] }
 0x285   :  { %6972 = vmatpush.bf16.msra.mxu2 %v10373_v38  ;;  %v10548_v38 = vld [vmem:[%s19129_s1 + $0x14e8] sm:$0xf]  ;;  %v12637_v62 = vld [vmem:[%s19129_s1 + $0x17f4] sm:$0xf0]  ;;  %v6718_v23 = vpop.f32.mrf.mxu3 }
 0x286   :  { %6946 = vmatpush.bf16.msra.mxu3 %v10117_v34  ;;  %v10181_v34 = vor.u32 %v12449_v10, %v10180_v8  ;;  %v10549_v53 = vor.u32 %v12541_v40, %v10548_v38  ;;  %v10772_v8 = vld [vmem:[%s19129_s1 + $0x16a8] sm:$0xf]  ;;  %v12597_v10 = vld [vmem:[%s19129_s1 + $0x16b4] sm:$0xf0]  ;;  %v17045_v24 = vadd.f32 %v6718_v23, %v6706_v27 }
 0x287   :  { %6962 = vmatpush.bf16.msrb.mxu0 %v10197_v3  ;;  %v6707_v3 = vpop.f32.mrf.mxu2  ;;  %v10516_v30 = vld [vmem:[%s19129_s1 + $0x14a8] sm:$0xf]  ;;  %v12533_v32 = vld [vmem:[%s19129_s1 + $0x14b4] sm:$0xf0]  ;;  %v10773_v41 = vor.u32 %v12597_v10, %v10772_v8 }
 0x288   :  { %6936 = vmatpush.bf16.msrb.mxu1 %v9941_v39  ;;  %v10677_v39 = vor.u32 %v12573_v59, %v10676_v57  ;;  %v12569_v35 = vld [vmem:[%s19129_s1 + $0x15d4] sm:$0xf0]  ;;  %v10916_v36 = vld [vmem:[%s19129_s1 + $0x17c8] sm:$0xf]  ;;  %v10517_v38 = vor.u32 %v12533_v32, %v10516_v30 }
 0x289   :  { %6973 = vmatpush.bf16.msra.mxu2 %v10357_v58  ;;  %v10789_v58 = vor.u32 %v12601_v43, %v10788_v42  ;;  %v10756_v27 = vld [vmem:[%s19129_s1 + $0x1688] sm:$0xf]  ;;  %v12593_v37 = vld [vmem:[%s19129_s1 + $0x1694] sm:$0xf0] }
 0x28a   :  { %6947 = vmatpush.bf16.msra.mxu3 %v10101_v56  ;;  %v12481_v56 = vld [vmem:[%s19129_s1 + $0x1314] sm:$0xf0]  ;;  %v10500_v42 = vld [vmem:[%s19129_s1 + $0x1488] sm:$0xf] }
 0x28b   :  { %6963 = vmatpush.bf16.msrb.mxu0 %v10181_v34  ;;  %v10309_v31 = vor.u32 %v12481_v56, %v10308_v45  ;;  %v12633_v34 = vld [vmem:[%s19129_s1 + $0x17d4] sm:$0xf0]  ;;  %v10900_v50 = vld [vmem:[%s19129_s1 + $0x17a8] sm:$0xf]  ;;  %v17089_v52 = vpop.f32.mrf.mxu0 }
 0x28c   :  { %6937 = vmatpush.bf16.msrb.mxu1 %v9925_v55  ;;  %v12529_v43 = vld [vmem:[%s19129_s1 + $0x1494] sm:$0xf0]  ;;  %v10644_v55 = vld [vmem:[%s19129_s1 + $0x15a8] sm:$0xf]  ;;  %v6731_v3 = vpop.f32.mrf.mxu1 }
 0x28d   :  { %6974 = vmatpush.bf16.msra.mxu2 %v10341_v33  ;;  %v10660_v33 = vld [vmem:[%s19129_s1 + $0x15c8] sm:$0xf]  ;;  %v12589_v45 = vld [vmem:[%s19129_s1 + $0x1674] sm:$0xf0]  ;;  %v10501_v56 = vor.u32 %v12529_v43, %v10500_v42 }
 0x28e   :  { %6948 = vmatpush.bf16.msra.mxu3 %v10085_v29  ;;  %v10933_v29 = vor.u32 %v12637_v62, %v10932_v61  ;;  %6964 = vmatmul.bf16.vlgmr.msrb.gmra.mxu0 %v14020_v13  ;;  %v10661_v40 = vor.u32 %v12569_v35, %v10660_v33  ;;  %v10740_v54 = vld [vmem:[%s19129_s1 + $0x1668] sm:$0xf]  ;;  %v12525_v59 = vld [vmem:[%s19129_s1 + $0x1474] sm:$0xf0]  ;;  %v6720_v62 = vpop.f32.mrf.mxu3 }
 0x28f   :  { %7008 = vmatpush.bf16.msra.mxu0 %v10805_v25  ;;  %6938 = vmatmul.bf16.vlgmr.msrb.gmra.mxu1 %v14012_v9  ;;  %v10917_v25 = vor.u32 %v12633_v34, %v10916_v36  ;;  %v10628_v61 = vld [vmem:[%s19129_s1 + $0x1588] sm:$0xf]  ;;  %v12625_v10 = vld [vmem:[%s19129_s1 + $0x1794] sm:$0xf0] }
 0x290   :  { %6982 = vmatpush.bf16.msra.mxu1 %v10549_v53  ;;  %v10757_v53 = vor.u32 %v12593_v37, %v10756_v27  ;;  %v10884_v8 = vld [vmem:[%s19129_s1 + $0x1788] sm:$0xf]  ;;  %v12585_v23 = vld [vmem:[%s19129_s1 + $0x1654] sm:$0xf0] }
 0x291   :  { %6975 = vmatpush.bf16.msra.mxu2 %v10325_v51  ;;  %v12629_v51 = vld [vmem:[%s19129_s1 + $0x17b4] sm:$0xf0]  ;;  %v10885_v33 = vor.u32 %v12625_v10, %v10884_v8  ;;  %v10468_v35 = vld [vmem:[%s19129_s1 + $0x1448] sm:$0xf] }
 0x292   :  { %6949 = vmatpush.bf16.msra.mxu3 %v10069_v44  ;;  %v12565_v44 = vld [vmem:[%s19129_s1 + $0x15b4] sm:$0xf0]  ;;  %v10901_v57 = vor.u32 %v12629_v51, %v10900_v50  ;;  %v10612_v34 = vld [vmem:[%s19129_s1 + $0x1568] sm:$0xf] }
 0x293   :  { %7009 = vmatpush.bf16.msra.mxu0 %v10789_v58  ;;  %v10645_v4 = vor.u32 %v12565_v44, %v10644_v55  ;;  %v10484_v58 = vld [vmem:[%s19129_s1 + $0x1468] sm:$0xf]  ;;  %v12521_v36 = vld [vmem:[%s19129_s1 + $0x1454] sm:$0xf0]  ;;  %v6759_v55 = vpop.f32.mrf.mxu0 }
 0x294   :  { %6983 = vmatpush.bf16.msra.mxu1 %v10533_v63  ;;  %v10724_v63 = vld [vmem:[%s19129_s1 + $0x1648] sm:$0xf]  ;;  %v12621_v37 = vld [vmem:[%s19129_s1 + $0x1774] sm:$0xf0]  ;;  %v10469_v42 = vor.u32 %v12521_v36, %v10468_v35 }
 0x295   :  { %6976 = vmatpush.bf16.msra.mxu2 %v10309_v31  ;;  %v10741_v31 = vor.u32 %v12589_v45, %v10740_v54  ;;  %v10868_v27 = vld [vmem:[%s19129_s1 + $0x1768] sm:$0xf]  ;;  %v6733_v45 = vpop.f32.mrf.mxu1  ;;  %v12733_v8 = vld [vmem:[%s19129_s1 + $0x1af4] sm:$0xf0] }
 0x296   :  { %6950 = vmatpush.bf16.msra.mxu3 %v10053_v5  ;;  %v12561_v5 = vld [vmem:[%s19129_s1 + $0x1594] sm:$0xf0]  ;;  %v10869_v50 = vor.u32 %v12621_v37, %v10868_v27  ;;  %v10452_v51 = vld [vmem:[%s19129_s1 + $0x1428] sm:$0xf] }
 0x297   :  { %7010 = vmatpush.bf16.msra.mxu0 %v10773_v41  ;;  %v10629_v32 = vor.u32 %v12561_v5, %v10628_v61  ;;  %v12557_v41 = vld [vmem:[%s19129_s1 + $0x1574] sm:$0xf0]  ;;  %v10596_v54 = vld [vmem:[%s19129_s1 + $0x1548] sm:$0xf] }
 0x298   :  { %6977 = vmatmul.bf16.vlgmr.msra.gmra.mxu2 %v14024_v18  ;;  %6984 = vmatpush.bf16.msra.mxu1 %v10517_v38  ;;  %v10725_v38 = vor.u32 %v12585_v23, %v10724_v63  ;;  %v10613_v44 = vor.u32 %v12557_v41, %v10612_v34  ;;  %v12577_v61 = vld [vmem:[%s19129_s1 + $0x1614] sm:$0xf0]  ;;  %v11316_v5 = vld [vmem:[%s19129_s1 + $0x1ae8] sm:$0xf] }
 0x299   :  { %7021 = vmatpush.bf16.msrb.mxu2 %v10933_v29  ;;  %6951 = vmatmul.bf16.vlgmr.msra.gmra.mxu3 %v14022_v14  ;;  %v12880_v29 = vld [vmem:[%s19130_s2] sm:$0xf]  ;;  %v12613_v35 = vld [vmem:[%s19129_s1 + $0x1734] sm:$0xf0]  ;;  %v11060_v41 = vld [vmem:[%s19129_s1 + $0x18e8] sm:$0xf]  ;;  %v11317_v37 = vor.u32 %v12733_v8, %v11316_v5 }
 0x29a   :  { %6995 = vmatpush.bf16.msrb.mxu3 %v10677_v39  ;;  %v10485_v39 = vor.u32 %v12525_v59, %v10484_v58  ;;  %v998_v30 = vperm.slane %v12880_v29, 2  ;;  %v10692_v59 = vld [vmem:[%s19129_s1 + $0x1608] sm:$0xf]  ;;  %v12513_v29 = vld [vmem:[%s19129_s1 + $0x1414] sm:$0xf0] }
 0x29b   :  { %7011 = vmatpush.bf16.msra.mxu0 %v10757_v53  ;;  %v12517_v53 = vld [vmem:[%s19129_s1 + $0x1434] sm:$0xf0]  ;;  %v10693_v36 = vor.u32 %v12577_v61, %v10692_v59  ;;  %v10564_v55 = vld [vmem:[%s19129_s1 + $0x1508] sm:$0xf] }
 0x29c   :  { %6985 = vmatpush.bf16.msra.mxu1 %v10501_v56  ;;  %v6732_v43 = vadd.f32 %v6731_v3, %v998_v30  ;;  %v12553_v56 = vld [vmem:[%s19129_s1 + $0x1554] sm:$0xf0]  ;;  %v6744_v62 = vpop.f32.mrf.mxu3  ;;  %v10453_v3 = vor.u32 %v12517_v53, %v10452_v51  ;;  %v10580_v30 = vld [vmem:[%s19129_s1 + $0x1528] sm:$0xf] }
 0x29d   :  { %7022 = vmatpush.bf16.msrb.mxu2 %v10917_v25  ;;  %v12581_v25 = vld [vmem:[%s19129_s1 + $0x1634] sm:$0xf0]  ;;  %v10597_v63 = vor.u32 %v12553_v56, %v10596_v54  ;;  %v11044_v54 = vld [vmem:[%s19129_s1 + $0x18c8] sm:$0xf] }
 0x29e   :  { %6996 = vmatpush.bf16.msrb.mxu3 %v10661_v40  ;;  %v10708_v40 = vld [vmem:[%s19129_s1 + $0x1628] sm:$0xf]  ;;  %v6745_v10 = vadd.f32 %v6744_v62, %v6732_v43  ;;  %v12669_v27 = vld [vmem:[%s19129_s1 + $0x18f4] sm:$0xf0] }
 0x29f   :  { %7012 = vmatpush.bf16.msra.mxu0 %v10741_v31  ;;  %v10709_v58 = vor.u32 %v12581_v25, %v10708_v40  ;;  %v6770_v31 = vpop.f32.mrf.mxu2  ;;  %v11300_v40 = vld [vmem:[%s19129_s1 + $0x1ac8] sm:$0xf]  ;;  %v12729_v25 = vld [vmem:[%s19129_s1 + $0x1ad4] sm:$0xf0]  ;;  %v11061_v51 = vor.u32 %v12669_v27, %v11060_v41 }
 0x2a0   :  { %6986 = vmatpush.bf16.msra.mxu1 %v10485_v39  ;;  %v10436_v39 = vld [vmem:[%s19129_s1 + $0x1408] sm:$0xf]  ;;  %v6758_v34 = vadd.f32 %v17089_v52, %v6745_v10  ;;  %v12609_v53 = vld [vmem:[%s19129_s1 + $0x1714] sm:$0xf0] }
 0x2a1   :  { %7023 = vmatpush.bf16.msrb.mxu2 %v10901_v57  ;;  %v12617_v57 = vld [vmem:[%s19129_s1 + $0x1754] sm:$0xf0]  ;;  %v11188_v56 = vld [vmem:[%s19129_s1 + $0x19e8] sm:$0xf] }
 0x2a2   :  { %6997 = vmatpush.bf16.msrb.mxu3 %v10645_v4  ;;  %v10852_v4 = vld [vmem:[%s19129_s1 + $0x1748] sm:$0xf]  ;;  %v17203_v52 = vadd.f32 %v6770_v31, %v6758_v34  ;;  %v12665_v45 = vld [vmem:[%s19129_s1 + $0x18d4] sm:$0xf0] }
 0x2a3   :  { %7013 = vmatpush.bf16.msra.mxu0 %v10725_v38  ;;  %v10853_v23 = vor.u32 %v12617_v57, %v10852_v4  ;;  %v10437_v38 = vor.u32 %v12513_v29, %v10436_v39  ;;  %v12701_v4 = vld [vmem:[%s19129_s1 + $0x19f4] sm:$0xf0]  ;;  %v11444_v57 = vld [vmem:[%s19129_s1 + $0x1be8] sm:$0xf]  ;;  %v11045_v31 = vor.u32 %v12665_v45, %v11044_v54 }
 0x2a4   :  { %6987 = vmatpush.bf16.msra.mxu1 %v10469_v42  ;;  %v6746_v59 = vpop.f32.mrf.mxu3  ;;  %v12765_v61 = vld [vmem:[%s19129_s1 + $0x1bf4] sm:$0xf0]  ;;  %v11284_v62 = vld [vmem:[%s19129_s1 + $0x1aa8] sm:$0xf] }
 0x2a5   :  { %7024 = vmatpush.bf16.msrb.mxu2 %v10885_v33  ;;  %v10836_v33 = vld [vmem:[%s19129_s1 + $0x1728] sm:$0xf]  ;;  %v12661_v39 = vld [vmem:[%s19129_s1 + $0x18b4] sm:$0xf0]  ;;  %v11445_v29 = vor.u32 %v12765_v61, %v11444_v57 }
 0x2a6   :  { %6998 = vmatpush.bf16.msrb.mxu3 %v10629_v32  ;;  %v12549_v32 = vld [vmem:[%s19129_s1 + $0x1534] sm:$0xf0]  ;;  %v10837_v43 = vor.u32 %v12613_v35, %v10836_v33  ;;  %v11428_v33 = vld [vmem:[%s19129_s1 + $0x1bc8] sm:$0xf] }
 0x2a7   :  { %7014 = vmatpush.bf16.msra.mxu0 %v10709_v58  ;;  %v10581_v42 = vor.u32 %v12549_v32, %v10580_v30  ;;  %v11301_v58 = vor.u32 %v12729_v25, %v11300_v40  ;;  %v6772_v5 = vpop.f32.mrf.mxu2  ;;  %v11172_v30 = vld [vmem:[%s19129_s1 + $0x19c8] sm:$0xf]  ;;  %v12697_v32 = vld [vmem:[%s19129_s1 + $0x19d4] sm:$0xf0] }
 0x2a8   :  { %6988 = vmatpush.bf16.msra.mxu1 %v10453_v3  ;;  %v12725_v3 = vld [vmem:[%s19129_s1 + $0x1ab4] sm:$0xf0]  ;;  %v11268_v34 = vld [vmem:[%s19129_s1 + $0x1a88] sm:$0xf] }
 0x2a9   :  { %7025 = vmatpush.bf16.msrb.mxu2 %v10869_v50  ;;  %v10820_v50 = vld [vmem:[%s19129_s1 + $0x1708] sm:$0xf]  ;;  %v11285_v35 = vor.u32 %v12725_v3, %v11284_v62  ;;  %v12721_v41 = vld [vmem:[%s19129_s1 + $0x1a94] sm:$0xf0] }
 0x2aa   :  { %6999 = vmatpush.bf16.msrb.mxu3 %v10613_v44  ;;  %v12545_v44 = vld [vmem:[%s19129_s1 + $0x1514] sm:$0xf0]  ;;  %v10821_v10 = vor.u32 %v12609_v53, %v10820_v50  ;;  %v11140_v61 = vld [vmem:[%s19129_s1 + $0x1988] sm:$0xf] }
 0x2ab   :  { %7015 = vmatpush.bf16.msra.mxu0 %v10693_v36  ;;  %v10565_v8 = vor.u32 %v12545_v44, %v10564_v55  ;;  %v12761_v36 = vld [vmem:[%s19129_s1 + $0x1bd4] sm:$0xf0]  ;;  %v11412_v55 = vld [vmem:[%s19129_s1 + $0x1ba8] sm:$0xf]  ;;  %v11269_v44 = vor.u32 %v12721_v41, %v11268_v34  ;;  %v17293_v54 = vpop.f32.mrf.mxu0 }
 0x2ac   :  { %6989 = vmatpush.bf16.msra.mxu1 %v10437_v38  ;;  %v11012_v38 = vld [vmem:[%s19129_s1 + $0x1888] sm:$0xf]  ;;  %v12657_v40 = vld [vmem:[%s19129_s1 + $0x1894] sm:$0xf0]  ;;  %v11429_v25 = vor.u32 %v12761_v36, %v11428_v33 }
 0x2ad   :  { %7026 = vmatpush.bf16.msrb.mxu2 %v10853_v23  ;;  %v11028_v23 = vld [vmem:[%s19129_s1 + $0x18a8] sm:$0xf]  ;;  %v12757_v50 = vld [vmem:[%s19129_s1 + $0x1bb4] sm:$0xf0]  ;;  %v11013_v45 = vor.u32 %v12657_v40, %v11012_v38 }
 0x2ae   :  { %7000 = vmatpush.bf16.msrb.mxu3 %v10597_v63  ;;  %v11189_v63 = vor.u32 %v12701_v4, %v11188_v56  ;;  %7016 = vmatmul.bf16.vlgmr.msra.gmra.mxu0 %v14191_v7  ;;  %v11029_v27 = vor.u32 %v12661_v39, %v11028_v23  ;;  %v12717_v53 = vld [vmem:[%s19129_s1 + $0x1a74] sm:$0xf0]  ;;  %v10996_v4 = vld [vmem:[%s19129_s1 + $0x1868] sm:$0xf]  ;;  %v11413_v59 = vor.u32 %v12757_v50, %v11412_v55 }
 0x2af   :  { %7060 = vmatpush.bf16.msrb.mxu0 %v11317_v37  ;;  %6990 = vmatmul.bf16.vlgmr.msra.gmra.mxu1 %v14189_v6  ;;  %v11173_v37 = vor.u32 %v12697_v32, %v11172_v30  ;;  %v12653_v57 = vld [vmem:[%s19129_s1 + $0x1874] sm:$0xf0]  ;;  %v11396_v3 = vld [vmem:[%s19129_s1 + $0x1b88] sm:$0xf] }
 0x2b0   :  { %7034 = vmatpush.bf16.msrb.mxu1 %v11061_v51  ;;  %v11252_v51 = vld [vmem:[%s19129_s1 + $0x1a68] sm:$0xf]  ;;  %v12689_v62 = vld [vmem:[%s19129_s1 + $0x1994] sm:$0xf0]  ;;  %v10997_v23 = vor.u32 %v12653_v57, %v10996_v4 }
 0x2b1   :  { %7027 = vmatpush.bf16.msrb.mxu2 %v10837_v43  ;;  %v12693_v43 = vld [vmem:[%s19129_s1 + $0x19b4] sm:$0xf0]  ;;  %v11141_v39 = vor.u32 %v12689_v62, %v11140_v61  ;;  %v11124_v32 = vld [vmem:[%s19129_s1 + $0x1968] sm:$0xf] }
 0x2b2   :  { %7001 = vmatpush.bf16.msrb.mxu3 %v10581_v42  ;;  %v11156_v42 = vld [vmem:[%s19129_s1 + $0x19a8] sm:$0xf]  ;;  %v12685_v33 = vld [vmem:[%s19129_s1 + $0x1974] sm:$0xf0] }
 0x2b3   :  { %7061 = vmatpush.bf16.msrb.mxu0 %v11301_v58  ;;  %v11157_v56 = vor.u32 %v12693_v43, %v11156_v42  ;;  %v6783_v58 = vpop.f32.mrf.mxu1  ;;  %v12749_v34 = vld [vmem:[%s19129_s1 + $0x1b74] sm:$0xf0]  ;;  %v11220_v41 = vld [vmem:[%s19129_s1 + $0x1a28] sm:$0xf]  ;;  %v11125_v40 = vor.u32 %v12685_v33, %v11124_v32 }
 0x2b4   :  { %7035 = vmatpush.bf16.msrb.mxu1 %v11045_v31  ;;  %v6784_v5 = vadd.f32 %v6783_v58, %v17203_v52  ;;  %v11236_v31 = vld [vmem:[%s19129_s1 + $0x1a48] sm:$0xf]  ;;  %v12645_v42 = vld [vmem:[%s19129_s1 + $0x1834] sm:$0xf0] }
 0x2b5   :  { %7028 = vmatpush.bf16.msrb.mxu2 %v10821_v10  ;;  %v12753_v10 = vld [vmem:[%s19129_s1 + $0x1b94] sm:$0xf0]  ;;  %v10980_v52 = vld [vmem:[%s19129_s1 + $0x1848] sm:$0xf] }
 0x2b6   :  { %7002 = vmatpush.bf16.msrb.mxu3 %v10565_v8  ;;  %v11253_v8 = vor.u32 %v12717_v53, %v11252_v51  ;;  %v11397_v30 = vor.u32 %v12753_v10, %v11396_v3  ;;  %v12681_v50 = vld [vmem:[%s19129_s1 + $0x1954] sm:$0xf0]  ;;  %v11364_v51 = vld [vmem:[%s19129_s1 + $0x1b48] sm:$0xf] }
 0x2b7   :  { %7062 = vmatpush.bf16.msrb.mxu0 %v11285_v35  ;;  %v11380_v35 = vld [vmem:[%s19129_s1 + $0x1b68] sm:$0xf]  ;;  %v12705_v4 = vld [vmem:[%s19129_s1 + $0x1a14] sm:$0xf0] }
 0x2b8   :  { %7029 = vmatmul.bf16.vlgmr.msrb.gmra.mxu2 %v14195_v19  ;;  %7036 = vmatpush.bf16.msrb.mxu1 %v11029_v27  ;;  %v12709_v27 = vld [vmem:[%s19129_s1 + $0x1a34] sm:$0xf0]  ;;  %v11381_v55 = vor.u32 %v12749_v34, %v11380_v35  ;;  %v10948_v10 = vld [vmem:[%s19129_s1 + $0x1808] sm:$0xf] }
 0x2b9   :  { %7073 = vmatpush.bf16.msra.mxu2 %v11445_v29  ;;  %7003 = vmatmul.bf16.vlgmr.msrb.gmra.mxu3 %v14193_v11  ;;  %v12649_v29 = vld [vmem:[%s19129_s1 + $0x1854] sm:$0xf0]  ;;  %v11221_v53 = vor.u32 %v12709_v27, %v11220_v41  ;;  %v11572_v32 = vld [vmem:[%s19129_s1 + $0x1ce8] sm:$0xf] }
 0x2ba   :  { %7047 = vmatpush.bf16.msra.mxu3 %v11189_v63  ;;  %v12713_v63 = vld [vmem:[%s19129_s1 + $0x1a54] sm:$0xf0]  ;;  %v10981_v38 = vor.u32 %v12649_v29, %v10980_v52 }
 0x2bb   :  { %7063 = vmatpush.bf16.msrb.mxu0 %v11269_v44  ;;  %v11237_v36 = vor.u32 %v12713_v63, %v11236_v31  ;;  %v6785_v43 = vpop.f32.mrf.mxu1  ;;  %v11108_v44 = vld [vmem:[%s19129_s1 + $0x1948] sm:$0xf]  ;;  %v6822_v58 = vpop.f32.mrf.mxu2  ;;  %v12837_v61 = vld [vmem:[%s19129_s1 + $0x1e34] sm:$0xf0] }
 0x2bc   :  { %7037 = vmatpush.bf16.msrb.mxu1 %v11013_v45  ;;  %v12745_v45 = vld [vmem:[%s19129_s1 + $0x1b54] sm:$0xf0]  ;;  %v6796_v57 = vpop.f32.mrf.mxu3 }
 0x2bd   :  { %7074 = vmatpush.bf16.msra.mxu2 %v11429_v25  ;;  %v10964_v25 = vld [vmem:[%s19129_s1 + $0x1828] sm:$0xf]  ;;  %v6797_v62 = vadd.f32 %v6796_v57, %v6784_v5  ;;  %v12641_v31 = vld [vmem:[%s19129_s1 + $0x1814] sm:$0xf0]  ;;  %v11365_v63 = vor.u32 %v12745_v45, %v11364_v51  ;;  %v7990_v57 = vld [vmem:[%s19129_s1 + $0xf8] sm:$0xf0] }
 0x2be   :  { %7048 = vmatpush.bf16.msra.mxu3 %v11173_v37  ;;  %v6811_v37 = vpop.f32.mrf.mxu0  ;;  %v10965_v3 = vor.u32 %v12645_v42, %v10964_v25  ;;  %v12677_v5 = vld [vmem:[%s19129_s1 + $0x1934] sm:$0xf0]  ;;  %v10949_v41 = vor.u32 %v12641_v31, %v10948_v10  ;;  %v11927_v10 = vld [vmem:[%s19129_s1 + $0x1cc] sm:$0xf]  ;;  %v8102_v31 = vld [vmem:[%s19129_s1 + $0x1d8] sm:$0xf0] }
 0x2bf   :  { %7064 = vmatpush.bf16.msrb.mxu0 %v11253_v8  ;;  %v11109_v8 = vor.u32 %v12681_v50, %v11108_v44  ;;  %v6810_v29 = vadd.f32 %v17293_v54, %v6797_v62  ;;  %v12797_v33 = vld [vmem:[%s19129_s1 + $0x1cf4] sm:$0xf0]  ;;  %v11076_v37 = vld [vmem:[%s19129_s1 + $0x1908] sm:$0xf]  ;;  %v8118_v44 = vld [vmem:[%s19129_s1 + $0x1f8] sm:$0xf0] }
 0x2c0   :  { %7038 = vmatpush.bf16.msrb.mxu1 %v10997_v23  ;;  %v11092_v23 = vld [vmem:[%s19129_s1 + $0x1928] sm:$0xf]  ;;  %v12833_v54 = vld [vmem:[%s19129_s1 + $0x1e14] sm:$0xf0]  ;;  %v11573_v42 = vor.u32 %v12797_v33, %v11572_v32  ;;  %v11895_v33 = vld [vmem:[%s19129_s1 + $0xcc] sm:$0xf] }
 0x2c1   :  { %7075 = vmatpush.bf16.msra.mxu2 %v11413_v59  ;;  %v11732_v59 = vld [vmem:[%s19129_s1 + $0x1e28] sm:$0xf]  ;;  %v17405_v34 = vadd.f32 %v6822_v58, %v6810_v29  ;;  %v11093_v27 = vor.u32 %v12677_v5, %v11092_v23  ;;  %v12737_v43 = vld [vmem:[%s19129_s1 + $0x1b14] sm:$0xf0]  ;;  %v12881_v29 = vld [vmem:[#allocation1] sm:$0xff] }
 0x2c2   :  { %7049 = vmatpush.bf16.msra.mxu3 %v11157_v56  ;;  %v11204_v56 = vld [vmem:[%s19129_s1 + $0x1a08] sm:$0xf]  ;;  %v11733_v35 = vor.u32 %v12837_v61, %v11732_v59  ;;  %v12793_v51 = vld [vmem:[%s19129_s1 + $0x1cd4] sm:$0xf0] }
 0x2c3   :  { %7065 = vmatpush.bf16.msrb.mxu0 %v11237_v36  ;;  %v11205_v52 = vor.u32 %v12705_v4, %v11204_v56  ;;  %v11716_v36 = vld [vmem:[%s19129_s1 + $0x1e08] sm:$0xf]  ;;  %v12829_v56 = vld [vmem:[%s19129_s1 + $0x1df4] sm:$0xf0]  ;;  %v11899_v4 = vld [vmem:[%s19129_s1 + $0xec] sm:$0xf]  ;;  %v6824_v59 = vpop.f32.mrf.mxu2 }
 0x2c4   :  { %7039 = vmatpush.bf16.msrb.mxu1 %v10981_v38  ;;  %v12673_v38 = vld [vmem:[%s19129_s1 + $0x1914] sm:$0xf0]  ;;  %v11556_v50 = vld [vmem:[%s19129_s1 + $0x1cc8] sm:$0xf]  ;;  %v11717_v45 = vor.u32 %v12833_v54, %v11716_v36  ;;  %v6798_v58 = vpop.f32.mrf.mxu3  ;;  %v7993_v23 = vor.u32 %v11899_v4, %v7990_v57  ;;  %v8105_v36 = vor.u32 %v11927_v10, %v8102_v31  ;;  %v8070_v4 = vld [vmem:[%s19129_s1 + $0x198] sm:$0xf0] }
 0x2c5   :  { %7076 = vmatpush.bf16.msra.mxu2 %v11397_v30  ;;  %v12741_v30 = vld [vmem:[%s19129_s1 + $0x1b34] sm:$0xf0]  ;;  %v11077_v61 = vor.u32 %v12673_v38, %v11076_v37  ;;  %v11540_v5 = vld [vmem:[%s19129_s1 + $0x1ca8] sm:$0xf] }
 0x2c6   :  { %7050 = vmatpush.bf16.msra.mxu3 %v11141_v39  ;;  %v11348_v39 = vld [vmem:[%s19129_s1 + $0x1b28] sm:$0xf]  ;;  %v12825_v32 = vld [vmem:[%s19129_s1 + $0x1dd4] sm:$0xf0] }
 0x2c7   :  { %7066 = vmatpush.bf16.msrb.mxu0 %v11221_v53  ;;  %v11349_v25 = vor.u32 %v12741_v30, %v11348_v39  ;;  %v11700_v53 = vld [vmem:[%s19129_s1 + $0x1de8] sm:$0xf]  ;;  %v12789_v39 = vld [vmem:[%s19129_s1 + $0x1cb4] sm:$0xf0] }
 0x2c8   :  { %7040 = vmatpush.bf16.msrb.mxu1 %v10965_v3  ;;  %v12882_v30 = vld [vmem:[#allocation1 + $0x12] sm:$0xff]  ;;  %v11541_v54 = vor.u32 %v12789_v39, %v11540_v5 }
 0x2c9   :  { %7077 = vmatpush.bf16.msra.mxu2 %v11381_v55  ;;  %v11931_v55 = vld [vmem:[%s19129_s1 + $0x1ec] sm:$0xf]  ;;  %v12817_v31 = vld [vmem:[%s19129_s1 + $0x1d94] sm:$0xf0] }
 0x2ca   :  { %7051 = vmatpush.bf16.msra.mxu3 %v11125_v40  ;;  %v11332_v40 = vld [vmem:[%s19129_s1 + $0x1b08] sm:$0xf]  ;;  %v8121_v62 = vor.u32 %v11931_v55, %v8118_v44  ;;  %v12821_v55 = vld [vmem:[%s19129_s1 + $0x1db4] sm:$0xf0]  ;;  %v11891_v44 = vld [vmem:[%s19129_s1 + $0xac] sm:$0xf] }
 0x2cb   :  { %7067 = vmatpush.bf16.msrb.mxu0 %v11205_v52  ;;  %v11333_v3 = vor.u32 %v12737_v43, %v11332_v40  ;;  %v11684_v52 = vld [vmem:[%s19129_s1 + $0x1dc8] sm:$0xf] }
 0x2cc   :  { %7041 = vmatpush.bf16.msrb.mxu1 %v10949_v41  ;;  %v11923_v41 = vld [vmem:[%s19129_s1 + $0x1ac] sm:$0xf]  ;;  %v11685_v37 = vor.u32 %v12825_v32, %v11684_v52  ;;  %v11524_v40 = vld [vmem:[%s19129_s1 + $0x1c88] sm:$0xf]  ;;  %v6835_v57 = vpop.f32.mrf.mxu1  ;;  %v8054_v52 = vld [vmem:[%s19129_s1 + $0x178] sm:$0xf0] }
 0x2cd   :  { %7078 = vmatpush.bf16.msra.mxu2 %v11365_v63  ;;  %v11701_v63 = vor.u32 %v12829_v56, %v11700_v53  ;;  %v12883_v43 = vld [vmem:[#allocation1 + $0x9] sm:$0xff]  ;;  %v6836_v10 = vadd.f32 %v6835_v57, %v17405_v34 }
 0x2ce   :  { %7052 = vmatpush.bf16.msra.mxu3 %v11109_v8  ;;  %v11557_v8 = vor.u32 %v12793_v51, %v11556_v50  ;;  %7068 = vmatmul.bf16.vlgmr.msrb.gmra.mxu0 %v12882_v30  ;;  %v7958_v50 = vld [vmem:[%s19129_s1 + $0xb8] sm:$0xf0]  ;;  %v11919_v56 = vld [vmem:[%s19129_s1 + $0x18c] sm:$0xf]  ;;  %v11492_v32 = vld [vmem:[%s19129_s1 + $0x1c48] sm:$0xf] }
 0x2cf   :  { %7118 = vmatpush.bf16.msra.mxu0 %v11733_v35  ;;  %7042 = vmatmul.bf16.vlgmr.msrb.gmra.mxu1 %v12881_v29  ;;  %v7974_v35 = vld [vmem:[%s19129_s1 + $0xd8] sm:$0xf0]  ;;  %v7961_v59 = vor.u32 %v11891_v44, %v7958_v50  ;;  %v8073_v5 = vor.u32 %v11919_v56, %v8070_v4  ;;  %v11915_v34 = vld [vmem:[%s19129_s1 + $0x16c] sm:$0xf]  ;;  %v11620_v44 = vld [vmem:[%s19129_s1 + $0x1d48] sm:$0xf] }
 0x2d0   :  { %7086 = vmatpush.bf16.msra.mxu1 %v11573_v42  ;;  %v7977_v38 = vor.u32 %v11895_v33, %v7974_v35  ;;  %v11668_v42 = vld [vmem:[%s19129_s1 + $0x1da8] sm:$0xf]  ;;  %v12884_v51 = vld [vmem:[#allocation1 + $0x1b] sm:$0xff] }
 0x2d1   :  { %7079 = vmatpush.bf16.msra.mxu2 %v11349_v25  ;;  %v12785_v25 = vld [vmem:[%s19129_s1 + $0x1c94] sm:$0xf0]  ;;  %v11669_v58 = vor.u32 %v12821_v55, %v11668_v42  ;;  %v11636_v35 = vld [vmem:[%s19129_s1 + $0x1d68] sm:$0xf]  ;;  %v7910_v56 = vld [vmem:[%s19129_s1 + $0x58] sm:$0xf0] }
 0x2d2   :  { %7053 = vmatpush.bf16.msra.mxu3 %v11093_v27  ;;  %v8086_v27 = vld [vmem:[%s19129_s1 + $0x1b8] sm:$0xf0]  ;;  %v12777_v33 = vld [vmem:[%s19129_s1 + $0x1c54] sm:$0xf0] }
 0x2d3   :  { %7119 = vmatpush.bf16.msra.mxu0 %v11717_v45  ;;  %v8089_v53 = vor.u32 %v11923_v41, %v8086_v27  ;;  %v11525_v45 = vor.u32 %v12785_v25, %v11524_v40  ;;  %v7926_v41 = vld [vmem:[%s19129_s1 + $0x78] sm:$0xf0]  ;;  %v8057_v27 = vor.u32 %v11915_v34, %v8054_v52  ;;  %v12773_v55 = vld [vmem:[%s19129_s1 + $0x1c34] sm:$0xf0] }
 0x2d4   :  { %7087 = vmatpush.bf16.msra.mxu1 %v11557_v8  ;;  %v6861_v8 = vpop.f32.mrf.mxu0  ;;  %v8038_v40 = vld [vmem:[%s19129_s1 + $0x158] sm:$0xf0]  ;;  %v6837_v50 = vpop.f32.mrf.mxu1  ;;  %v12805_v52 = vld [vmem:[%s19129_s1 + $0x1d34] sm:$0xf0] }
 0x2d5   :  { %7080 = vmatpush.bf16.msra.mxu2 %v11333_v3  ;;  %v11652_v3 = vld [vmem:[%s19129_s1 + $0x1d88] sm:$0xf]  ;;  %v12885_v4 = vld [vmem:[#allocation1 + $0x36] sm:$0xff]  ;;  %v11959_v50 = vld [vmem:[%s19129_s1 + $0x2cc] sm:$0xf] }
 0x2d6   :  { %7054 = vmatpush.bf16.msra.mxu3 %v11077_v61  ;;  %v11508_v61 = vld [vmem:[%s19129_s1 + $0x1c68] sm:$0xf]  ;;  %v11653_v29 = vor.u32 %v12817_v31, %v11652_v3  ;;  %v11907_v3 = vld [vmem:[%s19129_s1 + $0x12c] sm:$0xf]  ;;  %v8022_v31 = vld [vmem:[%s19129_s1 + $0x138] sm:$0xf0] }
 0x2d7   :  { %7138 = vmatpush.bf16.msrb.mxu0 %v8121_v62  ;;  %v12781_v62 = vld [vmem:[%s19129_s1 + $0x1c74] sm:$0xf0] }
 0x2d8   :  { %7081 = vmatmul.bf16.vlgmr.msra.gmra.mxu2 %v12884_v51  ;;  %7088 = vmatpush.bf16.msra.mxu1 %v11541_v54  ;;  %v11509_v39 = vor.u32 %v12781_v62, %v11508_v61  ;;  %v11883_v54 = vld [vmem:[%s19129_s1 + $0x6c] sm:$0xf] }
 0x2d9   :  { %7125 = vmatpush.bf16.msrb.mxu2 %v7993_v23  ;;  %7055 = vmatmul.bf16.vlgmr.msra.gmra.mxu3 %v12883_v43  ;;  %v7942_v23 = vld [vmem:[%s19129_s1 + $0x98] sm:$0xf0]  ;;  %v7929_v42 = vor.u32 %v11883_v54, %v7926_v41  ;;  %v11476_v43 = vld [vmem:[%s19129_s1 + $0x1c28] sm:$0xf]  ;;  %v11903_v41 = vld [vmem:[%s19129_s1 + $0x10c] sm:$0xf] }
 0x2da   :  { %7099 = vmatpush.bf16.msrb.mxu3 %v11701_v63  ;;  %v11887_v63 = vld [vmem:[%s19129_s1 + $0x8c] sm:$0xf]  ;;  %v11477_v61 = vor.u32 %v12773_v55, %v11476_v43  ;;  %v11588_v54 = vld [vmem:[%s19129_s1 + $0x1d08] sm:$0xf] }
 0x2db   :  { %7139 = vmatpush.bf16.msrb.mxu0 %v8105_v36  ;;  %v7945_v30 = vor.u32 %v11887_v63, %v7942_v23  ;;  %v12813_v36 = vld [vmem:[%s19129_s1 + $0x1d74] sm:$0xf0]  ;;  %v6874_v62 = vpop.f32.mrf.mxu2  ;;  %v11871_v55 = vld [vmem:[%s19129_s1 + $0xc] sm:$0xf] }
 0x2dc   :  { %7089 = vmatpush.bf16.msra.mxu1 %v11525_v45  ;;  %v11637_v25 = vor.u32 %v12813_v36, %v11636_v35  ;;  %v6863_v51 = vpop.f32.mrf.mxu0  ;;  %v11879_v45 = vld [vmem:[%s19129_s1 + $0x4c] sm:$0xf]  ;;  %v6848_v57 = vpop.f32.mrf.mxu3 }
 0x2dd   :  { %7126 = vmatpush.bf16.msrb.mxu2 %v7977_v38  ;;  %v11911_v38 = vld [vmem:[%s19129_s1 + $0x14c] sm:$0xf]  ;;  %v7913_v23 = vor.u32 %v11879_v45, %v7910_v56  ;;  %v8230_v51 = vld [vmem:[%s19129_s1 + $0x2d8] sm:$0xf0] }
 0x2de   :  { %7100 = vmatpush.bf16.msrb.mxu3 %v11685_v37  ;;  %v11493_v37 = vor.u32 %v12777_v33, %v11492_v32  ;;  %11740 = vmatmul.msk.bf16.vlgmr.msra.gmra.mxu0 %vm5913_vm0, %v12885_v4  ;;  %v11963_v32 = vld [vmem:[%s19129_s1 + $0x2ec] sm:$0xf]  ;;  %v8025_v33 = vor.u32 %v11907_v3, %v8022_v31  ;;  %v8374_v45 = vld [vmem:[%s19129_s1 + $0x3f8] sm:$0xf0] }
 0x2df   :  { %7140 = vmatpush.bf16.msrb.mxu0 %v8089_v53  ;;  %v12809_v53 = vld [vmem:[%s19129_s1 + $0x1d54] sm:$0xf0]  ;;  %v12055_v31 = vld [vmem:[%s19129_s1 + $0x5cc] sm:$0xf] }
 0x2e0   :  { %7090 = vmatpush.bf16.msra.mxu1 %v11509_v39  ;;  %v11621_v63 = vor.u32 %v12809_v53, %v11620_v44  ;;  %v11604_v39 = vld [vmem:[%s19129_s1 + $0x1d28] sm:$0xf]  ;;  %v7878_v44 = vld [vmem:[%s19129_s1 + $0x18] sm:$0xf0]  ;;  %v11995_v53 = vld [vmem:[%s19129_s1 + $0x3ec] sm:$0xf] }
 0x2e1   :  { %7127 = vmatpush.bf16.msrb.mxu2 %v7961_v59  ;;  %v6849_v59 = vadd.f32 %v6848_v57, %v6836_v10  ;;  %v12769_v10 = vld [vmem:[%s19129_s1 + $0x1c14] sm:$0xf0]  ;;  %v12027_v57 = vld [vmem:[%s19129_s1 + $0x4ec] sm:$0xf]  ;;  %v7881_v3 = vor.u32 %v11871_v55, %v7878_v44  ;;  %v8470_v44 = vld [vmem:[%s19129_s1 + $0x4b8] sm:$0xf0] }
 0x2e2   :  { %7101 = vmatpush.bf16.msrb.mxu3 %v11669_v58  ;;  %v8041_v58 = vor.u32 %v11911_v38, %v8038_v40  ;;  %v12801_v40 = vld [vmem:[%s19129_s1 + $0x1d14] sm:$0xf0]  ;;  %v12019_v55 = vld [vmem:[%s19129_s1 + $0x4ac] sm:$0xf] }
 0x2e3   :  { %7141 = vmatpush.bf16.msrb.mxu0 %v8073_v5  ;;  %v11460_v5 = vld [vmem:[%s19129_s1 + $0x1c08] sm:$0xf]  ;;  %v6862_v34 = vadd.f32 %v6861_v8, %v6849_v59  ;;  %v8246_v8 = vld [vmem:[%s19129_s1 + $0x2f8] sm:$0xf0] }
 0x2e4   :  { %7091 = vmatpush.bf16.msra.mxu1 %v11493_v37  ;;  %v11461_v36 = vor.u32 %v12769_v10, %v11460_v5  ;;  %v11605_v37 = vor.u32 %v12805_v52, %v11604_v39  ;;  %v8249_v43 = vor.u32 %v11963_v32, %v8246_v8  ;;  %v6850_v4 = vpop.f32.mrf.mxu3  ;;  %v8377_v5 = vor.u32 %v11995_v53, %v8374_v45  ;;  %v11955_v10 = vld [vmem:[%s19129_s1 + $0x2ac] sm:$0xf]  ;;  %v12886_v39 = vld [vmem:[#allocation1 + $0x24] sm:$0xff]  ;;  %v8214_v52 = vld [vmem:[%s19129_s1 + $0x2b8] sm:$0xf0] }
 0x2e5   :  { %7128 = vmatpush.bf16.msrb.mxu2 %v7945_v30  ;;  %v7894_v30 = vld [vmem:[%s19129_s1 + $0x38] sm:$0xf0]  ;;  %v17595_v35 = vadd.f32 %v6874_v62, %v6862_v34  ;;  %v11589_v62 = vor.u32 %v12801_v40, %v11588_v54  ;;  %v12023_v32 = vld [vmem:[%s19129_s1 + $0x4cc] sm:$0xf] }
 0x2e6   :  { %7102 = vmatpush.bf16.msrb.mxu3 %v11653_v29  ;;  %v11875_v29 = vld [vmem:[%s19129_s1 + $0x2c] sm:$0xf]  ;;  %v8486_v8 = vld [vmem:[%s19129_s1 + $0x4d8] sm:$0xf0] }
 0x2e7   :  { %7142 = vmatpush.bf16.msrb.mxu0 %v8057_v27  ;;  %v8006_v27 = vld [vmem:[%s19129_s1 + $0x118] sm:$0xf0]  ;;  %v7897_v38 = vor.u32 %v11875_v29, %v7894_v30  ;;  %v11991_v29 = vld [vmem:[%s19129_s1 + $0x3cc] sm:$0xf] }
 0x2e8   :  { %7092 = vmatpush.bf16.msra.mxu1 %v11477_v61  ;;  %v8009_v56 = vor.u32 %v11903_v41, %v8006_v27  ;;  %v6876_v61 = vpop.f32.mrf.mxu2  ;;  %v8358_v30 = vld [vmem:[%s19129_s1 + $0x3d8] sm:$0xf0]  ;;  %v8217_v41 = vor.u32 %v11955_v10, %v8214_v52 }
 0x2e9   :  { %7129 = vmatpush.bf16.msrb.mxu2 %v7929_v42  ;;  %v8630_v42 = vld [vmem:[%s19129_s1 + $0x5f8] sm:$0xf0]  ;;  %v8361_v27 = vor.u32 %v11991_v29, %v8358_v30  ;;  %v11979_v29 = vld [vmem:[%s19129_s1 + $0x36c] sm:$0xf] }
 0x2ea   :  { %7103 = vmatpush.bf16.msrb.mxu3 %v11637_v25  ;;  %v12059_v25 = vld [vmem:[%s19129_s1 + $0x5ec] sm:$0xf]  ;;  %v8598_v54 = vld [vmem:[%s19129_s1 + $0x5b8] sm:$0xf0] }
 0x2eb   :  { %7143 = vmatpush.bf16.msrb.mxu0 %v8041_v58  ;;  %v8502_v58 = vld [vmem:[%s19129_s1 + $0x4f8] sm:$0xf0]  ;;  %v8633_v59 = vor.u32 %v12059_v25, %v8630_v42  ;;  %v11987_v25 = vld [vmem:[%s19129_s1 + $0x3ac] sm:$0xf]  ;;  %v17694_v53 = vpop.f32.mrf.mxu0 }
 0x2ec   :  { %7093 = vmatpush.bf16.msra.mxu1 %v11461_v36  ;;  %v8505_v34 = vor.u32 %v12027_v57, %v8502_v58  ;;  %v12051_v36 = vld [vmem:[%s19129_s1 + $0x5ac] sm:$0xf]  ;;  %v8198_v40 = vld [vmem:[%s19129_s1 + $0x298] sm:$0xf0]  ;;  %v6887_v45 = vpop.f32.mrf.mxu1 }
 0x2ed   :  { %7130 = vmatpush.bf16.msrb.mxu2 %v7913_v23  ;;  %v8233_v23 = vor.u32 %v11959_v50, %v8230_v51  ;;  %v8342_v42 = vld [vmem:[%s19129_s1 + $0x3b8] sm:$0xf0]  ;;  %v8601_v50 = vor.u32 %v12051_v36, %v8598_v54  ;;  %v12047_v51 = vld [vmem:[%s19129_s1 + $0x58c] sm:$0xf]  ;;  %v6888_v58 = vadd.f32 %v6887_v45, %v17595_v35 }
 0x2ee   :  { %7104 = vmatpush.bf16.msrb.mxu3 %v11621_v63  ;;  %v8614_v63 = vld [vmem:[%s19129_s1 + $0x5d8] sm:$0xf0]  ;;  %v8345_v4 = vor.u32 %v11987_v25, %v8342_v42  ;;  %v11947_v57 = vld [vmem:[%s19129_s1 + $0x26c] sm:$0xf] }
 0x2ef   :  { %7144 = vmatpush.bf16.msrb.mxu0 %v8025_v33  ;;  %7094 = vmatmul.bf16.vlgmr.msra.gmra.mxu1 %v12886_v39  ;;  %v8617_v33 = vor.u32 %v12055_v31, %v8614_v63  ;;  %v8182_v61 = vld [vmem:[%s19129_s1 + $0x278] sm:$0xf0]  ;;  %v12043_v63 = vld [vmem:[%s19129_s1 + $0x56c] sm:$0xf] }
 0x2f0   :  { %7151 = vmatpush.bf16.msrb.mxu1 %v8249_v43  ;;  %v12887_v43 = vld [vmem:[#allocation1 + $0x2d] sm:$0xff]  ;;  %v8454_v35 = vld [vmem:[%s19129_s1 + $0x498] sm:$0xf0] }
 0x2f1   :  { %7131 = vmatpush.bf16.msrb.mxu2 %v7897_v38  ;;  %v8489_v38 = vor.u32 %v12023_v32, %v8486_v8  ;;  %v11943_v39 = vld [vmem:[%s19129_s1 + $0x24c] sm:$0xf]  ;;  %v8166_v52 = vld [vmem:[%s19129_s1 + $0x258] sm:$0xf0] }
 0x2f2   :  { %7105 = vmatpush.bf16.msrb.mxu3 %v11605_v37  ;;  %v11951_v37 = vld [vmem:[%s19129_s1 + $0x28c] sm:$0xf]  ;;  %v8310_v30 = vld [vmem:[%s19129_s1 + $0x378] sm:$0xf0] }
 0x2f3   :  { %7145 = vmatpush.bf16.msrb.mxu0 %v8009_v56  ;;  %v8201_v56 = vor.u32 %v11951_v37, %v8198_v40  ;;  %v12011_v32 = vld [vmem:[%s19129_s1 + $0x46c] sm:$0xf]  ;;  %v8438_v8 = vld [vmem:[%s19129_s1 + $0x478] sm:$0xf0]  ;;  %v8313_v37 = vor.u32 %v11979_v29, %v8310_v30 }
 0x2f4   :  { %7152 = vmatpush.bf16.msrb.mxu1 %v8233_v23  ;;  %v8566_v23 = vld [vmem:[%s19129_s1 + $0x578] sm:$0xf0]  ;;  %v12039_v36 = vld [vmem:[%s19129_s1 + $0x54c] sm:$0xf]  ;;  %v6889_v40 = vpop.f32.mrf.mxu1  ;;  %v8441_v25 = vor.u32 %v12011_v32, %v8438_v8 }
 0x2f5   :  { %7132 = vmatpush.bf16.msrb.mxu2 %v7881_v3  ;;  %v12015_v3 = vld [vmem:[%s19129_s1 + $0x48c] sm:$0xf]  ;;  %v8550_v54 = vld [vmem:[%s19129_s1 + $0x558] sm:$0xf0] }
 0x2f6   :  { %7106 = vmatpush.bf16.msrb.mxu3 %v11589_v62  ;;  %7146 = vmatmul.bf16.vlgmr.msrb.gmra.mxu0 %v13269_v26  ;;  %v8582_v26 = vld [vmem:[%s19129_s1 + $0x598] sm:$0xf0]  ;;  %v11967_v32 = vld [vmem:[%s19129_s1 + $0x30c] sm:$0xf] }
 0x2f7   :  { %7190 = vmatpush.bf16.msra.mxu0 %v8633_v59  ;;  %v8473_v59 = vor.u32 %v12019_v55, %v8470_v44  ;;  %v8326_v62 = vld [vmem:[%s19129_s1 + $0x398] sm:$0xf0]  ;;  %v8585_v31 = vor.u32 %v12047_v51, %v8582_v26  ;;  %v12007_v44 = vld [vmem:[%s19129_s1 + $0x44c] sm:$0xf]  ;;  %v8553_v51 = vor.u32 %v12039_v36, %v8550_v54 }
 0x2f8   :  { %7133 = vmatmul.bf16.vlgmr.msrb.gmra.mxu2 %v13258_v21  ;;  %7153 = vmatpush.bf16.msrb.mxu1 %v8217_v41  ;;  %v11983_v21 = vld [vmem:[%s19129_s1 + $0x38c] sm:$0xf]  ;;  %v6915_v41 = vpop.f32.mrf.mxu0  ;;  %v8150_v42 = vld [vmem:[%s19129_s1 + $0x238] sm:$0xf0] }
 0x2f9   :  { %7177 = vmatpush.bf16.msra.mxu2 %v8505_v34  ;;  %7107 = vmatmul.bf16.vlgmr.msrb.gmra.mxu3 %v12887_v43  ;;  %v8329_v10 = vor.u32 %v11983_v21, %v8326_v62  ;;  %v8457_v34 = vor.u32 %v12015_v3, %v8454_v35  ;;  %v11975_v43 = vld [vmem:[%s19129_s1 + $0x34c] sm:$0xf]  ;;  %v8294_v55 = vld [vmem:[%s19129_s1 + $0x358] sm:$0xf0] }
 0x2fa   :  { %7164 = vmatpush.bf16.msra.mxu3 %v8377_v5  ;;  %v8185_v5 = vor.u32 %v11947_v57, %v8182_v61  ;;  %v8297_v61 = vor.u32 %v11975_v43, %v8294_v55  ;;  %v11935_v21 = vld [vmem:[%s19129_s1 + $0x20c] sm:$0xf]  ;;  %v8134_v62 = vld [vmem:[%s19129_s1 + $0x218] sm:$0xf0] }
 0x2fb   :  { %7191 = vmatpush.bf16.msra.mxu0 %v8617_v33  ;;  %v8569_v33 = vor.u32 %v12043_v63, %v8566_v23  ;;  %v6926_v45 = vpop.f32.mrf.mxu2  ;;  %v11971_v35 = vld [vmem:[%s19129_s1 + $0x32c] sm:$0xf]  ;;  %v8406_v23 = vld [vmem:[%s19129_s1 + $0x438] sm:$0xf0]  ;;  %v8137_v29 = vor.u32 %v11935_v21, %v8134_v62 }
 0x2fc   :  { %7154 = vmatpush.bf16.msrb.mxu1 %v8201_v56  ;;  %v6900_v26 = vpop.f32.mrf.mxu3  ;;  %v12035_v56 = vld [vmem:[%s19129_s1 + $0x52c] sm:$0xf]  ;;  %v8262_v41 = vld [vmem:[%s19129_s1 + $0x318] sm:$0xf0] }
 0x2fd   :  { %7178 = vmatpush.bf16.msra.mxu2 %v8489_v38  ;;  %v11939_v38 = vld [vmem:[%s19129_s1 + $0x22c] sm:$0xf]  ;;  %v6901_v57 = vadd.f32 %v6900_v26, %v6888_v58  ;;  %v8278_v58 = vld [vmem:[%s19129_s1 + $0x338] sm:$0xf0] }
 0x2fe   :  { %7165 = vmatpush.bf16.msra.mxu3 %v8361_v27  ;;  %v8169_v27 = vor.u32 %v11943_v39, %v8166_v52  ;;  %v8281_v30 = vor.u32 %v11971_v35, %v8278_v58  ;;  %v12187_v8 = vld [vmem:[%s19129_s1 + $0x9ec] sm:$0xf]  ;;  %v8742_v40 = vld [vmem:[%s19129_s1 + $0x6d8] sm:$0xf0] }
 0x2ff   :  { %7192 = vmatpush.bf16.msra.mxu0 %v8601_v50  ;;  %v8422_v50 = vld [vmem:[%s19129_s1 + $0x458] sm:$0xf0]  ;;  %v6914_v63 = vadd.f32 %v17694_v53, %v6901_v57  ;;  %v12155_v55 = vld [vmem:[%s19129_s1 + $0x8ec] sm:$0xf] }
 0x300   :  { %7155 = vmatpush.bf16.msrb.mxu1 %v8185_v5  ;;  %v8425_v3 = vor.u32 %v12007_v44, %v8422_v50  ;;  %v12091_v5 = vld [vmem:[%s19129_s1 + $0x6ec] sm:$0xf]  ;;  %v8518_v53 = vld [vmem:[%s19129_s1 + $0x518] sm:$0xf0] }
 0x301   :  { %7179 = vmatpush.bf16.msra.mxu2 %v8473_v59  ;;  %v8153_v59 = vor.u32 %v11939_v38, %v8150_v42  ;;  %v17801_v52 = vadd.f32 %v6926_v45, %v6914_v63  ;;  %v12087_v38 = vld [vmem:[%s19129_s1 + $0x6cc] sm:$0xf]  ;;  %v8886_v43 = vld [vmem:[%s19129_s1 + $0x7f8] sm:$0xf0]  ;;  %v8265_v45 = vor.u32 %v11967_v32, %v8262_v41 }
 0x302   :  { %7166 = vmatpush.bf16.msra.mxu3 %v8345_v4  ;;  %v8534_v4 = vld [vmem:[%s19129_s1 + $0x538] sm:$0xf0]  ;;  %v12083_v62 = vld [vmem:[%s19129_s1 + $0x6ac] sm:$0xf] }
 0x303   :  { %7193 = vmatpush.bf16.msra.mxu0 %v8585_v31  ;;  %v12003_v31 = vld [vmem:[%s19129_s1 + $0x42c] sm:$0xf]  ;;  %v8537_v39 = vor.u32 %v12035_v56, %v8534_v4  ;;  %v9014_v44 = vld [vmem:[%s19129_s1 + $0x8f8] sm:$0xf0]  ;;  %v6928_v26 = vpop.f32.mrf.mxu2 }
 0x304   :  { %7156 = vmatpush.bf16.msrb.mxu1 %v8169_v27  ;;  %v8409_v36 = vor.u32 %v12003_v31, %v8406_v23  ;;  %v11999_v27 = vld [vmem:[%s19129_s1 + $0x40c] sm:$0xf]  ;;  %v9126_v4 = vld [vmem:[%s19129_s1 + $0x9d8] sm:$0xf0]  ;;  %v9017_v21 = vor.u32 %v12155_v55, %v9014_v44 }
 0x305   :  { %7180 = vmatpush.bf16.msra.mxu2 %v8457_v34  ;;  %v12031_v34 = vld [vmem:[%s19129_s1 + $0x50c] sm:$0xf]  ;;  %v8870_v58 = vld [vmem:[%s19129_s1 + $0x7d8] sm:$0xf0] }
 0x306   :  { %7167 = vmatpush.bf16.msra.mxu3 %v8329_v10  ;;  %v8758_v10 = vld [vmem:[%s19129_s1 + $0x6f8] sm:$0xf0]  ;;  %v8521_v42 = vor.u32 %v12031_v34, %v8518_v53  ;;  %v12183_v56 = vld [vmem:[%s19129_s1 + $0x9cc] sm:$0xf] }
 0x307   :  { %7194 = vmatpush.bf16.msra.mxu0 %v8569_v33  ;;  %v9142_v33 = vld [vmem:[%s19129_s1 + $0x9f8] sm:$0xf0]  ;;  %v8761_v54 = vor.u32 %v12091_v5, %v8758_v10  ;;  %v12119_v35 = vld [vmem:[%s19129_s1 + $0x7cc] sm:$0xf]  ;;  %v9129_v23 = vor.u32 %v12183_v56, %v9126_v4 }
 0x308   :  { %7157 = vmatpush.bf16.msrb.mxu1 %v8153_v59  ;;  %v9145_v50 = vor.u32 %v12187_v8, %v9142_v33  ;;  %v8745_v59 = vor.u32 %v12087_v38, %v8742_v40  ;;  %v12151_v31 = vld [vmem:[%s19129_s1 + $0x8cc] sm:$0xf]  ;;  %v8998_v63 = vld [vmem:[%s19129_s1 + $0x8d8] sm:$0xf0]  ;;  %v8873_v34 = vor.u32 %v12119_v35, %v8870_v58 }
 0x309   :  { %7181 = vmatpush.bf16.msra.mxu2 %v8441_v25  ;;  %v12123_v25 = vld [vmem:[%s19129_s1 + $0x7ec] sm:$0xf]  ;;  %v9110_v10 = vld [vmem:[%s19129_s1 + $0x9b8] sm:$0xf0]  ;;  %v9001_v53 = vor.u32 %v12151_v31, %v8998_v63 }
 0x30a   :  { %7168 = vmatpush.bf16.msra.mxu3 %v8313_v37  ;;  %v8390_v37 = vld [vmem:[%s19129_s1 + $0x418] sm:$0xf0]  ;;  %v12179_v5 = vld [vmem:[%s19129_s1 + $0x9ac] sm:$0xf] }
 0x30b   :  { %7195 = vmatpush.bf16.msra.mxu0 %v8553_v51  ;;  %v6902_v51 = vpop.f32.mrf.mxu3  ;;  %v8393_v57 = vor.u32 %v11999_v27, %v8390_v37  ;;  %v8854_v32 = vld [vmem:[%s19129_s1 + $0x7b8] sm:$0xf0]  ;;  %v12147_v8 = vld [vmem:[%s19129_s1 + $0x8ac] sm:$0xf] }
 0x30c   :  { %7158 = vmatpush.bf16.msrb.mxu1 %v8137_v29  ;;  %v8710_v29 = vld [vmem:[%s19129_s1 + $0x698] sm:$0xf0]  ;;  %v6939_v27 = vpop.f32.mrf.mxu1  ;;  %v12143_v55 = vld [vmem:[%s19129_s1 + $0x88c] sm:$0xf] }
 0x30d   :  { %7182 = vmatpush.bf16.msra.mxu2 %v8425_v3  ;;  %v8726_v3 = vld [vmem:[%s19129_s1 + $0x6b8] sm:$0xf0]  ;;  %v12171_v51 = vld [vmem:[%s19129_s1 + $0x96c] sm:$0xf] }
 0x30e   :  { %7169 = vmatpush.bf16.msra.mxu3 %v8297_v61  ;;  %v8889_v61 = vor.u32 %v12123_v25, %v8886_v43  ;;  %v8982_v33 = vld [vmem:[%s19129_s1 + $0x8b8] sm:$0xf0]  ;;  %v12111_v25 = vld [vmem:[%s19129_s1 + $0x78c] sm:$0xf] }
 0x30f   :  { %7196 = vmatpush.bf16.msra.mxu0 %v8537_v39  ;;  %7159 = vmatmul.bf16.vlgmr.msrb.gmra.mxu1 %v13256_v20  ;;  %v8729_v39 = vor.u32 %v12083_v62, %v8726_v3  ;;  %v12079_v20 = vld [vmem:[%s19129_s1 + $0x68c] sm:$0xf]  ;;  %v8985_v38 = vor.u32 %v12147_v8, %v8982_v33  ;;  %v8694_v40 = vld [vmem:[%s19129_s1 + $0x678] sm:$0xf0] }
 0x310   :  { %7203 = vmatpush.bf16.msra.mxu1 %v8761_v54  ;;  %v12175_v54 = vld [vmem:[%s19129_s1 + $0x98c] sm:$0xf]  ;;  %v8713_v41 = vor.u32 %v12079_v20, %v8710_v29  ;;  %v8838_v43 = vld [vmem:[%s19129_s1 + $0x798] sm:$0xf0] }
 0x311   :  { %7183 = vmatpush.bf16.msra.mxu2 %v8409_v36  ;;  %v9113_v36 = vor.u32 %v12179_v5, %v9110_v10  ;;  %v8966_v44 = vld [vmem:[%s19129_s1 + $0x898] sm:$0xf0]  ;;  %v12071_v4 = vld [vmem:[%s19129_s1 + $0x64c] sm:$0xf] }
 0x312   :  { %7170 = vmatpush.bf16.msra.mxu3 %v8281_v30  ;;  %v12115_v30 = vld [vmem:[%s19129_s1 + $0x7ac] sm:$0xf]  ;;  %v8969_v56 = vor.u32 %v12143_v55, %v8966_v44  ;;  %v8950_v62 = vld [vmem:[%s19129_s1 + $0x878] sm:$0xf0] }
 0x313   :  { %7197 = vmatpush.bf16.msra.mxu0 %v8521_v42  ;;  %v8857_v37 = vor.u32 %v12115_v30, %v8854_v32  ;;  %v6940_v42 = vadd.f32 %v6939_v27, %v17801_v52  ;;  %v9078_v52 = vld [vmem:[%s19129_s1 + $0x978] sm:$0xf0]  ;;  %v12167_v35 = vld [vmem:[%s19129_s1 + $0x94c] sm:$0xf] }
 0x314   :  { %7204 = vmatpush.bf16.msra.mxu1 %v8745_v59  ;;  %v12107_v59 = vld [vmem:[%s19129_s1 + $0x76c] sm:$0xf]  ;;  %v9081_v3 = vor.u32 %v12171_v51, %v9078_v52  ;;  %v9062_v58 = vld [vmem:[%s19129_s1 + $0x958] sm:$0xf0] }
 0x315   :  { %7184 = vmatpush.bf16.msra.mxu2 %v8393_v57  ;;  %v8678_v57 = vld [vmem:[%s19129_s1 + $0x658] sm:$0xf0]  ;;  %v12067_v5 = vld [vmem:[%s19129_s1 + $0x62c] sm:$0xf]  ;;  %v9065_v32 = vor.u32 %v12167_v35, %v9062_v58 }
 0x316   :  { %7171 = vmatpush.bf16.msra.mxu3 %v8265_v45  ;;  %7198 = vmatmul.bf16.vlgmr.msra.gmra.mxu0 %v13355_v2  ;;  %v6965_v2 = vpop.f32.mrf.mxu0  ;;  %v8841_v45 = vor.u32 %v12111_v25, %v8838_v43  ;;  %v8681_v31 = vor.u32 %v12071_v4, %v8678_v57  ;;  %v8662_v10 = vld [vmem:[%s19129_s1 + $0x638] sm:$0xf0]  ;;  %v12135_v29 = vld [vmem:[%s19129_s1 + $0x84c] sm:$0xf] }
 0x317   :  { %7242 = vmatpush.bf16.msrb.mxu0 %v9145_v50  ;;  %v8806_v20 = vld [vmem:[%s19129_s1 + $0x758] sm:$0xf0]  ;;  %v12163_v33 = vld [vmem:[%s19129_s1 + $0x92c] sm:$0xf] }
 0x318   :  { %7185 = vmatmul.bf16.vlgmr.msra.gmra.mxu2 %v13351_v0  ;;  %7205 = vmatpush.bf16.msra.mxu1 %v8729_v39  ;;  %v12075_v0 = vld [vmem:[%s19129_s1 + $0x66c] sm:$0xf]  ;;  %v8934_v30 = vld [vmem:[%s19129_s1 + $0x858] sm:$0xf0] }
 0x319   :  { %7229 = vmatpush.bf16.msrb.mxu2 %v9017_v21  ;;  %7172 = vmatmul.bf16.vlgmr.msra.gmra.mxu3 %v13260_v22  ;;  %v9094_v22 = vld [vmem:[%s19129_s1 + $0x998] sm:$0xf0]  ;;  %v8697_v26 = vor.u32 %v12075_v0, %v8694_v40  ;;  %v12139_v21 = vld [vmem:[%s19129_s1 + $0x86c] sm:$0xf] }
 0x31a   :  { %7216 = vmatpush.bf16.msrb.mxu3 %v8889_v61  ;;  %v9097_v50 = vor.u32 %v12175_v54, %v9094_v22  ;;  %v8822_v61 = vld [vmem:[%s19129_s1 + $0x778] sm:$0xf0]  ;;  %v12103_v39 = vld [vmem:[%s19129_s1 + $0x74c] sm:$0xf]  ;;  %v8665_v22 = vor.u32 %v12067_v5, %v8662_v10 }
 0x31b   :  { %7243 = vmatpush.bf16.msrb.mxu0 %v9129_v23  ;;  %v8825_v63 = vor.u32 %v12107_v59, %v8822_v61  ;;  %v8953_v23 = vor.u32 %v12139_v21, %v8950_v62  ;;  %v12063_v27 = vld [vmem:[%s19129_s1 + $0x60c] sm:$0xf]  ;;  %v8646_v0 = vld [vmem:[%s19129_s1 + $0x618] sm:$0xf0] }
 0x31c   :  { %7206 = vmatpush.bf16.msra.mxu1 %v8713_v41  ;;  %v6952_v8 = vpop.f32.mrf.mxu3  ;;  %v6978_v41 = vpop.f32.mrf.mxu2  ;;  %v12099_v40 = vld [vmem:[%s19129_s1 + $0x72c] sm:$0xf]  ;;  %v8790_v25 = vld [vmem:[%s19129_s1 + $0x738] sm:$0xf0] }
 0x31d   :  { %7230 = vmatpush.bf16.msrb.mxu2 %v9001_v53  ;;  %v6953_v54 = vadd.f32 %v6952_v8, %v6940_v42  ;;  %v12131_v43 = vld [vmem:[%s19129_s1 + $0x82c] sm:$0xf]  ;;  %v8918_v55 = vld [vmem:[%s19129_s1 + $0x838] sm:$0xf0]  ;;  %v8793_v57 = vor.u32 %v12099_v40, %v8790_v25 }
 0x31e   :  { %7217 = vmatpush.bf16.msrb.mxu3 %v8873_v34  ;;  %v6941_v34 = vpop.f32.mrf.mxu1  ;;  %v6967_v53 = vpop.f32.mrf.mxu0  ;;  %v12219_v44 = vld [vmem:[%s19129_s1 + $0xaec] sm:$0xf]  ;;  %v9270_v51 = vld [vmem:[%s19129_s1 + $0xaf8] sm:$0xf0]  ;;  %v8921_v59 = vor.u32 %v12131_v43, %v8918_v55 }
 0x31f   :  { %7244 = vmatpush.bf16.msrb.mxu0 %v9113_v36  ;;  %v9046_v36 = vld [vmem:[%s19129_s1 + $0x938] sm:$0xf0]  ;;  %v6966_v42 = vadd.f32 %v6965_v2, %v6953_v54  ;;  %v12159_v2 = vld [vmem:[%s19129_s1 + $0x90c] sm:$0xf] }
 0x320   :  { %7207 = vmatpush.bf16.msra.mxu1 %v8697_v26  ;;  %v9030_v52 = vld [vmem:[%s19129_s1 + $0x918] sm:$0xf0]  ;;  %v12095_v61 = vld [vmem:[%s19129_s1 + $0x70c] sm:$0xf] }
 0x321   :  { %7231 = vmatpush.bf16.msrb.mxu2 %v8985_v38  ;;  %v8937_v38 = vor.u32 %v12135_v29, %v8934_v30  ;;  %v18000_v26 = vadd.f32 %v6978_v41, %v6966_v42  ;;  %v9654_v4 = vld [vmem:[%s19129_s1 + $0xdf8] sm:$0xf0]  ;;  %v12127_v62 = vld [vmem:[%s19129_s1 + $0x80c] sm:$0xf] }
 0x322   :  { %7218 = vmatpush.bf16.msrb.mxu3 %v8857_v37  ;;  %v8809_v37 = vor.u32 %v12103_v39, %v8806_v20  ;;  %v8774_v21 = vld [vmem:[%s19129_s1 + $0x718] sm:$0xf0]  ;;  %v12215_v58 = vld [vmem:[%s19129_s1 + $0xacc] sm:$0xf] }
 0x323   :  { %7245 = vmatpush.bf16.msrb.mxu0 %v9097_v50  ;;  %v9049_v50 = vor.u32 %v12163_v33, %v9046_v36  ;;  %v8902_v35 = vld [vmem:[%s19129_s1 + $0x818] sm:$0xf0]  ;;  %v12283_v10 = vld [vmem:[%s19129_s1 + $0xcec] sm:$0xf] }
 0x324   :  { %7208 = vmatpush.bf16.msra.mxu1 %v8681_v31  ;;  %v9254_v31 = vld [vmem:[%s19129_s1 + $0xad8] sm:$0xf0]  ;;  %v6954_v34 = vpop.f32.mrf.mxu3  ;;  %v12311_v20 = vld [vmem:[%s19129_s1 + $0xdcc] sm:$0xf]  ;;  %v6980_v30 = vpop.f32.mrf.mxu2  ;;  %v8905_v8 = vor.u32 %v12127_v62, %v8902_v35 }
 0x325   :  { %7232 = vmatpush.bf16.msrb.mxu2 %v8969_v56  ;;  %v12315_v56 = vld [vmem:[%s19129_s1 + $0xdec] sm:$0xf]  ;;  %v9398_v5 = vld [vmem:[%s19129_s1 + $0xbf8] sm:$0xf0]  ;;  %v9257_v33 = vor.u32 %v12215_v58, %v9254_v31 }
 0x326   :  { %7219 = vmatpush.bf16.msrb.mxu3 %v8841_v45  ;;  %v8649_v45 = vor.u32 %v12063_v27, %v8646_v0  ;;  %v9657_v39 = vor.u32 %v12315_v56, %v9654_v4  ;;  %v9526_v53 = vld [vmem:[%s19129_s1 + $0xcf8] sm:$0xf0]  ;;  %v12211_v54 = vld [vmem:[%s19129_s1 + $0xaac] sm:$0xf] }
 0x327   :  { %7246 = vmatpush.bf16.msrb.mxu0 %v9081_v3  ;;  %v9273_v3 = vor.u32 %v12219_v44, %v9270_v51  ;;  %v9638_v29 = vld [vmem:[%s19129_s1 + $0xdd8] sm:$0xf0]  ;;  %v9529_v41 = vor.u32 %v12283_v10, %v9526_v53  ;;  %v12247_v27 = vld [vmem:[%s19129_s1 + $0xbcc] sm:$0xf] }
 0x328   :  { %7209 = vmatpush.bf16.msra.mxu1 %v8665_v22  ;;  %v9238_v22 = vld [vmem:[%s19129_s1 + $0xab8] sm:$0xf0]  ;;  %v9641_v0 = vor.u32 %v12311_v20, %v9638_v29  ;;  %v12207_v55 = vld [vmem:[%s19129_s1 + $0xa8c] sm:$0xf] }
 0x329   :  { %7233 = vmatpush.bf16.msrb.mxu2 %v8953_v23  ;;  %v12251_v23 = vld [vmem:[%s19129_s1 + $0xbec] sm:$0xf]  ;;  %v9510_v40 = vld [vmem:[%s19129_s1 + $0xcd8] sm:$0xf0]  ;;  %v9241_v42 = vor.u32 %v12211_v54, %v9238_v22 }
 0x32a   :  { %7220 = vmatpush.bf16.msrb.mxu3 %v8825_v63  ;;  %v9033_v63 = vor.u32 %v12159_v2, %v9030_v52  ;;  %v9401_v36 = vor.u32 %v12251_v23, %v9398_v5  ;;  %v9622_v25 = vld [vmem:[%s19129_s1 + $0xdb8] sm:$0xf0]  ;;  %v12243_v51 = vld [vmem:[%s19129_s1 + $0xbac] sm:$0xf] }
 0x32b   :  { %7247 = vmatpush.bf16.msrb.mxu0 %v9065_v32  ;;  %v8777_v32 = vor.u32 %v12095_v61, %v8774_v21  ;;  %v9222_v44 = vld [vmem:[%s19129_s1 + $0xa98] sm:$0xf0]  ;;  %v12275_v52 = vld [vmem:[%s19129_s1 + $0xcac] sm:$0xf] }
 0x32c   :  { %7210 = vmatpush.bf16.msra.mxu1 %v8649_v45  ;;  %v9366_v2 = vld [vmem:[%s19129_s1 + $0xbb8] sm:$0xf0]  ;;  %v12303_v4 = vld [vmem:[%s19129_s1 + $0xd8c] sm:$0xf] }
 0x32d   :  { %7234 = vmatpush.bf16.msrb.mxu2 %v8937_v38  ;;  %v12279_v38 = vld [vmem:[%s19129_s1 + $0xccc] sm:$0xf]  ;;  %v9494_v56 = vld [vmem:[%s19129_s1 + $0xcb8] sm:$0xf0]  ;;  %v9369_v61 = vor.u32 %v12243_v51, %v9366_v2 }
 0x32e   :  { %7221 = vmatpush.bf16.msrb.mxu3 %v8809_v37  ;;  %v9382_v37 = vld [vmem:[%s19129_s1 + $0xbd8] sm:$0xf0]  ;;  %v12203_v21 = vld [vmem:[%s19129_s1 + $0xa6c] sm:$0xf]  ;;  %v9497_v35 = vor.u32 %v12275_v52, %v9494_v56 }
 0x32f   :  { %7248 = vmatpush.bf16.msrb.mxu0 %v9049_v50  ;;  %7211 = vmatmul.bf16.vlgmr.msra.gmra.mxu1 %v13346_v60  ;;  %v12307_v60 = vld [vmem:[%s19129_s1 + $0xdac] sm:$0xf]  ;;  %v9385_v43 = vor.u32 %v12247_v27, %v9382_v37  ;;  %v9513_v50 = vor.u32 %v12279_v38, %v9510_v40  ;;  %v9206_v62 = vld [vmem:[%s19129_s1 + $0xa78] sm:$0xf0] }
 0x330   :  { %7255 = vmatpush.bf16.msrb.mxu1 %v9273_v3  ;;  %v9625_v45 = vor.u32 %v12307_v60, %v9622_v25  ;;  %v9350_v58 = vld [vmem:[%s19129_s1 + $0xb98] sm:$0xf0]  ;;  %v12271_v31 = vld [vmem:[%s19129_s1 + $0xc8c] sm:$0xf]  ;;  %v9209_v10 = vor.u32 %v12203_v21, %v9206_v62 }
 0x331   :  { %7235 = vmatpush.bf16.msrb.mxu2 %v8921_v59  ;;  %v18096_v59 = vpop.f32.mrf.mxu0  ;;  %v9478_v23 = vld [vmem:[%s19129_s1 + $0xc98] sm:$0xf0]  ;;  %v12199_v34 = vld [vmem:[%s19129_s1 + $0xa4c] sm:$0xf] }
 0x332   :  { %7222 = vmatpush.bf16.msrb.mxu3 %v8793_v57  ;;  %v9606_v57 = vld [vmem:[%s19129_s1 + $0xd98] sm:$0xf0]  ;;  %v9481_v20 = vor.u32 %v12271_v31, %v9478_v23  ;;  %v12235_v29 = vld [vmem:[%s19129_s1 + $0xb6c] sm:$0xf] }
 0x333   :  { %7249 = vmatpush.bf16.msrb.mxu0 %v9033_v63  ;;  %v9609_v63 = vor.u32 %v12303_v4, %v9606_v57  ;;  %v9590_v5 = vld [vmem:[%s19129_s1 + $0xd78] sm:$0xf0]  ;;  %v12195_v37 = vld [vmem:[%s19129_s1 + $0xa2c] sm:$0xf] }
 0x334   :  { %7256 = vmatpush.bf16.msrb.mxu1 %v9257_v33  ;;  %v9190_v53 = vld [vmem:[%s19129_s1 + $0xa58] sm:$0xf0]  ;;  %v12231_v60 = vld [vmem:[%s19129_s1 + $0xb4c] sm:$0xf] }
 0x335   :  { %7236 = vmatpush.bf16.msrb.mxu2 %v8905_v8  ;;  %v9334_v30 = vld [vmem:[%s19129_s1 + $0xb78] sm:$0xf0]  ;;  %v12191_v4 = vld [vmem:[%s19129_s1 + $0xa0c] sm:$0xf] }
 0x336   :  { %7223 = vmatpush.bf16.msrb.mxu3 %v8777_v32  ;;  %7250 = vmatmul.bf16.vlgmr.msrb.gmra.mxu0 %v13611_v16  ;;  %v12239_v16 = vld [vmem:[%s19129_s1 + $0xb8c] sm:$0xf]  ;;  %v9462_v33 = vld [vmem:[%s19129_s1 + $0xc78] sm:$0xf0]  ;;  %v9337_v27 = vor.u32 %v12235_v29, %v9334_v30 }
 0x337   :  { %7294 = vmatpush.bf16.msra.mxu0 %v9657_v39  ;;  %v9353_v39 = vor.u32 %v12239_v16, %v9350_v58  ;;  %v12267_v32 = vld [vmem:[%s19129_s1 + $0xc6c] sm:$0xf]  ;;  %v9574_v54 = vld [vmem:[%s19129_s1 + $0xd58] sm:$0xf0] }
 0x338   :  { %7237 = vmatmul.bf16.vlgmr.msrb.gmra.mxu2 %v13601_v12  ;;  %7257 = vmatpush.bf16.msrb.mxu1 %v9241_v42  ;;  %v9225_v12 = vor.u32 %v12207_v55, %v9222_v44  ;;  %v9174_v38 = vld [vmem:[%s19129_s1 + $0xa38] sm:$0xf0]  ;;  %v9465_v40 = vor.u32 %v12267_v32, %v9462_v33  ;;  %v12263_v42 = vld [vmem:[%s19129_s1 + $0xc4c] sm:$0xf] }
 0x339   :  { %7281 = vmatpush.bf16.msra.mxu2 %v9529_v41  ;;  %7224 = vmatmul.bf16.vlgmr.msrb.gmra.mxu3 %v13353_v1  ;;  %v6991_v1 = vpop.f32.mrf.mxu1  ;;  %v7019_v22 = vpop.f32.mrf.mxu0  ;;  %v9193_v41 = vor.u32 %v12199_v34, %v9190_v53  ;;  %v9318_v25 = vld [vmem:[%s19129_s1 + $0xb58] sm:$0xf0]  ;;  %v12291_v44 = vld [vmem:[%s19129_s1 + $0xd2c] sm:$0xf] }
 0x33a   :  { %7268 = vmatpush.bf16.msra.mxu3 %v9401_v36  ;;  %v6992_v3 = vadd.f32 %v6991_v1, %v18000_v26  ;;  %v12299_v26 = vld [vmem:[%s19129_s1 + $0xd6c] sm:$0xf]  ;;  %v9446_v55 = vld [vmem:[%s19129_s1 + $0xc58] sm:$0xf0]  ;;  %v9321_v56 = vor.u32 %v12231_v60, %v9318_v25 }
 0x33b   :  { %7295 = vmatpush.bf16.msra.mxu0 %v9641_v0  ;;  %v9593_v8 = vor.u32 %v12299_v26, %v9590_v5  ;;  %v12295_v36 = vld [vmem:[%s19129_s1 + $0xd4c] sm:$0xf]  ;;  %v7030_v2 = vpop.f32.mrf.mxu2  ;;  %v9158_v57 = vld [vmem:[%s19129_s1 + $0xa18] sm:$0xf0]  ;;  %v9449_v1 = vor.u32 %v12263_v42, %v9446_v55 }
 0x33c   :  { %7258 = vmatpush.bf16.msrb.mxu1 %v9225_v12  ;;  %v7004_v51 = vpop.f32.mrf.mxu3  ;;  %v12227_v12 = vld [vmem:[%s19129_s1 + $0xb2c] sm:$0xf]  ;;  %v9782_v58 = vld [vmem:[%s19129_s1 + $0xef8] sm:$0xf0]  ;;  %v9161_v23 = vor.u32 %v12191_v4, %v9158_v57 }
 0x33d   :  { %7282 = vmatpush.bf16.msra.mxu2 %v9513_v50  ;;  %v9558_v50 = vld [vmem:[%s19129_s1 + $0xd38] sm:$0xf0]  ;;  %v7005_v52 = vadd.f32 %v7004_v51, %v6992_v3  ;;  %v12259_v21 = vld [vmem:[%s19129_s1 + $0xc2c] sm:$0xf] }
 0x33e   :  { %7269 = vmatpush.bf16.msra.mxu3 %v9385_v43  ;;  %v9577_v43 = vor.u32 %v12295_v36, %v9574_v54  ;;  %v9561_v62 = vor.u32 %v12291_v44, %v9558_v50  ;;  %v12347_v16 = vld [vmem:[%s19129_s1 + $0xeec] sm:$0xf]  ;;  %v9414_v30 = vld [vmem:[%s19129_s1 + $0xc18] sm:$0xf0] }
 0x33f   :  { %7296 = vmatpush.bf16.msra.mxu0 %v9625_v45  ;;  %v9177_v45 = vor.u32 %v12195_v37, %v9174_v38  ;;  %v7018_v3 = vadd.f32 %v18096_v59, %v7005_v52  ;;  %v12287_v31 = vld [vmem:[%s19129_s1 + $0xd0c] sm:$0xf]  ;;  %v9542_v59 = vld [vmem:[%s19129_s1 + $0xd18] sm:$0xf0]  ;;  %v9785_v53 = vor.u32 %v12347_v16, %v9782_v58 }
 0x340   :  { %7259 = vmatpush.bf16.msrb.mxu1 %v9209_v10  ;;  %v12223_v5 = vld [vmem:[%s19129_s1 + $0xb0c] sm:$0xf]  ;;  %v9545_v36 = vor.u32 %v12287_v31, %v9542_v59  ;;  %v9910_v54 = vld [vmem:[%s19129_s1 + $0xff8] sm:$0xf0] }
 0x341   :  { %7283 = vmatpush.bf16.msra.mxu2 %v9497_v35  ;;  %v6993_v0 = vpop.f32.mrf.mxu1  ;;  %v9430_v35 = vld [vmem:[%s19129_s1 + $0xc38] sm:$0xf0]  ;;  %v12443_v10 = vld [vmem:[%s19129_s1 + $0x11ec] sm:$0xf] }
 0x342   :  { %7270 = vmatpush.bf16.msra.mxu3 %v9369_v61  ;;  %v9302_v61 = vld [vmem:[%s19129_s1 + $0xb38] sm:$0xf0]  ;;  %v9433_v34 = vor.u32 %v12259_v21, %v9430_v35  ;;  %v12255_v29 = vld [vmem:[%s19129_s1 + $0xc0c] sm:$0xf] }
 0x343   :  { %7297 = vmatpush.bf16.msra.mxu0 %v9609_v63  ;;  %v18202_v63 = vadd.f32 %v7030_v2, %v7018_v3  ;;  %v9305_v26 = vor.u32 %v12227_v12, %v9302_v61  ;;  %v12343_v32 = vld [vmem:[%s19129_s1 + $0xecc] sm:$0xf]  ;;  %v7032_v38 = vpop.f32.mrf.mxu2  ;;  %v10150_v60 = vld [vmem:[%s19129_s1 + $0x11d8] sm:$0xf0]  ;;  %v9417_v25 = vor.u32 %v12255_v29, %v9414_v30 }
 0x344   :  { %7260 = vmatpush.bf16.msrb.mxu1 %v9193_v41  ;;  %v12379_v33 = vld [vmem:[%s19129_s1 + $0xfec] sm:$0xf]  ;;  %v10038_v41 = vld [vmem:[%s19129_s1 + $0x10f8] sm:$0xf0]  ;;  %v7006_v37 = vpop.f32.mrf.mxu3 }
 0x345   :  { %7284 = vmatpush.bf16.msra.mxu2 %v9481_v20  ;;  %v9286_v20 = vld [vmem:[%s19129_s1 + $0xb18] sm:$0xf0]  ;;  %v12411_v22 = vld [vmem:[%s19129_s1 + $0x10ec] sm:$0xf] }
 0x346   :  { %7271 = vmatpush.bf16.msra.mxu3 %v9353_v39  ;;  %v10166_v39 = vld [vmem:[%s19129_s1 + $0x11f8] sm:$0xf0]  ;;  %v9289_v0 = vor.u32 %v12223_v5, %v9286_v20  ;;  %v10041_v55 = vor.u32 %v12411_v22, %v10038_v41  ;;  %v12339_v44 = vld [vmem:[%s19129_s1 + $0xeac] sm:$0xf] }
 0x347   :  { %7298 = vmatpush.bf16.msra.mxu0 %v9593_v8  ;;  %v9766_v8 = vld [vmem:[%s19129_s1 + $0xed8] sm:$0xf0]  ;;  %v12375_v51 = vld [vmem:[%s19129_s1 + $0xfcc] sm:$0xf] }
 0x348   :  { %7261 = vmatpush.bf16.msrb.mxu1 %v9177_v45  ;;  %v9769_v42 = vor.u32 %v12343_v32, %v9766_v8  ;;  %v9750_v50 = vld [vmem:[%s19129_s1 + $0xeb8] sm:$0xf0]  ;;  %v12407_v52 = vld [vmem:[%s19129_s1 + $0x10cc] sm:$0xf] }
 0x349   :  { %7285 = vmatpush.bf16.msra.mxu2 %v9465_v40  ;;  %v12439_v40 = vld [vmem:[%s19129_s1 + $0x11cc] sm:$0xf]  ;;  %v9894_v2 = vld [vmem:[%s19129_s1 + $0xfd8] sm:$0xf0]  ;;  %v9753_v57 = vor.u32 %v12339_v44, %v9750_v50 }
 0x34a   :  { %7272 = vmatpush.bf16.msra.mxu3 %v9337_v27  ;;  %v10169_v27 = vor.u32 %v12443_v10, %v10166_v39  ;;  %v10022_v45 = vld [vmem:[%s19129_s1 + $0x10d8] sm:$0xf0]  ;;  %v12435_v4 = vld [vmem:[%s19129_s1 + $0x11ac] sm:$0xf] }
 0x34b   :  { %7299 = vmatpush.bf16.msra.mxu0 %v9577_v43  ;;  %v9913_v43 = vor.u32 %v12379_v33, %v9910_v54  ;;  %v10025_v12 = vor.u32 %v12407_v52, %v10022_v45  ;;  %v12335_v61 = vld [vmem:[%s19129_s1 + $0xe8c] sm:$0xf]  ;;  %v9734_v21 = vld [vmem:[%s19129_s1 + $0xe98] sm:$0xf0]  ;;  %v7069_v10 = vpop.f32.mrf.mxu0 }
 0x34c   :  { %7262 = vmatpush.bf16.msrb.mxu1 %v9161_v23  ;;  %v9878_v3 = vld [vmem:[%s19129_s1 + $0xfb8] sm:$0xf0]  ;;  %v12403_v35 = vld [vmem:[%s19129_s1 + $0x10ac] sm:$0xf]  ;;  %v9737_v59 = vor.u32 %v12335_v61, %v9734_v21  ;;  %v7043_v23 = vpop.f32.mrf.mxu1 }
 0x34d   :  { %7286 = vmatpush.bf16.msra.mxu2 %v9449_v1  ;;  %v9897_v1 = vor.u32 %v12375_v51, %v9894_v2  ;;  %v10006_v16 = vld [vmem:[%s19129_s1 + $0x10b8] sm:$0xf0]  ;;  %v12367_v39 = vld [vmem:[%s19129_s1 + $0xf8c] sm:$0xf] }
 0x34e   :  { %7273 = vmatpush.bf16.msra.mxu3 %v9321_v56  ;;  %v10153_v56 = vor.u32 %v12439_v40, %v10150_v60  ;;  %v10118_v31 = vld [vmem:[%s19129_s1 + $0x1198] sm:$0xf0]  ;;  %v10009_v5 = vor.u32 %v12403_v35, %v10006_v16  ;;  %v12399_v20 = vld [vmem:[%s19129_s1 + $0x108c] sm:$0xf] }
 0x34f   :  { %7300 = vmatpush.bf16.msra.mxu0 %v9561_v62  ;;  %7263 = vmatmul.bf16.vlgmr.msrb.gmra.mxu1 %v13609_v15  ;;  %v10134_v15 = vld [vmem:[%s19129_s1 + $0x11b8] sm:$0xf0]  ;;  %v12371_v62 = vld [vmem:[%s19129_s1 + $0xfac] sm:$0xf] }
 0x350   :  { %7307 = vmatpush.bf16.msra.mxu1 %v9785_v53  ;;  %v10137_v58 = vor.u32 %v12435_v4, %v10134_v15  ;;  %v9862_v53 = vld [vmem:[%s19129_s1 + $0xf98] sm:$0xf0]  ;;  %v12427_v32 = vld [vmem:[%s19129_s1 + $0x116c] sm:$0xf] }
 0x351   :  { %7287 = vmatpush.bf16.msra.mxu2 %v9433_v34  ;;  %v7044_v34 = vadd.f32 %v7043_v23, %v18202_v63  ;;  %v9990_v29 = vld [vmem:[%s19129_s1 + $0x1098] sm:$0xf0]  ;;  %v9865_v33 = vor.u32 %v12367_v39, %v9862_v53  ;;  %v12327_v54 = vld [vmem:[%s19129_s1 + $0xe4c] sm:$0xf] }
 0x352   :  { %7274 = vmatpush.bf16.msra.mxu3 %v9305_v26  ;;  %v9881_v26 = vor.u32 %v12371_v62, %v9878_v3  ;;  %v10102_v63 = vld [vmem:[%s19129_s1 + $0x1178] sm:$0xf0]  ;;  %v12363_v41 = vld [vmem:[%s19129_s1 + $0xf6c] sm:$0xf] }
 0x353   :  { %7301 = vmatpush.bf16.msra.mxu0 %v9545_v36  ;;  %v9993_v36 = vor.u32 %v12399_v20, %v9990_v29  ;;  %v9702_v22 = vld [vmem:[%s19129_s1 + $0xe58] sm:$0xf0]  ;;  %v12395_v37 = vld [vmem:[%s19129_s1 + $0x106c] sm:$0xf] }
 0x354   :  { %7308 = vmatpush.bf16.msra.mxu1 %v9769_v42  ;;  %v9974_v38 = vld [vmem:[%s19129_s1 + $0x1078] sm:$0xf0]  ;;  %v12423_v40 = vld [vmem:[%s19129_s1 + $0x114c] sm:$0xf]  ;;  %v7045_v2 = vpop.f32.mrf.mxu1 }
 0x355   :  { %7288 = vmatpush.bf16.msra.mxu2 %v9417_v25  ;;  %v10086_v60 = vld [vmem:[%s19129_s1 + $0x1158] sm:$0xf0]  ;;  %v9705_v25 = vor.u32 %v12327_v54, %v9702_v22  ;;  %v12323_v44 = vld [vmem:[%s19129_s1 + $0xe2c] sm:$0xf] }
 0x356   :  { %7275 = vmatpush.bf16.msra.mxu3 %v9289_v0  ;;  %7302 = vmatmul.bf16.vlgmr.msra.gmra.mxu0 %v13779_v48  ;;  %v9718_v48 = vld [vmem:[%s19129_s1 + $0xe78] sm:$0xf0]  ;;  %v10105_v0 = vor.u32 %v12427_v32, %v10102_v63  ;;  %v12359_v51 = vld [vmem:[%s19129_s1 + $0xf4c] sm:$0xf]  ;;  %v10089_v4 = vor.u32 %v12423_v40, %v10086_v60 }
 0x357   :  { %7346 = vmatpush.bf16.msrb.mxu0 %v10169_v27  ;;  %v9846_v27 = vld [vmem:[%s19129_s1 + $0xf78] sm:$0xf0]  ;;  %v12391_v45 = vld [vmem:[%s19129_s1 + $0x104c] sm:$0xf] }
 0x358   :  { %7289 = vmatmul.bf16.vlgmr.msra.gmra.mxu2 %v13775_v46  ;;  %7309 = vmatpush.bf16.msra.mxu1 %v9753_v57  ;;  %v12331_v46 = vld [vmem:[%s19129_s1 + $0xe6c] sm:$0xf]  ;;  %v9849_v42 = vor.u32 %v12363_v41, %v9846_v27  ;;  %v9686_v50 = vld [vmem:[%s19129_s1 + $0xe38] sm:$0xf0] }
 0x359   :  { %7333 = vmatpush.bf16.msrb.mxu2 %v10041_v55  ;;  %7276 = vmatmul.bf16.vlgmr.msra.gmra.mxu3 %v13613_v17  ;;  %v12431_v17 = vld [vmem:[%s19129_s1 + $0x118c] sm:$0xf]  ;;  %v9721_v8 = vor.u32 %v12331_v46, %v9718_v48  ;;  %v7071_v55 = vpop.f32.mrf.mxu0  ;;  %v9830_v52 = vld [vmem:[%s19129_s1 + $0xf58] sm:$0xf0]  ;;  %v9689_v61 = vor.u32 %v12323_v44, %v9686_v50 }
 0x35a   :  { %7320 = vmatpush.bf16.msrb.mxu3 %v9913_v43  ;;  %v10121_v30 = vor.u32 %v12431_v17, %v10118_v31  ;;  %v9977_v43 = vor.u32 %v12395_v37, %v9974_v38  ;;  %v12419_v57 = vld [vmem:[%s19129_s1 + $0x112c] sm:$0xf]  ;;  %v9833_v3 = vor.u32 %v12359_v51, %v9830_v52  ;;  %v9670_v16 = vld [vmem:[%s19129_s1 + $0xe18] sm:$0xf0] }
 0x35b   :  { %7347 = vmatpush.bf16.msrb.mxu0 %v10153_v56  ;;  %v9958_v56 = vld [vmem:[%s19129_s1 + $0x1058] sm:$0xf0]  ;;  %v7082_v21 = vpop.f32.mrf.mxu2  ;;  %v12319_v62 = vld [vmem:[%s19129_s1 + $0xe0c] sm:$0xf] }
 0x35c   :  { %7310 = vmatpush.bf16.msra.mxu1 %v9737_v59  ;;  %v7056_v15 = vpop.f32.mrf.mxu3  ;;  %v9961_v35 = vor.u32 %v12391_v45, %v9958_v56  ;;  %v9814_v17 = vld [vmem:[%s19129_s1 + $0xf38] sm:$0xf0]  ;;  %v12387_v59 = vld [vmem:[%s19129_s1 + $0x102c] sm:$0xf] }
 0x35d   :  { %7334 = vmatpush.bf16.msrb.mxu2 %v10025_v12  ;;  %v7057_v12 = vadd.f32 %v7056_v15, %v7044_v34  ;;  %v9942_v23 = vld [vmem:[%s19129_s1 + $0x1038] sm:$0xf0]  ;;  %v9673_v34 = vor.u32 %v12319_v62, %v9670_v16  ;;  %v12571_v53 = vld [vmem:[%s19129_s1 + $0x15ec] sm:$0xf] }
 0x35e   :  { %7321 = vmatpush.bf16.msrb.mxu3 %v9897_v1  ;;  %v10070_v1 = vld [vmem:[%s19129_s1 + $0x1138] sm:$0xf0]  ;;  %v12351_v32 = vld [vmem:[%s19129_s1 + $0xf0c] sm:$0xf] }
 0x35f   :  { %7348 = vmatpush.bf16.msrb.mxu0 %v10137_v58  ;;  %v12355_v58 = vld [vmem:[%s19129_s1 + $0xf2c] sm:$0xf]  ;;  %v7070_v31 = vadd.f32 %v7069_v10, %v7057_v12  ;;  %v10294_v46 = vld [vmem:[%s19129_s1 + $0x12f8] sm:$0xf0] }
 0x360   :  { %7311 = vmatpush.bf16.msra.mxu1 %v9721_v8  ;;  %v12415_v10 = vld [vmem:[%s19129_s1 + $0x110c] sm:$0xf]  ;;  %v10054_v48 = vld [vmem:[%s19129_s1 + $0x1118] sm:$0xf0]  ;;  %v9817_v29 = vor.u32 %v12355_v58, %v9814_v17 }
 0x361   :  { %7335 = vmatpush.bf16.msrb.mxu2 %v10009_v5  ;;  %v10073_v5 = vor.u32 %v12419_v57, %v10070_v1  ;;  %v18401_v39 = vadd.f32 %v7082_v21, %v7070_v31  ;;  %v10678_v20 = vld [vmem:[%s19129_s1 + $0x15f8] sm:$0xf0]  ;;  %v12383_v8 = vld [vmem:[%s19129_s1 + $0x100c] sm:$0xf]  ;;  %v10057_v27 = vor.u32 %v12415_v10, %v10054_v48 }
 0x362   :  { %7322 = vmatpush.bf16.msrb.mxu3 %v9881_v26  ;;  %v12475_v26 = vld [vmem:[%s19129_s1 + $0x12ec] sm:$0xf]  ;;  %v9798_v63 = vld [vmem:[%s19129_s1 + $0xf18] sm:$0xf0]  ;;  %v10681_v40 = vor.u32 %v12571_v53, %v10678_v20 }
 0x363   :  { %7349 = vmatpush.bf16.msrb.mxu0 %v10121_v30  ;;  %v9945_v30 = vor.u32 %v12387_v59, %v9942_v23  ;;  %v9926_v54 = vld [vmem:[%s19129_s1 + $0x1018] sm:$0xf0]  ;;  %v12471_v22 = vld [vmem:[%s19129_s1 + $0x12cc] sm:$0xf]  ;;  %v7084_v55 = vpop.f32.mrf.mxu2  ;;  %v9801_v44 = vor.u32 %v12351_v32, %v9798_v63 }
 0x364   :  { %7312 = vmatpush.bf16.msra.mxu1 %v9705_v25  ;;  %v10278_v41 = vld [vmem:[%s19129_s1 + $0x12d8] sm:$0xf0]  ;;  %v12507_v37 = vld [vmem:[%s19129_s1 + $0x13ec] sm:$0xf]  ;;  %v7058_v60 = vpop.f32.mrf.mxu3  ;;  %v9929_v50 = vor.u32 %v12383_v8, %v9926_v54 }
 0x365   :  { %7336 = vmatpush.bf16.msrb.mxu2 %v9993_v36  ;;  %v10297_v36 = vor.u32 %v12475_v26, %v10294_v46  ;;  %v10422_v38 = vld [vmem:[%s19129_s1 + $0x13f8] sm:$0xf0]  ;;  %v10281_v51 = vor.u32 %v12471_v22, %v10278_v41  ;;  %v12467_v52 = vld [vmem:[%s19129_s1 + $0x12ac] sm:$0xf] }
 0x366   :  { %7323 = vmatpush.bf16.msrb.mxu3 %v9865_v33  ;;  %v18418_v33 = vpop.f32.mrf.mxu0  ;;  %v10550_v25 = vld [vmem:[%s19129_s1 + $0x14f8] sm:$0xf0]  ;;  %v10425_v2 = vor.u32 %v12507_v37, %v10422_v38  ;;  %v12535_v57 = vld [vmem:[%s19129_s1 + $0x14cc] sm:$0xf] }
 0x367   :  { %7350 = vmatpush.bf16.msrb.mxu0 %v10105_v0  ;;  %v12539_v0 = vld [vmem:[%s19129_s1 + $0x14ec] sm:$0xf]  ;;  %v10262_v45 = vld [vmem:[%s19129_s1 + $0x12b8] sm:$0xf0] }
 0x368   :  { %7313 = vmatpush.bf16.msra.mxu1 %v9689_v61  ;;  %v10553_v56 = vor.u32 %v12539_v0, %v10550_v25  ;;  %v10406_v15 = vld [vmem:[%s19129_s1 + $0x13d8] sm:$0xf0]  ;;  %v10265_v62 = vor.u32 %v12467_v52, %v10262_v45  ;;  %v12499_v17 = vld [vmem:[%s19129_s1 + $0x13ac] sm:$0xf] }
 0x369   :  { %7337 = vmatpush.bf16.msrb.mxu2 %v9977_v43  ;;  %v10662_v43 = vld [vmem:[%s19129_s1 + $0x15d8] sm:$0xf0]  ;;  %v12531_v59 = vld [vmem:[%s19129_s1 + $0x14ac] sm:$0xf] }
 0x36a   :  { %7324 = vmatpush.bf16.msrb.mxu3 %v9849_v42  ;;  %v12567_v42 = vld [vmem:[%s19129_s1 + $0x15cc] sm:$0xf]  ;;  %v10534_v12 = vld [vmem:[%s19129_s1 + $0x14d8] sm:$0xf0] }
 0x36b   :  { %7351 = vmatpush.bf16.msrb.mxu0 %v10089_v4  ;;  %v12503_v4 = vld [vmem:[%s19129_s1 + $0x13cc] sm:$0xf]  ;;  %v10665_v1 = vor.u32 %v12567_v42, %v10662_v43  ;;  %v10646_v61 = vld [vmem:[%s19129_s1 + $0x15b8] sm:$0xf0]  ;;  %v10537_v58 = vor.u32 %v12535_v57, %v10534_v12  ;;  %v12888_v57 = vld [vmem:[%s19130_s2] sm:$0xf] }
 0x36c   :  { %7314 = vmatpush.bf16.msra.mxu1 %v9673_v34  ;;  %v10246_v16 = vld [vmem:[%s19129_s1 + $0x1298] sm:$0xf0]  ;;  %v7095_v10 = vpop.f32.mrf.mxu1  ;;  %v12455_v22 = vld [vmem:[%s19129_s1 + $0x124c] sm:$0xf]  ;;  %s7855_s2 = sshll.u32 %s12922_s0, 4  ;;  %s7856_s2 = int_to_ptr.vmem [resolvable:$true] %s7855_s2 }
 0x36d   :  { %7338 = vmatpush.bf16.msrb.mxu2 %v9961_v35  ;;  %v12463_v35 = vld [vmem:[%s19129_s1 + $0x128c] sm:$0xf]  ;;  %v10390_v31 = vld [vmem:[%s19129_s1 + $0x13b8] sm:$0xf0]  ;;  %v7096_v53 = vadd.f32 %v7095_v10, %v18401_v39 }
 0x36e   :  { %7325 = vmatpush.bf16.msrb.mxu3 %v9833_v3  ;;  %v7123_v21 = vpop.f32.mrf.mxu0  ;;  %v10409_v3 = vor.u32 %v12503_v4, %v10406_v15  ;;  %v10518_v26 = vld [vmem:[%s19129_s1 + $0x14b8] sm:$0xf0]  ;;  %v10393_v48 = vor.u32 %v12499_v17, %v10390_v31  ;;  %v12555_v39 = vld [vmem:[%s19129_s1 + $0x156c] sm:$0xf] }
 0x36f   :  { %7352 = vmatpush.bf16.msrb.mxu0 %v10073_v5  ;;  %7315 = vmatmul.bf16.vlgmr.msra.gmra.mxu1 %v13777_v47  ;;  %v12563_v47 = vld [vmem:[%s19129_s1 + $0x15ac] sm:$0xf]  ;;  %v10630_v46 = vld [vmem:[%s19129_s1 + $0x1598] sm:$0xf0]  ;;  %v10521_v20 = vor.u32 %v12531_v59, %v10518_v26 }
 0x370   :  { %7359 = vmatpush.bf16.msrb.mxu1 %v10297_v36  ;;  %v10649_v23 = vor.u32 %v12563_v47, %v10646_v61  ;;  %v12559_v5 = vld [vmem:[%s19129_s1 + $0x158c] sm:$0xf]  ;;  %v10230_v34 = vld [vmem:[%s19129_s1 + $0x1278] sm:$0xf0] }
 0x371   :  { %7339 = vmatpush.bf16.msrb.mxu2 %v9945_v30  ;;  %v12527_v30 = vld [vmem:[%s19129_s1 + $0x148c] sm:$0xf]  ;;  %v10633_v32 = vor.u32 %v12559_v5, %v10630_v46  ;;  %v10502_v63 = vld [vmem:[%s19129_s1 + $0x1498] sm:$0xf0] }
 0x372   :  { %7326 = vmatpush.bf16.msrb.mxu3 %v9817_v29  ;;  %v10374_v29 = vld [vmem:[%s19129_s1 + $0x1398] sm:$0xf0]  ;;  %v10505_v37 = vor.u32 %v12527_v30, %v10502_v63  ;;  %v12491_v38 = vld [vmem:[%s19129_s1 + $0x136c] sm:$0xf] }
 0x373   :  { %7353 = vmatpush.bf16.msrb.mxu0 %v10057_v27  ;;  %v10614_v8 = vld [vmem:[%s19129_s1 + $0x1578] sm:$0xf0]  ;;  %v12551_v42 = vld [vmem:[%s19129_s1 + $0x154c] sm:$0xf] }
 0x374   :  { %7360 = vmatpush.bf16.msrb.mxu1 %v10281_v51  ;;  %v10214_v41 = vld [vmem:[%s19129_s1 + $0x1258] sm:$0xf0]  ;;  %v10617_v60 = vor.u32 %v12555_v39, %v10614_v8  ;;  %v7097_v52 = vpop.f32.mrf.mxu1  ;;  %v12519_v4 = vld [vmem:[%s19129_s1 + $0x144c] sm:$0xf] }
 0x375   :  { %7340 = vmatpush.bf16.msrb.mxu2 %v9929_v50  ;;  %v10358_v0 = vld [vmem:[%s19129_s1 + $0x1378] sm:$0xf0]  ;;  %v10217_v55 = vor.u32 %v12455_v22, %v10214_v41  ;;  %v12451_v50 = vld [vmem:[%s19129_s1 + $0x122c] sm:$0xf] }
 0x376   :  { %7327 = vmatpush.bf16.msrb.mxu3 %v9801_v44  ;;  %7354 = vmatmul.bf16.vlgmr.msrb.gmra.mxu0 %v14022_v14  ;;  %v12495_v14 = vld [vmem:[%s19129_s1 + $0x138c] sm:$0xf]  ;;  %v7147_v27 = vpop.f32.mrf.mxu0  ;;  %v10486_v25 = vld [vmem:[%s19129_s1 + $0x1478] sm:$0xf0]  ;;  %v10361_v44 = vor.u32 %v12491_v38, %v10358_v0 }
 0x377   :  { %7398 = vmatpush.bf16.msra.mxu0 %v10681_v40  ;;  %v10377_v54 = vor.u32 %v12495_v14, %v10374_v29  ;;  %v12523_v40 = vld [vmem:[%s19129_s1 + $0x146c] sm:$0xf]  ;;  %v10598_v43 = vld [vmem:[%s19129_s1 + $0x1558] sm:$0xf0] }
 0x378   :  { %7341 = vmatmul.bf16.vlgmr.msrb.gmra.mxu2 %v14012_v9  ;;  %7361 = vmatpush.bf16.msrb.mxu1 %v10265_v62  ;;  %v12459_v9 = vld [vmem:[%s19129_s1 + $0x126c] sm:$0xf]  ;;  %v10198_v51 = vld [vmem:[%s19129_s1 + $0x1238] sm:$0xf0]  ;;  %v10489_v45 = vor.u32 %v12523_v40, %v10486_v25  ;;  %v10601_v15 = vor.u32 %v12551_v42, %v10598_v43 }
 0x379   :  { %7385 = vmatpush.bf16.msra.mxu2 %v10553_v56  ;;  %7328 = vmatmul.bf16.vlgmr.msrb.gmra.mxu3 %v13781_v49  ;;  %v10249_v49 = vor.u32 %v12463_v35, %v10246_v16  ;;  %v10233_v36 = vor.u32 %v12459_v9, %v10230_v34  ;;  %v10342_v56 = vld [vmem:[%s19129_s1 + $0x1358] sm:$0xf0]  ;;  %v12547_v47 = vld [vmem:[%s19129_s1 + $0x152c] sm:$0xf] }
 0x37a   :  { %7372 = vmatpush.bf16.msra.mxu3 %v10425_v2  ;;  %v12487_v2 = vld [vmem:[%s19129_s1 + $0x134c] sm:$0xf]  ;;  %v10470_v12 = vld [vmem:[%s19129_s1 + $0x1458] sm:$0xf0] }
 0x37b   :  { %7399 = vmatpush.bf16.msra.mxu0 %v10665_v1  ;;  %v999_v1 = vperm.slane %v12888_v57, 3  ;;  %v10582_v61 = vld [vmem:[%s19129_s1 + $0x1538] sm:$0xf0]  ;;  %v10345_v35 = vor.u32 %v12487_v2, %v10342_v56  ;;  %v12447_v16 = vld [vmem:[%s19129_s1 + $0x120c] sm:$0xf]  ;;  %v7134_v17 = vpop.f32.mrf.mxu2  ;;  %v10473_v59 = vor.u32 %v12519_v4, %v10470_v12 }
 0x37c   :  { %7362 = vmatpush.bf16.msrb.mxu1 %v10249_v49  ;;  %v7108_v21 = vpop.f32.mrf.mxu3  ;;  %v10326_v26 = vld [vmem:[%s19129_s1 + $0x1338] sm:$0xf0]  ;;  %v12515_v5 = vld [vmem:[%s19129_s1 + $0x142c] sm:$0xf]  ;;  %v10585_v46 = vor.u32 %v12547_v47, %v10582_v61 }
 0x37d   :  { %7386 = vmatpush.bf16.msra.mxu2 %v10537_v58  ;;  %v7109_v62 = vadd.f32 %v7108_v21, %v7096_v53  ;;  %v10182_v58 = vld [vmem:[%s19129_s1 + $0x1218] sm:$0xf0]  ;;  %v7135_v10 = vadd.f32 %v7134_v17, %v999_v1  ;;  %v12603_v9 = vld [vmem:[%s19129_s1 + $0x16ec] sm:$0xf] }
 0x37e   :  { %7373 = vmatpush.bf16.msra.mxu3 %v10409_v3  ;;  %v10201_v3 = vor.u32 %v12451_v50, %v10198_v51  ;;  %v7149_v31 = vpop.f32.mrf.mxu0  ;;  %v10806_v34 = vld [vmem:[%s19129_s1 + $0x16f8] sm:$0xf0]  ;;  %v12543_v53 = vld [vmem:[%s19129_s1 + $0x150c] sm:$0xf]  ;;  %v10185_v14 = vor.u32 %v12447_v16, %v10182_v58 }
 0x37f   :  { %7400 = vmatpush.bf16.msra.mxu0 %v10649_v23  ;;  %v12483_v23 = vld [vmem:[%s19129_s1 + $0x132c] sm:$0xf]  ;;  %v18591_v49 = vadd.f32 %v18418_v33, %v7109_v62  ;;  %v10566_v33 = vld [vmem:[%s19129_s1 + $0x1518] sm:$0xf0]  ;;  %v10809_v8 = vor.u32 %v12603_v9, %v10806_v34 }
 0x380   :  { %7363 = vmatpush.bf16.msrb.mxu1 %v10233_v36  ;;  %v10329_v29 = vor.u32 %v12483_v23, %v10326_v26  ;;  %v12479_v30 = vld [vmem:[%s19129_s1 + $0x130c] sm:$0xf]  ;;  %v11190_v63 = vld [vmem:[%s19129_s1 + $0x19f8] sm:$0xf0]  ;;  %v10569_v38 = vor.u32 %v12543_v53, %v10566_v33 }
 0x381   :  { %7387 = vmatpush.bf16.msra.mxu2 %v10521_v20  ;;  %v18608_v20 = vadd.f32 %v7147_v27, %v7135_v10  ;;  %v10310_v36 = vld [vmem:[%s19129_s1 + $0x1318] sm:$0xf0]  ;;  %v12599_v41 = vld [vmem:[%s19129_s1 + $0x16cc] sm:$0xf] }
 0x382   :  { %7374 = vmatpush.bf16.msra.mxu3 %v10393_v48  ;;  %v10454_v48 = vld [vmem:[%s19129_s1 + $0x1438] sm:$0xf0]  ;;  %v12667_v40 = vld [vmem:[%s19129_s1 + $0x18ec] sm:$0xf]  ;;  %v10313_v43 = vor.u32 %v12479_v30, %v10310_v36 }
 0x383   :  { %7401 = vmatpush.bf16.msra.mxu0 %v10633_v32  ;;  %v12699_v32 = vld [vmem:[%s19129_s1 + $0x19ec] sm:$0xf]  ;;  %v10457_v39 = vor.u32 %v12515_v5, %v10454_v48  ;;  %v10438_v22 = vld [vmem:[%s19129_s1 + $0x1418] sm:$0xf0]  ;;  %v7136_v50 = vpop.f32.mrf.mxu2 }
 0x384   :  { %7364 = vmatpush.bf16.msrb.mxu1 %v10217_v55  ;;  %v10790_v27 = vld [vmem:[%s19129_s1 + $0x16d8] sm:$0xf0]  ;;  %v11193_v25 = vor.u32 %v12699_v32, %v11190_v63  ;;  %v7110_v42 = vpop.f32.mrf.mxu3  ;;  %v12695_v55 = vld [vmem:[%s19129_s1 + $0x19cc] sm:$0xf] }
 0x385   :  { %7388 = vmatpush.bf16.msra.mxu2 %v10505_v37  ;;  %v12635_v37 = vld [vmem:[%s19129_s1 + $0x17ec] sm:$0xf]  ;;  %v10934_v0 = vld [vmem:[%s19129_s1 + $0x17f8] sm:$0xf0]  ;;  %v10793_v2 = vor.u32 %v12599_v41, %v10790_v27 }
 0x386   :  { %7375 = vmatpush.bf16.msra.mxu3 %v10377_v54  ;;  %v12511_v54 = vld [vmem:[%s19129_s1 + $0x140c] sm:$0xf]  ;;  %v10937_v52 = vor.u32 %v12635_v37, %v10934_v0  ;;  %v10774_v4 = vld [vmem:[%s19129_s1 + $0x16b8] sm:$0xf0] }
 0x387   :  { %7402 = vmatpush.bf16.msra.mxu0 %v10617_v60  ;;  %v11062_v60 = vld [vmem:[%s19129_s1 + $0x18f8] sm:$0xf0]  ;;  %v10441_v51 = vor.u32 %v12511_v54, %v10438_v22  ;;  %v12595_v56 = vld [vmem:[%s19129_s1 + $0x16ac] sm:$0xf] }
 0x388   :  { %7365 = vmatpush.bf16.msrb.mxu1 %v10201_v3  ;;  %v10918_v57 = vld [vmem:[%s19129_s1 + $0x17d8] sm:$0xf0]  ;;  %v12663_v1 = vld [vmem:[%s19129_s1 + $0x18cc] sm:$0xf]  ;;  %v10777_v21 = vor.u32 %v12595_v56, %v10774_v4 }
 0x389   :  { %7389 = vmatpush.bf16.msra.mxu2 %v10489_v45  ;;  %v11065_v45 = vor.u32 %v12667_v40, %v11062_v60  ;;  %v11046_v12 = vld [vmem:[%s19129_s1 + $0x18d8] sm:$0xf0]  ;;  %v12691_v61 = vld [vmem:[%s19129_s1 + $0x19ac] sm:$0xf] }
 0x38a   :  { %7376 = vmatpush.bf16.msra.mxu3 %v10361_v44  ;;  %v11174_v44 = vld [vmem:[%s19129_s1 + $0x19d8] sm:$0xf0]  ;;  %v11049_v3 = vor.u32 %v12663_v1, %v11046_v12  ;;  %v12627_v58 = vld [vmem:[%s19129_s1 + $0x17ac] sm:$0xf] }
 0x38b   :  { %7403 = vmatpush.bf16.msra.mxu0 %v10601_v15  ;;  %v12631_v15 = vld [vmem:[%s19129_s1 + $0x17cc] sm:$0xf]  ;;  %v11177_v47 = vor.u32 %v12695_v55, %v11174_v44  ;;  %v10758_v16 = vld [vmem:[%s19129_s1 + $0x1698] sm:$0xf0] }
 0x38c   :  { %7366 = vmatpush.bf16.msrb.mxu1 %v10185_v14  ;;  %v10921_v62 = vor.u32 %v12631_v15, %v10918_v57  ;;  %v10902_v17 = vld [vmem:[%s19129_s1 + $0x17b8] sm:$0xf0]  ;;  %v12659_v31 = vld [vmem:[%s19129_s1 + $0x18ac] sm:$0xf]  ;;  %v7160_v9 = vpop.f32.mrf.mxu1 }
 0x38d   :  { %7390 = vmatpush.bf16.msra.mxu2 %v10473_v59  ;;  %v11030_v59 = vld [vmem:[%s19129_s1 + $0x18b8] sm:$0xf0]  ;;  %v12623_v48 = vld [vmem:[%s19129_s1 + $0x178c] sm:$0xf] }
 0x38e   :  { %7377 = vmatpush.bf16.msra.mxu3 %v10345_v35  ;;  %v12591_v35 = vld [vmem:[%s19129_s1 + $0x168c] sm:$0xf]  ;;  %v11142_v26 = vld [vmem:[%s19129_s1 + $0x1998] sm:$0xf0]  ;;  %v11033_v10 = vor.u32 %v12659_v31, %v11030_v59 }
 0x38f   :  { %7404 = vmatpush.bf16.msra.mxu0 %v10585_v46  ;;  %7367 = vmatmul.bf16.vlgmr.msrb.gmra.mxu1 %v14020_v13  ;;  %v11158_v13 = vld [vmem:[%s19129_s1 + $0x19b8] sm:$0xf0]  ;;  %v10761_v5 = vor.u32 %v12591_v35, %v10758_v16  ;;  %v10905_v46 = vor.u32 %v12627_v58, %v10902_v17  ;;  %v12655_v53 = vld [vmem:[%s19129_s1 + $0x188c] sm:$0xf] }
 0x390   :  { %7411 = vmatpush.bf16.msra.mxu1 %v10809_v8  ;;  %v11161_v23 = vor.u32 %v12691_v61, %v11158_v13  ;;  %v10886_v34 = vld [vmem:[%s19129_s1 + $0x1798] sm:$0xf0]  ;;  %v12683_v30 = vld [vmem:[%s19129_s1 + $0x196c] sm:$0xf] }
 0x391   :  { %7391 = vmatpush.bf16.msra.mxu2 %v10457_v39  ;;  %v11014_v33 = vld [vmem:[%s19129_s1 + $0x1898] sm:$0xf0]  ;;  %v10889_v39 = vor.u32 %v12623_v48, %v10886_v34  ;;  %v12583_v36 = vld [vmem:[%s19129_s1 + $0x164c] sm:$0xf] }
 0x392   :  { %7378 = vmatpush.bf16.msra.mxu3 %v10329_v29  ;;  %v7161_v29 = vadd.f32 %v7160_v9, %v18608_v20  ;;  %v11126_v32 = vld [vmem:[%s19129_s1 + $0x1978] sm:$0xf0]  ;;  %v11017_v8 = vor.u32 %v12655_v53, %v11014_v33  ;;  %v12619_v54 = vld [vmem:[%s19129_s1 + $0x176c] sm:$0xf] }
 0x393   :  { %7405 = vmatpush.bf16.msra.mxu0 %v10569_v38  ;;  %v10726_v20 = vld [vmem:[%s19129_s1 + $0x1658] sm:$0xf0]  ;;  %v12651_v41 = vld [vmem:[%s19129_s1 + $0x186c] sm:$0xf]  ;;  %v11129_v37 = vor.u32 %v12683_v30, %v11126_v32  ;;  %v7199_v38 = vpop.f32.mrf.mxu0 }
 0x394   :  { %7412 = vmatpush.bf16.msra.mxu1 %v10793_v2  ;;  %v10870_v22 = vld [vmem:[%s19129_s1 + $0x1778] sm:$0xf0]  ;;  %v12679_v0 = vld [vmem:[%s19129_s1 + $0x194c] sm:$0xf]  ;;  %v10729_v60 = vor.u32 %v12583_v36, %v10726_v20  ;;  %v7162_v50 = vpop.f32.mrf.mxu1 }
 0x395   :  { %7392 = vmatpush.bf16.msra.mxu2 %v10441_v51  ;;  %v10998_v27 = vld [vmem:[%s19129_s1 + $0x1878] sm:$0xf0]  ;;  %v12615_v44 = vld [vmem:[%s19129_s1 + $0x174c] sm:$0xf] }
 0x396   :  { %7379 = vmatpush.bf16.msra.mxu3 %v10313_v43  ;;  %7406 = vmatmul.bf16.vlgmr.msra.gmra.mxu0 %v14193_v11  ;;  %v10742_v11 = vld [vmem:[%s19129_s1 + $0x1678] sm:$0xf0]  ;;  %v11001_v42 = vor.u32 %v12651_v41, %v10998_v27  ;;  %v12579_v43 = vld [vmem:[%s19129_s1 + $0x162c] sm:$0xf] }
 0x397   :  { %7450 = vmatpush.bf16.msrb.mxu0 %v11193_v25  ;;  %v11110_v40 = vld [vmem:[%s19129_s1 + $0x1958] sm:$0xf0]  ;;  %v10873_v25 = vor.u32 %v12619_v54, %v10870_v22  ;;  %v12647_v2 = vld [vmem:[%s19129_s1 + $0x184c] sm:$0xf] }
 0x398   :  { %7393 = vmatmul.bf16.vlgmr.msra.gmra.mxu2 %v14189_v6  ;;  %7413 = vmatpush.bf16.msra.mxu1 %v10777_v21  ;;  %v12587_v6 = vld [vmem:[%s19129_s1 + $0x166c] sm:$0xf]  ;;  %v10710_v55 = vld [vmem:[%s19129_s1 + $0x1638] sm:$0xf0] }
 0x399   :  { %7437 = vmatpush.bf16.msrb.mxu2 %v11065_v45  ;;  %7380 = vmatmul.bf16.vlgmr.msra.gmra.mxu3 %v14024_v18  ;;  %v12687_v18 = vld [vmem:[%s19129_s1 + $0x198c] sm:$0xf]  ;;  %v10745_v63 = vor.u32 %v12587_v6, %v10742_v11  ;;  %v10854_v51 = vld [vmem:[%s19129_s1 + $0x1758] sm:$0xf0]  ;;  %v11113_v45 = vor.u32 %v12679_v0, %v11110_v40  ;;  %v10713_v57 = vor.u32 %v12579_v43, %v10710_v55 }
 0x39a   :  { %7424 = vmatpush.bf16.msrb.mxu3 %v10937_v52  ;;  %v11145_v14 = vor.u32 %v12687_v18, %v11142_v26  ;;  %v10982_v52 = vld [vmem:[%s19129_s1 + $0x1858] sm:$0xf0]  ;;  %v12675_v4 = vld [vmem:[%s19129_s1 + $0x192c] sm:$0xf]  ;;  %v10857_v61 = vor.u32 %v12615_v44, %v10854_v51 }
 0x39b   :  { %7451 = vmatpush.bf16.msrb.mxu0 %v11177_v47  ;;  %v11094_v15 = vld [vmem:[%s19129_s1 + $0x1938] sm:$0xf0]  ;;  %v12575_v12 = vld [vmem:[%s19129_s1 + $0x160c] sm:$0xf]  ;;  %v7186_v47 = vpop.f32.mrf.mxu2  ;;  %v10985_v13 = vor.u32 %v12647_v2, %v10982_v52  ;;  %v7201_v59 = vpop.f32.mrf.mxu0 }
 0x39c   :  { %7414 = vmatpush.bf16.msra.mxu1 %v10761_v5  ;;  %v7173_v56 = vpop.f32.mrf.mxu3  ;;  %v10694_v21 = vld [vmem:[%s19129_s1 + $0x1618] sm:$0xf0]  ;;  %v12643_v35 = vld [vmem:[%s19129_s1 + $0x182c] sm:$0xf]  ;;  %v11097_v31 = vor.u32 %v12675_v4, %v11094_v15 }
 0x39d   :  { %7438 = vmatpush.bf16.msrb.mxu2 %v11049_v3  ;;  %v7174_v1 = vadd.f32 %v7173_v56, %v7161_v29  ;;  %v10838_v3 = vld [vmem:[%s19129_s1 + $0x1738] sm:$0xf0]  ;;  %v12731_v58 = vld [vmem:[%s19129_s1 + $0x1aec] sm:$0xf]  ;;  %v10697_v5 = vor.u32 %v12575_v12, %v10694_v21 }
 0x39e   :  { %7425 = vmatpush.bf16.msrb.mxu3 %v10921_v62  ;;  %v12611_v62 = vld [vmem:[%s19129_s1 + $0x172c] sm:$0xf]  ;;  %v10966_v16 = vld [vmem:[%s19129_s1 + $0x1838] sm:$0xf0] }
 0x39f   :  { %7452 = vmatpush.bf16.msrb.mxu0 %v11161_v23  ;;  %v7187_v17 = vadd.f32 %v7186_v47, %v7174_v1  ;;  %v11318_v23 = vld [vmem:[%s19129_s1 + $0x1af8] sm:$0xf0]  ;;  %v12671_v18 = vld [vmem:[%s19129_s1 + $0x190c] sm:$0xf]  ;;  %v10841_v11 = vor.u32 %v12611_v62, %v10838_v3  ;;  %v10969_v48 = vor.u32 %v12643_v35, %v10966_v16 }
 0x3a0   :  { %7415 = vmatpush.bf16.msra.mxu1 %v10745_v63  ;;  %v11078_v26 = vld [vmem:[%s19129_s1 + $0x1918] sm:$0xf0]  ;;  %v12607_v9 = vld [vmem:[%s19129_s1 + $0x170c] sm:$0xf]  ;;  %v11321_v33 = vor.u32 %v12731_v58, %v11318_v23 }
 0x3a1   :  { %7439 = vmatpush.bf16.msrb.mxu2 %v11033_v10  ;;  %v12827_v10 = vld [vmem:[%s19129_s1 + $0x1dec] sm:$0xf]  ;;  %v11702_v6 = vld [vmem:[%s19129_s1 + $0x1df8] sm:$0xf0]  ;;  %v11081_v32 = vor.u32 %v12671_v18, %v11078_v26 }
 0x3a2   :  { %7426 = vmatpush.bf16.msrb.mxu3 %v10905_v46  ;;  %v18807_v46 = vadd.f32 %v7199_v38, %v7187_v17  ;;  %v10822_v34 = vld [vmem:[%s19129_s1 + $0x1718] sm:$0xf0]  ;;  %v12639_v53 = vld [vmem:[%s19129_s1 + $0x180c] sm:$0xf]  ;;  %v11705_v36 = vor.u32 %v12827_v10, %v11702_v6 }
 0x3a3   :  { %7453 = vmatpush.bf16.msrb.mxu0 %v11145_v14  ;;  %v10950_v14 = vld [vmem:[%s19129_s1 + $0x1818] sm:$0xf0]  ;;  %v12727_v29 = vld [vmem:[%s19129_s1 + $0x1acc] sm:$0xf]  ;;  %v7188_v27 = vpop.f32.mrf.mxu2 }
 0x3a4   :  { %7416 = vmatpush.bf16.msra.mxu1 %v10729_v60  ;;  %v11302_v30 = vld [vmem:[%s19129_s1 + $0x1ad8] sm:$0xf0]  ;;  %v12763_v63 = vld [vmem:[%s19129_s1 + $0x1bec] sm:$0xf]  ;;  %v7175_v20 = vpop.f32.mrf.mxu3  ;;  %v10953_v38 = vor.u32 %v12639_v53, %v10950_v14 }
 0x3a5   :  { %7440 = vmatpush.bf16.msrb.mxu2 %v11017_v8  ;;  %v12795_v8 = vld [vmem:[%s19129_s1 + $0x1cec] sm:$0xf]  ;;  %v11574_v54 = vld [vmem:[%s19129_s1 + $0x1cf8] sm:$0xf0]  ;;  %v11305_v0 = vor.u32 %v12727_v29, %v11302_v30 }
 0x3a6   :  { %7427 = vmatpush.bf16.msrb.mxu3 %v10889_v39  ;;  %v11446_v39 = vld [vmem:[%s19129_s1 + $0x1bf8] sm:$0xf0]  ;;  %v12823_v22 = vld [vmem:[%s19129_s1 + $0x1dcc] sm:$0xf] }
 0x3a7   :  { %7454 = vmatpush.bf16.msrb.mxu0 %v11129_v37  ;;  %v11686_v41 = vld [vmem:[%s19129_s1 + $0x1dd8] sm:$0xf0]  ;;  %v10825_v37 = vor.u32 %v12607_v9, %v10822_v34  ;;  %v11449_v40 = vor.u32 %v12763_v63, %v11446_v39  ;;  %v12723_v60 = vld [vmem:[%s19129_s1 + $0x1aac] sm:$0xf] }
 0x3a8   :  { %7417 = vmatpush.bf16.msra.mxu1 %v10713_v57  ;;  %v12759_v43 = vld [vmem:[%s19129_s1 + $0x1bcc] sm:$0xf]  ;;  %v11430_v55 = vld [vmem:[%s19129_s1 + $0x1bd8] sm:$0xf0]  ;;  %v11689_v50 = vor.u32 %v12823_v22, %v11686_v41 }
 0x3a9   :  { %7441 = vmatpush.bf16.msrb.mxu2 %v11001_v42  ;;  %v11577_v42 = vor.u32 %v12795_v8, %v11574_v54  ;;  %v12791_v44 = vld [vmem:[%s19129_s1 + $0x1ccc] sm:$0xf]  ;;  %v11558_v51 = vld [vmem:[%s19129_s1 + $0x1cd8] sm:$0xf0] }
 0x3aa   :  { %7428 = vmatpush.bf16.msrb.mxu3 %v10873_v25  ;;  %v11286_v25 = vld [vmem:[%s19129_s1 + $0x1ab8] sm:$0xf0]  ;;  %v12719_v56 = vld [vmem:[%s19129_s1 + $0x1a8c] sm:$0xf]  ;;  %v11561_v15 = vor.u32 %v12791_v44, %v11558_v51 }
 0x3ab   :  { %7455 = vmatpush.bf16.msrb.mxu0 %v11113_v45  ;;  %v11670_v2 = vld [vmem:[%s19129_s1 + $0x1db8] sm:$0xf0]  ;;  %v11289_v52 = vor.u32 %v12723_v60, %v11286_v25  ;;  %v11433_v45 = vor.u32 %v12759_v43, %v11430_v55  ;;  %v12755_v57 = vld [vmem:[%s19129_s1 + $0x1bac] sm:$0xf] }
 0x3ac   :  { %7418 = vmatpush.bf16.msra.mxu1 %v10697_v5  ;;  %v11270_v4 = vld [vmem:[%s19129_s1 + $0x1a98] sm:$0xf0]  ;;  %v12787_v12 = vld [vmem:[%s19129_s1 + $0x1cac] sm:$0xf]  ;;  %v7212_v35 = vpop.f32.mrf.mxu1 }
 0x3ad   :  { %7442 = vmatpush.bf16.msrb.mxu2 %v10985_v13  ;;  %v11414_v1 = vld [vmem:[%s19129_s1 + $0x1bb8] sm:$0xf0]  ;;  %v12815_v21 = vld [vmem:[%s19129_s1 + $0x1d8c] sm:$0xf] }
 0x3ae   :  { %7429 = vmatpush.bf16.msrb.mxu3 %v10857_v61  ;;  %v12889_v61 = vld [vmem:[#allocation1] sm:$0xff]  ;;  %v11542_v13 = vld [vmem:[%s19129_s1 + $0x1cb8] sm:$0xf0]  ;;  %v12890_v3 = vld [vmem:[#allocation1 + $0x9] sm:$0xff]  ;;  %v11417_v16 = vor.u32 %v12755_v57, %v11414_v1 }
 0x3af   :  { %7456 = vmatpush.bf16.msrb.mxu0 %v11097_v31  ;;  %7419 = vmatmul.bf16.vlgmr.msra.gmra.mxu1 %v14191_v7  ;;  %v12819_v7 = vld [vmem:[%s19129_s1 + $0x1dac] sm:$0xf]  ;;  %v11654_v62 = vld [vmem:[%s19129_s1 + $0x1d98] sm:$0xf0]  ;;  %v7213_v31 = vadd.f32 %v7212_v35, %v18807_v46  ;;  %v11545_v59 = vor.u32 %v12787_v12, %v11542_v13 }
 0x3b0   :  { %7463 = vmatpush.bf16.msrb.mxu1 %v11321_v33  ;;  %v11673_v47 = vor.u32 %v12819_v7, %v11670_v2  ;;  %v12715_v58 = vld [vmem:[%s19129_s1 + $0x1a6c] sm:$0xf]  ;;  %v11254_v17 = vld [vmem:[%s19129_s1 + $0x1a78] sm:$0xf0]  ;;  %v11657_v5 = vor.u32 %v12815_v21, %v11654_v62 }
 0x3b1   :  { %7443 = vmatpush.bf16.msrb.mxu2 %v10969_v48  ;;  %v12751_v23 = vld [vmem:[%s19129_s1 + $0x1b8c] sm:$0xf]  ;;  %v11398_v18 = vld [vmem:[%s19129_s1 + $0x1b98] sm:$0xf0] }
 0x3b2   :  { %7430 = vmatpush.bf16.msrb.mxu3 %v10841_v11  ;;  %v12783_v26 = vld [vmem:[%s19129_s1 + $0x1c8c] sm:$0xf]  ;;  %v11526_v10 = vld [vmem:[%s19129_s1 + $0x1c98] sm:$0xf0]  ;;  %v11257_v11 = vor.u32 %v12715_v58, %v11254_v17  ;;  %v11401_v48 = vor.u32 %v12751_v23, %v11398_v18 }
 0x3b3   :  { %7457 = vmatpush.bf16.msrb.mxu0 %v11081_v32  ;;  %v12811_v46 = vld [vmem:[%s19129_s1 + $0x1d6c] sm:$0xf]  ;;  %v11638_v6 = vld [vmem:[%s19129_s1 + $0x1d78] sm:$0xf0]  ;;  %v11529_v53 = vor.u32 %v12783_v26, %v11526_v10  ;;  %v7251_v63 = vpop.f32.mrf.mxu0 }
 0x3b4   :  { %7464 = vmatpush.bf16.msrb.mxu1 %v11305_v0  ;;  %v12711_v9 = vld [vmem:[%s19129_s1 + $0x1a4c] sm:$0xf]  ;;  %v11238_v34 = vld [vmem:[%s19129_s1 + $0x1a58] sm:$0xf0]  ;;  %v11641_v30 = vor.u32 %v12811_v46, %v11638_v6  ;;  %v7214_v41 = vpop.f32.mrf.mxu1 }
 0x3b5   :  { %7444 = vmatpush.bf16.msrb.mxu2 %v10953_v38  ;;  %v12747_v33 = vld [vmem:[%s19129_s1 + $0x1b6c] sm:$0xf]  ;;  %v11382_v14 = vld [vmem:[%s19129_s1 + $0x1b78] sm:$0xf0]  ;;  %v12850_v41 = vld [vmem:[%s19131_s3 + $0x60] sm:$0xff] }
 0x3b6   :  { %7431 = vmatpush.bf16.msrb.mxu3 %v10825_v37  ;;  %7458 = vmatmul.bf16.vlgmr.msrb.gmra.mxu0 %v12890_v3  ;;  %v12779_v29 = vld [vmem:[%s19129_s1 + $0x1c6c] sm:$0xf]  ;;  %v11510_v32 = vld [vmem:[%s19129_s1 + $0x1c78] sm:$0xf0]  ;;  %v11385_v20 = vor.u32 %v12747_v33, %v11382_v14  ;;  %v12844_v33 = vld [vmem:[%s19131_s3 + $0x30] sm:$0xff] }
 0x3b7   :  { %7502 = vmatpush.bf16.msra.mxu0 %v11705_v36  ;;  %v12807_v39 = vld [vmem:[%s19129_s1 + $0x1d4c] sm:$0xf]  ;;  %v11622_v8 = vld [vmem:[%s19129_s1 + $0x1d58] sm:$0xf0]  ;;  %v11241_v36 = vor.u32 %v12711_v9, %v11238_v34  ;;  %v11513_v27 = vor.u32 %v12779_v29, %v11510_v32  ;;  %v12891_v34 = vld [vmem:[#allocation1 + $0x12] sm:$0xff] }
 0x3b8   :  { %7445 = vmatmul.bf16.vlgmr.msrb.gmra.mxu2 %v12889_v61  ;;  %7465 = vmatpush.bf16.msrb.mxu1 %v11289_v52  ;;  %v12707_v54 = vld [vmem:[%s19129_s1 + $0x1a2c] sm:$0xf]  ;;  %v11222_v22 = vld [vmem:[%s19129_s1 + $0x1a38] sm:$0xf0]  ;;  %v12852_v14 = vld [vmem:[%s19131_s3 + $0x70] sm:$0xff] }
 0x3b9   :  { %7489 = vmatpush.bf16.msra.mxu2 %v11577_v42  ;;  %7432 = vmatmul.bf16.vlgmr.msrb.gmra.mxu3 %v14195_v19  ;;  %v11273_v19 = vor.u32 %v12719_v56, %v11270_v4  ;;  %v12743_v37 = vld [vmem:[%s19129_s1 + $0x1b4c] sm:$0xf]  ;;  %v11366_v38 = vld [vmem:[%s19129_s1 + $0x1b58] sm:$0xf0]  ;;  %v12893_v32 = vld [vmem:[#allocation1 + $0x24] sm:$0xff] }
 0x3ba   :  { %7476 = vmatpush.bf16.msra.mxu3 %v11449_v40  ;;  %v12775_v0 = vld [vmem:[%s19129_s1 + $0x1c4c] sm:$0xf]  ;;  %v11625_v40 = vor.u32 %v12807_v39, %v11622_v8  ;;  %v11494_v60 = vld [vmem:[%s19129_s1 + $0x1c58] sm:$0xf0]  ;;  %v11369_v51 = vor.u32 %v12743_v37, %v11366_v38 }
 0x3bb   :  { %7503 = vmatpush.bf16.msra.mxu0 %v11689_v50  ;;  %v12803_v25 = vld [vmem:[%s19129_s1 + $0x1d2c] sm:$0xf]  ;;  %v11606_v42 = vld [vmem:[%s19129_s1 + $0x1d38] sm:$0xf0]  ;;  %v7238_v55 = vpop.f32.mrf.mxu2  ;;  %v11225_v50 = vor.u32 %v12707_v54, %v11222_v22  ;;  %v11497_v52 = vor.u32 %v12775_v0, %v11494_v60  ;;  %v7253_v61 = vpop.f32.mrf.mxu0  ;;  %v12842_v22 = vld [vmem:[%s19131_s3 + $0x20] sm:$0xff] }
 0x3bc   :  { %7466 = vmatpush.bf16.msrb.mxu1 %v11273_v19  ;;  %v7225_v43 = vpop.f32.mrf.mxu3  ;;  %v12703_v7 = vld [vmem:[%s19129_s1 + $0x1a0c] sm:$0xf]  ;;  %v11206_v2 = vld [vmem:[%s19129_s1 + $0x1a18] sm:$0xf0]  ;;  %v7529_v61 = vmax.f32 %v17045_v24, 0.0 }
 0x3bd   :  { %7490 = vmatpush.bf16.msra.mxu2 %v11561_v15  ;;  %v7226_v44 = vadd.f32 %v7225_v43, %v7213_v31  ;;  %v11350_v56 = vld [vmem:[%s19129_s1 + $0x1b38] sm:$0xf0]  ;;  %v12771_v4 = vld [vmem:[%s19129_s1 + $0x1c2c] sm:$0xf]  ;;  %v11609_v15 = vor.u32 %v12803_v25, %v11606_v42  ;;  %v11209_v3 = vor.u32 %v12703_v7, %v11206_v2  ;;  %v12856_v7 = vld [vmem:[%s19131_s3 + $0x90] sm:$0xff] }
 0x3be   :  { %7477 = vmatpush.bf16.msra.mxu3 %v11433_v45  ;;  %v12739_v45 = vld [vmem:[%s19129_s1 + $0x1b2c] sm:$0xf]  ;;  %v11478_v1 = vld [vmem:[%s19129_s1 + $0x1c38] sm:$0xf0] }
 0x3bf   :  { %7504 = vmatpush.bf16.msra.mxu0 %v11673_v47  ;;  %v7239_v57 = vadd.f32 %v7238_v55, %v7226_v44  ;;  %v12835_v12 = vld [vmem:[%s19129_s1 + $0x1e2c] sm:$0xf]  ;;  %v11734_v47 = vld [vmem:[%s19129_s1 + $0x1e38] sm:$0xf0]  ;;  %v11353_v35 = vor.u32 %v12739_v45, %v11350_v56  ;;  %v11481_v19 = vor.u32 %v12771_v4, %v11478_v1  ;;  %v12840_v44 = vld [vmem:[%s19131_s3 + $0x10] sm:$0xff] }
 0x3c0   :  { %7467 = vmatpush.bf16.msrb.mxu1 %v11257_v11  ;;  %v12799_v13 = vld [vmem:[%s19129_s1 + $0x1d0c] sm:$0xf]  ;;  %v11590_v21 = vld [vmem:[%s19129_s1 + $0x1d18] sm:$0xf0]  ;;  %v12838_v1 = vld [vmem:[%s19131_s3] sm:$0xff] }
 0x3c1   :  { %7491 = vmatpush.bf16.msra.mxu2 %v11545_v59  ;;  %v7252_v62 = vadd.f32 %v7251_v63, %v7239_v57  ;;  %v12735_v58 = vld [vmem:[%s19129_s1 + $0x1b0c] sm:$0xf]  ;;  %v11334_v17 = vld [vmem:[%s19129_s1 + $0x1b18] sm:$0xf0]  ;;  %v11593_v26 = vor.u32 %v12799_v13, %v11590_v21  ;;  %v12854_v13 = vld [vmem:[%s19131_s3 + $0x80] sm:$0xff]  ;;  %v7530_v21 = vmax.f32 %v18591_v49, 0.0 }
 0x3c2   :  { %7478 = vmatpush.bf16.msra.mxu3 %v11417_v16  ;;  %v11737_v16 = vor.u32 %v12835_v12, %v11734_v47  ;;  %v12767_v31 = vld [vmem:[%s19129_s1 + $0x1c0c] sm:$0xf]  ;;  %v11462_v59 = vld [vmem:[%s19129_s1 + $0x1c18] sm:$0xf0]  ;;  %v11337_v46 = vor.u32 %v12735_v58, %v11334_v17  ;;  %v12846_v12 = vld [vmem:[%s19131_s3 + $0x40] sm:$0xff]  ;;  %v7528_v47 = vmax.f32 %v15522_v28, 0.0 }
 0x3c3   :  { %7505 = vmatpush.bf16.msra.mxu0 %v11657_v5  ;;  %v12831_v23 = vld [vmem:[%s19129_s1 + $0x1e0c] sm:$0xf]  ;;  %v11718_v18 = vld [vmem:[%s19129_s1 + $0x1e18] sm:$0xf0]  ;;  %v7240_v10 = vpop.f32.mrf.mxu2  ;;  %v11465_v6 = vor.u32 %v12767_v31, %v11462_v59 }
 0x3c4   :  { %7468 = vmatpush.bf16.msrb.mxu1 %v11241_v36  ;;  %v7227_v5 = vpop.f32.mrf.mxu3  ;;  %v11721_v11 = vor.u32 %v12831_v23, %v11718_v18  ;;  %v12853_v9 = vld [vmem:[%s19131_s3 + $0x78] sm:$0xff]  ;;  %v12894_v63 = vld [vmem:[#allocation1 + $0x2d] sm:$0xff] }
 0x3c5   :  { %7492 = vmatpush.bf16.msra.mxu2 %v11529_v53  ;;  %v12861_v53 = vld [vmem:[%s19131_s3 + $0xb8] sm:$0xff]  ;;  %v12843_v8 = vld [vmem:[%s19131_s3 + $0x28] sm:$0xff] }
 0x3c6   :  { %7479 = vmatpush.bf16.msra.mxu3 %v11401_v48  ;;  %v12845_v48 = vld [vmem:[%s19131_s3 + $0x38] sm:$0xff]  ;;  %v12851_v36 = vld [vmem:[%s19131_s3 + $0x68] sm:$0xff] }
 0x3c7   :  { %7506 = vmatpush.bf16.msra.mxu0 %v11641_v30  ;;  %v12892_v29 = vld [vmem:[#allocation1 + $0x1b] sm:$0xff]  ;;  %v12860_v30 = vld [vmem:[%s19131_s3 + $0xb0] sm:$0xff]  ;;  %v12859_v54 = vld [vmem:[%s19131_s3 + $0xa8] sm:$0xff] }
 0x3c8   :  { %7469 = vmatpush.bf16.msrb.mxu1 %v11225_v50  ;;  %v12841_v38 = vld [vmem:[%s19131_s3 + $0x18] sm:$0xff]  ;;  %v12848_v50 = vld [vmem:[%s19131_s3 + $0x50] sm:$0xff]  ;;  %v12839_v45 = vld [vmem:[%s19131_s3 + $0x8] sm:$0xff] }
 0x3c9   :  { %7493 = vmatpush.bf16.msra.mxu2 %v11513_v27  ;;  %v12858_v27 = vld [vmem:[%s19131_s3 + $0xa0] sm:$0xff]  ;;  %v12849_v0 = vld [vmem:[%s19131_s3 + $0x58] sm:$0xff]  ;;  %v12847_v56 = vld [vmem:[%s19131_s3 + $0x48] sm:$0xff] }
 0x3ca   :  { %7480 = vmatpush.bf16.msra.mxu3 %v11385_v20  ;;  %v12895_v60 = vld [vmem:[#allocation1 + $0x36] sm:$0xff]  ;;  %v12855_v4 = vld [vmem:[%s19131_s3 + $0x88] sm:$0xff] }
 0x3cb   :  { %7507 = vmatpush.bf16.msra.mxu0 %v11625_v40  ;;  %v12857_v25 = vld [vmem:[%s19131_s3 + $0x98] sm:$0xff] }
 0x3cc   :  { %7470 = vmatpush.bf16.msrb.mxu1 %v11209_v3  ;;  %v7264_v39 = vpop.f32.mrf.mxu1  ;;  %v7533_v3 = vpack.c.bf16 %v7529_v61, %v7529_v61 }
 0x3cd   :  { %7494 = vmatpush.bf16.msra.mxu2 %v11497_v52  ;;  %v7265_v20 = vadd.f32 %v7264_v39, %v7252_v62  ;;  %v7532_v62 = vpack.c.bf16 %v7528_v47, %v7528_v47 }
 0x3ce   :  { %7481 = vmatpush.bf16.msra.mxu3 %v11369_v51 }
 0x3cf   :  { %7508 = vmatpush.bf16.msra.mxu0 %v11609_v15  ;;  %7471 = vmatmul.bf16.vlgmr.msrb.gmra.mxu1 %v12891_v34  ;;  %v12868_v34 = vld [vmem:[%s19131_s3 + $0xf0] sm:$0xff] }
 0x3d0   :  { %7521 = vmatpush.bf16.msra.mxu1 %v11737_v16 }
 0x3d1   :  { %7495 = vmatpush.bf16.msra.mxu2 %v11481_v19 }
 0x3d2   :  { %7482 = vmatpush.bf16.msra.mxu3 %v11353_v35  ;;  %v7534_v35 = vpack.c.bf16 %v7530_v21, %v7530_v21 }
 0x3d3   :  { %7509 = vmatpush.bf16.msra.mxu0 %v11593_v26  ;;  %v7303_v37 = vpop.f32.mrf.mxu0 }
 0x3d4   :  { %7522 = vmatpush.bf16.msra.mxu1 %v11721_v11  ;;  %v7266_v40 = vpop.f32.mrf.mxu1 }
 0x3d5   :  { %7496 = vmatpush.bf16.msra.mxu2 %v11465_v6 }
 0x3d6   :  { %7483 = vmatpush.bf16.msra.mxu3 %v11337_v46  ;;  %7510 = vmatmul.bf16.vlgmr.msra.gmra.mxu0 %v12894_v63  ;;  %v12865_v63 = vld [vmem:[%s19131_s3 + $0xd8] sm:$0xff] }
 0x3d8   :  { %7809 = vmatpush.bf16.msrb.mxu1 %v12853_v9  ;;  %7497 = vmatmul.bf16.vlgmr.msra.gmra.mxu2 %v12893_v32  ;;  %v12869_v9 = vld [vmem:[%s19131_s3 + $0xf8] sm:$0xff] }
 0x3d9   :  { %7822 = vmatpush.bf16.msrb.mxu2 %v12861_v53  ;;  %7484 = vmatmul.bf16.vlgmr.msra.gmra.mxu3 %v12892_v29 }
 0x3da   :  { %7796 = vmatpush.bf16.msrb.mxu3 %v12845_v48  ;;  %7835 = vmatpush.bf16.msrb.mxu0 %v12869_v9 }
 0x3db   :  { %v7290_v55 = vpop.f32.mrf.mxu2  ;;  %v7305_v2 = vpop.f32.mrf.mxu0 }
 0x3dc   :  { %7810 = vmatpush.bf16.msrb.mxu1 %v12852_v14  ;;  %v7277_v42 = vpop.f32.mrf.mxu3  ;;  %v12867_v14 = vld [vmem:[%s19131_s3 + $0xe8] sm:$0xff] }
 0x3dd   :  { %7823 = vmatpush.bf16.msrb.mxu2 %v12860_v30  ;;  %v7278_v43 = vadd.f32 %v7277_v42, %v7265_v20  ;;  %v12866_v30 = vld [vmem:[%s19131_s3 + $0xe0] sm:$0xff] }
 0x3de   :  { %7797 = vmatpush.bf16.msrb.mxu3 %v12844_v33  ;;  %7836 = vmatpush.bf16.msrb.mxu0 %v12868_v34 }
 0x3df   :  { %11741 = vmatmul.msk.bf16.vlgmr.msra.gmra.mxu1 %vm5913_vm0, %v12895_v60  ;;  %v7291_v51 = vadd.f32 %v7290_v55, %v7278_v43 }
 0x3e0   :  { %7811 = vmatpush.bf16.msrb.mxu1 %v12851_v36 }
 0x3e1   :  { %7824 = vmatpush.bf16.msrb.mxu2 %v12859_v54  ;;  %v7304_v52 = vadd.f32 %v7303_v37, %v7291_v51  ;;  %v12862_v37 = vld [vmem:[%s19131_s3 + $0xc0] sm:$0xff] }
 0x3e2   :  { %7798 = vmatpush.bf16.msrb.mxu3 %v12843_v8  ;;  %7837 = vmatpush.bf16.msrb.mxu0 %v12867_v14  ;;  %v12864_v8 = vld [vmem:[%s19131_s3 + $0xd0] sm:$0xff] }
 0x3e3   :  { %v7292_v57 = vpop.f32.mrf.mxu2 }
 0x3e4   :  { %7812 = vmatpush.bf16.msrb.mxu1 %v12850_v41  ;;  %v7279_v15 = vpop.f32.mrf.mxu3 }
 0x3e5   :  { %7825 = vmatpush.bf16.msrb.mxu2 %v12858_v27 }
 0x3e6   :  { %7799 = vmatpush.bf16.msrb.mxu3 %v12842_v22  ;;  %7838 = vmatpush.bf16.msrb.mxu0 %v12866_v30  ;;  %v12863_v22 = vld [vmem:[%s19131_s3 + $0xc8] sm:$0xff] }
 0x3e8   :  { %7813 = vmatpush.bf16.msrb.mxu1 %v12849_v0 }
 0x3e9   :  { %7826 = vmatpush.bf16.msrb.mxu2 %v12857_v25 }
 0x3ea   :  { %7800 = vmatpush.bf16.msrb.mxu3 %v12841_v38  ;;  %7839 = vmatpush.bf16.msrb.mxu0 %v12865_v63 }
 0x3ec   :  { %7814 = vmatpush.bf16.msrb.mxu1 %v12848_v50  ;;  %v7316_v19 = vpop.f32.mrf.mxu1 }
 0x3ed   :  { %7827 = vmatpush.bf16.msrb.mxu2 %v12856_v7  ;;  %v7317_v28 = vadd.f32 %v7316_v19, %v7304_v52 }
 0x3ee   :  { %7801 = vmatpush.bf16.msrb.mxu3 %v12840_v44  ;;  %7840 = vmatpush.bf16.msrb.mxu0 %v12864_v8 }
 0x3f0   :  { %7815 = vmatpush.bf16.msrb.mxu1 %v12847_v56 }
 0x3f1   :  { %7828 = vmatpush.bf16.msrb.mxu2 %v12855_v4 }
 0x3f2   :  { %7802 = vmatpush.bf16.msrb.mxu3 %v12839_v45  ;;  %7841 = vmatpush.bf16.msrb.mxu0 %v12863_v22 }
 0x3f3   :  { %v7355_v16 = vpop.f32.mrf.mxu0 }
 0x3f4   :  { %7816 = vmatpush.bf16.msrb.mxu1 %v12846_v12  ;;  %v7318_v24 = vpop.f32.mrf.mxu1 }
 0x3f5   :  { %7829 = vmatpush.bf16.msrb.mxu2 %v12854_v13 }
 0x3f6   :  { %7803 = vmatpush.bf16.msrb.mxu3 %v12838_v1  ;;  %7842 = vmatpush.bf16.msrb.mxu0 %v12862_v37 }
 0x3f7   :  { %7817 = vmatmul.bf16.vlgmr.msrb.gmra.mxu1 %v7533_v3  ;;  %v12871_v3 = vld [vmem:[%s19132_s4] ss:$0 sm:$0xff] }
 0x3f8   :  { %7830 = vmatmul.bf16.vlgmr.msrb.gmra.mxu2 %v7534_v35 }
 0x3f9   :  { %7804 = vmatmul.bf16.vlgmr.msrb.gmra.mxu3 %v7532_v62 }
 0x3fb   :  { %v7342_v17 = vpop.f32.mrf.mxu2  ;;  %v7357_v23 = vpop.f32.mrf.mxu0 }
 0x3fc   :  { %v7329_v58 = vpop.f32.mrf.mxu3 }
 0x3fd   :  { %v7330_v31 = vadd.f32 %v7329_v58, %v7317_v28 }
 0x3ff   :  { %v7343_v59 = vadd.f32 %v7342_v17, %v7330_v31 }
 0x401   :  { %v7356_v18 = vadd.f32 %v7355_v16, %v7343_v59 }
 0x403   :  { %v7344_v26 = vpop.f32.mrf.mxu2 }
 0x404   :  { %v7331_v49 = vpop.f32.mrf.mxu3 }
 0x40c   :  { %v7368_v5 = vpop.f32.mrf.mxu1 }
 0x40d   :  { %v7369_v41 = vadd.f32 %v7368_v5, %v7356_v18 }
 0x413   :  { %v7407_v10 = vpop.f32.mrf.mxu0 }
 0x414   :  { %v7370_v46 = vpop.f32.mrf.mxu1 }
 0x41b   :  { %v7394_v11 = vpop.f32.mrf.mxu2  ;;  %v7409_v48 = vpop.f32.mrf.mxu0 }
 0x41c   :  { %v7381_v6 = vpop.f32.mrf.mxu3 }
 0x41d   :  { %v7382_v27 = vadd.f32 %v7381_v6, %v7369_v41 }
 0x41f   :  { %v7395_v40 = vadd.f32 %v7394_v11, %v7382_v27 }
 0x421   :  { %v7408_v60 = vadd.f32 %v7407_v10, %v7395_v40 }
 0x423   :  { %v7396_v33 = vpop.f32.mrf.mxu2 }
 0x424   :  { %v7383_v53 = vpop.f32.mrf.mxu3 }
 0x42c   :  { %v7420_v29 = vpop.f32.mrf.mxu1 }
 0x42d   :  { %v7421_v25 = vadd.f32 %v7420_v29, %v7408_v60 }
 0x433   :  { %v7459_v32 = vpop.f32.mrf.mxu0 }
 0x434   :  { %v7422_v39 = vpop.f32.mrf.mxu1 }
 0x43b   :  { %v7446_v20 = vpop.f32.mrf.mxu2  ;;  %v7461_v54 = vpop.f32.mrf.mxu0 }
 0x43c   :  { %v7433_v36 = vpop.f32.mrf.mxu3 }
 0x43d   :  { %v7434_v42 = vadd.f32 %v7433_v36, %v7421_v25 }
 0x43f   :  { %v7447_v55 = vadd.f32 %v7446_v20, %v7434_v42 }
 0x441   :  { %v7460_v50 = vadd.f32 %v7459_v32, %v7447_v55 }
 0x443   :  { %v7448_v0 = vpop.f32.mrf.mxu2 }
 0x444   :  { %v7435_v38 = vpop.f32.mrf.mxu3 }
 0x44c   :  { %v7472_v43 = vpop.f32.mrf.mxu1 }
 0x44d   :  { %v7473_v7 = vadd.f32 %v7472_v43, %v7460_v50 }
 0x453   :  { %v7511_v44 = vpop.f32.mrf.mxu0 }
 0x454   :  { %v7474_v51 = vpop.f32.mrf.mxu1 }
 0x45b   :  { %v7498_v45 = vpop.f32.mrf.mxu2  ;;  %v7513_v4 = vpop.f32.mrf.mxu0 }
 0x45c   :  { %v7485_v2 = vpop.f32.mrf.mxu3  ;;  %v7524_v57 = vpop.f32.mrf.mxu1 }
 0x45d   :  { %v7486_v52 = vadd.f32 %v7485_v2, %v7473_v7 }
 0x45f   :  { %v7499_v56 = vadd.f32 %v7498_v45, %v7486_v52 }
 0x461   :  { %v7512_v15 = vadd.f32 %v7511_v44, %v7499_v56 }
 0x463   :  { %v7525_v1 = vadd.f32 %v7524_v57, %v7512_v15  ;;  %v7500_v61 = vpop.f32.mrf.mxu2 }
 0x464   :  { %v7487_v12 = vpop.f32.mrf.mxu3  ;;  %v7526_v21 = vpop.f32.mrf.mxu1 }
 0x465   :  { %v7531_v47 = vmax.f32 %v7525_v1, 0.0 }
 0x467   :  { %v7535_v13 = vpack.c.bf16 %v7531_v47, %v7531_v47 }
 0x469   :  { %7843 = vmatmul.bf16.vlgmr.msrb.gmra.mxu0 %v7535_v13 }
 0x474   :  { %v7818_v62 = vpop.f32.mrf.mxu1 }
 0x47b   :  { %v7831_v28 = vpop.f32.mrf.mxu2 }
 0x47c   :  { %v7805_v35 = vpop.f32.mrf.mxu3  ;;  %v7820_v16 = vpop.f32.mrf.mxu1 }
 0x47d   :  { %v7806_v19 = vadd.f32 %v12871_v3, %v7805_v35 }
 0x47f   :  { %v7819_v24 = vadd.f32 %v7818_v62, %v7806_v19 }
 0x481   :  { %v7832_v58 = vadd.f32 %v7831_v28, %v7819_v24 }
 0x483   :  { %v7833_v31 = vpop.f32.mrf.mxu2 }
 0x484   :  { %v7807_v17 = vpop.f32.mrf.mxu3 }
 0x4e6   :  { %v7844_v59 = vpop.f32.mrf.mxu0 }
 0x4e7   :  { %v7845_v23 = vadd.f32 %v7844_v59, %v7832_v58 }
 0x4e9   :  { %7849 = vst.msk [vmem:[#allocation2] sm:$0x3] %vm7848_vm1, %v7845_v23 }
 0x4ea   :  { %7860 = dma.vmem_to_hbm [thread:$0]  %s7856_s2, 32, %s7858_s11, [#allocation3]  }
 0x4ee   :  { %v7846_v18 = vpop.f32.mrf.mxu0 }
 0x4ef   :  { %12920 = dma.done.wait [#allocation3], 32  }
 0x4f0   :  { %12921 = vsyncadd [#allocation3], 4294967264 }
 0x4f1   :  { %7865 = vsyncpa [#allocation3], 1 }

</bundles_post_ra>
